<compile_context>
chip_gen: v7x
topology: tpu7x:2x2x1
jax: 0.10.0
libtpu: 0.0.40
codegen_flags: <defaults>
</compile_context>

<pallas_src>
import math

import jax
import jax.numpy as jnp
from jax.experimental import pallas as pl
from jax.experimental.pallas import tpu as pltpu


def _round_up(x, m):
    return ((x + m - 1) // m) * m


# ----------------------------------------------------------------------------
# Pallas hot path: tiled matmul with fused bias + ReLU (accumulate over K axis)
# Grid: (M tiles, K tiles); N is a single resident block (Cout <= 512).
# ----------------------------------------------------------------------------
def _matmul_bias_relu_kernel(a_ref, b_ref, bias_ref, o_ref, acc_ref):
    k = pl.program_id(1)

    @pl.when(k == 0)
    def _():
        acc_ref[...] = jnp.zeros_like(acc_ref)

    acc_ref[...] += jnp.dot(a_ref[...], b_ref[...],
                            preferred_element_type=jnp.float32)

    @pl.when(k == pl.num_programs(1) - 1)
    def _():
        o_ref[...] = jnp.maximum(acc_ref[...] + bias_ref[...], 0.0).astype(o_ref.dtype)


def matmul_bias_relu(a, b, bias, *, out_dtype=jnp.bfloat16):
    """relu(a @ b + bias).  a: (M, K), b: (K, N), bias: (N,) -> (M, N) in out_dtype.

    Inputs are cast to bf16 for the MXU; accumulation stays f32 in VMEM."""
    M, K = a.shape
    K2, N = b.shape
    assert K == K2 and bias.shape == (N,)

    # --- tile selection -------------------------------------------------------
    if M >= 256:
        tm = 512 if M >= 2048 else 256
        Mp = _round_up(M, tm)
    else:
        tm = Mp = _round_up(max(M, 8), 16)

    if _round_up(K, 128) <= 2304:
        tk, Kp = K, K          # single K step; full-dim blocks need no padding
    else:
        tk = 512
        Kp = _round_up(K, tk)

    a_p = a.astype(jnp.bfloat16)
    b_p = b.astype(jnp.bfloat16)
    if Mp != M or Kp != K:
        a_p = jnp.pad(a_p, ((0, Mp - M), (0, Kp - K)))
    if Kp != K:
        b_p = jnp.pad(b_p, ((0, Kp - K), (0, 0)))
    bias_2d = bias.astype(jnp.float32).reshape(1, N)

    grid = (Mp // tm, Kp // tk)
    flops = 2 * Mp * N * Kp
    bytes_accessed = 2 * (Mp * Kp + (Mp // tm) * Kp * N + Mp * N) + 4 * N

    out = pl.pallas_call(
        _matmul_bias_relu_kernel,
        out_shape=jax.ShapeDtypeStruct((Mp, N), out_dtype),
        grid_spec=pltpu.PrefetchScalarGridSpec(
            num_scalar_prefetch=0,
            grid=grid,
            in_specs=[
                pl.BlockSpec((tm, tk), lambda i, k: (i, k)),
                pl.BlockSpec((tk, N), lambda i, k: (k, 0)),   # full-N resident weights
                pl.BlockSpec((1, N), lambda i, k: (0, 0)),
            ],
            out_specs=pl.BlockSpec((tm, N), lambda i, k: (i, 0)),
            scratch_shapes=[pltpu.VMEM((tm, N), jnp.float32)],
        ),
        compiler_params=pltpu.CompilerParams(
            dimension_semantics=("parallel", "arbitrary"),
            vmem_limit_bytes=32 * 1024 * 1024,
        ),
        cost_estimate=pl.CostEstimate(flops=flops, transcendentals=0,
                                      bytes_accessed=bytes_accessed),
    )(a_p, b_p, bias_2d)

    if Mp != M:
        out = out[:M]
    return out


# ----------------------------------------------------------------------------
# Conv / ConvTranspose lowering (channel-last im2col glue; matmul in Pallas)
# ----------------------------------------------------------------------------
def conv2d_relu(x, w, b, *, stride, padding, dilation=1):
    """relu(conv2d(x, w) + b).  x: (B, H, W, Cin) NHWC, w: (Cout, Cin, kh, kw).
    `padding` is ((top, bottom), (left, right))."""
    B, H, W, Cin = x.shape
    Cout, _, kh, kw = w.shape
    (pt, pb), (plf, prt) = padding
    x_p = jnp.pad(x, ((0, 0), (pt, pb), (plf, prt), (0, 0)))
    Hp, Wp = H + pt + pb, W + plf + prt
    Hout = (Hp - dilation * (kh - 1) - 1) // stride + 1
    Wout = (Wp - dilation * (kw - 1) - 1) // stride + 1

    taps = []
    for di in range(kh):
        r0 = di * dilation
        for dj in range(kw):
            c0 = dj * dilation
            taps.append(x_p[:,
                            r0:r0 + (Hout - 1) * stride + 1:stride,
                            c0:c0 + (Wout - 1) * stride + 1:stride, :])
    # (B, Hout, Wout, kh*kw, Cin) -> (M, kh*kw*Cin); channels stay in lane position.
    patches = jnp.stack(taps, axis=3).reshape(B * Hout * Wout, kh * kw * Cin)
    # weight -> (kh, kw, Cin, Cout) -> (kh*kw*Cin, Cout) to match patch K order.
    w_mat = w.transpose(2, 3, 1, 0).reshape(kh * kw * Cin, Cout)

    out = matmul_bias_relu(patches, w_mat, b)            # Pallas MXU hot path
    return out.reshape(B, Hout, Wout, Cout)              # no transpose needed


def conv_transpose2d_relu(x, w, b, *, stride, padding, dilation, output_padding):
    """relu(conv_transpose2d(x, w) + b).  x NHWC, w: (Cin, Cout, kh, kw) (PyTorch layout).

    Fast path (stride 2, even dilation & padding): only outputs at parity==padding
    receive contributions; they equal a stride-1 conv of the *un-dilated* input
    with the flipped kernel at dilation d/2.  All other positions are relu(bias).
    Fallback: zero-insert + flipped-kernel dilated conv."""
    B, H, W, Cin = x.shape
    _, Cout, kh, kw = w.shape
    Hout = (H - 1) * stride - 2 * padding + dilation * (kh - 1) + output_padding + 1
    Wout = (W - 1) * stride - 2 * padding + dilation * (kw - 1) + output_padding + 1
    w_flip = jnp.flip(w, axis=(2, 3)).transpose(1, 0, 2, 3)     # (Cout, Cin, kh, kw)
    pd = dilation * (kh - 1) - padding

    if (stride == 2 and dilation % 2 == 0 and padding % 2 == 0
            and pd >= 0 and pd % 2 == 0):
        n_eh = (Hout + 1) // 2                                   # populated rows
        n_ew = (Wout + 1) // 2                                   # populated cols
        Lh = pd // 2
        Rh = n_eh + (dilation // 2) * (kh - 1) - H - Lh
        Lw = pd // 2
        Rw = n_ew + (dilation // 2) * (kw - 1) - W - Lw
        if Rh >= 0 and Rw >= 0:
            even = conv2d_relu(x, w_flip, b, stride=1,
                               padding=((Lh, Rh), (Lw, Rw)),
                               dilation=dilation // 2)           # (B, n_eh, n_ew, Cout)
            fill = jnp.maximum(b, 0.0).astype(even.dtype)        # relu(bias)
            out = jnp.broadcast_to(fill, (B, Hout, Wout, Cout))
            out = out.at[:, 0:2 * n_eh:2, 0:2 * n_ew:2, :].set(even)
            return out

    # Fallback: zero-dilate input + asymmetric pad + ordinary dilated conv.
    Hd, Wd = (H - 1) * stride + 1, (W - 1) * stride + 1
    xd = jnp.zeros((B, Hd, Wd, Cin), x.dtype).at[:, ::stride, ::stride, :].set(x)
    return conv2d_relu(xd, w_flip, b, stride=1,
                       padding=((pd, pd + output_padding), (pd, pd + output_padding)),
                       dilation=dilation)


# ----------------------------------------------------------------------------
# FaceUNetCNN forward
# ----------------------------------------------------------------------------
ENC_CFG = [(7, 2, 2), (3, 2, 1), (3, 2, 1), (3, 2, 1)]            # (k, stride, pad)
DEC_CFG = [(3, 2, 1, 1, 1), (3, 2, 2, 2, 1),
           (3, 2, 4, 4, 1), (3, 2, 8, 8, 1)]                      # (k, s, dil, pad, out_pad)


def face_unet_forward(x, params, embed_ln):
    # x: (B, H, W, C) channel-last (PyTorch slices channels on the last axis).
    embeded_rgb = x[..., :embed_ln]
    # torch.transpose(x, 1, 3) -> NCHW with H/W swapped.  We keep channel-last
    # internally as (B, W, H, C) and only go to NCHW once at the very end.
    h = jnp.transpose(x, (0, 2, 1, 3)).astype(jnp.bfloat16)
    emb_nchw = jnp.transpose(embeded_rgb, (0, 3, 2, 1))           # (B, embed_ln, W, H)

    stack = []
    for i, (k, s, p) in enumerate(ENC_CFG):
        h = conv2d_relu(h, params[f"enc_w{i}"], params[f"enc_b{i}"],
                        stride=s, padding=((p, p), (p, p)))
        stack.append(h)
    stack.pop()

    for i, (k, s, d, p, op) in enumerate(DEC_CFG):
        h = conv_transpose2d_relu(h, params[f"dec_w{i}"], params[f"dec_b{i}"],
                                  stride=s, padding=p, dilation=d,
                                  output_padding=op)
        if stack:
            h = jnp.concatenate([h, stack.pop()], axis=-1)        # channel concat

    h = jnp.pad(h, ((0, 0), (1, 1), (1, 1), (0, 0)), mode="edge")  # replicate pad
    h = jnp.transpose(h.astype(jnp.float32), (0, 3, 1, 2))         # -> (B, C, W, H)
    return jnp.concatenate([h, emb_nchw], axis=1)


def init_params(key, input_ch):
    enc_shapes = [(64, input_ch, 7, 7), (128, 64, 3, 3),
                  (256, 128, 3, 3), (512, 256, 3, 3)]
    dec_shapes = [(512, 256, 3, 3), (512, 128, 3, 3),
                  (256, 64, 3, 3), (128, 128, 3, 3)]  # ConvTranspose2d: (Cin, Cout, kh, kw)
    params = {}
    keys = jax.random.split(key, 16)
    idx = 0
    for i, shp in enumerate(enc_shapes):
        fan_in = shp[1] * shp[2] * shp[3]
        params[f"enc_w{i}"] = (jax.random.normal(keys[idx], shp, jnp.float32)
                               / math.sqrt(fan_in)); idx += 1
        params[f"enc_b{i}"] = (jax.random.normal(keys[idx], (shp[0],), jnp.float32)
                               * 0.01); idx += 1
    for i, shp in enumerate(dec_shapes):
        fan_in = shp[0] * shp[2] * shp[3]
        params[f"dec_w{i}"] = (jax.random.normal(keys[idx], shp, jnp.float32)
                               / math.sqrt(fan_in)); idx += 1
        params[f"dec_b{i}"] = (jax.random.normal(keys[idx], (shp[1],), jnp.float32)
                               * 0.01); idx += 1
    return params


if __name__ == "__main__":
    # Small shapes consistent with the UNet skip-connection arithmetic
    # (spatial S must satisfy the same divisibility chain as H=W=450; S=34 works).
    B, S, C_IN, EMBED_LN = 2, 34, 8, 4

    key = jax.random.PRNGKey(0)
    kx, kp = jax.random.split(key)
    x = jax.random.normal(kx, (B, S, S, C_IN), jnp.float32)
    params = init_params(kp, C_IN)

    fwd = jax.jit(lambda inp: face_unet_forward(inp, params, EMBED_LN))
    out = fwd(x)
    jax.block_until_ready(out)

    assert out.shape == (B, 128 + EMBED_LN, S, S), out.shape
    assert out.dtype == jnp.float32
    print("KERNEL_OK")
</pallas_src>

<mosaic_0001>
module attributes {stable_mosaic.version = 11 : i64} {
  func.func @_matmul_bias_relu_kernel(%arg0: i32, %arg1: i32, %arg2: memref<256x392xbf16, #tpu.memory_space<vmem>>, %arg3: memref<392x64xbf16, #tpu.memory_space<vmem>>, %arg4: memref<1x64xf32, #tpu.memory_space<vmem>>, %arg5: memref<256x64xbf16, #tpu.memory_space<vmem>>, %arg6: memref<256x64xf32, #tpu.memory_space<vmem>>) attributes {dimension_semantics = [#tpu.dimension_semantics<parallel>, #tpu.dimension_semantics<arbitrary>], iteration_bounds = array<i64: 2, 1>, scalar_prefetch = 0 : i64, scratch_operands = 1 : i64, tpu.core_type = #tpu.core_type<tc>, window_params = [{transform_indices = @transform_0, window_bounds = array<i64: 256, 392>}, {transform_indices = @transform_1, window_bounds = array<i64: 392, 64>}, {pipeline_mode = #tpu.pipeline_mode<synchronous>, transform_indices = @transform_2, window_bounds = array<i64: 1, 64>}, {transform_indices = @transform_3, window_bounds = array<i64: 256, 64>}]} {
    %c0_i32 = arith.constant 0 : i32
    %0 = arith.cmpi eq, %arg1, %c0_i32 : i32
    %1 = arith.extui %0 : i1 to i32
    %c0_i32_0 = arith.constant 0 : i32
    %2 = arith.cmpi ne, %1, %c0_i32_0 : i32
    scf.if %2 {
      %cst_10 = arith.constant 0.000000e+00 : f32
      %12 = vector.broadcast %cst_10 : f32 to vector<256x64xf32>
      %c0_11 = arith.constant 0 : index
      %c0_12 = arith.constant 0 : index
      %13 = vector.load %arg6[%c0_11, %c0_12] : memref<256x64xf32, #tpu.memory_space<vmem>>, vector<256x64xf32>
      tpu.vector_store %arg6[%c0_11, %c0_12], %12 {strides = array<i32>} : memref<256x64xf32, #tpu.memory_space<vmem>>, vector<256x64xf32>,
    } else {
    }
    %c0 = arith.constant 0 : index
    %c0_1 = arith.constant 0 : index
    %3 = vector.load %arg6[%c0, %c0_1] : memref<256x64xf32, #tpu.memory_space<vmem>>, vector<256x64xf32>
    %c0_2 = arith.constant 0 : index
    %c0_3 = arith.constant 0 : index
    %4 = vector.load %arg2[%c0_2, %c0_3] : memref<256x392xbf16, #tpu.memory_space<vmem>>, vector<256x392xbf16>
    %c0_4 = arith.constant 0 : index
    %c0_5 = arith.constant 0 : index
    %5 = vector.load %arg3[%c0_4, %c0_5] : memref<392x64xbf16, #tpu.memory_space<vmem>>, vector<392x64xbf16>
    %cst = arith.constant dense<0.000000e+00> : vector<256x64xf32>
    %6 = tpu.matmul %4, %5, %cst {dimension_numbers = #tpu.dot_dimension_numbers<[1], [0], [0], [1], [0, 0, 1, 1], [], []>} : vector<256x392xbf16>, vector<392x64xbf16>, vector<256x64xf32> -> vector<256x64xf32>
    %7 = arith.addf %3, %6 : vector<256x64xf32>
    %c0_6 = arith.constant 0 : index
    %c0_7 = arith.constant 0 : index
    %8 = vector.load %arg6[%c0_6, %c0_7] : memref<256x64xf32, #tpu.memory_space<vmem>>, vector<256x64xf32>
    tpu.vector_store %arg6[%c0_6, %c0_7], %7 {strides = array<i32>} : memref<256x64xf32, #tpu.memory_space<vmem>>, vector<256x64xf32>,
    %c0_i32_8 = arith.constant 0 : i32
    %9 = arith.cmpi eq, %arg1, %c0_i32_8 : i32
    %10 = arith.extui %9 : i1 to i32
    %c0_i32_9 = arith.constant 0 : i32
    %11 = arith.cmpi ne, %10, %c0_i32_9 : i32
    scf.if %11 {
      %c0_10 = arith.constant 0 : index
      %c0_11 = arith.constant 0 : index
      %12 = vector.load %arg6[%c0_10, %c0_11] : memref<256x64xf32, #tpu.memory_space<vmem>>, vector<256x64xf32>
      %c0_12 = arith.constant 0 : index
      %c0_13 = arith.constant 0 : index
      %13 = vector.load %arg4[%c0_12, %c0_13] : memref<1x64xf32, #tpu.memory_space<vmem>>, vector<1x64xf32>
      %14 = vector.broadcast %13 : vector<1x64xf32> to vector<256x64xf32>
      %15 = arith.addf %12, %14 : vector<256x64xf32>
      %cst_14 = arith.constant 0.000000e+00 : f32
      %16 = vector.broadcast %cst_14 : f32 to vector<256x64xf32>
      %17 = arith.maximumf %15, %16 : vector<256x64xf32>
      %18 = arith.truncf %17 : vector<256x64xf32> to vector<256x64xbf16>
      %c0_15 = arith.constant 0 : index
      %c0_16 = arith.constant 0 : index
      %19 = vector.load %arg5[%c0_15, %c0_16] : memref<256x64xbf16, #tpu.memory_space<vmem>>, vector<256x64xbf16>
      tpu.vector_store %arg5[%c0_15, %c0_16], %18 {strides = array<i32>} : memref<256x64xbf16, #tpu.memory_space<vmem>>, vector<256x64xbf16>,
    } else {
    }
    return
  }
  func.func @transform_0(%arg0: i32, %arg1: i32) -> (i32, i32) {
    %c0_i32 = arith.constant 0 : i32
    return %arg0, %arg1 : i32, i32
  }
  func.func @transform_1(%arg0: i32, %arg1: i32) -> (i32, i32) {
    %c0_i32 = arith.constant 0 : i32
    %c0_i32_0 = arith.constant 0 : i32
    return %arg1, %c0_i32 : i32, i32
  }
  func.func @transform_2(%arg0: i32, %arg1: i32) -> (i32, i32) {
    %c0_i32 = arith.constant 0 : i32
    %c0_i32_0 = arith.constant 0 : i32
    %c0_i32_1 = arith.constant 0 : i32
    return %c0_i32, %c0_i32_0 : i32, i32
  }
  func.func @transform_3(%arg0: i32, %arg1: i32) -> (i32, i32) {
    %c0_i32 = arith.constant 0 : i32
    %c0_i32_0 = arith.constant 0 : i32
    return %arg0, %c0_i32 : i32, i32
  }
}

module attributes {stable_mosaic.version = 11 : i64} {
  func.func @_matmul_bias_relu_kernel(%arg0: i32, %arg1: i32, %arg2: memref<128x576xbf16, #tpu.memory_space<vmem>>, %arg3: memref<576x128xbf16, #tpu.memory_space<vmem>>, %arg4: memref<1x128xf32, #tpu.memory_space<vmem>>, %arg5: memref<128x128xbf16, #tpu.memory_space<vmem>>, %arg6: memref<128x128xf32, #tpu.memory_space<vmem>>) attributes {dimension_semantics = [#tpu.dimension_semantics<parallel>, #tpu.dimension_semantics<arbitrary>], iteration_bounds = array<i64: 1, 1>, scalar_prefetch = 0 : i64, scratch_operands = 1 : i64, tpu.core_type = #tpu.core_type<tc>, window_params = [{transform_indices = @transform_0, window_bounds = array<i64: 128, 576>}, {transform_indices = @transform_1, window_bounds = array<i64: 576, 128>}, {pipeline_mode = #tpu.pipeline_mode<synchronous>, transform_indices = @transform_2, window_bounds = array<i64: 1, 128>}, {transform_indices = @transform_3, window_bounds = array<i64: 128, 128>}]} {
    %c0_i32 = arith.constant 0 : i32
    %0 = arith.cmpi eq, %arg1, %c0_i32 : i32
    %1 = arith.extui %0 : i1 to i32
    %c0_i32_0 = arith.constant 0 : i32
    %2 = arith.cmpi ne, %1, %c0_i32_0 : i32
    scf.if %2 {
      %cst_10 = arith.constant 0.000000e+00 : f32
      %12 = vector.broadcast %cst_10 : f32 to vector<128x128xf32>
      %c0_11 = arith.constant 0 : index
      %c0_12 = arith.constant 0 : index
      %13 = vector.load %arg6[%c0_11, %c0_12] : memref<128x128xf32, #tpu.memory_space<vmem>>, vector<128x128xf32>
      tpu.vector_store %arg6[%c0_11, %c0_12], %12 {strides = array<i32>} : memref<128x128xf32, #tpu.memory_space<vmem>>, vector<128x128xf32>,
    } else {
    }
    %c0 = arith.constant 0 : index
    %c0_1 = arith.constant 0 : index
    %3 = vector.load %arg6[%c0, %c0_1] : memref<128x128xf32, #tpu.memory_space<vmem>>, vector<128x128xf32>
    %c0_2 = arith.constant 0 : index
    %c0_3 = arith.constant 0 : index
    %4 = vector.load %arg2[%c0_2, %c0_3] : memref<128x576xbf16, #tpu.memory_space<vmem>>, vector<128x576xbf16>
    %c0_4 = arith.constant 0 : index
    %c0_5 = arith.constant 0 : index
    %5 = vector.load %arg3[%c0_4, %c0_5] : memref<576x128xbf16, #tpu.memory_space<vmem>>, vector<576x128xbf16>
    %cst = arith.constant dense<0.000000e+00> : vector<128x128xf32>
    %6 = tpu.matmul %4, %5, %cst {dimension_numbers = #tpu.dot_dimension_numbers<[1], [0], [0], [1], [0, 0, 1, 1], [], []>} : vector<128x576xbf16>, vector<576x128xbf16>, vector<128x128xf32> -> vector<128x128xf32>
    %7 = arith.addf %3, %6 : vector<128x128xf32>
    %c0_6 = arith.constant 0 : index
    %c0_7 = arith.constant 0 : index
    %8 = vector.load %arg6[%c0_6, %c0_7] : memref<128x128xf32, #tpu.memory_space<vmem>>, vector<128x128xf32>
    tpu.vector_store %arg6[%c0_6, %c0_7], %7 {strides = array<i32>} : memref<128x128xf32, #tpu.memory_space<vmem>>, vector<128x128xf32>,
    %c0_i32_8 = arith.constant 0 : i32
    %9 = arith.cmpi eq, %arg1, %c0_i32_8 : i32
    %10 = arith.extui %9 : i1 to i32
    %c0_i32_9 = arith.constant 0 : i32
    %11 = arith.cmpi ne, %10, %c0_i32_9 : i32
    scf.if %11 {
      %c0_10 = arith.constant 0 : index
      %c0_11 = arith.constant 0 : index
      %12 = vector.load %arg6[%c0_10, %c0_11] : memref<128x128xf32, #tpu.memory_space<vmem>>, vector<128x128xf32>
      %c0_12 = arith.constant 0 : index
      %c0_13 = arith.constant 0 : index
      %13 = vector.load %arg4[%c0_12, %c0_13] : memref<1x128xf32, #tpu.memory_space<vmem>>, vector<1x128xf32>
      %14 = vector.broadcast %13 : vector<1x128xf32> to vector<128x128xf32>
      %15 = arith.addf %12, %14 : vector<128x128xf32>
      %cst_14 = arith.constant 0.000000e+00 : f32
      %16 = vector.broadcast %cst_14 : f32 to vector<128x128xf32>
      %17 = arith.maximumf %15, %16 : vector<128x128xf32>
      %18 = arith.truncf %17 : vector<128x128xf32> to vector<128x128xbf16>
      %c0_15 = arith.constant 0 : index
      %c0_16 = arith.constant 0 : index
      %19 = vector.load %arg5[%c0_15, %c0_16] : memref<128x128xbf16, #tpu.memory_space<vmem>>, vector<128x128xbf16>
      tpu.vector_store %arg5[%c0_15, %c0_16], %18 {strides = array<i32>} : memref<128x128xbf16, #tpu.memory_space<vmem>>, vector<128x128xbf16>,
    } else {
    }
    return
  }
  func.func @transform_0(%arg0: i32, %arg1: i32) -> (i32, i32) {
    %c0_i32 = arith.constant 0 : i32
    return %arg0, %arg1 : i32, i32
  }
  func.func @transform_1(%arg0: i32, %arg1: i32) -> (i32, i32) {
    %c0_i32 = arith.constant 0 : i32
    %c0_i32_0 = arith.constant 0 : i32
    return %arg1, %c0_i32 : i32, i32
  }
  func.func @transform_2(%arg0: i32, %arg1: i32) -> (i32, i32) {
    %c0_i32 = arith.constant 0 : i32
    %c0_i32_0 = arith.constant 0 : i32
    %c0_i32_1 = arith.constant 0 : i32
    return %c0_i32, %c0_i32_0 : i32, i32
  }
  func.func @transform_3(%arg0: i32, %arg1: i32) -> (i32, i32) {
    %c0_i32 = arith.constant 0 : i32
    %c0_i32_0 = arith.constant 0 : i32
    return %arg0, %c0_i32 : i32, i32
  }
}

module attributes {stable_mosaic.version = 11 : i64} {
  func.func @_matmul_bias_relu_kernel(%arg0: i32, %arg1: i32, %arg2: memref<32x1152xbf16, #tpu.memory_space<vmem>>, %arg3: memref<1152x256xbf16, #tpu.memory_space<vmem>>, %arg4: memref<1x256xf32, #tpu.memory_space<vmem>>, %arg5: memref<32x256xbf16, #tpu.memory_space<vmem>>, %arg6: memref<32x256xf32, #tpu.memory_space<vmem>>) attributes {dimension_semantics = [#tpu.dimension_semantics<parallel>, #tpu.dimension_semantics<arbitrary>], iteration_bounds = array<i64: 1, 1>, scalar_prefetch = 0 : i64, scratch_operands = 1 : i64, tpu.core_type = #tpu.core_type<tc>, window_params = [{transform_indices = @transform_0, window_bounds = array<i64: 32, 1152>}, {transform_indices = @transform_1, window_bounds = array<i64: 1152, 256>}, {pipeline_mode = #tpu.pipeline_mode<synchronous>, transform_indices = @transform_2, window_bounds = array<i64: 1, 256>}, {transform_indices = @transform_3, window_bounds = array<i64: 32, 256>}]} {
    %c0_i32 = arith.constant 0 : i32
    %0 = arith.cmpi eq, %arg1, %c0_i32 : i32
    %1 = arith.extui %0 : i1 to i32
    %c0_i32_0 = arith.constant 0 : i32
    %2 = arith.cmpi ne, %1, %c0_i32_0 : i32
    scf.if %2 {
      %cst_10 = arith.constant 0.000000e+00 : f32
      %12 = vector.broadcast %cst_10 : f32 to vector<32x256xf32>
      %c0_11 = arith.constant 0 : index
      %c0_12 = arith.constant 0 : index
      %13 = vector.load %arg6[%c0_11, %c0_12] : memref<32x256xf32, #tpu.memory_space<vmem>>, vector<32x256xf32>
      tpu.vector_store %arg6[%c0_11, %c0_12], %12 {strides = array<i32>} : memref<32x256xf32, #tpu.memory_space<vmem>>, vector<32x256xf32>,
    } else {
    }
    %c0 = arith.constant 0 : index
    %c0_1 = arith.constant 0 : index
    %3 = vector.load %arg6[%c0, %c0_1] : memref<32x256xf32, #tpu.memory_space<vmem>>, vector<32x256xf32>
    %c0_2 = arith.constant 0 : index
    %c0_3 = arith.constant 0 : index
    %4 = vector.load %arg2[%c0_2, %c0_3] : memref<32x1152xbf16, #tpu.memory_space<vmem>>, vector<32x1152xbf16>
    %c0_4 = arith.constant 0 : index
    %c0_5 = arith.constant 0 : index
    %5 = vector.load %arg3[%c0_4, %c0_5] : memref<1152x256xbf16, #tpu.memory_space<vmem>>, vector<1152x256xbf16>
    %cst = arith.constant dense<0.000000e+00> : vector<32x256xf32>
    %6 = tpu.matmul %4, %5, %cst {dimension_numbers = #tpu.dot_dimension_numbers<[1], [0], [0], [1], [0, 0, 1, 1], [], []>} : vector<32x1152xbf16>, vector<1152x256xbf16>, vector<32x256xf32> -> vector<32x256xf32>
    %7 = arith.addf %3, %6 : vector<32x256xf32>
    %c0_6 = arith.constant 0 : index
    %c0_7 = arith.constant 0 : index
    %8 = vector.load %arg6[%c0_6, %c0_7] : memref<32x256xf32, #tpu.memory_space<vmem>>, vector<32x256xf32>
    tpu.vector_store %arg6[%c0_6, %c0_7], %7 {strides = array<i32>} : memref<32x256xf32, #tpu.memory_space<vmem>>, vector<32x256xf32>,
    %c0_i32_8 = arith.constant 0 : i32
    %9 = arith.cmpi eq, %arg1, %c0_i32_8 : i32
    %10 = arith.extui %9 : i1 to i32
    %c0_i32_9 = arith.constant 0 : i32
    %11 = arith.cmpi ne, %10, %c0_i32_9 : i32
    scf.if %11 {
      %c0_10 = arith.constant 0 : index
      %c0_11 = arith.constant 0 : index
      %12 = vector.load %arg6[%c0_10, %c0_11] : memref<32x256xf32, #tpu.memory_space<vmem>>, vector<32x256xf32>
      %c0_12 = arith.constant 0 : index
      %c0_13 = arith.constant 0 : index
      %13 = vector.load %arg4[%c0_12, %c0_13] : memref<1x256xf32, #tpu.memory_space<vmem>>, vector<1x256xf32>
      %14 = vector.broadcast %13 : vector<1x256xf32> to vector<32x256xf32>
      %15 = arith.addf %12, %14 : vector<32x256xf32>
      %cst_14 = arith.constant 0.000000e+00 : f32
      %16 = vector.broadcast %cst_14 : f32 to vector<32x256xf32>
      %17 = arith.maximumf %15, %16 : vector<32x256xf32>
      %18 = arith.truncf %17 : vector<32x256xf32> to vector<32x256xbf16>
      %c0_15 = arith.constant 0 : index
      %c0_16 = arith.constant 0 : index
      %19 = vector.load %arg5[%c0_15, %c0_16] : memref<32x256xbf16, #tpu.memory_space<vmem>>, vector<32x256xbf16>
      tpu.vector_store %arg5[%c0_15, %c0_16], %18 {strides = array<i32>} : memref<32x256xbf16, #tpu.memory_space<vmem>>, vector<32x256xbf16>,
    } else {
    }
    return
  }
  func.func @transform_0(%arg0: i32, %arg1: i32) -> (i32, i32) {
    %c0_i32 = arith.constant 0 : i32
    return %arg0, %arg1 : i32, i32
  }
  func.func @transform_1(%arg0: i32, %arg1: i32) -> (i32, i32) {
    %c0_i32 = arith.constant 0 : i32
    %c0_i32_0 = arith.constant 0 : i32
    return %arg1, %c0_i32 : i32, i32
  }
  func.func @transform_2(%arg0: i32, %arg1: i32) -> (i32, i32) {
    %c0_i32 = arith.constant 0 : i32
    %c0_i32_0 = arith.constant 0 : i32
    %c0_i32_1 = arith.constant 0 : i32
    return %c0_i32, %c0_i32_0 : i32, i32
  }
  func.func @transform_3(%arg0: i32, %arg1: i32) -> (i32, i32) {
    %c0_i32 = arith.constant 0 : i32
    %c0_i32_0 = arith.constant 0 : i32
    return %arg0, %c0_i32 : i32, i32
  }
}

module attributes {stable_mosaic.version = 11 : i64} {
  func.func @_matmul_bias_relu_kernel(%arg0: i32, %arg1: i32, %arg2: memref<16x2304xbf16, #tpu.memory_space<vmem>>, %arg3: memref<2304x512xbf16, #tpu.memory_space<vmem>>, %arg4: memref<1x512xf32, #tpu.memory_space<vmem>>, %arg5: memref<16x512xbf16, #tpu.memory_space<vmem>>, %arg6: memref<16x512xf32, #tpu.memory_space<vmem>>) attributes {dimension_semantics = [#tpu.dimension_semantics<parallel>, #tpu.dimension_semantics<arbitrary>], iteration_bounds = array<i64: 1, 1>, scalar_prefetch = 0 : i64, scratch_operands = 1 : i64, tpu.core_type = #tpu.core_type<tc>, window_params = [{transform_indices = @transform_0, window_bounds = array<i64: 16, 2304>}, {transform_indices = @transform_1, window_bounds = array<i64: 2304, 512>}, {pipeline_mode = #tpu.pipeline_mode<synchronous>, transform_indices = @transform_2, window_bounds = array<i64: 1, 512>}, {transform_indices = @transform_3, window_bounds = array<i64: 16, 512>}]} {
    %c0_i32 = arith.constant 0 : i32
    %0 = arith.cmpi eq, %arg1, %c0_i32 : i32
    %1 = arith.extui %0 : i1 to i32
    %c0_i32_0 = arith.constant 0 : i32
    %2 = arith.cmpi ne, %1, %c0_i32_0 : i32
    scf.if %2 {
      %cst_10 = arith.constant 0.000000e+00 : f32
      %12 = vector.broadcast %cst_10 : f32 to vector<16x512xf32>
      %c0_11 = arith.constant 0 : index
      %c0_12 = arith.constant 0 : index
      %13 = vector.load %arg6[%c0_11, %c0_12] : memref<16x512xf32, #tpu.memory_space<vmem>>, vector<16x512xf32>
      tpu.vector_store %arg6[%c0_11, %c0_12], %12 {strides = array<i32>} : memref<16x512xf32, #tpu.memory_space<vmem>>, vector<16x512xf32>,
    } else {
    }
    %c0 = arith.constant 0 : index
    %c0_1 = arith.constant 0 : index
    %3 = vector.load %arg6[%c0, %c0_1] : memref<16x512xf32, #tpu.memory_space<vmem>>, vector<16x512xf32>
    %c0_2 = arith.constant 0 : index
    %c0_3 = arith.constant 0 : index
    %4 = vector.load %arg2[%c0_2, %c0_3] : memref<16x2304xbf16, #tpu.memory_space<vmem>>, vector<16x2304xbf16>
    %c0_4 = arith.constant 0 : index
    %c0_5 = arith.constant 0 : index
    %5 = vector.load %arg3[%c0_4, %c0_5] : memref<2304x512xbf16, #tpu.memory_space<vmem>>, vector<2304x512xbf16>
    %cst = arith.constant dense<0.000000e+00> : vector<16x512xf32>
    %6 = tpu.matmul %4, %5, %cst {dimension_numbers = #tpu.dot_dimension_numbers<[1], [0], [0], [1], [0, 0, 1, 1], [], []>} : vector<16x2304xbf16>, vector<2304x512xbf16>, vector<16x512xf32> -> vector<16x512xf32>
    %7 = arith.addf %3, %6 : vector<16x512xf32>
    %c0_6 = arith.constant 0 : index
    %c0_7 = arith.constant 0 : index
    %8 = vector.load %arg6[%c0_6, %c0_7] : memref<16x512xf32, #tpu.memory_space<vmem>>, vector<16x512xf32>
    tpu.vector_store %arg6[%c0_6, %c0_7], %7 {strides = array<i32>} : memref<16x512xf32, #tpu.memory_space<vmem>>, vector<16x512xf32>,
    %c0_i32_8 = arith.constant 0 : i32
    %9 = arith.cmpi eq, %arg1, %c0_i32_8 : i32
    %10 = arith.extui %9 : i1 to i32
    %c0_i32_9 = arith.constant 0 : i32
    %11 = arith.cmpi ne, %10, %c0_i32_9 : i32
    scf.if %11 {
      %c0_10 = arith.constant 0 : index
      %c0_11 = arith.constant 0 : index
      %12 = vector.load %arg6[%c0_10, %c0_11] : memref<16x512xf32, #tpu.memory_space<vmem>>, vector<16x512xf32>
      %c0_12 = arith.constant 0 : index
      %c0_13 = arith.constant 0 : index
      %13 = vector.load %arg4[%c0_12, %c0_13] : memref<1x512xf32, #tpu.memory_space<vmem>>, vector<1x512xf32>
      %14 = vector.broadcast %13 : vector<1x512xf32> to vector<16x512xf32>
      %15 = arith.addf %12, %14 : vector<16x512xf32>
      %cst_14 = arith.constant 0.000000e+00 : f32
      %16 = vector.broadcast %cst_14 : f32 to vector<16x512xf32>
      %17 = arith.maximumf %15, %16 : vector<16x512xf32>
      %18 = arith.truncf %17 : vector<16x512xf32> to vector<16x512xbf16>
      %c0_15 = arith.constant 0 : index
      %c0_16 = arith.constant 0 : index
      %19 = vector.load %arg5[%c0_15, %c0_16] : memref<16x512xbf16, #tpu.memory_space<vmem>>, vector<16x512xbf16>
      tpu.vector_store %arg5[%c0_15, %c0_16], %18 {strides = array<i32>} : memref<16x512xbf16, #tpu.memory_space<vmem>>, vector<16x512xbf16>,
    } else {
    }
    return
  }
  func.func @transform_0(%arg0: i32, %arg1: i32) -> (i32, i32) {
    %c0_i32 = arith.constant 0 : i32
    return %arg0, %arg1 : i32, i32
  }
  func.func @transform_1(%arg0: i32, %arg1: i32) -> (i32, i32) {
    %c0_i32 = arith.constant 0 : i32
    %c0_i32_0 = arith.constant 0 : i32
    return %arg1, %c0_i32 : i32, i32
  }
  func.func @transform_2(%arg0: i32, %arg1: i32) -> (i32, i32) {
    %c0_i32 = arith.constant 0 : i32
    %c0_i32_0 = arith.constant 0 : i32
    %c0_i32_1 = arith.constant 0 : i32
    return %c0_i32, %c0_i32_0 : i32, i32
  }
  func.func @transform_3(%arg0: i32, %arg1: i32) -> (i32, i32) {
    %c0_i32 = arith.constant 0 : i32
    %c0_i32_0 = arith.constant 0 : i32
    return %arg0, %c0_i32 : i32, i32
  }
}

module attributes {stable_mosaic.version = 11 : i64} {
  func.func @_matmul_bias_relu_kernel(%arg0: i32, %arg1: i32, %arg2: memref<32x512xbf16, #tpu.memory_space<vmem>>, %arg3: memref<512x256xbf16, #tpu.memory_space<vmem>>, %arg4: memref<1x256xf32, #tpu.memory_space<vmem>>, %arg5: memref<32x256xbf16, #tpu.memory_space<vmem>>, %arg6: memref<32x256xf32, #tpu.memory_space<vmem>>) attributes {dimension_semantics = [#tpu.dimension_semantics<parallel>, #tpu.dimension_semantics<arbitrary>], iteration_bounds = array<i64: 1, 9>, scalar_prefetch = 0 : i64, scratch_operands = 1 : i64, tpu.core_type = #tpu.core_type<tc>, window_params = [{transform_indices = @transform_0, window_bounds = array<i64: 32, 512>}, {transform_indices = @transform_1, window_bounds = array<i64: 512, 256>}, {pipeline_mode = #tpu.pipeline_mode<synchronous>, transform_indices = @transform_2, window_bounds = array<i64: 1, 256>}, {transform_indices = @transform_3, window_bounds = array<i64: 32, 256>}]} {
    %c0_i32 = arith.constant 0 : i32
    %0 = arith.cmpi eq, %arg1, %c0_i32 : i32
    %1 = arith.extui %0 : i1 to i32
    %c0_i32_0 = arith.constant 0 : i32
    %2 = arith.cmpi ne, %1, %c0_i32_0 : i32
    scf.if %2 {
      %cst_9 = arith.constant 0.000000e+00 : f32
      %12 = vector.broadcast %cst_9 : f32 to vector<32x256xf32>
      %c0_10 = arith.constant 0 : index
      %c0_11 = arith.constant 0 : index
      %13 = vector.load %arg6[%c0_10, %c0_11] : memref<32x256xf32, #tpu.memory_space<vmem>>, vector<32x256xf32>
      tpu.vector_store %arg6[%c0_10, %c0_11], %12 {strides = array<i32>} : memref<32x256xf32, #tpu.memory_space<vmem>>, vector<32x256xf32>,
    } else {
    }
    %c0 = arith.constant 0 : index
    %c0_1 = arith.constant 0 : index
    %3 = vector.load %arg6[%c0, %c0_1] : memref<32x256xf32, #tpu.memory_space<vmem>>, vector<32x256xf32>
    %c0_2 = arith.constant 0 : index
    %c0_3 = arith.constant 0 : index
    %4 = vector.load %arg2[%c0_2, %c0_3] : memref<32x512xbf16, #tpu.memory_space<vmem>>, vector<32x512xbf16>
    %c0_4 = arith.constant 0 : index
    %c0_5 = arith.constant 0 : index
    %5 = vector.load %arg3[%c0_4, %c0_5] : memref<512x256xbf16, #tpu.memory_space<vmem>>, vector<512x256xbf16>
    %cst = arith.constant dense<0.000000e+00> : vector<32x256xf32>
    %6 = tpu.matmul %4, %5, %cst {dimension_numbers = #tpu.dot_dimension_numbers<[1], [0], [0], [1], [0, 0, 1, 1], [], []>} : vector<32x512xbf16>, vector<512x256xbf16>, vector<32x256xf32> -> vector<32x256xf32>
    %7 = arith.addf %3, %6 : vector<32x256xf32>
    %c0_6 = arith.constant 0 : index
    %c0_7 = arith.constant 0 : index
    %8 = vector.load %arg6[%c0_6, %c0_7] : memref<32x256xf32, #tpu.memory_space<vmem>>, vector<32x256xf32>
    tpu.vector_store %arg6[%c0_6, %c0_7], %7 {strides = array<i32>} : memref<32x256xf32, #tpu.memory_space<vmem>>, vector<32x256xf32>,
    %c8_i32 = arith.constant 8 : i32
    %9 = arith.cmpi eq, %arg1, %c8_i32 : i32
    %10 = arith.extui %9 : i1 to i32
    %c0_i32_8 = arith.constant 0 : i32
    %11 = arith.cmpi ne, %10, %c0_i32_8 : i32
    scf.if %11 {
      %c0_9 = arith.constant 0 : index
      %c0_10 = arith.constant 0 : index
      %12 = vector.load %arg6[%c0_9, %c0_10] : memref<32x256xf32, #tpu.memory_space<vmem>>, vector<32x256xf32>
      %c0_11 = arith.constant 0 : index
      %c0_12 = arith.constant 0 : index
      %13 = vector.load %arg4[%c0_11, %c0_12] : memref<1x256xf32, #tpu.memory_space<vmem>>, vector<1x256xf32>
      %14 = vector.broadcast %13 : vector<1x256xf32> to vector<32x256xf32>
      %15 = arith.addf %12, %14 : vector<32x256xf32>
      %cst_13 = arith.constant 0.000000e+00 : f32
      %16 = vector.broadcast %cst_13 : f32 to vector<32x256xf32>
      %17 = arith.maximumf %15, %16 : vector<32x256xf32>
      %18 = arith.truncf %17 : vector<32x256xf32> to vector<32x256xbf16>
      %c0_14 = arith.constant 0 : index
      %c0_15 = arith.constant 0 : index
      %19 = vector.load %arg5[%c0_14, %c0_15] : memref<32x256xbf16, #tpu.memory_space<vmem>>, vector<32x256xbf16>
      tpu.vector_store %arg5[%c0_14, %c0_15], %18 {strides = array<i32>} : memref<32x256xbf16, #tpu.memory_space<vmem>>, vector<32x256xbf16>,
    } else {
    }
    return
  }
  func.func @transform_0(%arg0: i32, %arg1: i32) -> (i32, i32) {
    %c0_i32 = arith.constant 0 : i32
    return %arg0, %arg1 : i32, i32
  }
  func.func @transform_1(%arg0: i32, %arg1: i32) -> (i32, i32) {
    %c0_i32 = arith.constant 0 : i32
    %c0_i32_0 = arith.constant 0 : i32
    return %arg1, %c0_i32 : i32, i32
  }
  func.func @transform_2(%arg0: i32, %arg1: i32) -> (i32, i32) {
    %c0_i32 = arith.constant 0 : i32
    %c0_i32_0 = arith.constant 0 : i32
    %c0_i32_1 = arith.constant 0 : i32
    return %c0_i32, %c0_i32_0 : i32, i32
  }
  func.func @transform_3(%arg0: i32, %arg1: i32) -> (i32, i32) {
    %c0_i32 = arith.constant 0 : i32
    %c0_i32_0 = arith.constant 0 : i32
    return %arg0, %c0_i32 : i32, i32
  }
}

module attributes {stable_mosaic.version = 11 : i64} {
  func.func @_matmul_bias_relu_kernel(%arg0: i32, %arg1: i32, %arg2: memref<32x512xbf16, #tpu.memory_space<vmem>>, %arg3: memref<512x128xbf16, #tpu.memory_space<vmem>>, %arg4: memref<1x128xf32, #tpu.memory_space<vmem>>, %arg5: memref<32x128xbf16, #tpu.memory_space<vmem>>, %arg6: memref<32x128xf32, #tpu.memory_space<vmem>>) attributes {dimension_semantics = [#tpu.dimension_semantics<parallel>, #tpu.dimension_semantics<arbitrary>], iteration_bounds = array<i64: 1, 9>, scalar_prefetch = 0 : i64, scratch_operands = 1 : i64, tpu.core_type = #tpu.core_type<tc>, window_params = [{transform_indices = @transform_0, window_bounds = array<i64: 32, 512>}, {transform_indices = @transform_1, window_bounds = array<i64: 512, 128>}, {pipeline_mode = #tpu.pipeline_mode<synchronous>, transform_indices = @transform_2, window_bounds = array<i64: 1, 128>}, {transform_indices = @transform_3, window_bounds = array<i64: 32, 128>}]} {
    %c0_i32 = arith.constant 0 : i32
    %0 = arith.cmpi eq, %arg1, %c0_i32 : i32
    %1 = arith.extui %0 : i1 to i32
    %c0_i32_0 = arith.constant 0 : i32
    %2 = arith.cmpi ne, %1, %c0_i32_0 : i32
    scf.if %2 {
      %cst_9 = arith.constant 0.000000e+00 : f32
      %12 = vector.broadcast %cst_9 : f32 to vector<32x128xf32>
      %c0_10 = arith.constant 0 : index
      %c0_11 = arith.constant 0 : index
      %13 = vector.load %arg6[%c0_10, %c0_11] : memref<32x128xf32, #tpu.memory_space<vmem>>, vector<32x128xf32>
      tpu.vector_store %arg6[%c0_10, %c0_11], %12 {strides = array<i32>} : memref<32x128xf32, #tpu.memory_space<vmem>>, vector<32x128xf32>,
    } else {
    }
    %c0 = arith.constant 0 : index
    %c0_1 = arith.constant 0 : index
    %3 = vector.load %arg6[%c0, %c0_1] : memref<32x128xf32, #tpu.memory_space<vmem>>, vector<32x128xf32>
    %c0_2 = arith.constant 0 : index
    %c0_3 = arith.constant 0 : index
    %4 = vector.load %arg2[%c0_2, %c0_3] : memref<32x512xbf16, #tpu.memory_space<vmem>>, vector<32x512xbf16>
    %c0_4 = arith.constant 0 : index
    %c0_5 = arith.constant 0 : index
    %5 = vector.load %arg3[%c0_4, %c0_5] : memref<512x128xbf16, #tpu.memory_space<vmem>>, vector<512x128xbf16>
    %cst = arith.constant dense<0.000000e+00> : vector<32x128xf32>
    %6 = tpu.matmul %4, %5, %cst {dimension_numbers = #tpu.dot_dimension_numbers<[1], [0], [0], [1], [0, 0, 1, 1], [], []>} : vector<32x512xbf16>, vector<512x128xbf16>, vector<32x128xf32> -> vector<32x128xf32>
    %7 = arith.addf %3, %6 : vector<32x128xf32>
    %c0_6 = arith.constant 0 : index
    %c0_7 = arith.constant 0 : index
    %8 = vector.load %arg6[%c0_6, %c0_7] : memref<32x128xf32, #tpu.memory_space<vmem>>, vector<32x128xf32>
    tpu.vector_store %arg6[%c0_6, %c0_7], %7 {strides = array<i32>} : memref<32x128xf32, #tpu.memory_space<vmem>>, vector<32x128xf32>,
    %c8_i32 = arith.constant 8 : i32
    %9 = arith.cmpi eq, %arg1, %c8_i32 : i32
    %10 = arith.extui %9 : i1 to i32
    %c0_i32_8 = arith.constant 0 : i32
    %11 = arith.cmpi ne, %10, %c0_i32_8 : i32
    scf.if %11 {
      %c0_9 = arith.constant 0 : index
      %c0_10 = arith.constant 0 : index
      %12 = vector.load %arg6[%c0_9, %c0_10] : memref<32x128xf32, #tpu.memory_space<vmem>>, vector<32x128xf32>
      %c0_11 = arith.constant 0 : index
      %c0_12 = arith.constant 0 : index
      %13 = vector.load %arg4[%c0_11, %c0_12] : memref<1x128xf32, #tpu.memory_space<vmem>>, vector<1x128xf32>
      %14 = vector.broadcast %13 : vector<1x128xf32> to vector<32x128xf32>
      %15 = arith.addf %12, %14 : vector<32x128xf32>
      %cst_13 = arith.constant 0.000000e+00 : f32
      %16 = vector.broadcast %cst_13 : f32 to vector<32x128xf32>
      %17 = arith.maximumf %15, %16 : vector<32x128xf32>
      %18 = arith.truncf %17 : vector<32x128xf32> to vector<32x128xbf16>
      %c0_14 = arith.constant 0 : index
      %c0_15 = arith.constant 0 : index
      %19 = vector.load %arg5[%c0_14, %c0_15] : memref<32x128xbf16, #tpu.memory_space<vmem>>, vector<32x128xbf16>
      tpu.vector_store %arg5[%c0_14, %c0_15], %18 {strides = array<i32>} : memref<32x128xbf16, #tpu.memory_space<vmem>>, vector<32x128xbf16>,
    } else {
    }
    return
  }
  func.func @transform_0(%arg0: i32, %arg1: i32) -> (i32, i32) {
    %c0_i32 = arith.constant 0 : i32
    return %arg0, %arg1 : i32, i32
  }
  func.func @transform_1(%arg0: i32, %arg1: i32) -> (i32, i32) {
    %c0_i32 = arith.constant 0 : i32
    %c0_i32_0 = arith.constant 0 : i32
    return %arg1, %c0_i32 : i32, i32
  }
  func.func @transform_2(%arg0: i32, %arg1: i32) -> (i32, i32) {
    %c0_i32 = arith.constant 0 : i32
    %c0_i32_0 = arith.constant 0 : i32
    %c0_i32_1 = arith.constant 0 : i32
    return %c0_i32, %c0_i32_0 : i32, i32
  }
  func.func @transform_3(%arg0: i32, %arg1: i32) -> (i32, i32) {
    %c0_i32 = arith.constant 0 : i32
    %c0_i32_0 = arith.constant 0 : i32
    return %arg0, %c0_i32 : i32, i32
  }
}

module attributes {stable_mosaic.version = 11 : i64} {
  func.func @_matmul_bias_relu_kernel(%arg0: i32, %arg1: i32, %arg2: memref<128x2304xbf16, #tpu.memory_space<vmem>>, %arg3: memref<2304x64xbf16, #tpu.memory_space<vmem>>, %arg4: memref<1x64xf32, #tpu.memory_space<vmem>>, %arg5: memref<128x64xbf16, #tpu.memory_space<vmem>>, %arg6: memref<128x64xf32, #tpu.memory_space<vmem>>) attributes {dimension_semantics = [#tpu.dimension_semantics<parallel>, #tpu.dimension_semantics<arbitrary>], iteration_bounds = array<i64: 1, 1>, scalar_prefetch = 0 : i64, scratch_operands = 1 : i64, tpu.core_type = #tpu.core_type<tc>, window_params = [{transform_indices = @transform_0, window_bounds = array<i64: 128, 2304>}, {transform_indices = @transform_1, window_bounds = array<i64: 2304, 64>}, {pipeline_mode = #tpu.pipeline_mode<synchronous>, transform_indices = @transform_2, window_bounds = array<i64: 1, 64>}, {transform_indices = @transform_3, window_bounds = array<i64: 128, 64>}]} {
    %c0_i32 = arith.constant 0 : i32
    %0 = arith.cmpi eq, %arg1, %c0_i32 : i32
    %1 = arith.extui %0 : i1 to i32
    %c0_i32_0 = arith.constant 0 : i32
    %2 = arith.cmpi ne, %1, %c0_i32_0 : i32
    scf.if %2 {
      %cst_10 = arith.constant 0.000000e+00 : f32
      %12 = vector.broadcast %cst_10 : f32 to vector<128x64xf32>
      %c0_11 = arith.constant 0 : index
      %c0_12 = arith.constant 0 : index
      %13 = vector.load %arg6[%c0_11, %c0_12] : memref<128x64xf32, #tpu.memory_space<vmem>>, vector<128x64xf32>
      tpu.vector_store %arg6[%c0_11, %c0_12], %12 {strides = array<i32>} : memref<128x64xf32, #tpu.memory_space<vmem>>, vector<128x64xf32>,
    } else {
    }
    %c0 = arith.constant 0 : index
    %c0_1 = arith.constant 0 : index
    %3 = vector.load %arg6[%c0, %c0_1] : memref<128x64xf32, #tpu.memory_space<vmem>>, vector<128x64xf32>
    %c0_2 = arith.constant 0 : index
    %c0_3 = arith.constant 0 : index
    %4 = vector.load %arg2[%c0_2, %c0_3] : memref<128x2304xbf16, #tpu.memory_space<vmem>>, vector<128x2304xbf16>
    %c0_4 = arith.constant 0 : index
    %c0_5 = arith.constant 0 : index
    %5 = vector.load %arg3[%c0_4, %c0_5] : memref<2304x64xbf16, #tpu.memory_space<vmem>>, vector<2304x64xbf16>
    %cst = arith.constant dense<0.000000e+00> : vector<128x64xf32>
    %6 = tpu.matmul %4, %5, %cst {dimension_numbers = #tpu.dot_dimension_numbers<[1], [0], [0], [1], [0, 0, 1, 1], [], []>} : vector<128x2304xbf16>, vector<2304x64xbf16>, vector<128x64xf32> -> vector<128x64xf32>
    %7 = arith.addf %3, %6 : vector<128x64xf32>
    %c0_6 = arith.constant 0 : index
    %c0_7 = arith.constant 0 : index
    %8 = vector.load %arg6[%c0_6, %c0_7] : memref<128x64xf32, #tpu.memory_space<vmem>>, vector<128x64xf32>
    tpu.vector_store %arg6[%c0_6, %c0_7], %7 {strides = array<i32>} : memref<128x64xf32, #tpu.memory_space<vmem>>, vector<128x64xf32>,
    %c0_i32_8 = arith.constant 0 : i32
    %9 = arith.cmpi eq, %arg1, %c0_i32_8 : i32
    %10 = arith.extui %9 : i1 to i32
    %c0_i32_9 = arith.constant 0 : i32
    %11 = arith.cmpi ne, %10, %c0_i32_9 : i32
    scf.if %11 {
      %c0_10 = arith.constant 0 : index
      %c0_11 = arith.constant 0 : index
      %12 = vector.load %arg6[%c0_10, %c0_11] : memref<128x64xf32, #tpu.memory_space<vmem>>, vector<128x64xf32>
      %c0_12 = arith.constant 0 : index
      %c0_13 = arith.constant 0 : index
      %13 = vector.load %arg4[%c0_12, %c0_13] : memref<1x64xf32, #tpu.memory_space<vmem>>, vector<1x64xf32>
      %14 = vector.broadcast %13 : vector<1x64xf32> to vector<128x64xf32>
      %15 = arith.addf %12, %14 : vector<128x64xf32>
      %cst_14 = arith.constant 0.000000e+00 : f32
      %16 = vector.broadcast %cst_14 : f32 to vector<128x64xf32>
      %17 = arith.maximumf %15, %16 : vector<128x64xf32>
      %18 = arith.truncf %17 : vector<128x64xf32> to vector<128x64xbf16>
      %c0_15 = arith.constant 0 : index
      %c0_16 = arith.constant 0 : index
      %19 = vector.load %arg5[%c0_15, %c0_16] : memref<128x64xbf16, #tpu.memory_space<vmem>>, vector<128x64xbf16>
      tpu.vector_store %arg5[%c0_15, %c0_16], %18 {strides = array<i32>} : memref<128x64xbf16, #tpu.memory_space<vmem>>, vector<128x64xbf16>,
    } else {
    }
    return
  }
  func.func @transform_0(%arg0: i32, %arg1: i32) -> (i32, i32) {
    %c0_i32 = arith.constant 0 : i32
    return %arg0, %arg1 : i32, i32
  }
  func.func @transform_1(%arg0: i32, %arg1: i32) -> (i32, i32) {
    %c0_i32 = arith.constant 0 : i32
    %c0_i32_0 = arith.constant 0 : i32
    return %arg1, %c0_i32 : i32, i32
  }
  func.func @transform_2(%arg0: i32, %arg1: i32) -> (i32, i32) {
    %c0_i32 = arith.constant 0 : i32
    %c0_i32_0 = arith.constant 0 : i32
    %c0_i32_1 = arith.constant 0 : i32
    return %c0_i32, %c0_i32_0 : i32, i32
  }
  func.func @transform_3(%arg0: i32, %arg1: i32) -> (i32, i32) {
    %c0_i32 = arith.constant 0 : i32
    %c0_i32_0 = arith.constant 0 : i32
    return %arg0, %c0_i32 : i32, i32
  }
}

module attributes {stable_mosaic.version = 11 : i64} {
  func.func @_matmul_bias_relu_kernel(%arg0: i32, %arg1: i32, %arg2: memref<256x1152xbf16, #tpu.memory_space<vmem>>, %arg3: memref<1152x128xbf16, #tpu.memory_space<vmem>>, %arg4: memref<1x128xf32, #tpu.memory_space<vmem>>, %arg5: memref<256x128xbf16, #tpu.memory_space<vmem>>, %arg6: memref<256x128xf32, #tpu.memory_space<vmem>>) attributes {dimension_semantics = [#tpu.dimension_semantics<parallel>, #tpu.dimension_semantics<arbitrary>], iteration_bounds = array<i64: 2, 1>, scalar_prefetch = 0 : i64, scratch_operands = 1 : i64, tpu.core_type = #tpu.core_type<tc>, window_params = [{transform_indices = @transform_0, window_bounds = array<i64: 256, 1152>}, {transform_indices = @transform_1, window_bounds = array<i64: 1152, 128>}, {pipeline_mode = #tpu.pipeline_mode<synchronous>, transform_indices = @transform_2, window_bounds = array<i64: 1, 128>}, {transform_indices = @transform_3, window_bounds = array<i64: 256, 128>}]} {
    %c0_i32 = arith.constant 0 : i32
    %0 = arith.cmpi eq, %arg1, %c0_i32 : i32
    %1 = arith.extui %0 : i1 to i32
    %c0_i32_0 = arith.constant 0 : i32
    %2 = arith.cmpi ne, %1, %c0_i32_0 : i32
    scf.if %2 {
      %cst_10 = arith.constant 0.000000e+00 : f32
      %12 = vector.broadcast %cst_10 : f32 to vector<256x128xf32>
      %c0_11 = arith.constant 0 : index
      %c0_12 = arith.constant 0 : index
      %13 = vector.load %arg6[%c0_11, %c0_12] : memref<256x128xf32, #tpu.memory_space<vmem>>, vector<256x128xf32>
      tpu.vector_store %arg6[%c0_11, %c0_12], %12 {strides = array<i32>} : memref<256x128xf32, #tpu.memory_space<vmem>>, vector<256x128xf32>,
    } else {
    }
    %c0 = arith.constant 0 : index
    %c0_1 = arith.constant 0 : index
    %3 = vector.load %arg6[%c0, %c0_1] : memref<256x128xf32, #tpu.memory_space<vmem>>, vector<256x128xf32>
    %c0_2 = arith.constant 0 : index
    %c0_3 = arith.constant 0 : index
    %4 = vector.load %arg2[%c0_2, %c0_3] : memref<256x1152xbf16, #tpu.memory_space<vmem>>, vector<256x1152xbf16>
    %c0_4 = arith.constant 0 : index
    %c0_5 = arith.constant 0 : index
    %5 = vector.load %arg3[%c0_4, %c0_5] : memref<1152x128xbf16, #tpu.memory_space<vmem>>, vector<1152x128xbf16>
    %cst = arith.constant dense<0.000000e+00> : vector<256x128xf32>
    %6 = tpu.matmul %4, %5, %cst {dimension_numbers = #tpu.dot_dimension_numbers<[1], [0], [0], [1], [0, 0, 1, 1], [], []>} : vector<256x1152xbf16>, vector<1152x128xbf16>, vector<256x128xf32> -> vector<256x128xf32>
    %7 = arith.addf %3, %6 : vector<256x128xf32>
    %c0_6 = arith.constant 0 : index
    %c0_7 = arith.constant 0 : index
    %8 = vector.load %arg6[%c0_6, %c0_7] : memref<256x128xf32, #tpu.memory_space<vmem>>, vector<256x128xf32>
    tpu.vector_store %arg6[%c0_6, %c0_7], %7 {strides = array<i32>} : memref<256x128xf32, #tpu.memory_space<vmem>>, vector<256x128xf32>,
    %c0_i32_8 = arith.constant 0 : i32
    %9 = arith.cmpi eq, %arg1, %c0_i32_8 : i32
    %10 = arith.extui %9 : i1 to i32
    %c0_i32_9 = arith.constant 0 : i32
    %11 = arith.cmpi ne, %10, %c0_i32_9 : i32
    scf.if %11 {
      %c0_10 = arith.constant 0 : index
      %c0_11 = arith.constant 0 : index
      %12 = vector.load %arg6[%c0_10, %c0_11] : memref<256x128xf32, #tpu.memory_space<vmem>>, vector<256x128xf32>
      %c0_12 = arith.constant 0 : index
      %c0_13 = arith.constant 0 : index
      %13 = vector.load %arg4[%c0_12, %c0_13] : memref<1x128xf32, #tpu.memory_space<vmem>>, vector<1x128xf32>
      %14 = vector.broadcast %13 : vector<1x128xf32> to vector<256x128xf32>
      %15 = arith.addf %12, %14 : vector<256x128xf32>
      %cst_14 = arith.constant 0.000000e+00 : f32
      %16 = vector.broadcast %cst_14 : f32 to vector<256x128xf32>
      %17 = arith.maximumf %15, %16 : vector<256x128xf32>
      %18 = arith.truncf %17 : vector<256x128xf32> to vector<256x128xbf16>
      %c0_15 = arith.constant 0 : index
      %c0_16 = arith.constant 0 : index
      %19 = vector.load %arg5[%c0_15, %c0_16] : memref<256x128xbf16, #tpu.memory_space<vmem>>, vector<256x128xbf16>
      tpu.vector_store %arg5[%c0_15, %c0_16], %18 {strides = array<i32>} : memref<256x128xbf16, #tpu.memory_space<vmem>>, vector<256x128xbf16>,
    } else {
    }
    return
  }
  func.func @transform_0(%arg0: i32, %arg1: i32) -> (i32, i32) {
    %c0_i32 = arith.constant 0 : i32
    return %arg0, %arg1 : i32, i32
  }
  func.func @transform_1(%arg0: i32, %arg1: i32) -> (i32, i32) {
    %c0_i32 = arith.constant 0 : i32
    %c0_i32_0 = arith.constant 0 : i32
    return %arg1, %c0_i32 : i32, i32
  }
  func.func @transform_2(%arg0: i32, %arg1: i32) -> (i32, i32) {
    %c0_i32 = arith.constant 0 : i32
    %c0_i32_0 = arith.constant 0 : i32
    %c0_i32_1 = arith.constant 0 : i32
    return %c0_i32, %c0_i32_0 : i32, i32
  }
  func.func @transform_3(%arg0: i32, %arg1: i32) -> (i32, i32) {
    %c0_i32 = arith.constant 0 : i32
    %c0_i32_0 = arith.constant 0 : i32
    return %arg0, %c0_i32 : i32, i32
  }
}

</mosaic_0001>

<bundles_post_ra>
// kernel: _lambda_.8
= control target key start
LH: loop header
LB: loop body
LE: loop exit
PB: predicated region body
PF: predicated region fallthrough
CT: control target
= control target key end

     0   :  { %s2143_s12 = smov 0   ;;  %s2145_s13 = smov 0   ;;  %s2516_s0 = inlined_call_operand.vmem [shape: bf16[512,392], index: 0, kind: input, shape index: {}]   ;;  %s2517_s1 = inlined_call_operand.vmem [shape: bf16[392,64], index: 1, kind: input, shape index: {}]   ;;  %s2518_s2 = inlined_call_operand.vmem [shape: f32[1,64], index: 2, kind: input, shape index: {}]   ;;  %s2519_s3 = inlined_call_operand.vmem [shape: bf16[512,64], index: 3, kind: output, shape index: {}]  }
   0x1   :  { %s2147_s14 = smov 0  }
   0x2 LB: > { %s25_s15 = sadd.s32 1, %s2115_s13  ;;  %p1659_p0 = scmp.ge.s32.totalorder %s2119_s14, 1  ;;  %s2119_s14 = sphi %s2147_s14, %s13_s14   ;;  %s2115_s13 = sphi %s2145_s13, %s2521_s13   ;;  %s2111_s12 = sphi %s2143_s12, %s2520_s12  }
   0x3   : > { %p27_p1 = scmp.ge.s32.totalorder %s25_s15, 2  ;;  %p169_p2 = scmp.lt.s32.totalorder %s2119_s14, 3 }
   0x5   : > { %s2523_s15 = smov (%p27_p1, %s25_s15), 0  ;;  %p170_p3 = pnand %p1659_p0, %p169_p2 }
   0x6   : > { %v1976_v0 = vld [vmem:[%s2517_s1 + $0x40] sm:$0xff] (!%p170_p3)   ;;  %v2121_v1 = vmov (!%p170_p3), 0   ;;  %v1979_v4 = vld [vmem:[%s2517_s1 + $0x48] sm:$0xff] (!%p170_p3)   ;;  %v1982_v7 = vld [vmem:[%s2517_s1 + $0x50] sm:$0xff] (!%p170_p3)   ;;  %s1660_s7 = sshll.u32 (!%p170_p3), %s2111_s12, 5  ;;  %vm861_vm0 = vcmask (!%p170_p3), 64512  }
   0x7   : > { %173 = sbr.rel (%p170_p3) target bundleno = 396 (0x18c), region = 32  ;;  %1075 = vmatprep.subr.bf16.mxu1 (!%p170_p3), %v2121_v1  ;;  %v1977_v2 = vld [vmem:[%s2517_s1 + $0x80] sm:$0xff] (!%p170_p3)   ;;  %1838 = vmatprep.subr.bf16.mxu0 (!%p170_p3), %v1976_v0  ;;  %v1980_v5 = vld [vmem:[%s2517_s1 + $0x88] sm:$0xff] (!%p170_p3)   ;;  %v1983_v8 = vld [vmem:[%s2517_s1 + $0x90] sm:$0xff] (!%p170_p3)   ;;  %p205_p4 = scmp.lt.s32.totalorder (!%p170_p3), %s1660_s7, 63  ;;  %vm910_vm1 = vcmask (!%p170_p3), 1043456  }
   0x8   : > { %v1978_v3 = vld [vmem:[%s2517_s1] sm:$0xff] (!%p170_p3)   ;;  %1076 = vmatpush1.bf16.msra.mxu1 (!%p170_p3), %v1977_v2  ;;  %v1981_v6 = vld [vmem:[%s2517_s1 + $0x8] sm:$0xff] (!%p170_p3)   ;;  %v1984_v9 = vld [vmem:[%s2517_s1 + $0x10] sm:$0xff] (!%p170_p3)   ;;  %vm232_vm2 = vcmask (!%p170_p3), 523264   ;;  %vm1535_vm3 = vcmask (!%p170_p3), 519168  }
   0x9   : > { %1839 = vmatpush3.bf16.msra.mxu0 (!%p170_p3), %v1978_v3  ;;  %1077 = vmatprep.subr.bf16.mxu1 (!%p170_p3), %v2121_v1  ;;  %v1985_v10 = vld [vmem:[%s2517_s1 + $0x58] sm:$0xff] (!%p170_p3)   ;;  %v1988_v13 = vld [vmem:[%s2517_s1 + $0x60] sm:$0xff] (!%p170_p3)   ;;  %v1991_v16 = vld [vmem:[%s2517_s1 + $0x68] sm:$0xff] (!%p170_p3)  }
   0xa   : > { %1840 = vmatprep.subr.bf16.mxu0 (!%p170_p3), %v1979_v4  ;;  %v1986_v11 = vld [vmem:[%s2517_s1 + $0x98] sm:$0xff] (!%p170_p3)   ;;  %v1989_v14 = vld [vmem:[%s2517_s1 + $0xa0] sm:$0xff] (!%p170_p3)   ;;  %v1992_v17 = vld [vmem:[%s2517_s1 + $0xa8] sm:$0xff] (!%p170_p3)  }
   0xb   : > { %v1987_v12 = vld [vmem:[%s2517_s1 + $0x18] sm:$0xff] (!%p170_p3)   ;;  %v1990_v15 = vld [vmem:[%s2517_s1 + $0x20] sm:$0xff] (!%p170_p3)   ;;  %v1993_v18 = vld [vmem:[%s2517_s1 + $0x28] sm:$0xff] (!%p170_p3)  }
   0xc   : > { %1078 = vmatpush1.bf16.msra.mxu1 (!%p170_p3), %v1980_v5  ;;  %v1994_v19 = vld [vmem:[%s2517_s1 + $0x70] sm:$0xff] (!%p170_p3)   ;;  %v1997_v22 = vld [vmem:[%s2517_s1 + $0x78] sm:$0xff] (!%p170_p3)   ;;  %v2003_v27 = vld [vmem:[%s2517_s1 + $0xc0] ss:$0 sps:$4 sm:$0xff] (!%p170_p3)  }
   0xd   : > { %1841 = vmatpush3.bf16.msra.mxu0 (!%p170_p3), %v1981_v6  ;;  %1079 = vmatprep.subr.bf16.mxu1 (!%p170_p3), %v2121_v1  ;;  %v1995_v20 = vld [vmem:[%s2517_s1 + $0xb0] sm:$0xff] (!%p170_p3)   ;;  %v1998_v24 = vld [vmem:[%s2517_s1 + $0xb8] sm:$0xff] (!%p170_p3)   ;;  %v912_v29 = vsel (!%p170_p3), %vm910_vm1, %v2003_v27, 0 }
   0xe   : > { %1842 = vmatprep.subr.bf16.mxu0 %v1982_v7  ;;  %s2525_s7 = smov (!%p205_p4, %s1660_s7), 63  ;;  %v1996_v21 = vld [vmem:[%s2517_s1 + $0x30] sm:$0xff]   ;;  %v1999_v26 = vld [vmem:[%s2517_s1 + $0x38] sm:$0xff]  }
   0xf   : > { %s1805_s27 = sshll.u32 %s2525_s7, 4  ;;  %s1664_s26 = sshll.u32 %s2525_s7, 2 }
  0x10   : > { %1080 = vmatpush1.bf16.msra.mxu1 %v1983_v8  ;;  %s2233_s8 = scalar_lea.vmem %s2516_s0, %s1805_s27  ;;  %s2383_s29 = scalar_lea.vmem %s2519_s3, %s1664_s26 }
  0x11   : > { %1843 = vmatpush3.bf16.msra.mxu0 %v1984_v9  ;;  %1081 = vmatprep.subr.bf16.mxu1 %v2121_v1  ;;  %v2002_v23 = vld [vmem:[%s2233_s8 + $0x4] ss:$16 sps:$4 sm:$0xff]   ;;  %v2006_v25 = vld [vmem:[%s2233_s8 + $0xc] ss:$16 sps:$4 sm:$0xff]   ;;  %v2000_v28 = vld [vmem:[%s2233_s8] ss:$16 sps:$4 sm:$0xff]  }
  0x12   : > { %1844 = vmatprep.subr.bf16.mxu0 %v1985_v10  ;;  %946 = vmatprep.mubr.bf16.mxu0 %v2002_v23  ;;  %v2007_v30 = vld [vmem:[%s2233_s8 + $0x24] ss:$16 sps:$4 sm:$0xff]   ;;  %v2004_v31 = vld [vmem:[%s2233_s8 + $0x8] ss:$16 sps:$4 sm:$0xff]   ;;  %v2010_v32 = vld [vmem:[%s2233_s8 + $0x2c] ss:$16 sps:$4 sm:$0xff]  }
  0x13   : > { %1754 = vmatprep.mubr.msk.bf16.mxu1 %vm861_vm0, %v2006_v25  ;;  %v2009_v33 = vld [vmem:[%s2233_s8 + $0x20] ss:$16 sps:$4 sm:$0xff]   ;;  %v2013_v34 = vld [vmem:[%s2233_s8 + $0x44] ss:$16 sps:$4 sm:$0xff]   ;;  %v2012_v35 = vld [vmem:[%s2233_s8 + $0x28] ss:$16 sps:$4 sm:$0xff]  }
  0x14   : > { %1082 = vmatpush1.bf16.msra.mxu1 %v1986_v11  ;;  %v2016_v36 = vld [vmem:[%s2233_s8 + $0x4c] ss:$16 sps:$4 sm:$0xff]   ;;  %v2015_v37 = vld [vmem:[%s2233_s8 + $0x40] ss:$16 sps:$4 sm:$0xff]   ;;  %v2019_v38 = vld [vmem:[%s2233_s8 + $0x64] ss:$16 sps:$4 sm:$0xff]  }
  0x15   : > { %1845 = vmatpush3.bf16.msra.mxu0 %v1987_v12  ;;  %1083 = vmatprep.subr.bf16.mxu1 %v2121_v1  ;;  %v2018_v39 = vld [vmem:[%s2233_s8 + $0x48] ss:$16 sps:$4 sm:$0xff]   ;;  %v2022_v40 = vld [vmem:[%s2233_s8 + $0x6c] ss:$16 sps:$4 sm:$0xff]   ;;  %v2021_v41 = vld [vmem:[%s2233_s8 + $0x60] ss:$16 sps:$4 sm:$0xff]  }
  0x16   : > { %1846 = vmatprep.subr.bf16.mxu0 %v1988_v13  ;;  %v2025_v42 = vld [vmem:[%s2233_s8 + $0x84] ss:$16 sps:$4 sm:$0xff]   ;;  %v2024_v43 = vld [vmem:[%s2233_s8 + $0x68] ss:$16 sps:$4 sm:$0xff]   ;;  %v2028_v44 = vld [vmem:[%s2233_s8 + $0x8c] ss:$16 sps:$4 sm:$0xff]  }
  0x17   : > { %v2027_v45 = vld [vmem:[%s2233_s8 + $0x80] ss:$16 sps:$4 sm:$0xff]   ;;  %v2031_v46 = vld [vmem:[%s2233_s8 + $0xa4] ss:$16 sps:$4 sm:$0xff]   ;;  %v2030_v47 = vld [vmem:[%s2233_s8 + $0x88] ss:$16 sps:$4 sm:$0xff]  }
  0x18   : > { %1084 = vmatpush1.bf16.msra.mxu1 %v1989_v14  ;;  %v2034_v48 = vld [vmem:[%s2233_s8 + $0xac] ss:$16 sps:$4 sm:$0xff]   ;;  %v2033_v49 = vld [vmem:[%s2233_s8 + $0xa0] ss:$16 sps:$4 sm:$0xff]   ;;  %v2037_v50 = vld [vmem:[%s2233_s8 + $0xc4] ss:$16 sps:$4 sm:$0xff]  }
  0x19   : > { %1847 = vmatpush3.bf16.msra.mxu0 %v1990_v15  ;;  %1085 = vmatprep.subr.bf16.mxu1 %v2121_v1  ;;  %v2036_v51 = vld [vmem:[%s2233_s8 + $0xa8] ss:$16 sps:$4 sm:$0xff]   ;;  %v2040_v52 = vld [vmem:[%s2233_s8 + $0xcc] ss:$16 sps:$4 sm:$0xff]   ;;  %v2039_v53 = vld [vmem:[%s2233_s8 + $0xc0] ss:$16 sps:$4 sm:$0xff]  }
  0x1a   : > { %1848 = vmatprep.subr.bf16.mxu0 %v1991_v16  ;;  %v2043_v54 = vld [vmem:[%s2233_s8 + $0xe4] ss:$16 sps:$4 sm:$0xff]   ;;  %v2042_v55 = vld [vmem:[%s2233_s8 + $0xc8] ss:$16 sps:$4 sm:$0xff]   ;;  %v2046_v56 = vld [vmem:[%s2233_s8 + $0xec] ss:$16 sps:$4 sm:$0xff]  }
  0x1b   : > { %v2045_v57 = vld [vmem:[%s2233_s8 + $0xe0] ss:$16 sps:$4 sm:$0xff]   ;;  %v2049_v58 = vld [vmem:[%s2233_s8 + $0x104] ss:$16 sps:$4 sm:$0xff]   ;;  %v2048_v59 = vld [vmem:[%s2233_s8 + $0xe8] ss:$16 sps:$4 sm:$0xff]  }
  0x1c   : > { %1086 = vmatpush1.bf16.msra.mxu1 %v1992_v17  ;;  %v2052_v60 = vld [vmem:[%s2233_s8 + $0x10c] ss:$16 sps:$4 sm:$0xff]   ;;  %v2051_v61 = vld [vmem:[%s2233_s8 + $0x100] ss:$16 sps:$4 sm:$0xff]   ;;  %v2055_v62 = vld [vmem:[%s2233_s8 + $0x124] ss:$16 sps:$4 sm:$0xff]  }
  0x1d   : > { %1849 = vmatpush3.bf16.msra.mxu0 %v1993_v18  ;;  %1087 = vmatprep.subr.bf16.mxu1 %v2121_v1  ;;  %v2054_v63 = vld [vmem:[%s2233_s8 + $0x108] ss:$16 sps:$4 sm:$0xff]   ;;  %v2058_v0 = vld [vmem:[%s2233_s8 + $0x12c] ss:$16 sps:$4 sm:$0xff]   ;;  %v2061_v2 = vld [vmem:[%s2233_s8 + $0x144] ss:$16 sps:$4 sm:$0xff]  }
  0x1e   : > { %1850 = vmatprep.subr.bf16.mxu0 %v1994_v19  ;;  %v2060_v3 = vld [vmem:[%s2233_s8 + $0x128] ss:$16 sps:$4 sm:$0xff]   ;;  %v2064_v4 = vld [vmem:[%s2233_s8 + $0x14c] ss:$16 sps:$4 sm:$0xff]   ;;  %v2063_v5 = vld [vmem:[%s2233_s8 + $0x140] ss:$16 sps:$4 sm:$0xff]  }
  0x1f   : > { %v2067_v6 = vld [vmem:[%s2233_s8 + $0x164] ss:$16 sps:$4 sm:$0xff]   ;;  %v2066_v7 = vld [vmem:[%s2233_s8 + $0x148] ss:$16 sps:$4 sm:$0xff]   ;;  %v2070_v8 = vld [vmem:[%s2233_s8 + $0x16c] ss:$16 sps:$4 sm:$0xff]  }
  0x20   : > { %1088 = vmatpush1.bf16.msra.mxu1 %v1995_v20  ;;  %v2122_v9 = vmov 0.0   ;;  %v2069_v10 = vld [vmem:[%s2233_s8 + $0x160] ss:$16 sps:$4 sm:$0xff]   ;;  %v2073_v11 = vld [vmem:[%s2233_s8 + $0x184] ss:$16 sps:$4 sm:$0xff]  }
  0x21   : > { %1851 = vmatpush3.bf16.msra.mxu0 %v1996_v21  ;;  %1089 = vmatprep.subr.bf16.mxu1 %v2121_v1  ;;  %233 = vst.msk [vmem:[#allocation2] sm:$0xff] %vm232_vm2, %v2122_v9  ;;  %234 = vst.msk [vmem:[#allocation2 + $0x8] sm:$0xff] %vm232_vm2, %v2122_v9  ;;  %v2072_v12 = vld [vmem:[%s2233_s8 + $0x168] ss:$16 sps:$4 sm:$0xff]   ;;  %v2076_v13 = vld [vmem:[%s2233_s8 + $0x18c] ss:$16 sps:$4 sm:$0xff]  }
  0x22   : > { %1852 = vmatprep.subr.bf16.mxu0 %v1997_v22  ;;  %235 = vst.msk [vmem:[#allocation2 + $0x10] sm:$0xff] %vm232_vm2, %v2122_v9  ;;  %236 = vst.msk [vmem:[#allocation2 + $0x18] sm:$0xff] %vm232_vm2, %v2122_v9  ;;  %v2075_v14 = vld [vmem:[%s2233_s8 + $0x180] ss:$16 sps:$4 sm:$0xff]   ;;  %v2079_v15 = vld [vmem:[%s2233_s8 + $0x1a4] ss:$16 sps:$4 sm:$0xff]  }
  0x23   : > { %237 = vst.msk [vmem:[#allocation2 + $0x20] sm:$0xff] %vm232_vm2, %v2122_v9  ;;  %238 = vst.msk [vmem:[#allocation2 + $0x28] sm:$0xff] %vm232_vm2, %v2122_v9  ;;  %v2078_v16 = vld [vmem:[%s2233_s8 + $0x188] ss:$16 sps:$4 sm:$0xff]   ;;  %v2082_v17 = vld [vmem:[%s2233_s8 + $0x1ac] ss:$16 sps:$4 sm:$0xff]  }
  0x24   : > { %1090 = vmatpush1.bf16.msra.mxu1 %v1998_v24  ;;  %239 = vst.msk [vmem:[#allocation2 + $0x30] sm:$0xff] %vm232_vm2, %v2122_v9  ;;  %240 = vst.msk [vmem:[#allocation2 + $0x38] sm:$0xff] %vm232_vm2, %v2122_v9  ;;  %v2081_v18 = vld [vmem:[%s2233_s8 + $0x1a0] ss:$16 sps:$4 sm:$0xff]   ;;  %v2085_v19 = vld [vmem:[%s2233_s8 + $0x1c4] ss:$16 sps:$4 sm:$0xff]  }
  0x25   : > { %1853 = vmatpush3.bf16.msra.mxu0 %v1999_v26  ;;  %1091 = vmatprep.subr.bf16.mxu1 %v2121_v1  ;;  %v2057_v1 = vld [vmem:[%s2233_s8 + $0x120] ss:$16 sps:$4 sm:$0xff]   ;;  %241 = vst.msk [vmem:[#allocation2 + $0x40] sm:$0xff] %vm232_vm2, %v2122_v9  ;;  %242 = vst.msk [vmem:[#allocation2 + $0x48] sm:$0xff] %vm232_vm2, %v2122_v9  ;;  %v2084_v20 = vld [vmem:[%s2233_s8 + $0x1a8] ss:$16 sps:$4 sm:$0xff]  }
  0x26   : > { %243 = vst.msk [vmem:[#allocation2 + $0x50] sm:$0xff] %vm232_vm2, %v2122_v9  ;;  %244 = vst.msk [vmem:[#allocation2 + $0x58] sm:$0xff] %vm232_vm2, %v2122_v9  ;;  %v2088_v21 = vld [vmem:[%s2233_s8 + $0x1cc] ss:$16 sps:$4 sm:$0xff]   ;;  %v2087_v22 = vld [vmem:[%s2233_s8 + $0x1c0] ss:$16 sps:$4 sm:$0xff]  }
  0x27   : > { %245 = vst.msk [vmem:[#allocation2 + $0x60] sm:$0xff] %vm232_vm2, %v2122_v9  ;;  %246 = vst.msk [vmem:[#allocation2 + $0x68] sm:$0xff] %vm232_vm2, %v2122_v9  ;;  %v2091_v23 = vld [vmem:[%s2233_s8 + $0x1e4] ss:$16 sps:$4 sm:$0xff]   ;;  %v2090_v24 = vld [vmem:[%s2233_s8 + $0x1c8] ss:$16 sps:$4 sm:$0xff]  }
  0x28   : > { %947 = vmatmul.mubr.bf16.vlgmr.msra.gmra.mrb[0].mxu0 %v2000_v28  ;;  %1092 = vmatpush1.bf16.msra.mxu1 %v912_v29  ;;  %247 = vst.msk [vmem:[#allocation2 + $0x70] sm:$0xff] %vm232_vm2, %v2122_v9  ;;  %248 = vst.msk [vmem:[#allocation2 + $0x78] sm:$0xff] %vm232_vm2, %v2122_v9  ;;  %v2094_v25 = vld [vmem:[%s2233_s8 + $0x1ec] ss:$16 sps:$4 sm:$0xff]   ;;  %v2093_v26 = vld [vmem:[%s2233_s8 + $0x1e0] ss:$16 sps:$4 sm:$0xff]  }
  0x29   : > { %954 = vmatprep.mubr.bf16.mxu0 %v2007_v30  ;;  %249 = vst.msk [vmem:[#allocation2 + $0x80] sm:$0xff] %vm232_vm2, %v2122_v9  ;;  %250 = vst.msk [vmem:[#allocation2 + $0x88] sm:$0xff] %vm232_vm2, %v2122_v9  ;;  %v2096_v27 = vld [vmem:[%s2233_s8 + $0x1e8] ss:$16 sps:$4 sm:$0xff]  }
  0x2a   : > { %251 = vst.msk [vmem:[#allocation2 + $0x90] sm:$0xff] %vm232_vm2, %v2122_v9  ;;  %252 = vst.msk [vmem:[#allocation2 + $0x98] sm:$0xff] %vm232_vm2, %v2122_v9 }
  0x2b   : > { %1108 = vmatmul.mubr.bf16.vlgmr.msra.gmra.mrb[0].mxu1 %v2004_v31  ;;  %253 = vst.msk [vmem:[#allocation2 + $0xa0] sm:$0xff] %vm232_vm2, %v2122_v9  ;;  %254 = vst.msk [vmem:[#allocation2 + $0xa8] sm:$0xff] %vm232_vm2, %v2122_v9 }
  0x2c   : > { %1755 = vmatprep.mubr.msk.bf16.mxu1 %vm861_vm0, %v2010_v32  ;;  %255 = vst.msk [vmem:[#allocation2 + $0xb0] sm:$0xff] %vm232_vm2, %v2122_v9  ;;  %256 = vst.msk [vmem:[#allocation2 + $0xb8] sm:$0xff] %vm232_vm2, %v2122_v9 }
  0x2d   : > { %257 = vst.msk [vmem:[#allocation2 + $0xc0] sm:$0xff] %vm232_vm2, %v2122_v9  ;;  %258 = vst.msk [vmem:[#allocation2 + $0xc8] sm:$0xff] %vm232_vm2, %v2122_v9 }
  0x2e   : > { %259 = vst.msk [vmem:[#allocation2 + $0xd0] sm:$0xff] %vm232_vm2, %v2122_v9  ;;  %260 = vst.msk [vmem:[#allocation2 + $0xd8] sm:$0xff] %vm232_vm2, %v2122_v9 }
  0x2f   : > { %261 = vst.msk [vmem:[#allocation2 + $0xe0] sm:$0xff] %vm232_vm2, %v2122_v9  ;;  %262 = vst.msk [vmem:[#allocation2 + $0xe8] sm:$0xff] %vm232_vm2, %v2122_v9 }
  0x30   : > { %955 = vmatmul.mubr.bf16.gmra.mrb[4].mxu0 %v2009_v33  ;;  %263 = vst.msk [vmem:[#allocation2 + $0xf0] sm:$0xff] %vm232_vm2, %v2122_v9  ;;  %264 = vst.msk [vmem:[#allocation2 + $0xf8] sm:$0xff] %vm232_vm2, %v2122_v9  ;;  %v265_v33 = vld [vmem:[#allocation2] sm:$0xff] }
  0x31   : > { %962 = vmatprep.mubr.bf16.mxu0 %v2013_v34 }
  0x33   : > { %1116 = vmatmul.mubr.bf16.gmra.mrb[4].mxu1 %v2012_v35 }
  0x34   : > { %1756 = vmatprep.mubr.msk.bf16.mxu1 %vm861_vm0, %v2016_v36 }
  0x38   : > { %963 = vmatmul.mubr.bf16.gmra.mrb[8].mxu0 %v2015_v37 }
  0x39   : > { %970 = vmatprep.mubr.bf16.mxu0 %v2019_v38  ;;  %v266_v38 = vld [vmem:[#allocation2 + $0x8] sm:$0xff] }
  0x3b   : > { %1124 = vmatmul.mubr.bf16.gmra.mrb[8].mxu1 %v2018_v39 }
  0x3c   : > { %1757 = vmatprep.mubr.msk.bf16.mxu1 %vm861_vm0, %v2022_v40 }
  0x40   : > { %971 = vmatmul.mubr.bf16.gmra.mrb[12].mxu0 %v2021_v41 }
  0x41   : > { %978 = vmatprep.mubr.bf16.mxu0 %v2025_v42 }
  0x43   : > { %1132 = vmatmul.mubr.bf16.gmra.mrb[12].mxu1 %v2024_v43 }
  0x44   : > { %1758 = vmatprep.mubr.msk.bf16.mxu1 %vm861_vm0, %v2028_v44 }
  0x48   : > { %979 = vmatmul.mubr.bf16.gmra.mrb[16].mxu0 %v2027_v45 }
  0x49   : > { %986 = vmatprep.mubr.bf16.mxu0 %v2031_v46 }
  0x4b   : > { %1140 = vmatmul.mubr.bf16.gmra.mrb[16].mxu1 %v2030_v47 }
  0x4c   : > { %1759 = vmatprep.mubr.msk.bf16.mxu1 %vm861_vm0, %v2034_v48 }
  0x50   : > { %987 = vmatmul.mubr.bf16.gmra.mrb[20].mxu0 %v2033_v49  ;;  %v267_v49 = vld [vmem:[#allocation2 + $0x10] sm:$0xff] }
  0x51   : > { %994 = vmatprep.mubr.bf16.mxu0 %v2037_v50 }
  0x53   : > { %1148 = vmatmul.mubr.bf16.gmra.mrb[20].mxu1 %v2036_v51 }
  0x54   : > { %1760 = vmatprep.mubr.msk.bf16.mxu1 %vm861_vm0, %v2040_v52 }
  0x58   : > { %995 = vmatmul.mubr.bf16.gmra.mrb[24].mxu0 %v2039_v53 }
  0x59   : > { %1002 = vmatprep.mubr.bf16.mxu0 %v2043_v54  ;;  %v2373_v54 = vld [vmem:[%s2518_s2] ss:$0 sm:$0xff] }
  0x5b   : > { %1156 = vmatmul.mubr.bf16.gmra.mrb[24].mxu1 %v2042_v55  ;;  %v268_v55 = vld [vmem:[#allocation2 + $0x18] sm:$0xff] }
  0x5c   : > { %1761 = vmatprep.mubr.msk.bf16.mxu1 %vm861_vm0, %v2046_v56 }
  0x60   : > { %1003 = vmatmul.mubr.bf16.gmra.mrb[28].mxu0 %v2045_v57 }
  0x61   : > { %1010 = vmatprep.mubr.bf16.mxu0 %v2049_v58 }
  0x63   : > { %1164 = vmatmul.mubr.bf16.gmra.mrb[28].mxu1 %v2048_v59 }
  0x64   : > { %1762 = vmatprep.mubr.msk.bf16.mxu1 %vm861_vm0, %v2052_v60 }
  0x68   : > { %1011 = vmatmul.mubr.bf16.gmra.mrb[32].mxu0 %v2051_v61 }
  0x69   : > { %1018 = vmatprep.mubr.bf16.mxu0 %v2055_v62 }
  0x6b   : > { %1172 = vmatmul.mubr.bf16.gmra.mrb[32].mxu1 %v2054_v63 }
  0x6c   : > { %1763 = vmatprep.mubr.msk.bf16.mxu1 %vm861_vm0, %v2058_v0 }
  0x70   : > { %1019 = vmatmul.mubr.bf16.gmra.mrb[36].mxu0 %v2057_v1 }
  0x71   : > { %1026 = vmatprep.mubr.bf16.mxu0 %v2061_v2 }
  0x73   : > { %1180 = vmatmul.mubr.bf16.gmra.mrb[36].mxu1 %v2060_v3 }
  0x74   : > { %1764 = vmatprep.mubr.msk.bf16.mxu1 %vm861_vm0, %v2064_v4 }
  0x78   : > { %1027 = vmatmul.mubr.bf16.gmra.mrb[40].mxu0 %v2063_v5 }
  0x79   : > { %1034 = vmatprep.mubr.bf16.mxu0 %v2067_v6 }
  0x7b   : > { %1188 = vmatmul.mubr.bf16.gmra.mrb[40].mxu1 %v2066_v7  ;;  %v269_v7 = vld [vmem:[#allocation2 + $0x20] sm:$0xff] }
  0x7c   : > { %1765 = vmatprep.mubr.msk.bf16.mxu1 %vm861_vm0, %v2070_v8 }
  0x80   : > { %1035 = vmatmul.mubr.bf16.gmra.mrb[44].mxu0 %v2069_v10 }
  0x81   : > { %1042 = vmatprep.mubr.bf16.mxu0 %v2073_v11 }
  0x83   : > { %1196 = vmatmul.mubr.bf16.gmra.mrb[44].mxu1 %v2072_v12 }
  0x84   : > { %1766 = vmatprep.mubr.msk.bf16.mxu1 %vm861_vm0, %v2076_v13 }
  0x88   : > { %1043 = vmatmul.mubr.bf16.gmra.mrb[48].mxu0 %v2075_v14  ;;  %v270_v14 = vld [vmem:[#allocation2 + $0x28] sm:$0xff] }
  0x89   : > { %1050 = vmatprep.mubr.bf16.mxu0 %v2079_v15 }
  0x8b   : > { %1204 = vmatmul.mubr.bf16.gmra.mrb[48].mxu1 %v2078_v16 }
  0x8c   : > { %1767 = vmatprep.mubr.msk.bf16.mxu1 %vm861_vm0, %v2082_v17 }
  0x90   : > { %1051 = vmatmul.mubr.bf16.gmra.mrb[52].mxu0 %v2081_v18 }
  0x91   : > { %1058 = vmatprep.mubr.bf16.mxu0 %v2085_v19 }
  0x93   : > { %1212 = vmatmul.mubr.bf16.gmra.mrb[52].mxu1 %v2084_v20 }
  0x94   : > { %1768 = vmatprep.mubr.msk.bf16.mxu1 %vm861_vm0, %v2088_v21 }
  0x98   : > { %1059 = vmatmul.mubr.bf16.gmra.mrb[56].mxu0 %v2087_v22 }
  0x99   : > { %1066 = vmatprep.mubr.bf16.mxu0 %v2091_v23 }
  0x9b   : > { %1220 = vmatmul.mubr.bf16.gmra.mrb[56].mxu1 %v2090_v24 }
  0x9c   : > { %1769 = vmatprep.mubr.msk.bf16.mxu1 %vm861_vm0, %v2094_v25 }
  0xa0   : > { %1067 = vmatmul.mubr.bf16.gmra.mrb[60].mxu0 %v2093_v26 }
  0xa3   : > { %1228 = vmatmul.mubr.bf16.gmra.mrb[60].mxu1 %v2096_v27 }
  0xfb   : > { %v1854_v28 = vpop.f32.mrb[0].mxu0 }
  0xfc   : > { %v1855_v29 = vpop.f32.mrb[1].mxu0 }
  0xfd   : > { %v1856_v30 = vadd.f32 %v1855_v29, %v1854_v28  ;;  %v1857_v31 = vpop.f32.mrb[2].mxu0 }
  0xfe   : > { %v1858_v32 = vpop.f32.mrb[3].mxu0  ;;  %v1109_v34 = vpop.f32.mrb[0].mxu1 }
  0xff   : > { %v1859_v35 = vadd.f32 %v1858_v32, %v1857_v31  ;;  %v1110_v36 = vadd.f32 %v1856_v30, %v1109_v34  ;;  %v1111_v37 = vpop.f32.mrb[1].mxu1  ;;  %v271_v31 = vld [vmem:[#allocation2 + $0x30] sm:$0xff] }
 0x100   : > { %v1112_v39 = vpop.f32.mrb[2].mxu1 }
 0x101   : > { %v1236_v40 = vadd.f32 %v1110_v36, %v265_v33  ;;  %v1113_v41 = vadd.f32 %v1859_v35, %v1112_v39  ;;  %v1114_v42 = vpop.f32.mrb[3].mxu1 }
 0x103   : > { %1269 = vst.msk [vmem:[#allocation2] sm:$0xff] %vm232_vm2, %v1236_v40  ;;  %v1237_v43 = vadd.f32 %v1113_v41, %v266_v38  ;;  %v1860_v44 = vpop.f32.mrb[4].mxu0  ;;  %v272_v38 = vld [vmem:[#allocation2 + $0x38] sm:$0xff] }
 0x104   : > { %v1861_v45 = vpop.f32.mrb[5].mxu0 }
 0x105   : > { %1270 = vst.msk [vmem:[#allocation2 + $0x8] sm:$0xff] %vm232_vm2, %v1237_v43  ;;  %v1862_v46 = vadd.f32 %v1861_v45, %v1860_v44  ;;  %v1863_v47 = vpop.f32.mrb[6].mxu0 }
 0x106   : > { %v1864_v48 = vpop.f32.mrb[7].mxu0  ;;  %v1117_v50 = vpop.f32.mrb[4].mxu1 }
 0x107   : > { %v1865_v51 = vadd.f32 %v1864_v48, %v1863_v47  ;;  %v1118_v52 = vadd.f32 %v1862_v46, %v1117_v50  ;;  %v1119_v53 = vpop.f32.mrb[5].mxu1 }
 0x108   : > { %v1120_v56 = vpop.f32.mrb[6].mxu1 }
 0x109   : > { %v1238_v57 = vadd.f32 %v1118_v52, %v267_v49  ;;  %v1121_v58 = vadd.f32 %v1865_v51, %v1120_v56  ;;  %v1122_v59 = vpop.f32.mrb[7].mxu1  ;;  %v273_v56 = vld [vmem:[#allocation2 + $0x40] sm:$0xff] }
 0x10a   : > { %v1304_v60 = vld [vmem:[#allocation2] sm:$0xff] }
 0x10b   : > { %v1343_v61 = vadd.f32 %v2373_v54, %v1304_v60  ;;  %1271 = vst.msk [vmem:[#allocation2 + $0x10] sm:$0xff] %vm232_vm2, %v1238_v57  ;;  %v1239_v62 = vadd.f32 %v1121_v58, %v268_v55  ;;  %v1866_v63 = vpop.f32.mrb[8].mxu0 }
 0x10c   : > { %v1305_v0 = vld [vmem:[#allocation2 + $0x8] sm:$0xff]  ;;  %v1867_v1 = vpop.f32.mrb[9].mxu0 }
 0x10d   : > { %v1375_v2 = vmax.f32 %v1343_v61, 0.0  ;;  %v1344_v3 = vadd.f32 %v2373_v54, %v1305_v0  ;;  %1272 = vst.msk [vmem:[#allocation2 + $0x18] sm:$0xff] %vm232_vm2, %v1239_v62  ;;  %v1868_v4 = vadd.f32 %v1867_v1, %v1866_v63  ;;  %v1869_v5 = vpop.f32.mrb[10].mxu0  ;;  %v274_v63 = vld [vmem:[#allocation2 + $0x48] sm:$0xff] }
 0x10e   : > { %v1870_v6 = vpop.f32.mrb[11].mxu0  ;;  %v1125_v8 = vpop.f32.mrb[8].mxu1 }
 0x10f   : > { %v1806_v9 = vpack.c.bf16 %v1375_v2, %v1375_v2  ;;  %v1376_v10 = vmax.f32 %v1344_v3, 0.0  ;;  %v1871_v11 = vadd.f32 %v1870_v6, %v1869_v5  ;;  %v1126_v12 = vadd.f32 %v1868_v4, %v1125_v8  ;;  %v1127_v13 = vpop.f32.mrb[9].mxu1 }
 0x110   : > { %v1128_v15 = vpop.f32.mrb[10].mxu1 }
 0x111   : > { %1536 = vst.msk [vmem:[%s2383_s29] sm:$0xf] %vm1535_vm3, %v1806_v9  ;;  %v1807_v16 = vpack.c.bf16 %v1376_v10, %v1376_v10  ;;  %v1240_v17 = vadd.f32 %v1126_v12, %v269_v7  ;;  %v1129_v18 = vadd.f32 %v1871_v11, %v1128_v15  ;;  %v1130_v19 = vpop.f32.mrb[11].mxu1 }
 0x112   : > { %v1306_v20 = vld [vmem:[#allocation2 + $0x10] sm:$0xff] }
 0x113   : > { %1537 = vst.msk [vmem:[%s2383_s29 + $0x4] sm:$0xf] %vm1535_vm3, %v1807_v16  ;;  %v1345_v21 = vadd.f32 %v2373_v54, %v1306_v20  ;;  %v1241_v22 = vadd.f32 %v1129_v18, %v270_v14  ;;  %v1872_v23 = vpop.f32.mrb[12].mxu0  ;;  %v275_v16 = vld [vmem:[#allocation2 + $0x50] sm:$0xff] }
 0x114   : > { %1273 = vst.msk [vmem:[#allocation2 + $0x20] sm:$0xff] %vm232_vm2, %v1240_v17  ;;  %v1307_v24 = vld [vmem:[#allocation2 + $0x18] sm:$0xff]  ;;  %v1873_v25 = vpop.f32.mrb[13].mxu0 }
 0x115   : > { %v1377_v26 = vmax.f32 %v1345_v21, 0.0  ;;  %v1346_v27 = vadd.f32 %v2373_v54, %v1307_v24  ;;  %1274 = vst.msk [vmem:[#allocation2 + $0x28] sm:$0xff] %vm232_vm2, %v1241_v22  ;;  %v1874_v28 = vadd.f32 %v1873_v25, %v1872_v23  ;;  %v1875_v29 = vpop.f32.mrb[14].mxu0  ;;  %v276_v23 = vld [vmem:[#allocation2 + $0x58] sm:$0xff] }
 0x116   : > { %v1876_v30 = vpop.f32.mrb[15].mxu0  ;;  %v1133_v32 = vpop.f32.mrb[12].mxu1 }
 0x117   : > { %v1808_v33 = vpack.c.bf16 %v1377_v26, %v1377_v26  ;;  %v1378_v34 = vmax.f32 %v1346_v27, 0.0  ;;  %v1877_v35 = vadd.f32 %v1876_v30, %v1875_v29  ;;  %v1134_v36 = vadd.f32 %v1874_v28, %v1133_v32  ;;  %v1135_v37 = vpop.f32.mrb[13].mxu1 }
 0x118   : > { %v1136_v39 = vpop.f32.mrb[14].mxu1 }
 0x119   : > { %1538 = vst.msk [vmem:[%s2383_s29 + $0x8] sm:$0xf] %vm1535_vm3, %v1808_v33  ;;  %v1809_v40 = vpack.c.bf16 %v1378_v34, %v1378_v34  ;;  %v1242_v41 = vadd.f32 %v1134_v36, %v271_v31  ;;  %v1137_v42 = vadd.f32 %v1877_v35, %v1136_v39  ;;  %v1138_v43 = vpop.f32.mrb[15].mxu1 }
 0x11b   : > { %v1308_v44 = vld [vmem:[#allocation2 + $0x20] sm:$0xff]  ;;  %1539 = vst.msk [vmem:[%s2383_s29 + $0xc] sm:$0xf] %vm1535_vm3, %v1809_v40  ;;  %v1243_v46 = vadd.f32 %v1137_v42, %v272_v38  ;;  %v1878_v47 = vpop.f32.mrb[16].mxu0 }
 0x11c   : > { %v1347_v45 = vadd.f32 %v2373_v54, %v1308_v44  ;;  %1275 = vst.msk [vmem:[#allocation2 + $0x30] sm:$0xff] %vm232_vm2, %v1242_v41  ;;  %v1309_v48 = vld [vmem:[#allocation2 + $0x28] sm:$0xff]  ;;  %v1879_v49 = vpop.f32.mrb[17].mxu0  ;;  %v277_v40 = vld [vmem:[#allocation2 + $0x60] sm:$0xff] }
 0x11d   : > { %v1348_v51 = vadd.f32 %v2373_v54, %v1309_v48  ;;  %1276 = vst.msk [vmem:[#allocation2 + $0x38] sm:$0xff] %vm232_vm2, %v1243_v46  ;;  %v1880_v52 = vadd.f32 %v1879_v49, %v1878_v47  ;;  %v1881_v53 = vpop.f32.mrb[18].mxu0  ;;  %v278_v47 = vld [vmem:[#allocation2 + $0x68] sm:$0xff] }
 0x11e   : > { %v1379_v50 = vmax.f32 %v1347_v45, 0.0  ;;  %v1882_v55 = vpop.f32.mrb[19].mxu0  ;;  %v1141_v57 = vpop.f32.mrb[16].mxu1 }
 0x11f   : > { %v1380_v59 = vmax.f32 %v1348_v51, 0.0  ;;  %v1883_v60 = vadd.f32 %v1882_v55, %v1881_v53  ;;  %v1142_v61 = vadd.f32 %v1880_v52, %v1141_v57  ;;  %v1143_v62 = vpop.f32.mrb[17].mxu1 }
 0x120   : > { %v1810_v58 = vpack.c.bf16 %v1379_v50, %v1379_v50  ;;  %v1144_v0 = vpop.f32.mrb[18].mxu1 }
 0x121   : > { %v1811_v1 = vpack.c.bf16 %v1380_v59, %v1380_v59  ;;  %v1244_v2 = vadd.f32 %v1142_v61, %v273_v56  ;;  %v1145_v3 = vadd.f32 %v1883_v60, %v1144_v0  ;;  %v1146_v4 = vpop.f32.mrb[19].mxu1 }
 0x122   : > { %1540 = vst.msk [vmem:[%s2383_s29 + $0x10] sm:$0xf] %vm1535_vm3, %v1810_v58 }
 0x123   : > { %v1310_v5 = vld [vmem:[#allocation2 + $0x30] sm:$0xff]  ;;  %1541 = vst.msk [vmem:[%s2383_s29 + $0x14] sm:$0xf] %vm1535_vm3, %v1811_v1  ;;  %v1245_v7 = vadd.f32 %v1145_v3, %v274_v63  ;;  %v1884_v8 = vpop.f32.mrb[20].mxu0 }
 0x124   : > { %v1349_v6 = vadd.f32 %v2373_v54, %v1310_v5  ;;  %1277 = vst.msk [vmem:[#allocation2 + $0x40] sm:$0xff] %vm232_vm2, %v1244_v2  ;;  %v1311_v9 = vld [vmem:[#allocation2 + $0x38] sm:$0xff]  ;;  %v1885_v10 = vpop.f32.mrb[21].mxu0  ;;  %v279_v1 = vld [vmem:[#allocation2 + $0x70] sm:$0xff] }
 0x125   : > { %v1350_v12 = vadd.f32 %v2373_v54, %v1311_v9  ;;  %1278 = vst.msk [vmem:[#allocation2 + $0x48] sm:$0xff] %vm232_vm2, %v1245_v7  ;;  %v1886_v13 = vadd.f32 %v1885_v10, %v1884_v8  ;;  %v1887_v14 = vpop.f32.mrb[22].mxu0  ;;  %v280_v8 = vld [vmem:[#allocation2 + $0x78] sm:$0xff] }
 0x126   : > { %v1381_v11 = vmax.f32 %v1349_v6, 0.0  ;;  %v1888_v15 = vpop.f32.mrb[23].mxu0  ;;  %v1149_v17 = vpop.f32.mrb[20].mxu1 }
 0x127   : > { %v1382_v19 = vmax.f32 %v1350_v12, 0.0  ;;  %v1889_v20 = vadd.f32 %v1888_v15, %v1887_v14  ;;  %v1150_v21 = vadd.f32 %v1886_v13, %v1149_v17  ;;  %v1151_v22 = vpop.f32.mrb[21].mxu1 }
 0x128   : > { %v1812_v18 = vpack.c.bf16 %v1381_v11, %v1381_v11  ;;  %v1152_v24 = vpop.f32.mrb[22].mxu1 }
 0x129   : > { %v1813_v25 = vpack.c.bf16 %v1382_v19, %v1382_v19  ;;  %v1246_v26 = vadd.f32 %v1150_v21, %v275_v16  ;;  %v1153_v27 = vadd.f32 %v1889_v20, %v1152_v24  ;;  %v1154_v28 = vpop.f32.mrb[23].mxu1 }
 0x12a   : > { %1542 = vst.msk [vmem:[%s2383_s29 + $0x18] sm:$0xf] %vm1535_vm3, %v1812_v18 }
 0x12b   : > { %v1312_v29 = vld [vmem:[#allocation2 + $0x40] sm:$0xff]  ;;  %1543 = vst.msk [vmem:[%s2383_s29 + $0x1c] sm:$0xf] %vm1535_vm3, %v1813_v25  ;;  %v1247_v31 = vadd.f32 %v1153_v27, %v276_v23  ;;  %v1890_v32 = vpop.f32.mrb[24].mxu0 }
 0x12c   : > { %v1351_v30 = vadd.f32 %v2373_v54, %v1312_v29  ;;  %1279 = vst.msk [vmem:[#allocation2 + $0x50] sm:$0xff] %vm232_vm2, %v1246_v26  ;;  %v1313_v33 = vld [vmem:[#allocation2 + $0x48] sm:$0xff]  ;;  %v1891_v34 = vpop.f32.mrb[25].mxu0  ;;  %v281_v25 = vld [vmem:[#allocation2 + $0x80] sm:$0xff] }
 0x12d   : > { %v1352_v36 = vadd.f32 %v2373_v54, %v1313_v33  ;;  %1280 = vst.msk [vmem:[#allocation2 + $0x58] sm:$0xff] %vm232_vm2, %v1247_v31  ;;  %v1892_v37 = vadd.f32 %v1891_v34, %v1890_v32  ;;  %v1893_v38 = vpop.f32.mrb[26].mxu0  ;;  %v282_v32 = vld [vmem:[#allocation2 + $0x88] sm:$0xff] }
 0x12e   : > { %v1383_v35 = vmax.f32 %v1351_v30, 0.0  ;;  %v1894_v39 = vpop.f32.mrb[27].mxu0  ;;  %v1157_v41 = vpop.f32.mrb[24].mxu1 }
 0x12f   : > { %v1384_v43 = vmax.f32 %v1352_v36, 0.0  ;;  %v1895_v44 = vadd.f32 %v1894_v39, %v1893_v38  ;;  %v1158_v45 = vadd.f32 %v1892_v37, %v1157_v41  ;;  %v1159_v46 = vpop.f32.mrb[25].mxu1 }
 0x130   : > { %v1814_v42 = vpack.c.bf16 %v1383_v35, %v1383_v35  ;;  %v1160_v48 = vpop.f32.mrb[26].mxu1 }
 0x131   : > { %v1815_v49 = vpack.c.bf16 %v1384_v43, %v1384_v43  ;;  %v1248_v50 = vadd.f32 %v1158_v45, %v277_v40  ;;  %v1161_v51 = vadd.f32 %v1895_v44, %v1160_v48  ;;  %v1162_v52 = vpop.f32.mrb[27].mxu1 }
 0x132   : > { %1544 = vst.msk [vmem:[%s2383_s29 + $0x20] sm:$0xf] %vm1535_vm3, %v1814_v42 }
 0x133   : > { %v1314_v53 = vld [vmem:[#allocation2 + $0x50] sm:$0xff]  ;;  %1545 = vst.msk [vmem:[%s2383_s29 + $0x24] sm:$0xf] %vm1535_vm3, %v1815_v49  ;;  %v1249_v56 = vadd.f32 %v1161_v51, %v278_v47  ;;  %v1896_v57 = vpop.f32.mrb[28].mxu0 }
 0x134   : > { %v1353_v55 = vadd.f32 %v2373_v54, %v1314_v53  ;;  %1281 = vst.msk [vmem:[#allocation2 + $0x60] sm:$0xff] %vm232_vm2, %v1248_v50  ;;  %v1315_v58 = vld [vmem:[#allocation2 + $0x58] sm:$0xff]  ;;  %v1897_v59 = vpop.f32.mrb[29].mxu0  ;;  %v283_v49 = vld [vmem:[#allocation2 + $0x90] sm:$0xff] }
 0x135   : > { %v1354_v61 = vadd.f32 %v2373_v54, %v1315_v58  ;;  %1282 = vst.msk [vmem:[#allocation2 + $0x68] sm:$0xff] %vm232_vm2, %v1249_v56  ;;  %v1898_v62 = vadd.f32 %v1897_v59, %v1896_v57  ;;  %v1899_v63 = vpop.f32.mrb[30].mxu0  ;;  %v284_v57 = vld [vmem:[#allocation2 + $0x98] sm:$0xff] }
 0x136   : > { %v1385_v60 = vmax.f32 %v1353_v55, 0.0  ;;  %v1900_v0 = vpop.f32.mrb[31].mxu0  ;;  %v1165_v2 = vpop.f32.mrb[28].mxu1 }
 0x137   : > { %v1386_v4 = vmax.f32 %v1354_v61, 0.0  ;;  %v1901_v5 = vadd.f32 %v1900_v0, %v1899_v63  ;;  %v1166_v6 = vadd.f32 %v1898_v62, %v1165_v2  ;;  %v1167_v7 = vpop.f32.mrb[29].mxu1 }
 0x138   : > { %v1816_v3 = vpack.c.bf16 %v1385_v60, %v1385_v60  ;;  %v1168_v9 = vpop.f32.mrb[30].mxu1 }
 0x139   : > { %v1817_v10 = vpack.c.bf16 %v1386_v4, %v1386_v4  ;;  %v1250_v11 = vadd.f32 %v1166_v6, %v279_v1  ;;  %v1169_v12 = vadd.f32 %v1901_v5, %v1168_v9  ;;  %v1170_v13 = vpop.f32.mrb[31].mxu1 }
 0x13a   : > { %1546 = vst.msk [vmem:[%s2383_s29 + $0x28] sm:$0xf] %vm1535_vm3, %v1816_v3 }
 0x13b   : > { %v1316_v14 = vld [vmem:[#allocation2 + $0x60] sm:$0xff]  ;;  %1547 = vst.msk [vmem:[%s2383_s29 + $0x2c] sm:$0xf] %vm1535_vm3, %v1817_v10  ;;  %v1251_v16 = vadd.f32 %v1169_v12, %v280_v8  ;;  %v1902_v17 = vpop.f32.mrb[32].mxu0 }
 0x13c   : > { %v1355_v15 = vadd.f32 %v2373_v54, %v1316_v14  ;;  %1283 = vst.msk [vmem:[#allocation2 + $0x70] sm:$0xff] %vm232_vm2, %v1250_v11  ;;  %v1317_v18 = vld [vmem:[#allocation2 + $0x68] sm:$0xff]  ;;  %v1903_v19 = vpop.f32.mrb[33].mxu0  ;;  %v285_v10 = vld [vmem:[#allocation2 + $0xa0] sm:$0xff] }
 0x13d   : > { %v1356_v21 = vadd.f32 %v2373_v54, %v1317_v18  ;;  %1284 = vst.msk [vmem:[#allocation2 + $0x78] sm:$0xff] %vm232_vm2, %v1251_v16  ;;  %v1904_v22 = vadd.f32 %v1903_v19, %v1902_v17  ;;  %v1905_v23 = vpop.f32.mrb[34].mxu0  ;;  %v286_v17 = vld [vmem:[#allocation2 + $0xa8] sm:$0xff] }
 0x13e   : > { %v1387_v20 = vmax.f32 %v1355_v15, 0.0  ;;  %v1906_v24 = vpop.f32.mrb[35].mxu0  ;;  %v1173_v26 = vpop.f32.mrb[32].mxu1 }
 0x13f   : > { %v1388_v28 = vmax.f32 %v1356_v21, 0.0  ;;  %v1907_v29 = vadd.f32 %v1906_v24, %v1905_v23  ;;  %v1174_v30 = vadd.f32 %v1904_v22, %v1173_v26  ;;  %v1175_v31 = vpop.f32.mrb[33].mxu1 }
 0x140   : > { %v1818_v27 = vpack.c.bf16 %v1387_v20, %v1387_v20  ;;  %v1176_v33 = vpop.f32.mrb[34].mxu1 }
 0x141   : > { %v1819_v34 = vpack.c.bf16 %v1388_v28, %v1388_v28  ;;  %v1252_v35 = vadd.f32 %v1174_v30, %v281_v25  ;;  %v1177_v36 = vadd.f32 %v1907_v29, %v1176_v33  ;;  %v1178_v37 = vpop.f32.mrb[35].mxu1 }
 0x142   : > { %1548 = vst.msk [vmem:[%s2383_s29 + $0x30] sm:$0xf] %vm1535_vm3, %v1818_v27 }
 0x143   : > { %v1318_v38 = vld [vmem:[#allocation2 + $0x70] sm:$0xff]  ;;  %1549 = vst.msk [vmem:[%s2383_s29 + $0x34] sm:$0xf] %vm1535_vm3, %v1819_v34  ;;  %v1253_v40 = vadd.f32 %v1177_v36, %v282_v32  ;;  %v1908_v41 = vpop.f32.mrb[36].mxu0 }
 0x144   : > { %v1357_v39 = vadd.f32 %v2373_v54, %v1318_v38  ;;  %1285 = vst.msk [vmem:[#allocation2 + $0x80] sm:$0xff] %vm232_vm2, %v1252_v35  ;;  %v1319_v42 = vld [vmem:[#allocation2 + $0x78] sm:$0xff]  ;;  %v1909_v43 = vpop.f32.mrb[37].mxu0  ;;  %v287_v34 = vld [vmem:[#allocation2 + $0xb0] sm:$0xff] }
 0x145   : > { %v1358_v45 = vadd.f32 %v2373_v54, %v1319_v42  ;;  %1286 = vst.msk [vmem:[#allocation2 + $0x88] sm:$0xff] %vm232_vm2, %v1253_v40  ;;  %v1910_v46 = vadd.f32 %v1909_v43, %v1908_v41  ;;  %v1911_v47 = vpop.f32.mrb[38].mxu0  ;;  %v288_v41 = vld [vmem:[#allocation2 + $0xb8] sm:$0xff] }
 0x146   : > { %v1389_v44 = vmax.f32 %v1357_v39, 0.0  ;;  %v1912_v48 = vpop.f32.mrb[39].mxu0  ;;  %v1181_v50 = vpop.f32.mrb[36].mxu1 }
 0x147   : > { %v1390_v52 = vmax.f32 %v1358_v45, 0.0  ;;  %v1913_v53 = vadd.f32 %v1912_v48, %v1911_v47  ;;  %v1182_v55 = vadd.f32 %v1910_v46, %v1181_v50  ;;  %v1183_v56 = vpop.f32.mrb[37].mxu1 }
 0x148   : > { %v1820_v51 = vpack.c.bf16 %v1389_v44, %v1389_v44  ;;  %v1184_v58 = vpop.f32.mrb[38].mxu1 }
 0x149   : > { %v1821_v59 = vpack.c.bf16 %v1390_v52, %v1390_v52  ;;  %v1254_v60 = vadd.f32 %v1182_v55, %v283_v49  ;;  %v1185_v61 = vadd.f32 %v1913_v53, %v1184_v58  ;;  %v1186_v62 = vpop.f32.mrb[39].mxu1 }
 0x14a   : > { %1550 = vst.msk [vmem:[%s2383_s29 + $0x38] sm:$0xf] %vm1535_vm3, %v1820_v51 }
 0x14b   : > { %v1320_v63 = vld [vmem:[#allocation2 + $0x80] sm:$0xff]  ;;  %1551 = vst.msk [vmem:[%s2383_s29 + $0x3c] sm:$0xf] %vm1535_vm3, %v1821_v59  ;;  %v1255_v1 = vadd.f32 %v1185_v61, %v284_v57  ;;  %v1914_v2 = vpop.f32.mrb[40].mxu0 }
 0x14c   : > { %v1359_v0 = vadd.f32 %v2373_v54, %v1320_v63  ;;  %1287 = vst.msk [vmem:[#allocation2 + $0x90] sm:$0xff] %vm232_vm2, %v1254_v60  ;;  %v1321_v3 = vld [vmem:[#allocation2 + $0x88] sm:$0xff]  ;;  %v1915_v4 = vpop.f32.mrb[41].mxu0  ;;  %v289_v59 = vld [vmem:[#allocation2 + $0xc0] sm:$0xff] }
 0x14d   : > { %v1360_v6 = vadd.f32 %v2373_v54, %v1321_v3  ;;  %1288 = vst.msk [vmem:[#allocation2 + $0x98] sm:$0xff] %vm232_vm2, %v1255_v1  ;;  %v1916_v7 = vadd.f32 %v1915_v4, %v1914_v2  ;;  %v1917_v8 = vpop.f32.mrb[42].mxu0  ;;  %v290_v2 = vld [vmem:[#allocation2 + $0xc8] sm:$0xff] }
 0x14e   : > { %v1391_v5 = vmax.f32 %v1359_v0, 0.0  ;;  %v1918_v9 = vpop.f32.mrb[43].mxu0  ;;  %v1189_v11 = vpop.f32.mrb[40].mxu1 }
 0x14f   : > { %v1392_v13 = vmax.f32 %v1360_v6, 0.0  ;;  %v1919_v14 = vadd.f32 %v1918_v9, %v1917_v8  ;;  %v1190_v15 = vadd.f32 %v1916_v7, %v1189_v11  ;;  %v1191_v16 = vpop.f32.mrb[41].mxu1 }
 0x150   : > { %v1822_v12 = vpack.c.bf16 %v1391_v5, %v1391_v5  ;;  %v1192_v18 = vpop.f32.mrb[42].mxu1 }
 0x151   : > { %v1823_v19 = vpack.c.bf16 %v1392_v13, %v1392_v13  ;;  %v1256_v20 = vadd.f32 %v1190_v15, %v285_v10  ;;  %v1193_v21 = vadd.f32 %v1919_v14, %v1192_v18  ;;  %v1194_v22 = vpop.f32.mrb[43].mxu1 }
 0x152   : > { %1552 = vst.msk [vmem:[%s2383_s29 + $0x40] sm:$0xf] %vm1535_vm3, %v1822_v12 }
 0x153   : > { %v1322_v23 = vld [vmem:[#allocation2 + $0x90] sm:$0xff]  ;;  %1553 = vst.msk [vmem:[%s2383_s29 + $0x44] sm:$0xf] %vm1535_vm3, %v1823_v19  ;;  %v1257_v25 = vadd.f32 %v1193_v21, %v286_v17  ;;  %v1920_v26 = vpop.f32.mrb[44].mxu0 }
 0x154   : > { %v1361_v24 = vadd.f32 %v2373_v54, %v1322_v23  ;;  %1289 = vst.msk [vmem:[#allocation2 + $0xa0] sm:$0xff] %vm232_vm2, %v1256_v20  ;;  %v1323_v27 = vld [vmem:[#allocation2 + $0x98] sm:$0xff]  ;;  %v1921_v28 = vpop.f32.mrb[45].mxu0  ;;  %v291_v19 = vld [vmem:[#allocation2 + $0xd0] sm:$0xff] }
 0x155   : > { %v1362_v30 = vadd.f32 %v2373_v54, %v1323_v27  ;;  %1290 = vst.msk [vmem:[#allocation2 + $0xa8] sm:$0xff] %vm232_vm2, %v1257_v25  ;;  %v1922_v31 = vadd.f32 %v1921_v28, %v1920_v26  ;;  %v1923_v32 = vpop.f32.mrb[46].mxu0  ;;  %v292_v26 = vld [vmem:[#allocation2 + $0xd8] sm:$0xff] }
 0x156   : > { %v1393_v29 = vmax.f32 %v1361_v24, 0.0  ;;  %v1924_v33 = vpop.f32.mrb[47].mxu0  ;;  %v1197_v35 = vpop.f32.mrb[44].mxu1 }
 0x157   : > { %v1394_v37 = vmax.f32 %v1362_v30, 0.0  ;;  %v1925_v38 = vadd.f32 %v1924_v33, %v1923_v32  ;;  %v1198_v39 = vadd.f32 %v1922_v31, %v1197_v35  ;;  %v1199_v40 = vpop.f32.mrb[45].mxu1 }
 0x158   : > { %v1824_v36 = vpack.c.bf16 %v1393_v29, %v1393_v29  ;;  %v1200_v42 = vpop.f32.mrb[46].mxu1 }
 0x159   : > { %v1825_v43 = vpack.c.bf16 %v1394_v37, %v1394_v37  ;;  %v1258_v44 = vadd.f32 %v1198_v39, %v287_v34  ;;  %v1201_v45 = vadd.f32 %v1925_v38, %v1200_v42  ;;  %v1202_v46 = vpop.f32.mrb[47].mxu1 }
 0x15a   : > { %1554 = vst.msk [vmem:[%s2383_s29 + $0x48] sm:$0xf] %vm1535_vm3, %v1824_v36 }
 0x15b   : > { %v1324_v47 = vld [vmem:[#allocation2 + $0xa0] sm:$0xff]  ;;  %1555 = vst.msk [vmem:[%s2383_s29 + $0x4c] sm:$0xf] %vm1535_vm3, %v1825_v43  ;;  %v1259_v49 = vadd.f32 %v1201_v45, %v288_v41  ;;  %v1926_v50 = vpop.f32.mrb[48].mxu0 }
 0x15c   : > { %v1363_v48 = vadd.f32 %v2373_v54, %v1324_v47  ;;  %1291 = vst.msk [vmem:[#allocation2 + $0xb0] sm:$0xff] %vm232_vm2, %v1258_v44  ;;  %v1325_v51 = vld [vmem:[#allocation2 + $0xa8] sm:$0xff]  ;;  %v1927_v52 = vpop.f32.mrb[49].mxu0  ;;  %v293_v43 = vld [vmem:[#allocation2 + $0xe0] sm:$0xff] }
 0x15d   : > { %v1364_v55 = vadd.f32 %v2373_v54, %v1325_v51  ;;  %1292 = vst.msk [vmem:[#allocation2 + $0xb8] sm:$0xff] %vm232_vm2, %v1259_v49  ;;  %v1928_v56 = vadd.f32 %v1927_v52, %v1926_v50  ;;  %v1929_v57 = vpop.f32.mrb[50].mxu0  ;;  %v294_v50 = vld [vmem:[#allocation2 + $0xe8] sm:$0xff] }
 0x15e   : > { %v1395_v53 = vmax.f32 %v1363_v48, 0.0  ;;  %v1930_v58 = vpop.f32.mrb[51].mxu0  ;;  %v1205_v60 = vpop.f32.mrb[48].mxu1 }
 0x15f   : > { %v1396_v62 = vmax.f32 %v1364_v55, 0.0  ;;  %v1931_v63 = vadd.f32 %v1930_v58, %v1929_v57  ;;  %v1206_v0 = vadd.f32 %v1928_v56, %v1205_v60  ;;  %v1207_v1 = vpop.f32.mrb[49].mxu1 }
 0x160   : > { %v1826_v61 = vpack.c.bf16 %v1395_v53, %v1395_v53  ;;  %v1208_v3 = vpop.f32.mrb[50].mxu1 }
 0x161   : > { %v1827_v4 = vpack.c.bf16 %v1396_v62, %v1396_v62  ;;  %v1260_v5 = vadd.f32 %v1206_v0, %v289_v59  ;;  %v1209_v6 = vadd.f32 %v1931_v63, %v1208_v3  ;;  %v1210_v7 = vpop.f32.mrb[51].mxu1 }
 0x162   : > { %1556 = vst.msk [vmem:[%s2383_s29 + $0x50] sm:$0xf] %vm1535_vm3, %v1826_v61 }
 0x163   : > { %v1326_v8 = vld [vmem:[#allocation2 + $0xb0] sm:$0xff]  ;;  %1557 = vst.msk [vmem:[%s2383_s29 + $0x54] sm:$0xf] %vm1535_vm3, %v1827_v4  ;;  %v1261_v10 = vadd.f32 %v1209_v6, %v290_v2  ;;  %v1932_v11 = vpop.f32.mrb[52].mxu0 }
 0x164   : > { %v1365_v9 = vadd.f32 %v2373_v54, %v1326_v8  ;;  %1293 = vst.msk [vmem:[#allocation2 + $0xc0] sm:$0xff] %vm232_vm2, %v1260_v5  ;;  %v1327_v12 = vld [vmem:[#allocation2 + $0xb8] sm:$0xff]  ;;  %v1933_v13 = vpop.f32.mrb[53].mxu0  ;;  %v295_v4 = vld [vmem:[#allocation2 + $0xf0] sm:$0xff] }
 0x165   : > { %v1366_v15 = vadd.f32 %v2373_v54, %v1327_v12  ;;  %1294 = vst.msk [vmem:[#allocation2 + $0xc8] sm:$0xff] %vm232_vm2, %v1261_v10  ;;  %v1934_v16 = vadd.f32 %v1933_v13, %v1932_v11  ;;  %v1935_v17 = vpop.f32.mrb[54].mxu0  ;;  %v296_v11 = vld [vmem:[#allocation2 + $0xf8] sm:$0xff] }
 0x166   : > { %v1397_v14 = vmax.f32 %v1365_v9, 0.0  ;;  %v1936_v18 = vpop.f32.mrb[55].mxu0  ;;  %v1213_v20 = vpop.f32.mrb[52].mxu1 }
 0x167   : > { %v1398_v22 = vmax.f32 %v1366_v15, 0.0  ;;  %v1937_v23 = vadd.f32 %v1936_v18, %v1935_v17  ;;  %v1214_v24 = vadd.f32 %v1934_v16, %v1213_v20  ;;  %v1215_v25 = vpop.f32.mrb[53].mxu1 }
 0x168   : > { %v1828_v21 = vpack.c.bf16 %v1397_v14, %v1397_v14  ;;  %v1216_v27 = vpop.f32.mrb[54].mxu1 }
 0x169   : > { %v1829_v28 = vpack.c.bf16 %v1398_v22, %v1398_v22  ;;  %v1262_v29 = vadd.f32 %v1214_v24, %v291_v19  ;;  %v1217_v30 = vadd.f32 %v1937_v23, %v1216_v27  ;;  %v1218_v31 = vpop.f32.mrb[55].mxu1 }
 0x16a   : > { %1558 = vst.msk [vmem:[%s2383_s29 + $0x58] sm:$0xf] %vm1535_vm3, %v1828_v21 }
 0x16b   : > { %v1328_v32 = vld [vmem:[#allocation2 + $0xc0] sm:$0xff]  ;;  %1559 = vst.msk [vmem:[%s2383_s29 + $0x5c] sm:$0xf] %vm1535_vm3, %v1829_v28  ;;  %v1263_v34 = vadd.f32 %v1217_v30, %v292_v26  ;;  %v1938_v35 = vpop.f32.mrb[56].mxu0 }
 0x16c   : > { %v1367_v33 = vadd.f32 %v2373_v54, %v1328_v32  ;;  %1295 = vst.msk [vmem:[#allocation2 + $0xd0] sm:$0xff] %vm232_vm2, %v1262_v29  ;;  %v1329_v36 = vld [vmem:[#allocation2 + $0xc8] sm:$0xff]  ;;  %v1939_v37 = vpop.f32.mrb[57].mxu0 }
 0x16d   : > { %v1368_v39 = vadd.f32 %v2373_v54, %v1329_v36  ;;  %1296 = vst.msk [vmem:[#allocation2 + $0xd8] sm:$0xff] %vm232_vm2, %v1263_v34  ;;  %v1940_v40 = vadd.f32 %v1939_v37, %v1938_v35  ;;  %v1941_v41 = vpop.f32.mrb[58].mxu0 }
 0x16e   : > { %v1399_v38 = vmax.f32 %v1367_v33, 0.0  ;;  %v1942_v42 = vpop.f32.mrb[59].mxu0  ;;  %v1221_v44 = vpop.f32.mrb[56].mxu1 }
 0x16f   : > { %v1400_v46 = vmax.f32 %v1368_v39, 0.0  ;;  %v1943_v47 = vadd.f32 %v1942_v42, %v1941_v41  ;;  %v1222_v48 = vadd.f32 %v1940_v40, %v1221_v44  ;;  %v1223_v49 = vpop.f32.mrb[57].mxu1 }
 0x170   : > { %v1830_v45 = vpack.c.bf16 %v1399_v38, %v1399_v38  ;;  %v1224_v51 = vpop.f32.mrb[58].mxu1 }
 0x171   : > { %v1831_v52 = vpack.c.bf16 %v1400_v46, %v1400_v46  ;;  %v1264_v53 = vadd.f32 %v1222_v48, %v293_v43  ;;  %v1225_v55 = vadd.f32 %v1943_v47, %v1224_v51  ;;  %v1226_v56 = vpop.f32.mrb[59].mxu1 }
 0x172   : > { %1560 = vst.msk [vmem:[%s2383_s29 + $0x60] sm:$0xf] %vm1535_vm3, %v1830_v45 }
 0x173   : > { %v1330_v57 = vld [vmem:[#allocation2 + $0xd0] sm:$0xff]  ;;  %1561 = vst.msk [vmem:[%s2383_s29 + $0x64] sm:$0xf] %vm1535_vm3, %v1831_v52  ;;  %v1265_v59 = vadd.f32 %v1225_v55, %v294_v50  ;;  %v1944_v60 = vpop.f32.mrb[60].mxu0 }
 0x174   : > { %v1369_v58 = vadd.f32 %v2373_v54, %v1330_v57  ;;  %1297 = vst.msk [vmem:[#allocation2 + $0xe0] sm:$0xff] %vm232_vm2, %v1264_v53  ;;  %v1331_v61 = vld [vmem:[#allocation2 + $0xd8] sm:$0xff]  ;;  %v1945_v62 = vpop.f32.mrb[61].mxu0 }
 0x175   : > { %v1370_v0 = vadd.f32 %v2373_v54, %v1331_v61  ;;  %1298 = vst.msk [vmem:[#allocation2 + $0xe8] sm:$0xff] %vm232_vm2, %v1265_v59  ;;  %v1946_v1 = vadd.f32 %v1945_v62, %v1944_v60  ;;  %v1947_v2 = vpop.f32.mrb[62].mxu0 }
 0x176   : > { %v1401_v63 = vmax.f32 %v1369_v58, 0.0  ;;  %v1948_v3 = vpop.f32.mrb[63].mxu0  ;;  %v1229_v5 = vpop.f32.mrb[60].mxu1 }
 0x177   : > { %v1402_v7 = vmax.f32 %v1370_v0, 0.0  ;;  %v1949_v8 = vadd.f32 %v1948_v3, %v1947_v2  ;;  %v1230_v9 = vadd.f32 %v1946_v1, %v1229_v5  ;;  %v1231_v10 = vpop.f32.mrb[61].mxu1 }
 0x178   : > { %v1832_v6 = vpack.c.bf16 %v1401_v63, %v1401_v63  ;;  %v1232_v12 = vpop.f32.mrb[62].mxu1 }
 0x179   : > { %v1833_v13 = vpack.c.bf16 %v1402_v7, %v1402_v7  ;;  %v1266_v14 = vadd.f32 %v1230_v9, %v295_v4  ;;  %v1233_v15 = vadd.f32 %v1949_v8, %v1232_v12  ;;  %v1234_v16 = vpop.f32.mrb[63].mxu1 }
 0x17a   : > { %1562 = vst.msk [vmem:[%s2383_s29 + $0x68] sm:$0xf] %vm1535_vm3, %v1832_v6 }
 0x17b   : > { %v1332_v17 = vld [vmem:[#allocation2 + $0xe0] sm:$0xff]  ;;  %1563 = vst.msk [vmem:[%s2383_s29 + $0x6c] sm:$0xf] %vm1535_vm3, %v1833_v13  ;;  %v1267_v19 = vadd.f32 %v1233_v15, %v296_v11 }
 0x17c   : > { %v1371_v18 = vadd.f32 %v2373_v54, %v1332_v17  ;;  %1299 = vst.msk [vmem:[#allocation2 + $0xf0] sm:$0xff] %vm232_vm2, %v1266_v14  ;;  %v1333_v20 = vld [vmem:[#allocation2 + $0xe8] sm:$0xff] }
 0x17d   : > { %v1372_v22 = vadd.f32 %v2373_v54, %v1333_v20  ;;  %1300 = vst.msk [vmem:[#allocation2 + $0xf8] sm:$0xff] %vm232_vm2, %v1267_v19 }
 0x17e   : > { %v1403_v21 = vmax.f32 %v1371_v18, 0.0 }
 0x17f   : > { %v1404_v24 = vmax.f32 %v1372_v22, 0.0 }
 0x180   : > { %v1834_v23 = vpack.c.bf16 %v1403_v21, %v1403_v21 }
 0x181   : > { %v1835_v25 = vpack.c.bf16 %v1404_v24, %v1404_v24 }
 0x182   : > { %1564 = vst.msk [vmem:[%s2383_s29 + $0x70] sm:$0xf] %vm1535_vm3, %v1834_v23 }
 0x183   : > { %v1334_v26 = vld [vmem:[#allocation2 + $0xf0] sm:$0xff]  ;;  %1565 = vst.msk [vmem:[%s2383_s29 + $0x74] sm:$0xf] %vm1535_vm3, %v1835_v25 }
 0x184   : > { %v1373_v27 = vadd.f32 %v2373_v54, %v1334_v26  ;;  %v1335_v28 = vld [vmem:[#allocation2 + $0xf8] sm:$0xff] }
 0x185   : > { %v1374_v30 = vadd.f32 %v2373_v54, %v1335_v28 }
 0x186   : > { %v1405_v29 = vmax.f32 %v1373_v27, 0.0 }
 0x187   : > { %v1406_v32 = vmax.f32 %v1374_v30, 0.0 }
 0x188   : > { %v1836_v31 = vpack.c.bf16 %v1405_v29, %v1405_v29 }
 0x189   : > { %v1837_v33 = vpack.c.bf16 %v1406_v32, %v1406_v32 }
 0x18a   : > { %1566 = vst.msk [vmem:[%s2383_s29 + $0x78] sm:$0xf] %vm1535_vm3, %v1836_v31 }
 0x18b   : > { %1567 = vst.msk [vmem:[%s2383_s29 + $0x7c] sm:$0xf] %vm1535_vm3, %v1837_v33 }
 0x18c PF: > { %s13_s14 = sadd.s32 1, %s2119_s14   ;;  %s2520_s12 = smov %s2115_s13 }
 0x18d   : > { %p10_p5 = scmp.ge.s32.totalorder %s13_s14, 4   ;;  %s2521_s13 = smov %s2523_s15 }
 0x18f   :  { %12 = sbr.rel (!%p10_p5) target bundleno = 2 (0x2), region = 73 }

// kernel: _lambda_.9
= control target key start
LH: loop header
LB: loop body
LE: loop exit
PB: predicated region body
PF: predicated region fallthrough
CT: control target
= control target key end

     0   :  { %vm587_vm0 = vcmask 523264   ;;  %s1839_s1 = inlined_call_operand.vmem [shape: bf16[576,128], index: 1, kind: input, shape index: {}]   ;;  %s1840_s0 = inlined_call_operand.vmem [shape: bf16[128,576], index: 0, kind: input, shape index: {}]   ;;  %s1841_s2 = inlined_call_operand.vmem [shape: f32[1,128], index: 2, kind: input, shape index: {}]   ;;  %s1842_s3 = inlined_call_operand.vmem [shape: bf16[128,128], index: 3, kind: output, shape index: {}]  }
   0x1   :  { %v1413_v0 = vld [vmem:[%s1839_s1 + $0x40] sm:$0xff]   ;;  %v1417_v4 = vld [vmem:[%s1839_s1 + $0x48] sm:$0xff]   ;;  %v1421_v8 = vld [vmem:[%s1839_s1 + $0x50] sm:$0xff]  }
   0x2   :  { %v1414_v1 = vld [vmem:[%s1839_s1 + $0xc0] sm:$0xff]   ;;  %1241 = vmatprep.subr.bf16.mxu0 %v1413_v0  ;;  %v1418_v5 = vld [vmem:[%s1839_s1 + $0xc8] sm:$0xff]   ;;  %v1422_v9 = vld [vmem:[%s1839_s1 + $0xd0] sm:$0xff]  }
   0x3   :  { %v1415_v2 = vld [vmem:[%s1839_s1] sm:$0xff]   ;;  %1305 = vmatprep.subr.bf16.mxu1 %v1414_v1  ;;  %v1419_v6 = vld [vmem:[%s1839_s1 + $0x8] sm:$0xff]   ;;  %v1423_v10 = vld [vmem:[%s1839_s1 + $0x10] sm:$0xff]  }
   0x4   :  { %v1416_v3 = vld [vmem:[%s1839_s1 + $0x80] sm:$0xff]   ;;  %1242 = vmatpush3.bf16.msra.mxu0 %v1415_v2  ;;  %v1420_v7 = vld [vmem:[%s1839_s1 + $0x88] sm:$0xff]   ;;  %v1424_v11 = vld [vmem:[%s1839_s1 + $0x90] sm:$0xff]  }
   0x5   :  { %1306 = vmatpush3.bf16.msra.mxu1 %v1416_v3  ;;  %1243 = vmatprep.subr.bf16.mxu0 %v1417_v4  ;;  %v1425_v12 = vld [vmem:[%s1839_s1 + $0x58] sm:$0xff]   ;;  %v1429_v16 = vld [vmem:[%s1839_s1 + $0x60] sm:$0xff]   ;;  %v1433_v20 = vld [vmem:[%s1839_s1 + $0x68] sm:$0xff]  }
   0x6   :  { %1307 = vmatprep.subr.bf16.mxu1 %v1418_v5  ;;  %v1426_v13 = vld [vmem:[%s1839_s1 + $0xd8] sm:$0xff]   ;;  %v1430_v17 = vld [vmem:[%s1839_s1 + $0xe0] sm:$0xff]   ;;  %v1434_v21 = vld [vmem:[%s1839_s1 + $0xe8] sm:$0xff]  }
   0x7   :  { %v1427_v14 = vld [vmem:[%s1839_s1 + $0x18] sm:$0xff]   ;;  %v1431_v18 = vld [vmem:[%s1839_s1 + $0x20] sm:$0xff]   ;;  %v1435_v22 = vld [vmem:[%s1839_s1 + $0x28] sm:$0xff]  }
   0x8   :  { %1244 = vmatpush3.bf16.msra.mxu0 %v1419_v6  ;;  %v1428_v15 = vld [vmem:[%s1839_s1 + $0x98] sm:$0xff]   ;;  %v1432_v19 = vld [vmem:[%s1839_s1 + $0xa0] sm:$0xff]   ;;  %v1436_v23 = vld [vmem:[%s1839_s1 + $0xa8] sm:$0xff]  }
   0x9   :  { %1308 = vmatpush3.bf16.msra.mxu1 %v1420_v7  ;;  %1245 = vmatprep.subr.bf16.mxu0 %v1421_v8  ;;  %v1437_v24 = vld [vmem:[%s1839_s1 + $0x70] sm:$0xff]   ;;  %v1441_v28 = vld [vmem:[%s1839_s1 + $0x78] sm:$0xff]   ;;  %v1450_v35 = vld [vmem:[%s1840_s0 + $0xc] ss:$20 sps:$4 sm:$0xff]  }
   0xa   :  { %1309 = vmatprep.subr.bf16.mxu1 %v1422_v9  ;;  %v1438_v25 = vld [vmem:[%s1839_s1 + $0xf0] sm:$0xff]   ;;  %v1442_v29 = vld [vmem:[%s1839_s1 + $0xf8] sm:$0xff]   ;;  %v1451_v36 = vld [vmem:[%s1839_s1 + $0x100] sm:$0xff]   ;;  %741 = vmatprep.mubr.bf16.mxu1 %v1450_v35 }
   0xb   :  { %v1439_v26 = vld [vmem:[%s1839_s1 + $0x30] sm:$0xff]   ;;  %v1443_v30 = vld [vmem:[%s1839_s1 + $0x38] sm:$0xff]   ;;  %v1452_v37 = vld [vmem:[%s1840_s0 + $0x2c] ss:$20 sps:$4 sm:$0xff]  }
   0xc   :  { %1246 = vmatpush3.bf16.msra.mxu0 %v1423_v10  ;;  %v1440_v27 = vld [vmem:[%s1839_s1 + $0xb0] sm:$0xff]   ;;  %v1444_v31 = vld [vmem:[%s1839_s1 + $0xb8] sm:$0xff]   ;;  %v1464_v42 = vld [vmem:[%s1839_s1 + $0x108] sm:$0xff]  }
   0xd   :  { %1310 = vmatpush3.bf16.msra.mxu1 %v1424_v11  ;;  %1247 = vmatprep.subr.bf16.mxu0 %v1425_v12  ;;  %v1445_v32 = vld [vmem:[%s1840_s0] ss:$20 sps:$4 sm:$0xff]   ;;  %v1447_v33 = vld [vmem:[%s1840_s0 + $0x4] ss:$20 sps:$4 sm:$0xff]   ;;  %v1448_v34 = vld [vmem:[%s1840_s0 + $0x8] ss:$20 sps:$4 sm:$0xff]  }
   0xe   :  { %1311 = vmatprep.subr.bf16.mxu1 %v1426_v13  ;;  %644 = vmatprep.mubr.bf16.mxu0 %v1447_v33  ;;  %v1454_v38 = vld [vmem:[%s1840_s0 + $0x34] ss:$20 sps:$4 sm:$0xff]   ;;  %v1457_v40 = vld [vmem:[%s1840_s0 + $0x30] ss:$20 sps:$4 sm:$0xff]   ;;  %v1463_v45 = vld [vmem:[%s1840_s0 + $0x58] ss:$20 sps:$4 sm:$0xff]  }
   0xf   :  { %v1456_v39 = vld [vmem:[%s1840_s0 + $0x28] ss:$20 sps:$4 sm:$0xff]   ;;  %v1462_v44 = vld [vmem:[%s1840_s0 + $0x50] ss:$20 sps:$4 sm:$0xff]   ;;  %v1469_v50 = vld [vmem:[%s1840_s0 + $0x78] ss:$20 sps:$4 sm:$0xff]  }
  0x10   :  { %1248 = vmatpush3.bf16.msra.mxu0 %v1427_v14  ;;  %v1458_v41 = vld [vmem:[%s1840_s0 + $0x54] ss:$20 sps:$4 sm:$0xff]   ;;  %v1460_v43 = vld [vmem:[%s1840_s0 + $0x5c] ss:$20 sps:$4 sm:$0xff]   ;;  %v1467_v48 = vld [vmem:[%s1840_s0 + $0x84] ss:$20 sps:$4 sm:$0xff]  }
  0x11   :  { %1312 = vmatpush3.bf16.msra.mxu1 %v1428_v15  ;;  %1249 = vmatprep.subr.bf16.mxu0 %v1429_v16  ;;  %v1477_v46 = vld [vmem:[%s1839_s1 + $0x110] sm:$0xff]   ;;  %v1490_v49 = vld [vmem:[%s1839_s1 + $0x118] sm:$0xff]   ;;  %v1473_v53 = vld [vmem:[%s1840_s0 + $0xac] ss:$20 sps:$4 sm:$0xff]  }
  0x12   :  { %1313 = vmatprep.subr.bf16.mxu1 %v1430_v17  ;;  %v1465_v47 = vld [vmem:[%s1840_s0 + $0x7c] ss:$20 sps:$4 sm:$0xff]   ;;  %v1470_v51 = vld [vmem:[%s1840_s0 + $0x80] ss:$20 sps:$4 sm:$0xff]   ;;  %v1471_v52 = vld [vmem:[%s1840_s0 + $0xa4] ss:$20 sps:$4 sm:$0xff]  }
  0x13   :  { %v1475_v54 = vld [vmem:[%s1840_s0 + $0xa0] ss:$20 sps:$4 sm:$0xff]   ;;  %v1476_v55 = vld [vmem:[%s1840_s0 + $0xa8] ss:$20 sps:$4 sm:$0xff]   ;;  %v1483_v59 = vld [vmem:[%s1840_s0 + $0xd0] ss:$20 sps:$4 sm:$0xff]  }
  0x14   :  { %1250 = vmatpush3.bf16.msra.mxu0 %v1431_v18  ;;  %v1478_v56 = vld [vmem:[%s1840_s0 + $0xcc] ss:$20 sps:$4 sm:$0xff]   ;;  %v1480_v57 = vld [vmem:[%s1840_s0 + $0xd4] ss:$20 sps:$4 sm:$0xff]   ;;  %v1486_v61 = vld [vmem:[%s1840_s0 + $0xfc] ss:$20 sps:$4 sm:$0xff]  }
  0x15   :  { %1314 = vmatpush3.bf16.msra.mxu1 %v1432_v19  ;;  %1251 = vmatprep.subr.bf16.mxu0 %v1433_v20  ;;  %v1482_v58 = vld [vmem:[%s1840_s0 + $0xc8] ss:$20 sps:$4 sm:$0xff]   ;;  %v1488_v62 = vld [vmem:[%s1840_s0 + $0xf0] ss:$20 sps:$4 sm:$0xff]   ;;  %v1489_v63 = vld [vmem:[%s1840_s0 + $0xf8] ss:$20 sps:$4 sm:$0xff]  }
  0x16   :  { %1315 = vmatprep.subr.bf16.mxu1 %v1434_v21  ;;  %v1484_v60 = vld [vmem:[%s1840_s0 + $0xf4] ss:$20 sps:$4 sm:$0xff]   ;;  %v1491_v0 = vld [vmem:[%s1840_s0 + $0x11c] ss:$20 sps:$4 sm:$0xff]   ;;  %v1493_v1 = vld [vmem:[%s1840_s0 + $0x124] ss:$20 sps:$4 sm:$0xff]  }
  0x17   :  { %v1495_v2 = vld [vmem:[%s1840_s0 + $0x118] ss:$20 sps:$4 sm:$0xff]   ;;  %v1496_v3 = vld [vmem:[%s1840_s0 + $0x120] ss:$20 sps:$4 sm:$0xff]   ;;  %v1497_v4 = vld [vmem:[%s1840_s0 + $0x10] ss:$20 sps:$4 sm:$0xff]  }
  0x18   :  { %1252 = vmatpush3.bf16.msra.mxu0 %v1435_v22  ;;  %v1498_v5 = vld [vmem:[%s1840_s0 + $0xb0] ss:$20 sps:$4 sm:$0xff]   ;;  %v1499_v6 = vld [vmem:[%s1840_s0 + $0x38] ss:$20 sps:$4 sm:$0xff]   ;;  %v1501_v8 = vld [vmem:[%s1840_s0 + $0x60] ss:$20 sps:$4 sm:$0xff]  }
  0x19   :  { %1316 = vmatpush3.bf16.msra.mxu1 %v1436_v23  ;;  %1253 = vmatprep.subr.bf16.mxu0 %v1437_v24  ;;  %v1500_v7 = vld [vmem:[%s1840_s0 + $0xd8] ss:$20 sps:$4 sm:$0xff]   ;;  %v1502_v9 = vld [vmem:[%s1840_s0 + $0x100] ss:$20 sps:$4 sm:$0xff]   ;;  %v1503_v10 = vld [vmem:[%s1840_s0 + $0x88] ss:$20 sps:$4 sm:$0xff]  }
  0x1a   :  { %1317 = vmatprep.subr.bf16.mxu1 %v1438_v25  ;;  %v1504_v11 = vld [vmem:[%s1840_s0 + $0x128] ss:$20 sps:$4 sm:$0xff]  }
  0x1c   :  { %1254 = vmatpush3.bf16.msra.mxu0 %v1439_v26 }
  0x1d   :  { %1318 = vmatpush3.bf16.msra.mxu1 %v1440_v27  ;;  %1255 = vmatprep.subr.bf16.mxu0 %v1441_v28 }
  0x1e   :  { %1319 = vmatprep.subr.bf16.mxu1 %v1442_v29 }
  0x20   :  { %1256 = vmatpush3.bf16.msra.mxu0 %v1443_v30 }
  0x21   :  { %1320 = vmatpush3.bf16.msra.mxu1 %v1444_v31  ;;  %1381 = vmatprep.subr.bf16.mxu0 %v1451_v36 }
  0x22   :  { %1405 = vmatprep.subr.bf16.mxu1 %v1451_v36 }
  0x23   :  { %645 = vmatmul.mubr.bf16.vlgmr.msra.gmra.mrb[0].mxu0 %v1445_v32 }
  0x24   :  { %742 = vmatmul.mubr.bf16.vlgmr.msra.gmra.mrb[0].mxu1 %v1448_v34  ;;  %1382 = vmatpush3.bf16.msra.mxu0 %v1451_v36 }
  0x25   :  { %1409 = vmatpush3.bf16.msra.mxu1 %v1451_v36  ;;  %652 = vmatprep.mubr.bf16.mxu0 %v1452_v37 }
  0x26   :  { %749 = vmatprep.mubr.bf16.mxu1 %v1454_v38  ;;  %1383 = vmatprep.subr.bf16.mxu0 %v1464_v42 }
  0x27   :  { %1406 = vmatprep.subr.bf16.mxu1 %v1464_v42 }
  0x28   :  { %1384 = vmatpush3.bf16.msra.mxu0 %v1464_v42 }
  0x29   :  { %1410 = vmatpush3.bf16.msra.mxu1 %v1464_v42  ;;  %1385 = vmatprep.subr.bf16.mxu0 %v1477_v46 }
  0x2a   :  { %1407 = vmatprep.subr.bf16.mxu1 %v1477_v46 }
  0x2b   :  { %653 = vmatmul.mubr.bf16.gmra.mrb[4].mxu0 %v1456_v39 }
  0x2c   :  { %750 = vmatmul.mubr.bf16.gmra.mrb[4].mxu1 %v1457_v40  ;;  %660 = vmatprep.mubr.bf16.mxu0 %v1458_v41 }
  0x2d   :  { %757 = vmatprep.mubr.bf16.mxu1 %v1460_v43  ;;  %1386 = vmatpush3.bf16.msra.mxu0 %v1477_v46 }
  0x2e   :  { %1411 = vmatpush3.bf16.msra.mxu1 %v1477_v46  ;;  %1387 = vmatprep.subr.bf16.mxu0 %v1490_v49 }
  0x2f   :  { %1408 = vmatprep.subr.bf16.mxu1 %v1490_v49 }
  0x31   :  { %1388 = vmatpush3.bf16.msra.mxu0 %v1490_v49 }
  0x32   :  { %1412 = vmatpush3.bf16.msra.mxu1 %v1490_v49 }
  0x33   :  { %661 = vmatmul.mubr.bf16.gmra.mrb[8].mxu0 %v1462_v44 }
  0x34   :  { %758 = vmatmul.mubr.bf16.gmra.mrb[8].mxu1 %v1463_v45  ;;  %668 = vmatprep.mubr.bf16.mxu0 %v1465_v47 }
  0x35   :  { %765 = vmatprep.mubr.bf16.mxu1 %v1467_v48 }
  0x3b   :  { %669 = vmatmul.mubr.bf16.gmra.mrb[12].mxu0 %v1469_v50 }
  0x3c   :  { %766 = vmatmul.mubr.bf16.gmra.mrb[12].mxu1 %v1470_v51  ;;  %676 = vmatprep.mubr.bf16.mxu0 %v1471_v52 }
  0x3d   :  { %773 = vmatprep.mubr.bf16.mxu1 %v1473_v53 }
  0x43   :  { %677 = vmatmul.mubr.bf16.gmra.mrb[16].mxu0 %v1475_v54 }
  0x44   :  { %774 = vmatmul.mubr.bf16.gmra.mrb[16].mxu1 %v1476_v55  ;;  %684 = vmatprep.mubr.bf16.mxu0 %v1478_v56 }
  0x45   :  { %781 = vmatprep.mubr.bf16.mxu1 %v1480_v57 }
  0x4b   :  { %685 = vmatmul.mubr.bf16.gmra.mrb[20].mxu0 %v1482_v58 }
  0x4c   :  { %782 = vmatmul.mubr.bf16.gmra.mrb[20].mxu1 %v1483_v59  ;;  %692 = vmatprep.mubr.bf16.mxu0 %v1484_v60 }
  0x4d   :  { %789 = vmatprep.mubr.bf16.mxu1 %v1486_v61 }
  0x53   :  { %693 = vmatmul.mubr.bf16.gmra.mrb[24].mxu0 %v1488_v62 }
  0x54   :  { %790 = vmatmul.mubr.bf16.gmra.mrb[24].mxu1 %v1489_v63  ;;  %700 = vmatprep.mubr.bf16.mxu0 %v1491_v0 }
  0x55   :  { %797 = vmatprep.mubr.bf16.mxu1 %v1493_v1 }
  0x5b   :  { %701 = vmatmul.mubr.bf16.gmra.mrb[28].mxu0 %v1495_v2 }
  0x5c   :  { %798 = vmatmul.mubr.bf16.gmra.mrb[28].mxu1 %v1496_v3  ;;  %1389 = vmatprep.mubr.msk.bf16.mxu0 %vm587_vm0, %v1497_v4 }
  0x5d   :  { %1397 = vmatprep.mubr.msk.bf16.mxu1 %vm587_vm0, %v1498_v5 }
  0x63   :  { %1390 = vmatmul.mubr.msk.bf16.vlgmr.msra.gmra.mrb[32].mxu0 %vm587_vm0, %v1499_v6 }
  0x64   :  { %1398 = vmatmul.mubr.msk.bf16.vlgmr.msra.gmra.mrb[32].mxu1 %vm587_vm0, %v1500_v7  ;;  %1393 = vmatprep.mubr.msk.bf16.mxu0 %vm587_vm0, %v1501_v8 }
  0x65   :  { %1401 = vmatprep.mubr.msk.bf16.mxu1 %vm587_vm0, %v1502_v9 }
  0x6b   :  { %1394 = vmatmul.mubr.msk.bf16.gmra.mrb[36].mxu0 %vm587_vm0, %v1503_v10 }
  0x6c   :  { %1402 = vmatmul.mubr.msk.bf16.gmra.mrb[36].mxu1 %vm587_vm0, %v1504_v11 }
  0xf6   :  { %v1257_v12 = vpop.f32.mrb[0].mxu0 }
  0xf7   :  { %v1321_v13 = vpop.f32.mrb[0].mxu1  ;;  %v1258_v14 = vpop.f32.mrb[1].mxu0 }
  0xf8   :  { %v1259_v15 = vadd.f32 %v1258_v14, %v1257_v12  ;;  %v1322_v16 = vpop.f32.mrb[1].mxu1  ;;  %v1260_v17 = vpop.f32.mrb[2].mxu0 }
  0xf9   :  { %v1323_v18 = vadd.f32 %v1322_v16, %v1321_v13  ;;  %v1324_v19 = vpop.f32.mrb[2].mxu1  ;;  %v1261_v20 = vpop.f32.mrb[3].mxu0 }
  0xfa   :  { %v1262_v21 = vadd.f32 %v1261_v20, %v1260_v17  ;;  %v1325_v22 = vpop.f32.mrb[3].mxu1 }
  0xfb   :  { %v1326_v23 = vadd.f32 %v1325_v22, %v1324_v19  ;;  %v1761_v24 = vadd.f32 %v1323_v18, %v1259_v15 }
  0xfd   :  { %v1763_v25 = vadd.f32 %v1326_v23, %v1262_v21 }
  0xfe   :  { %v1263_v26 = vpop.f32.mrb[4].mxu0 }
  0xff   :  { %v1327_v27 = vpop.f32.mrb[4].mxu1  ;;  %v1264_v28 = vpop.f32.mrb[5].mxu0 }
 0x100   :  { %v1265_v29 = vadd.f32 %v1264_v28, %v1263_v26  ;;  %v1328_v30 = vpop.f32.mrb[5].mxu1  ;;  %v1266_v31 = vpop.f32.mrb[6].mxu0 }
 0x101   :  { %v1329_v32 = vadd.f32 %v1328_v30, %v1327_v27  ;;  %v1330_v33 = vpop.f32.mrb[6].mxu1  ;;  %v1267_v34 = vpop.f32.mrb[7].mxu0 }
 0x102   :  { %v1268_v35 = vadd.f32 %v1267_v34, %v1266_v31  ;;  %v1331_v36 = vpop.f32.mrb[7].mxu1 }
 0x103   :  { %v1332_v37 = vadd.f32 %v1331_v36, %v1330_v33  ;;  %v1765_v38 = vadd.f32 %v1329_v32, %v1265_v29 }
 0x105   :  { %v1767_v39 = vadd.f32 %v1332_v37, %v1268_v35 }
 0x106   :  { %v1269_v40 = vpop.f32.mrb[8].mxu0 }
 0x107   :  { %v1333_v41 = vpop.f32.mrb[8].mxu1  ;;  %v1270_v42 = vpop.f32.mrb[9].mxu0 }
 0x108   :  { %v1271_v43 = vadd.f32 %v1270_v42, %v1269_v40  ;;  %v1334_v44 = vpop.f32.mrb[9].mxu1  ;;  %v1272_v45 = vpop.f32.mrb[10].mxu0 }
 0x109   :  { %v1335_v46 = vadd.f32 %v1334_v44, %v1333_v41  ;;  %v1336_v47 = vpop.f32.mrb[10].mxu1  ;;  %v1273_v48 = vpop.f32.mrb[11].mxu0 }
 0x10a   :  { %v1274_v49 = vadd.f32 %v1273_v48, %v1272_v45  ;;  %v1337_v50 = vpop.f32.mrb[11].mxu1 }
 0x10b   :  { %v1338_v51 = vadd.f32 %v1337_v50, %v1336_v47  ;;  %v1769_v52 = vadd.f32 %v1335_v46, %v1271_v43 }
 0x10d   :  { %v1771_v53 = vadd.f32 %v1338_v51, %v1274_v49 }
 0x10e   :  { %v1275_v54 = vpop.f32.mrb[12].mxu0 }
 0x10f   :  { %v1339_v55 = vpop.f32.mrb[12].mxu1  ;;  %v1276_v56 = vpop.f32.mrb[13].mxu0 }
 0x110   :  { %v1277_v57 = vadd.f32 %v1276_v56, %v1275_v54  ;;  %v1340_v58 = vpop.f32.mrb[13].mxu1  ;;  %v1278_v59 = vpop.f32.mrb[14].mxu0 }
 0x111   :  { %v1341_v60 = vadd.f32 %v1340_v58, %v1339_v55  ;;  %v1342_v61 = vpop.f32.mrb[14].mxu1  ;;  %v1279_v62 = vpop.f32.mrb[15].mxu0 }
 0x112   :  { %v1280_v63 = vadd.f32 %v1279_v62, %v1278_v59  ;;  %v1343_v0 = vpop.f32.mrb[15].mxu1 }
 0x113   :  { %v1344_v1 = vadd.f32 %v1343_v0, %v1342_v61  ;;  %v1773_v2 = vadd.f32 %v1341_v60, %v1277_v57 }
 0x115   :  { %v1775_v3 = vadd.f32 %v1344_v1, %v1280_v63 }
 0x116   :  { %v1281_v4 = vpop.f32.mrb[16].mxu0 }
 0x117   :  { %v1345_v5 = vpop.f32.mrb[16].mxu1  ;;  %v1282_v6 = vpop.f32.mrb[17].mxu0 }
 0x118   :  { %v1283_v7 = vadd.f32 %v1282_v6, %v1281_v4  ;;  %v1346_v8 = vpop.f32.mrb[17].mxu1  ;;  %v1284_v9 = vpop.f32.mrb[18].mxu0 }
 0x119   :  { %v1347_v10 = vadd.f32 %v1346_v8, %v1345_v5  ;;  %v1348_v11 = vpop.f32.mrb[18].mxu1  ;;  %v1285_v12 = vpop.f32.mrb[19].mxu0  ;;  %v1786_v5 = vld [vmem:[%s1841_s2] ss:$0 sm:$0xff] }
 0x11a   :  { %v1286_v13 = vadd.f32 %v1285_v12, %v1284_v9  ;;  %v1349_v14 = vpop.f32.mrb[19].mxu1 }
 0x11b   :  { %v1350_v15 = vadd.f32 %v1349_v14, %v1348_v11  ;;  %v776_v16 = vadd.f32 %v1347_v10, %v1283_v7 }
 0x11d   :  { %v1777_v17 = vadd.f32 %v1350_v15, %v1286_v13 }
 0x11e   :  { %v1287_v18 = vpop.f32.mrb[20].mxu0 }
 0x11f   :  { %v1351_v19 = vpop.f32.mrb[20].mxu1  ;;  %v1288_v20 = vpop.f32.mrb[21].mxu0 }
 0x120   :  { %v1289_v21 = vadd.f32 %v1288_v20, %v1287_v18  ;;  %v1352_v22 = vpop.f32.mrb[21].mxu1  ;;  %v1290_v23 = vpop.f32.mrb[22].mxu0 }
 0x121   :  { %v1353_v26 = vadd.f32 %v1352_v22, %v1351_v19  ;;  %v1354_v27 = vpop.f32.mrb[22].mxu1  ;;  %v1291_v28 = vpop.f32.mrb[23].mxu0 }
 0x122   :  { %v1292_v29 = vadd.f32 %v1291_v28, %v1290_v23  ;;  %v1355_v30 = vpop.f32.mrb[23].mxu1 }
 0x123   :  { %v1356_v31 = vadd.f32 %v1355_v30, %v1354_v27  ;;  %v784_v32 = vadd.f32 %v1353_v26, %v1289_v21 }
 0x125   :  { %v787_v33 = vadd.f32 %v1356_v31, %v1292_v29 }
 0x126   :  { %v1293_v34 = vpop.f32.mrb[24].mxu0 }
 0x127   :  { %v1357_v35 = vpop.f32.mrb[24].mxu1  ;;  %v1294_v36 = vpop.f32.mrb[25].mxu0 }
 0x128   :  { %v1295_v37 = vadd.f32 %v1294_v36, %v1293_v34  ;;  %v1358_v40 = vpop.f32.mrb[25].mxu1  ;;  %v1296_v41 = vpop.f32.mrb[26].mxu0 }
 0x129   :  { %v1359_v42 = vadd.f32 %v1358_v40, %v1357_v35  ;;  %v1360_v43 = vpop.f32.mrb[26].mxu1  ;;  %v1297_v44 = vpop.f32.mrb[27].mxu0 }
 0x12a   :  { %v1298_v45 = vadd.f32 %v1297_v44, %v1296_v41  ;;  %v1361_v46 = vpop.f32.mrb[27].mxu1 }
 0x12b   :  { %v1362_v47 = vadd.f32 %v1361_v46, %v1360_v43  ;;  %v1779_v48 = vadd.f32 %v1359_v42, %v1295_v37 }
 0x12d   :  { %v1781_v49 = vadd.f32 %v1362_v47, %v1298_v45 }
 0x12e   :  { %v1299_v50 = vpop.f32.mrb[28].mxu0 }
 0x12f   :  { %v1363_v51 = vpop.f32.mrb[28].mxu1  ;;  %v1300_v54 = vpop.f32.mrb[29].mxu0 }
 0x130   :  { %v1301_v55 = vadd.f32 %v1300_v54, %v1299_v50  ;;  %v1364_v56 = vpop.f32.mrb[29].mxu1  ;;  %v1302_v57 = vpop.f32.mrb[30].mxu0 }
 0x131   :  { %v1365_v58 = vadd.f32 %v1364_v56, %v1363_v51  ;;  %v1366_v59 = vpop.f32.mrb[30].mxu1  ;;  %v1303_v60 = vpop.f32.mrb[31].mxu0 }
 0x132   :  { %v1304_v61 = vadd.f32 %v1303_v60, %v1302_v57  ;;  %v1367_v62 = vpop.f32.mrb[31].mxu1 }
 0x133   :  { %v1368_v63 = vadd.f32 %v1367_v62, %v1366_v59  ;;  %v800_v0 = vadd.f32 %v1365_v58, %v1301_v55 }
 0x135   :  { %v803_v1 = vadd.f32 %v1368_v63, %v1304_v61 }
 0x136   :  { %v1391_v4 = vpop.f32.mrb[32].mxu0 }
 0x137   :  { %v849_v6 = vadd.f32 %v1391_v4, %v1765_v38  ;;  %v1399_v7 = vpop.f32.mrb[32].mxu1  ;;  %v840_v8 = vpop.f32.mrb[33].mxu0 }
 0x138   :  { %v881_v9 = vadd.f32 %v1399_v7, %v784_v32  ;;  %v841_v10 = vadd.f32 %v840_v8, %v1761_v24  ;;  %v872_v11 = vpop.f32.mrb[33].mxu1  ;;  %v1392_v12 = vpop.f32.mrb[34].mxu0 }
 0x139   :  { %v963_v13 = vadd.f32 %v1786_v5, %v849_v6  ;;  %v873_v14 = vadd.f32 %v872_v11, %v776_v16  ;;  %v852_v15 = vadd.f32 %v1392_v12, %v1767_v39  ;;  %v1400_v18 = vpop.f32.mrb[34].mxu1  ;;  %v843_v19 = vpop.f32.mrb[35].mxu0 }
 0x13a   :  { %v971_v20 = vadd.f32 %v1786_v5, %v881_v9  ;;  %v961_v21 = vadd.f32 %v1786_v5, %v841_v10  ;;  %v884_v22 = vadd.f32 %v1400_v18, %v787_v33  ;;  %v844_v38 = vadd.f32 %v843_v19, %v1763_v25  ;;  %v875_v23 = vpop.f32.mrb[35].mxu1 }
 0x13b   :  { %v969_v26 = vadd.f32 %v1786_v5, %v873_v14  ;;  %v964_v24 = vadd.f32 %v1786_v5, %v852_v15  ;;  %v876_v27 = vadd.f32 %v875_v23, %v1777_v17  ;;  %v979_v28 = vmax.f32 %v963_v13, 0.0 }
 0x13c   :  { %v972_v16 = vadd.f32 %v1786_v5, %v884_v22  ;;  %v962_v39 = vadd.f32 %v1786_v5, %v844_v38  ;;  %v987_v31 = vmax.f32 %v971_v20, 0.0  ;;  %v977_v32 = vmax.f32 %v961_v21, 0.0 }
 0x13d   :  { %v980_v29 = vmax.f32 %v964_v24, 0.0  ;;  %v970_v30 = vadd.f32 %v1786_v5, %v876_v27  ;;  %v985_v35 = vmax.f32 %v969_v26, 0.0 }
 0x13e   :  { %v988_v33 = vmax.f32 %v972_v16, 0.0  ;;  %v978_v34 = vmax.f32 %v962_v39, 0.0  ;;  %v1395_v25 = vpop.f32.mrb[36].mxu0 }
 0x13f   :  { %v1202_v36 = vpack.c.bf16 %v980_v29, %v979_v28  ;;  %v986_v37 = vmax.f32 %v970_v30, 0.0  ;;  %v865_v40 = vadd.f32 %v1395_v25, %v1773_v2  ;;  %v1403_v41 = vpop.f32.mrb[36].mxu1  ;;  %v856_v17 = vpop.f32.mrb[37].mxu0 }
 0x140   :  { %v1222_v42 = vpack.c.bf16 %v988_v33, %v987_v31  ;;  %v1197_v43 = vpack.c.bf16 %v978_v34, %v977_v32  ;;  %v897_v44 = vadd.f32 %v1403_v41, %v800_v0  ;;  %v857_v45 = vadd.f32 %v856_v17, %v1769_v52  ;;  %v888_v46 = vpop.f32.mrb[37].mxu1  ;;  %v1396_v47 = vpop.f32.mrb[38].mxu0 }
 0x141   :  { %1234 = vst [vmem:[%s1842_s3 + $0x8] sm:$0xff] %v1202_v36   ;;  %v1217_v50 = vpack.c.bf16 %v986_v37, %v985_v35  ;;  %v967_v51 = vadd.f32 %v1786_v5, %v865_v40  ;;  %v889_v54 = vadd.f32 %v888_v46, %v1779_v48  ;;  %v868_v2 = vadd.f32 %v1396_v47, %v1775_v3  ;;  %v1404_v55 = vpop.f32.mrb[38].mxu1  ;;  %v859_v56 = vpop.f32.mrb[39].mxu0 }
 0x142   :  { %1238 = vst [vmem:[%s1842_s3 + $0x28] sm:$0xff] %v1222_v42   ;;  %1198 = vst [vmem:[%s1842_s3] sm:$0xff] %v1197_v43   ;;  %v975_v52 = vadd.f32 %v1786_v5, %v897_v44  ;;  %v965_v57 = vadd.f32 %v1786_v5, %v857_v45  ;;  %v900_v58 = vadd.f32 %v1404_v55, %v803_v1  ;;  %v891_v48 = vpop.f32.mrb[39].mxu1 }
 0x143   :  { %v860_v59 = vadd.f32 %v859_v56, %v1771_v53  ;;  %1237 = vst [vmem:[%s1842_s3 + $0x20] sm:$0xff] %v1217_v50   ;;  %v973_v3 = vadd.f32 %v1786_v5, %v889_v54  ;;  %v968_v60 = vadd.f32 %v1786_v5, %v868_v2  ;;  %v892_v61 = vadd.f32 %v891_v48, %v1781_v49 }
 0x144   :  { %v976_v62 = vadd.f32 %v1786_v5, %v900_v58  ;;  %v983_v0 = vmax.f32 %v967_v51, 0.0  ;;  %v991_v53 = vmax.f32 %v975_v52, 0.0  ;;  %v981_v6 = vmax.f32 %v965_v57, 0.0 }
 0x145   :  { %v966_v63 = vadd.f32 %v1786_v5, %v860_v59  ;;  %v984_v4 = vmax.f32 %v968_v60, 0.0  ;;  %v974_v1 = vadd.f32 %v1786_v5, %v892_v61  ;;  %v989_v9 = vmax.f32 %v973_v3, 0.0 }
 0x146   :  { %v992_v7 = vmax.f32 %v976_v62, 0.0 }
 0x147   :  { %v982_v8 = vmax.f32 %v966_v63, 0.0  ;;  %v1212_v10 = vpack.c.bf16 %v984_v4, %v983_v0  ;;  %v990_v11 = vmax.f32 %v974_v1, 0.0 }
 0x148   :  { %v1232_v12 = vpack.c.bf16 %v992_v7, %v991_v53 }
 0x149   :  { %v1207_v13 = vpack.c.bf16 %v982_v8, %v981_v6  ;;  %1236 = vst [vmem:[%s1842_s3 + $0x18] sm:$0xff] %v1212_v10   ;;  %v1227_v49 = vpack.c.bf16 %v990_v11, %v989_v9 }
 0x14a   :  { %1240 = vst [vmem:[%s1842_s3 + $0x38] sm:$0xff] %v1232_v12  }
 0x14b   :  { %1235 = vst [vmem:[%s1842_s3 + $0x10] sm:$0xff] %v1207_v13   ;;  %1239 = vst [vmem:[%s1842_s3 + $0x30] sm:$0xff] %v1227_v49  }

// kernel: _lambda_.10
= control target key start
LH: loop header
LB: loop body
LE: loop exit
PB: predicated region body
PF: predicated region fallthrough
CT: control target
= control target key end

     0   :  { %s2346_s1 = inlined_call_operand.vmem [shape: bf16[1152,256], index: 1, kind: input, shape index: {}]   ;;  %s2347_s0 = inlined_call_operand.vmem [shape: bf16[32,1152], index: 0, kind: input, shape index: {}]   ;;  %s2348_s2 = inlined_call_operand.vmem [shape: f32[1,256], index: 2, kind: input, shape index: {}]   ;;  %s2349_s3 = inlined_call_operand.vmem [shape: bf16[32,256], index: 3, kind: output, shape index: {}]  }
   0x1   :  { %v1582_v0 = vld [vmem:[%s2346_s1 + $0x4] ss:$8 sps:$4 sm:$0xff]   ;;  %v1586_v2 = vld [vmem:[%s2346_s1] ss:$8 sps:$4 sm:$0xff]   ;;  %v1588_v4 = vld [vmem:[%s2346_s1 + $0x14] ss:$8 sps:$4 sm:$0xff]  }
   0x2   :  { %v1584_v1 = vld [vmem:[%s2346_s1 + $0x204] ss:$8 sps:$4 sm:$0xff]   ;;  %1011 = vmatprep.subr.bf16.mxu1 %v1582_v0  ;;  %v1587_v3 = vld [vmem:[%s2346_s1 + $0x200] ss:$8 sps:$4 sm:$0xff]   ;;  %v1590_v5 = vld [vmem:[%s2346_s1 + $0x214] ss:$8 sps:$4 sm:$0xff]  }
   0x3   :  { %1117 = vmatprep.subr.bf16.mxu0 %v1584_v1  ;;  %1012 = vmatpush1.bf16.msra.mxu1 %v1586_v2  ;;  %v1592_v6 = vld [vmem:[%s2346_s1 + $0x10] ss:$8 sps:$4 sm:$0xff]   ;;  %v1594_v8 = vld [vmem:[%s2346_s1 + $0x24] ss:$8 sps:$4 sm:$0xff]   ;;  %v1598_v10 = vld [vmem:[%s2346_s1 + $0x20] ss:$8 sps:$4 sm:$0xff]  }
   0x4   :  { %1118 = vmatpush1.bf16.msra.mxu0 %v1587_v3  ;;  %1013 = vmatprep.subr.bf16.mxu1 %v1588_v4  ;;  %v1593_v7 = vld [vmem:[%s2346_s1 + $0x210] ss:$8 sps:$4 sm:$0xff]   ;;  %v1596_v9 = vld [vmem:[%s2346_s1 + $0x224] ss:$8 sps:$4 sm:$0xff]   ;;  %v1599_v11 = vld [vmem:[%s2346_s1 + $0x220] ss:$8 sps:$4 sm:$0xff]  }
   0x5   :  { %1119 = vmatprep.subr.bf16.mxu0 %v1590_v5  ;;  %v1600_v12 = vld [vmem:[%s2346_s1 + $0x34] ss:$8 sps:$4 sm:$0xff]   ;;  %v1604_v14 = vld [vmem:[%s2346_s1 + $0x30] ss:$8 sps:$4 sm:$0xff]   ;;  %v1606_v16 = vld [vmem:[%s2346_s1 + $0x44] ss:$8 sps:$4 sm:$0xff]  }
   0x6   :  { %v1602_v13 = vld [vmem:[%s2346_s1 + $0x234] ss:$8 sps:$4 sm:$0xff]   ;;  %v1605_v15 = vld [vmem:[%s2346_s1 + $0x230] ss:$8 sps:$4 sm:$0xff]   ;;  %v1608_v17 = vld [vmem:[%s2346_s1 + $0x244] ss:$8 sps:$4 sm:$0xff]  }
   0x7   :  { %1014 = vmatpush1.bf16.msra.mxu1 %v1592_v6  ;;  %v1610_v18 = vld [vmem:[%s2346_s1 + $0x40] ss:$8 sps:$4 sm:$0xff]   ;;  %v1612_v20 = vld [vmem:[%s2346_s1 + $0x54] ss:$8 sps:$4 sm:$0xff]   ;;  %v1616_v22 = vld [vmem:[%s2346_s1 + $0x50] ss:$8 sps:$4 sm:$0xff]  }
   0x8   :  { %1120 = vmatpush1.bf16.msra.mxu0 %v1593_v7  ;;  %1015 = vmatprep.subr.bf16.mxu1 %v1594_v8  ;;  %v1611_v19 = vld [vmem:[%s2346_s1 + $0x240] ss:$8 sps:$4 sm:$0xff]   ;;  %v1614_v21 = vld [vmem:[%s2346_s1 + $0x254] ss:$8 sps:$4 sm:$0xff]   ;;  %v1617_v23 = vld [vmem:[%s2346_s1 + $0x250] ss:$8 sps:$4 sm:$0xff]  }
   0x9   :  { %1121 = vmatprep.subr.bf16.mxu0 %v1596_v9  ;;  %v1618_v24 = vld [vmem:[%s2346_s1 + $0x64] ss:$8 sps:$4 sm:$0xff]   ;;  %v1622_v26 = vld [vmem:[%s2346_s1 + $0x60] ss:$8 sps:$4 sm:$0xff]   ;;  %v1624_v28 = vld [vmem:[%s2346_s1 + $0x74] ss:$8 sps:$4 sm:$0xff]  }
   0xa   :  { %v1620_v25 = vld [vmem:[%s2346_s1 + $0x264] ss:$8 sps:$4 sm:$0xff]   ;;  %v1623_v27 = vld [vmem:[%s2346_s1 + $0x260] ss:$8 sps:$4 sm:$0xff]   ;;  %v1626_v29 = vld [vmem:[%s2346_s1 + $0x274] ss:$8 sps:$4 sm:$0xff]  }
   0xb   :  { %1016 = vmatpush1.bf16.msra.mxu1 %v1598_v10  ;;  %v1628_v30 = vld [vmem:[%s2346_s1 + $0x70] ss:$8 sps:$4 sm:$0xff]   ;;  %v1630_v32 = vld [vmem:[%s2346_s1 + $0x84] ss:$8 sps:$4 sm:$0xff]   ;;  %v1634_v34 = vld [vmem:[%s2346_s1 + $0x80] ss:$8 sps:$4 sm:$0xff]  }
   0xc   :  { %1122 = vmatpush1.bf16.msra.mxu0 %v1599_v11  ;;  %1017 = vmatprep.subr.bf16.mxu1 %v1600_v12  ;;  %v1629_v31 = vld [vmem:[%s2346_s1 + $0x270] ss:$8 sps:$4 sm:$0xff]   ;;  %v1632_v33 = vld [vmem:[%s2346_s1 + $0x284] ss:$8 sps:$4 sm:$0xff]   ;;  %v1635_v35 = vld [vmem:[%s2346_s1 + $0x280] ss:$8 sps:$4 sm:$0xff]  }
   0xd   :  { %1123 = vmatprep.subr.bf16.mxu0 %v1602_v13  ;;  %v1636_v36 = vld [vmem:[%s2346_s1 + $0x94] ss:$8 sps:$4 sm:$0xff]   ;;  %v1640_v38 = vld [vmem:[%s2346_s1 + $0x90] ss:$8 sps:$4 sm:$0xff]   ;;  %v1642_v40 = vld [vmem:[%s2346_s1 + $0xa4] ss:$8 sps:$4 sm:$0xff]  }
   0xe   :  { %v1638_v37 = vld [vmem:[%s2346_s1 + $0x294] ss:$8 sps:$4 sm:$0xff]   ;;  %v1641_v39 = vld [vmem:[%s2346_s1 + $0x290] ss:$8 sps:$4 sm:$0xff]   ;;  %v1644_v41 = vld [vmem:[%s2346_s1 + $0x2a4] ss:$8 sps:$4 sm:$0xff]  }
   0xf   :  { %1018 = vmatpush1.bf16.msra.mxu1 %v1604_v14  ;;  %v1646_v42 = vld [vmem:[%s2346_s1 + $0xa0] ss:$8 sps:$4 sm:$0xff]   ;;  %v1648_v44 = vld [vmem:[%s2346_s1 + $0xb4] ss:$8 sps:$4 sm:$0xff]   ;;  %v1652_v46 = vld [vmem:[%s2346_s1 + $0xb0] ss:$8 sps:$4 sm:$0xff]  }
  0x10   :  { %1124 = vmatpush1.bf16.msra.mxu0 %v1605_v15  ;;  %1019 = vmatprep.subr.bf16.mxu1 %v1606_v16  ;;  %v1647_v43 = vld [vmem:[%s2346_s1 + $0x2a0] ss:$8 sps:$4 sm:$0xff]   ;;  %v1650_v45 = vld [vmem:[%s2346_s1 + $0x2b4] ss:$8 sps:$4 sm:$0xff]   ;;  %v1653_v47 = vld [vmem:[%s2346_s1 + $0x2b0] ss:$8 sps:$4 sm:$0xff]  }
  0x11   :  { %1125 = vmatprep.subr.bf16.mxu0 %v1608_v17  ;;  %v1680_v48 = vld [vmem:[%s2347_s0 + $0x4] ss:$36 sps:$4 sm:$0xff]   ;;  %v1686_v51 = vld [vmem:[%s2347_s0 + $0x14] ss:$36 sps:$4 sm:$0xff]  }
  0x12   :  { %v1654_v49 = vld [vmem:[%s2346_s1 + $0xc4] ss:$8 sps:$4 sm:$0xff]   ;;  %1043 = vmatprep.mubr.bf16.mxu1 %v1680_v48  ;;  %v1658_v52 = vld [vmem:[%s2346_s1 + $0xc0] ss:$8 sps:$4 sm:$0xff]   ;;  %v1660_v54 = vld [vmem:[%s2346_s1 + $0xd4] ss:$8 sps:$4 sm:$0xff]   ;;  %1149 = vmatprep.mubr.bf16.mxu0 %v1686_v51 }
  0x13   :  { %1020 = vmatpush1.bf16.msra.mxu1 %v1610_v18  ;;  %v1656_v50 = vld [vmem:[%s2346_s1 + $0x2c4] ss:$8 sps:$4 sm:$0xff]   ;;  %v1659_v53 = vld [vmem:[%s2346_s1 + $0x2c0] ss:$8 sps:$4 sm:$0xff]   ;;  %v1662_v55 = vld [vmem:[%s2346_s1 + $0x2d4] ss:$8 sps:$4 sm:$0xff]  }
  0x14   :  { %1126 = vmatpush1.bf16.msra.mxu0 %v1611_v19  ;;  %1021 = vmatprep.subr.bf16.mxu1 %v1612_v20  ;;  %v1664_v56 = vld [vmem:[%s2346_s1 + $0xd0] ss:$8 sps:$4 sm:$0xff]   ;;  %v1666_v58 = vld [vmem:[%s2346_s1 + $0xe4] ss:$8 sps:$4 sm:$0xff]   ;;  %v1670_v60 = vld [vmem:[%s2346_s1 + $0xe0] ss:$8 sps:$4 sm:$0xff]  }
  0x15   :  { %1127 = vmatprep.subr.bf16.mxu0 %v1614_v21  ;;  %v1665_v57 = vld [vmem:[%s2346_s1 + $0x2d0] ss:$8 sps:$4 sm:$0xff]   ;;  %v1668_v59 = vld [vmem:[%s2346_s1 + $0x2e4] ss:$8 sps:$4 sm:$0xff]   ;;  %v1671_v61 = vld [vmem:[%s2346_s1 + $0x2e0] ss:$8 sps:$4 sm:$0xff]  }
  0x16   :  { %v1672_v62 = vld [vmem:[%s2346_s1 + $0xf4] ss:$8 sps:$4 sm:$0xff]   ;;  %v1676_v0 = vld [vmem:[%s2346_s1 + $0xf0] ss:$8 sps:$4 sm:$0xff]   ;;  %v1683_v2 = vld [vmem:[%s2346_s1 + $0x104] ss:$8 sps:$4 sm:$0xff]  }
  0x17   :  { %1022 = vmatpush1.bf16.msra.mxu1 %v1616_v22  ;;  %v1674_v63 = vld [vmem:[%s2346_s1 + $0x2f4] ss:$8 sps:$4 sm:$0xff]   ;;  %v1677_v1 = vld [vmem:[%s2346_s1 + $0x2f0] ss:$8 sps:$4 sm:$0xff]   ;;  %v1689_v3 = vld [vmem:[%s2346_s1 + $0x304] ss:$8 sps:$4 sm:$0xff]  }
  0x18   :  { %1128 = vmatpush1.bf16.msra.mxu0 %v1617_v23  ;;  %1023 = vmatprep.subr.bf16.mxu1 %v1618_v24  ;;  %v1678_v4 = vld [vmem:[%s2347_s0] ss:$36 sps:$4 sm:$0xff]   ;;  %v1684_v6 = vld [vmem:[%s2347_s0 + $0x10] ss:$36 sps:$4 sm:$0xff]  }
  0x19   :  { %1129 = vmatprep.subr.bf16.mxu0 %v1620_v25  ;;  %v1681_v5 = vld [vmem:[%s2346_s1 + $0x100] ss:$8 sps:$4 sm:$0xff]   ;;  %v1692_v8 = vld [vmem:[%s2346_s1 + $0x114] ss:$8 sps:$4 sm:$0xff]   ;;  %v1690_v10 = vld [vmem:[%s2346_s1 + $0x110] ss:$8 sps:$4 sm:$0xff]  }
  0x1a   :  { %v1687_v7 = vld [vmem:[%s2346_s1 + $0x300] ss:$8 sps:$4 sm:$0xff]   ;;  %v1695_v9 = vld [vmem:[%s2346_s1 + $0x314] ss:$8 sps:$4 sm:$0xff]   ;;  %v1693_v11 = vld [vmem:[%s2346_s1 + $0x310] ss:$8 sps:$4 sm:$0xff]  }
  0x1b   :  { %1024 = vmatpush1.bf16.msra.mxu1 %v1622_v26  ;;  %v1698_v12 = vld [vmem:[%s2346_s1 + $0x124] ss:$8 sps:$4 sm:$0xff]   ;;  %v1696_v14 = vld [vmem:[%s2346_s1 + $0x120] ss:$8 sps:$4 sm:$0xff]   ;;  %v1704_v16 = vld [vmem:[%s2346_s1 + $0x134] ss:$8 sps:$4 sm:$0xff]  }
  0x1c   :  { %1130 = vmatpush1.bf16.msra.mxu0 %v1623_v27  ;;  %1025 = vmatprep.subr.bf16.mxu1 %v1624_v28  ;;  %v1701_v13 = vld [vmem:[%s2346_s1 + $0x324] ss:$8 sps:$4 sm:$0xff]   ;;  %v1699_v15 = vld [vmem:[%s2346_s1 + $0x320] ss:$8 sps:$4 sm:$0xff]   ;;  %v1707_v17 = vld [vmem:[%s2346_s1 + $0x334] ss:$8 sps:$4 sm:$0xff]  }
  0x1d   :  { %1131 = vmatprep.subr.bf16.mxu0 %v1626_v29  ;;  %v1702_v18 = vld [vmem:[%s2346_s1 + $0x130] ss:$8 sps:$4 sm:$0xff]   ;;  %v1710_v20 = vld [vmem:[%s2346_s1 + $0x144] ss:$8 sps:$4 sm:$0xff]   ;;  %v1708_v22 = vld [vmem:[%s2346_s1 + $0x140] ss:$8 sps:$4 sm:$0xff]  }
  0x1e   :  { %v1705_v19 = vld [vmem:[%s2346_s1 + $0x330] ss:$8 sps:$4 sm:$0xff]   ;;  %v1713_v21 = vld [vmem:[%s2346_s1 + $0x344] ss:$8 sps:$4 sm:$0xff]   ;;  %v1711_v23 = vld [vmem:[%s2346_s1 + $0x340] ss:$8 sps:$4 sm:$0xff]  }
  0x1f   :  { %1026 = vmatpush1.bf16.msra.mxu1 %v1628_v30  ;;  %v1716_v24 = vld [vmem:[%s2346_s1 + $0x154] ss:$8 sps:$4 sm:$0xff]   ;;  %v1714_v26 = vld [vmem:[%s2346_s1 + $0x150] ss:$8 sps:$4 sm:$0xff]   ;;  %v1722_v28 = vld [vmem:[%s2346_s1 + $0x164] ss:$8 sps:$4 sm:$0xff]  }
  0x20   :  { %1132 = vmatpush1.bf16.msra.mxu0 %v1629_v31  ;;  %1027 = vmatprep.subr.bf16.mxu1 %v1630_v32  ;;  %v1719_v25 = vld [vmem:[%s2346_s1 + $0x354] ss:$8 sps:$4 sm:$0xff]   ;;  %v1717_v27 = vld [vmem:[%s2346_s1 + $0x350] ss:$8 sps:$4 sm:$0xff]   ;;  %v1772_v31 = vld [vmem:[%s2347_s0 + $0x48] ss:$36 sps:$4 sm:$0xff]  }
  0x21   :  { %1133 = vmatprep.subr.bf16.mxu0 %v1632_v33  ;;  %v1768_v29 = vld [vmem:[%s2347_s0 + $0x4c] ss:$36 sps:$4 sm:$0xff]   ;;  %v1770_v30 = vld [vmem:[%s2347_s0 + $0x5c] ss:$36 sps:$4 sm:$0xff]  }
  0x22   :  { %v1725_v32 = vld [vmem:[%s2346_s1 + $0x364] ss:$8 sps:$4 sm:$0xff]   ;;  %v1776_v33 = vld [vmem:[%s2347_s0 + $0x58] ss:$36 sps:$4 sm:$0xff]  }
  0x23   :  { %1028 = vmatpush1.bf16.msra.mxu1 %v1634_v34  ;;  %v1720_v34 = vld [vmem:[%s2346_s1 + $0x160] ss:$8 sps:$4 sm:$0xff]   ;;  %v1738_v48 = vld [vmem:[%s2346_s1 + $0x190] ss:$8 sps:$4 sm:$0xff]   ;;  %v1749_v51 = vld [vmem:[%s2346_s1 + $0x3a4] ss:$8 sps:$4 sm:$0xff]  }
  0x24   :  { %1134 = vmatpush1.bf16.msra.mxu0 %v1635_v35  ;;  %1029 = vmatprep.subr.bf16.mxu1 %v1636_v36  ;;  %v1723_v35 = vld [vmem:[%s2346_s1 + $0x360] ss:$8 sps:$4 sm:$0xff]   ;;  %v1728_v36 = vld [vmem:[%s2346_s1 + $0x174] ss:$8 sps:$4 sm:$0xff]  }
  0x25   :  { %1135 = vmatprep.subr.bf16.mxu0 %v1638_v37  ;;  %v1731_v37 = vld [vmem:[%s2346_s1 + $0x374] ss:$8 sps:$4 sm:$0xff]  }
  0x27   :  { %1030 = vmatpush1.bf16.msra.mxu1 %v1640_v38  ;;  %v1726_v38 = vld [vmem:[%s2346_s1 + $0x170] ss:$8 sps:$4 sm:$0xff]  }
  0x28   :  { %1136 = vmatpush1.bf16.msra.mxu0 %v1641_v39  ;;  %1031 = vmatprep.subr.bf16.mxu1 %v1642_v40  ;;  %v1729_v39 = vld [vmem:[%s2346_s1 + $0x370] ss:$8 sps:$4 sm:$0xff]   ;;  %v1734_v40 = vld [vmem:[%s2346_s1 + $0x184] ss:$8 sps:$4 sm:$0xff]  }
  0x29   :  { %1137 = vmatprep.subr.bf16.mxu0 %v1644_v41  ;;  %v1788_v41 = vld [vmem:[%s2347_s0 + $0xc] ss:$36 sps:$4 sm:$0xff]  }
  0x2b   :  { %1032 = vmatpush1.bf16.msra.mxu1 %v1646_v42  ;;  %v1737_v42 = vld [vmem:[%s2346_s1 + $0x384] ss:$8 sps:$4 sm:$0xff]  }
  0x2c   :  { %1138 = vmatpush1.bf16.msra.mxu0 %v1647_v43  ;;  %1033 = vmatprep.subr.bf16.mxu1 %v1648_v44  ;;  %v1791_v43 = vld [vmem:[%s2347_s0 + $0x1c] ss:$36 sps:$4 sm:$0xff]  }
  0x2d   :  { %1139 = vmatprep.subr.bf16.mxu0 %v1650_v45  ;;  %v1732_v44 = vld [vmem:[%s2346_s1 + $0x180] ss:$8 sps:$4 sm:$0xff]  }
  0x2e   :  { %v1735_v45 = vld [vmem:[%s2346_s1 + $0x380] ss:$8 sps:$4 sm:$0xff]  }
  0x2f   :  { %1034 = vmatpush1.bf16.msra.mxu1 %v1652_v46  ;;  %v1740_v46 = vld [vmem:[%s2346_s1 + $0x194] ss:$8 sps:$4 sm:$0xff]  }
  0x30   :  { %1140 = vmatpush1.bf16.msra.mxu0 %v1653_v47  ;;  %1035 = vmatprep.subr.bf16.mxu1 %v1654_v49  ;;  %v1743_v47 = vld [vmem:[%s2346_s1 + $0x394] ss:$8 sps:$4 sm:$0xff]   ;;  %v1741_v49 = vld [vmem:[%s2346_s1 + $0x390] ss:$8 sps:$4 sm:$0xff]  }
  0x31   :  { %1141 = vmatprep.subr.bf16.mxu0 %v1656_v50  ;;  %v1746_v50 = vld [vmem:[%s2346_s1 + $0x1a4] ss:$8 sps:$4 sm:$0xff]  }
  0x33   :  { %1036 = vmatpush1.bf16.msra.mxu1 %v1658_v52  ;;  %v1744_v52 = vld [vmem:[%s2346_s1 + $0x1a0] ss:$8 sps:$4 sm:$0xff]  }
  0x34   :  { %1142 = vmatpush1.bf16.msra.mxu0 %v1659_v53  ;;  %1037 = vmatprep.subr.bf16.mxu1 %v1660_v54  ;;  %v1747_v53 = vld [vmem:[%s2346_s1 + $0x3a0] ss:$8 sps:$4 sm:$0xff]   ;;  %v1752_v54 = vld [vmem:[%s2346_s1 + $0x1b4] ss:$8 sps:$4 sm:$0xff]  }
  0x35   :  { %1143 = vmatprep.subr.bf16.mxu0 %v1662_v55  ;;  %v1755_v55 = vld [vmem:[%s2346_s1 + $0x3b4] ss:$8 sps:$4 sm:$0xff]  }
  0x37   :  { %1038 = vmatpush1.bf16.msra.mxu1 %v1664_v56  ;;  %v1750_v56 = vld [vmem:[%s2346_s1 + $0x1b0] ss:$8 sps:$4 sm:$0xff]  }
  0x38   :  { %1144 = vmatpush1.bf16.msra.mxu0 %v1665_v57  ;;  %1039 = vmatprep.subr.bf16.mxu1 %v1666_v58  ;;  %v1753_v57 = vld [vmem:[%s2346_s1 + $0x3b0] ss:$8 sps:$4 sm:$0xff]   ;;  %v1758_v58 = vld [vmem:[%s2346_s1 + $0x1c4] ss:$8 sps:$4 sm:$0xff]  }
  0x39   :  { %1145 = vmatprep.subr.bf16.mxu0 %v1668_v59  ;;  %v1761_v59 = vld [vmem:[%s2346_s1 + $0x3c4] ss:$8 sps:$4 sm:$0xff]  }
  0x3b   :  { %1040 = vmatpush1.bf16.msra.mxu1 %v1670_v60  ;;  %v1756_v60 = vld [vmem:[%s2346_s1 + $0x1c0] ss:$8 sps:$4 sm:$0xff]  }
  0x3c   :  { %1146 = vmatpush1.bf16.msra.mxu0 %v1671_v61  ;;  %1041 = vmatprep.subr.bf16.mxu1 %v1672_v62  ;;  %v1759_v61 = vld [vmem:[%s2346_s1 + $0x3c0] ss:$8 sps:$4 sm:$0xff]   ;;  %v1764_v62 = vld [vmem:[%s2346_s1 + $0x1d4] ss:$8 sps:$4 sm:$0xff]  }
  0x3d   :  { %1147 = vmatprep.subr.bf16.mxu0 %v1674_v63  ;;  %v1767_v63 = vld [vmem:[%s2346_s1 + $0x3d4] ss:$8 sps:$4 sm:$0xff]  }
  0x3f   :  { %1042 = vmatpush1.bf16.msra.mxu1 %v1676_v0  ;;  %v1762_v0 = vld [vmem:[%s2346_s1 + $0x1d0] ss:$8 sps:$4 sm:$0xff]  }
  0x40   :  { %1148 = vmatpush1.bf16.msra.mxu0 %v1677_v1  ;;  %1064 = vmatprep.subr.bf16.mxu1 %v1683_v2  ;;  %v1765_v1 = vld [vmem:[%s2346_s1 + $0x3d0] ss:$8 sps:$4 sm:$0xff]   ;;  %v1775_v2 = vld [vmem:[%s2346_s1 + $0x1e4] ss:$8 sps:$4 sm:$0xff]  }
  0x41   :  { %1170 = vmatprep.subr.bf16.mxu0 %v1689_v3  ;;  %v1779_v3 = vld [vmem:[%s2346_s1 + $0x3e4] ss:$8 sps:$4 sm:$0xff]  }
  0x42   :  { %1044 = vmatmul.mubr.bf16.vlgmr.msra.gmra.mrb[0].mxu1 %v1678_v4  ;;  %v1773_v4 = vld [vmem:[%s2346_s1 + $0x1e0] ss:$8 sps:$4 sm:$0xff]  }
  0x43   :  { %1150 = vmatmul.mubr.bf16.vlgmr.msra.gmra.mrb[0].mxu0 %v1684_v6  ;;  %1065 = vmatpush1.bf16.msra.mxu1 %v1681_v5  ;;  %v1777_v5 = vld [vmem:[%s2346_s1 + $0x3e0] ss:$8 sps:$4 sm:$0xff]   ;;  %v1782_v6 = vld [vmem:[%s2346_s1 + $0x1f4] ss:$8 sps:$4 sm:$0xff]  }
  0x44   :  { %1171 = vmatpush1.bf16.msra.mxu0 %v1687_v7  ;;  %1066 = vmatprep.subr.bf16.mxu1 %v1692_v8  ;;  %v1785_v7 = vld [vmem:[%s2346_s1 + $0x3f4] ss:$8 sps:$4 sm:$0xff]   ;;  %v1780_v8 = vld [vmem:[%s2346_s1 + $0x1f0] ss:$8 sps:$4 sm:$0xff]  }
  0x45   :  { %1172 = vmatprep.subr.bf16.mxu0 %v1695_v9  ;;  %1053 = vmatprep.mubr.bf16.mxu1 %v1768_v29  ;;  %v1783_v9 = vld [vmem:[%s2346_s1 + $0x3f0] ss:$8 sps:$4 sm:$0xff]   ;;  %v1818_v29 = vld [vmem:[%s2346_s1 + $0x464] ss:$8 sps:$4 sm:$0xff]  }
  0x46   :  { %1159 = vmatprep.mubr.bf16.mxu0 %v1770_v30  ;;  %v1816_v30 = vld [vmem:[%s2346_s1 + $0x460] ss:$8 sps:$4 sm:$0xff]  }
  0x47   :  { %1067 = vmatpush1.bf16.msra.mxu1 %v1690_v10  ;;  %v1794_v10 = vld [vmem:[%s2346_s1 + $0x404] ss:$8 sps:$4 sm:$0xff]  }
  0x48   :  { %1173 = vmatpush1.bf16.msra.mxu0 %v1693_v11  ;;  %1068 = vmatprep.subr.bf16.mxu1 %v1698_v12  ;;  %v1786_v11 = vld [vmem:[%s2347_s0 + $0x8] ss:$36 sps:$4 sm:$0xff]   ;;  %v1789_v12 = vld [vmem:[%s2347_s0 + $0x18] ss:$36 sps:$4 sm:$0xff]  }
  0x49   :  { %1174 = vmatprep.subr.bf16.mxu0 %v1701_v13  ;;  %v1792_v13 = vld [vmem:[%s2346_s1 + $0x400] ss:$8 sps:$4 sm:$0xff]  }
  0x4a   :  { %1054 = vmatmul.mubr.bf16.gmra.mrb[4].mxu1 %v1772_v31  ;;  %v1821_v31 = vld [vmem:[%s2346_s1 + $0x474] ss:$8 sps:$4 sm:$0xff]  }
  0x4b   :  { %1069 = vmatpush1.bf16.msra.mxu1 %v1696_v14  ;;  %1160 = vmatmul.mubr.bf16.gmra.mrb[4].mxu0 %v1776_v33  ;;  %v1797_v14 = vld [vmem:[%s2346_s1 + $0x414] ss:$8 sps:$4 sm:$0xff]   ;;  %v1822_v33 = vld [vmem:[%s2347_s0 + $0x20] ss:$36 sps:$4 sm:$0xff]  }
  0x4c   :  { %1175 = vmatpush1.bf16.msra.mxu0 %v1699_v15  ;;  %1070 = vmatprep.subr.bf16.mxu1 %v1704_v16  ;;  %v1798_v15 = vld [vmem:[%s2347_s0 + $0x54] ss:$36 sps:$4 sm:$0xff]   ;;  %v1800_v16 = vld [vmem:[%s2347_s0 + $0x64] ss:$36 sps:$4 sm:$0xff]  }
  0x4d   :  { %1176 = vmatprep.subr.bf16.mxu0 %v1707_v17  ;;  %1096 = vmatprep.mubr.bf16.mxu1 %v1788_v41  ;;  %v1795_v17 = vld [vmem:[%s2346_s1 + $0x410] ss:$8 sps:$4 sm:$0xff]  }
  0x4e   :  { %1202 = vmatprep.mubr.bf16.mxu0 %v1791_v43 }
  0x4f   :  { %1071 = vmatpush1.bf16.msra.mxu1 %v1702_v18  ;;  %v1806_v18 = vld [vmem:[%s2346_s1 + $0x424] ss:$8 sps:$4 sm:$0xff]  }
  0x50   :  { %1177 = vmatpush1.bf16.msra.mxu0 %v1705_v19  ;;  %1072 = vmatprep.subr.bf16.mxu1 %v1710_v20  ;;  %v1802_v19 = vld [vmem:[%s2347_s0 + $0x50] ss:$36 sps:$4 sm:$0xff]   ;;  %v1803_v20 = vld [vmem:[%s2347_s0 + $0x60] ss:$36 sps:$4 sm:$0xff]  }
  0x51   :  { %1178 = vmatprep.subr.bf16.mxu0 %v1713_v21  ;;  %v1804_v21 = vld [vmem:[%s2346_s1 + $0x420] ss:$8 sps:$4 sm:$0xff]  }
  0x53   :  { %1073 = vmatpush1.bf16.msra.mxu1 %v1708_v22  ;;  %v1809_v22 = vld [vmem:[%s2346_s1 + $0x434] ss:$8 sps:$4 sm:$0xff]  }
  0x54   :  { %1179 = vmatpush1.bf16.msra.mxu0 %v1711_v23  ;;  %1074 = vmatprep.subr.bf16.mxu1 %v1716_v24  ;;  %v1807_v23 = vld [vmem:[%s2346_s1 + $0x430] ss:$8 sps:$4 sm:$0xff]   ;;  %v1812_v24 = vld [vmem:[%s2346_s1 + $0x444] ss:$8 sps:$4 sm:$0xff]  }
  0x55   :  { %1180 = vmatprep.subr.bf16.mxu0 %v1719_v25  ;;  %v1824_v25 = vmov 0  }
  0x57   :  { %1075 = vmatpush1.bf16.msra.mxu1 %v1714_v26  ;;  %v1810_v26 = vld [vmem:[%s2346_s1 + $0x440] ss:$8 sps:$4 sm:$0xff]  }
  0x58   :  { %1181 = vmatpush1.bf16.msra.mxu0 %v1717_v27  ;;  %1076 = vmatprep.subr.bf16.mxu1 %v1722_v28  ;;  %v1815_v27 = vld [vmem:[%s2346_s1 + $0x454] ss:$8 sps:$4 sm:$0xff]   ;;  %v1813_v28 = vld [vmem:[%s2346_s1 + $0x450] ss:$8 sps:$4 sm:$0xff]  }
  0x59   :  { %1182 = vmatprep.subr.bf16.mxu0 %v1725_v32  ;;  %v1819_v32 = vld [vmem:[%s2346_s1 + $0x470] ss:$8 sps:$4 sm:$0xff]  }
  0x5b   :  { %1077 = vmatpush1.bf16.msra.mxu1 %v1720_v34  ;;  %v1823_v34 = vld [vmem:[%s2347_s0 + $0x68] ss:$36 sps:$4 sm:$0xff]  }
  0x5c   :  { %1183 = vmatpush1.bf16.msra.mxu0 %v1723_v35  ;;  %1078 = vmatprep.subr.bf16.mxu1 %v1728_v36 }
  0x5d   :  { %1184 = vmatprep.subr.bf16.mxu0 %v1731_v37 }
  0x5f   :  { %1079 = vmatpush1.bf16.msra.mxu1 %v1726_v38 }
  0x60   :  { %1185 = vmatpush1.bf16.msra.mxu0 %v1729_v39  ;;  %1080 = vmatprep.subr.bf16.mxu1 %v1734_v40 }
  0x61   :  { %1186 = vmatprep.subr.bf16.mxu0 %v1737_v42 }
  0x63   :  { %1081 = vmatpush1.bf16.msra.mxu1 %v1732_v44 }
  0x64   :  { %1187 = vmatpush1.bf16.msra.mxu0 %v1735_v45  ;;  %1082 = vmatprep.subr.bf16.mxu1 %v1740_v46 }
  0x65   :  { %1188 = vmatprep.subr.bf16.mxu0 %v1743_v47 }
  0x67   :  { %1083 = vmatpush1.bf16.msra.mxu1 %v1738_v48 }
  0x68   :  { %1189 = vmatpush1.bf16.msra.mxu0 %v1741_v49  ;;  %1084 = vmatprep.subr.bf16.mxu1 %v1746_v50 }
  0x69   :  { %1190 = vmatprep.subr.bf16.mxu0 %v1749_v51  ;;  %v1305_v51 = vlaneseq }
  0x6b   :  { %1085 = vmatpush1.bf16.msra.mxu1 %v1744_v52  ;;  %v1306_v52 = vshrl.u32 %v1305_v51, 7 }
  0x6c   :  { %1191 = vmatpush1.bf16.msra.mxu0 %v1747_v53  ;;  %1086 = vmatprep.subr.bf16.mxu1 %v1752_v54  ;;  %v1303_v54 = vld [vmem:[%s2348_s2] sm:$0x3] }
  0x6d   :  { %1192 = vmatprep.subr.bf16.mxu0 %v1755_v55  ;;  %v1307_v53 = vsub.s32 0, %v1306_v52  ;;  %v1311_v55 = vsub.s32 1, %v1306_v52 }
  0x6f   :  { %1087 = vmatpush1.bf16.msra.mxu1 %v1750_v56  ;;  %v1308_v56 = vrot.slane %v1303_v54, %v1307_v53 }
  0x70   :  { %1193 = vmatpush1.bf16.msra.mxu0 %v1753_v57  ;;  %1088 = vmatprep.subr.bf16.mxu1 %v1758_v58 }
  0x71   :  { %1194 = vmatprep.subr.bf16.mxu0 %v1761_v59  ;;  %v1312_v59 = vrot.slane %v1303_v54, %v1311_v55 }
  0x73   :  { %1089 = vmatpush1.bf16.msra.mxu1 %v1756_v60 }
  0x74   :  { %1195 = vmatpush1.bf16.msra.mxu0 %v1759_v61  ;;  %1090 = vmatprep.subr.bf16.mxu1 %v1764_v62 }
  0x75   :  { %1196 = vmatprep.subr.bf16.mxu0 %v1767_v63 }
  0x77   :  { %1091 = vmatpush1.bf16.msra.mxu1 %v1762_v0 }
  0x78   :  { %1197 = vmatpush1.bf16.msra.mxu0 %v1765_v1  ;;  %1092 = vmatprep.subr.bf16.mxu1 %v1775_v2 }
  0x79   :  { %1198 = vmatprep.subr.bf16.mxu0 %v1779_v3 }
  0x7b   :  { %1093 = vmatpush1.bf16.msra.mxu1 %v1773_v4 }
  0x7c   :  { %1199 = vmatpush1.bf16.msra.mxu0 %v1777_v5  ;;  %1094 = vmatprep.subr.bf16.mxu1 %v1782_v6 }
  0x7d   :  { %1200 = vmatprep.subr.bf16.mxu0 %v1785_v7 }
  0x7f   :  { %1095 = vmatpush1.bf16.msra.mxu1 %v1780_v8 }
  0x80   :  { %1201 = vmatpush1.bf16.msra.mxu0 %v1783_v9  ;;  %1533 = vmatprep.subr.bf16.mxu1 %v1794_v10 }
  0x81   :  { %1223 = vmatprep.subr.bf16.mxu0 %v1794_v10 }
  0x82   :  { %1097 = vmatmul.mubr.bf16.vlgmr.msra.gmra.mrb[0].mxu1 %v1786_v11 }
  0x83   :  { %1203 = vmatmul.mubr.bf16.vlgmr.msra.gmra.mrb[0].mxu0 %v1789_v12  ;;  %1541 = vmatpush1.bf16.msra.mxu1 %v1792_v13 }
  0x84   :  { %1224 = vmatpush1.bf16.msra.mxu0 %v1792_v13  ;;  %1534 = vmatprep.subr.bf16.mxu1 %v1797_v14 }
  0x85   :  { %1225 = vmatprep.subr.bf16.mxu0 %v1797_v14  ;;  %1106 = vmatprep.mubr.bf16.mxu1 %v1798_v15 }
  0x86   :  { %1212 = vmatprep.mubr.bf16.mxu0 %v1800_v16 }
  0x87   :  { %1542 = vmatpush1.bf16.msra.mxu1 %v1795_v17 }
  0x88   :  { %1226 = vmatpush1.bf16.msra.mxu0 %v1795_v17  ;;  %1535 = vmatprep.subr.bf16.mxu1 %v1806_v18 }
  0x89   :  { %1227 = vmatprep.subr.bf16.mxu0 %v1806_v18 }
  0x8a   :  { %1107 = vmatmul.mubr.bf16.gmra.mrb[4].mxu1 %v1802_v19 }
  0x8b   :  { %1213 = vmatmul.mubr.bf16.gmra.mrb[4].mxu0 %v1803_v20  ;;  %1543 = vmatpush1.bf16.msra.mxu1 %v1804_v21 }
  0x8c   :  { %1228 = vmatpush1.bf16.msra.mxu0 %v1804_v21  ;;  %1536 = vmatprep.subr.bf16.mxu1 %v1809_v22 }
  0x8d   :  { %1229 = vmatprep.subr.bf16.mxu0 %v1809_v22  ;;  %1255 = vmatprep.mubr.bf16.mxu0 %v1824_v25 }
  0x8e   :  { %1265 = vmatprep.mubr.bf16.mxu1 %v1824_v25 }
  0x8f   :  { %1544 = vmatpush1.bf16.msra.mxu1 %v1807_v23 }
  0x90   :  { %1230 = vmatpush1.bf16.msra.mxu0 %v1807_v23  ;;  %1537 = vmatprep.subr.bf16.mxu1 %v1812_v24 }
  0x91   :  { %1231 = vmatprep.subr.bf16.mxu0 %v1812_v24 }
  0x93   :  { %1545 = vmatpush1.bf16.msra.mxu1 %v1810_v26 }
  0x94   :  { %1232 = vmatpush1.bf16.msra.mxu0 %v1810_v26  ;;  %1538 = vmatprep.subr.bf16.mxu1 %v1815_v27 }
  0x95   :  { %1233 = vmatprep.subr.bf16.mxu0 %v1815_v27 }
  0x97   :  { %1546 = vmatpush1.bf16.msra.mxu1 %v1813_v28 }
  0x98   :  { %1234 = vmatpush1.bf16.msra.mxu0 %v1813_v28  ;;  %1539 = vmatprep.subr.bf16.mxu1 %v1818_v29 }
  0x99   :  { %1235 = vmatprep.subr.bf16.mxu0 %v1818_v29 }
  0x9b   :  { %1547 = vmatpush1.bf16.msra.mxu1 %v1816_v30 }
  0x9c   :  { %1236 = vmatpush1.bf16.msra.mxu0 %v1816_v30  ;;  %1540 = vmatprep.subr.bf16.mxu1 %v1821_v31 }
  0x9d   :  { %1237 = vmatprep.subr.bf16.mxu0 %v1821_v31 }
  0x9f   :  { %1548 = vmatpush1.bf16.msra.mxu1 %v1819_v32 }
  0xa0   :  { %1238 = vmatpush1.bf16.msra.mxu0 %v1819_v32 }
  0xa2   :  { %1266 = vmatmul.mubr.bf16.vlgmr.msra.gmra.mrb[8].mxu1 %v1823_v34 }
  0xa3   :  { %1256 = vmatmul.mubr.bf16.vlgmr.msra.gmra.mrb[0].mxu0 %v1822_v33 }
 0x155   :  { %v1098_v35 = vpop.f32.mrb[0].mxu1 }
 0x156   :  { %v1100_v36 = vpop.f32.mrb[1].mxu1 }
 0x157   :  { %v1102_v37 = vpop.f32.mrb[2].mxu1 }
 0x158   :  { %v1104_v38 = vpop.f32.mrb[3].mxu1 }
 0x15d   :  { %v1108_v39 = vpop.f32.mrb[4].mxu1 }
 0x15e   :  { %v1214_v40 = vpop.f32.mrb[4].mxu0  ;;  %v1110_v42 = vpop.f32.mrb[5].mxu1 }
 0x15f   :  { %v1553_v41 = vadd.f32 %v1214_v40, %v1108_v39  ;;  %v1216_v43 = vpop.f32.mrb[5].mxu0  ;;  %v1112_v45 = vpop.f32.mrb[6].mxu1 }
 0x160   :  { %v1555_v44 = vadd.f32 %v1216_v43, %v1110_v42  ;;  %v1218_v46 = vpop.f32.mrb[6].mxu0  ;;  %v1114_v48 = vpop.f32.mrb[7].mxu1 }
 0x161   :  { %v1557_v47 = vadd.f32 %v1218_v46, %v1112_v45  ;;  %v1220_v49 = vpop.f32.mrb[7].mxu0 }
 0x162   :  { %v1559_v50 = vadd.f32 %v1220_v49, %v1114_v48 }
 0x175   :  { %v1267_v58 = vpop.f32.mrb[8].mxu1 }
 0x176   :  { %v1257_v57 = vpop.f32.mrb[0].mxu0  ;;  %v1554_v61 = vadd.f32 %v1553_v41, %v1267_v58  ;;  %v1269_v63 = vpop.f32.mrb[9].mxu1 }
 0x177   :  { %v1549_v60 = vadd.f32 %v1257_v57, %v1098_v35  ;;  %v1259_v62 = vpop.f32.mrb[1].mxu0  ;;  %v1556_v1 = vadd.f32 %v1555_v44, %v1269_v63  ;;  %v1271_v3 = vpop.f32.mrb[10].mxu1 }
 0x178   :  { %v1550_v0 = vadd.f32 %v1259_v62, %v1100_v36  ;;  %v1261_v2 = vpop.f32.mrb[2].mxu0  ;;  %v1319_v5 = vadd.f32 %v1554_v61, %v1308_v56  ;;  %v1558_v7 = vadd.f32 %v1557_v47, %v1271_v3  ;;  %v1273_v9 = vpop.f32.mrb[11].mxu1 }
 0x179   :  { %v1315_v4 = vadd.f32 %v1549_v60, %v1308_v56  ;;  %v1551_v6 = vadd.f32 %v1261_v2, %v1102_v37  ;;  %v1263_v8 = vpop.f32.mrb[3].mxu0  ;;  %v1320_v11 = vadd.f32 %v1556_v1, %v1312_v59  ;;  %v1560_v13 = vadd.f32 %v1559_v50, %v1273_v9 }
 0x17a   :  { %v1316_v10 = vadd.f32 %v1550_v0, %v1312_v59  ;;  %v1552_v12 = vadd.f32 %v1263_v8, %v1104_v38  ;;  %v1327_v15 = vmax.f32 %v1319_v5, 0.0  ;;  %v1321_v17 = vadd.f32 %v1558_v7, %v1308_v56 }
 0x17b   :  { %v1323_v14 = vmax.f32 %v1315_v4, 0.0  ;;  %v1317_v16 = vadd.f32 %v1551_v6, %v1308_v56  ;;  %v1328_v19 = vmax.f32 %v1320_v11, 0.0  ;;  %v1322_v21 = vadd.f32 %v1560_v13, %v1312_v59 }
 0x17c   :  { %v1324_v18 = vmax.f32 %v1316_v10, 0.0  ;;  %v1318_v20 = vadd.f32 %v1552_v12, %v1312_v59  ;;  %v1329_v23 = vmax.f32 %v1321_v17, 0.0 }
 0x17d   :  { %v1325_v22 = vmax.f32 %v1317_v16, 0.0  ;;  %v1531_v25 = vpack.c.bf16 %v1328_v19, %v1327_v15  ;;  %v1330_v27 = vmax.f32 %v1322_v21, 0.0 }
 0x17e   :  { %v1529_v24 = vpack.c.bf16 %v1324_v18, %v1323_v14  ;;  %v1326_v26 = vmax.f32 %v1318_v20, 0.0 }
 0x17f   :  { %1357 = vst [vmem:[%s2349_s3 + $0x10] sm:$0xff] %v1531_v25  ;;  %v1532_v29 = vpack.c.bf16 %v1330_v27, %v1329_v23 }
 0x180   :  { %1355 = vst [vmem:[%s2349_s3] sm:$0xff] %v1529_v24  ;;  %v1530_v28 = vpack.c.bf16 %v1326_v26, %v1325_v22 }
 0x181   :  { %1358 = vst [vmem:[%s2349_s3 + $0x18] sm:$0xff] %v1532_v29 }
 0x182   :  { %1356 = vst [vmem:[%s2349_s3 + $0x8] sm:$0xff] %v1530_v28 }

// kernel: _lambda_.11
= control target key start
LH: loop header
LB: loop body
LE: loop exit
PB: predicated region body
PF: predicated region fallthrough
CT: control target
= control target key end

     0   :  { %s7843_s1 = inlined_call_operand.vmem [shape: bf16[2304,512], index: 1, kind: input, shape index: {}]   ;;  %s7844_s0 = inlined_call_operand.vmem [shape: bf16[16,2304], index: 0, kind: input, shape index: {}]   ;;  %s7845_s2 = inlined_call_operand.vmem [shape: f32[1,512], index: 2, kind: input, shape index: {}]   ;;  %s7846_s3 = inlined_call_operand.vmem [shape: bf16[16,512], index: 3, kind: output, shape index: {}]  }
   0x1   :  { %v5135_v0 = vld [vmem:[%s7843_s1 + $0x4] ss:$16 sps:$4 sm:$0xff]   ;;  %v5137_v1 = vld [vmem:[%s7843_s1 + $0xc] ss:$16 sps:$4 sm:$0xff]   ;;  %v5139_v2 = vld [vmem:[%s7843_s1] ss:$16 sps:$4 sm:$0xff]  }
   0x2   :  { %3598 = vmatprep.subr.bf16.mxu0 %v5135_v0  ;;  %v5140_v3 = vld [vmem:[%s7843_s1 + $0x8] ss:$16 sps:$4 sm:$0xff]   ;;  %3985 = vmatprep.subr.bf16.mxu1 %v5137_v1  ;;  %v5141_v4 = vld [vmem:[%s7843_s1 + $0x24] ss:$16 sps:$4 sm:$0xff]   ;;  %v5143_v5 = vld [vmem:[%s7843_s1 + $0x2c] ss:$16 sps:$4 sm:$0xff]  }
   0x3   :  { %3599 = vmatpush1.bf16.msra.mxu0 %v5139_v2  ;;  %3986 = vmatpush1.bf16.msra.mxu1 %v5140_v3  ;;  %v5145_v6 = vld [vmem:[%s7843_s1 + $0x20] ss:$16 sps:$4 sm:$0xff]   ;;  %v5146_v7 = vld [vmem:[%s7843_s1 + $0x28] ss:$16 sps:$4 sm:$0xff]   ;;  %v5147_v8 = vld [vmem:[%s7843_s1 + $0x44] ss:$16 sps:$4 sm:$0xff]  }
   0x4   :  { %3600 = vmatprep.subr.bf16.mxu0 %v5141_v4  ;;  %3987 = vmatprep.subr.bf16.mxu1 %v5143_v5  ;;  %v5149_v9 = vld [vmem:[%s7843_s1 + $0x4c] ss:$16 sps:$4 sm:$0xff]   ;;  %v5151_v10 = vld [vmem:[%s7843_s1 + $0x40] ss:$16 sps:$4 sm:$0xff]   ;;  %v5152_v11 = vld [vmem:[%s7843_s1 + $0x48] ss:$16 sps:$4 sm:$0xff]  }
   0x5   :  { %v5153_v12 = vld [vmem:[%s7843_s1 + $0x64] ss:$16 sps:$4 sm:$0xff]   ;;  %v5155_v13 = vld [vmem:[%s7843_s1 + $0x6c] ss:$16 sps:$4 sm:$0xff]   ;;  %v5157_v14 = vld [vmem:[%s7843_s1 + $0x60] ss:$16 sps:$4 sm:$0xff]  }
   0x6   :  { %v5158_v15 = vld [vmem:[%s7843_s1 + $0x68] ss:$16 sps:$4 sm:$0xff]   ;;  %v5159_v16 = vld [vmem:[%s7843_s1 + $0x84] ss:$16 sps:$4 sm:$0xff]   ;;  %v5161_v17 = vld [vmem:[%s7843_s1 + $0x8c] ss:$16 sps:$4 sm:$0xff]  }
   0x7   :  { %3601 = vmatpush1.bf16.msra.mxu0 %v5145_v6  ;;  %3988 = vmatpush1.bf16.msra.mxu1 %v5146_v7  ;;  %v5163_v18 = vld [vmem:[%s7843_s1 + $0x80] ss:$16 sps:$4 sm:$0xff]   ;;  %v5164_v19 = vld [vmem:[%s7843_s1 + $0x88] ss:$16 sps:$4 sm:$0xff]   ;;  %v5165_v20 = vld [vmem:[%s7843_s1 + $0xa4] ss:$16 sps:$4 sm:$0xff]  }
   0x8   :  { %3602 = vmatprep.subr.bf16.mxu0 %v5147_v8  ;;  %3989 = vmatprep.subr.bf16.mxu1 %v5149_v9  ;;  %v5167_v21 = vld [vmem:[%s7843_s1 + $0xac] ss:$16 sps:$4 sm:$0xff]   ;;  %v5169_v22 = vld [vmem:[%s7843_s1 + $0xa0] ss:$16 sps:$4 sm:$0xff]   ;;  %v5170_v23 = vld [vmem:[%s7843_s1 + $0xa8] ss:$16 sps:$4 sm:$0xff]  }
   0x9   :  { %v5171_v24 = vld [vmem:[%s7843_s1 + $0xc4] ss:$16 sps:$4 sm:$0xff]   ;;  %v5173_v25 = vld [vmem:[%s7843_s1 + $0xcc] ss:$16 sps:$4 sm:$0xff]   ;;  %v5175_v26 = vld [vmem:[%s7843_s1 + $0xc0] ss:$16 sps:$4 sm:$0xff]  }
   0xa   :  { %v5176_v27 = vld [vmem:[%s7843_s1 + $0xc8] ss:$16 sps:$4 sm:$0xff]   ;;  %v5177_v28 = vld [vmem:[%s7843_s1 + $0xe4] ss:$16 sps:$4 sm:$0xff]   ;;  %v5179_v29 = vld [vmem:[%s7843_s1 + $0xec] ss:$16 sps:$4 sm:$0xff]  }
   0xb   :  { %3603 = vmatpush1.bf16.msra.mxu0 %v5151_v10  ;;  %3990 = vmatpush1.bf16.msra.mxu1 %v5152_v11  ;;  %v5181_v30 = vld [vmem:[%s7843_s1 + $0xe0] ss:$16 sps:$4 sm:$0xff]   ;;  %v5182_v31 = vld [vmem:[%s7843_s1 + $0xe8] ss:$16 sps:$4 sm:$0xff]   ;;  %v5183_v32 = vld [vmem:[%s7843_s1 + $0x104] ss:$16 sps:$4 sm:$0xff]  }
   0xc   :  { %3604 = vmatprep.subr.bf16.mxu0 %v5153_v12  ;;  %3991 = vmatprep.subr.bf16.mxu1 %v5155_v13  ;;  %v5185_v33 = vld [vmem:[%s7843_s1 + $0x10c] ss:$16 sps:$4 sm:$0xff]   ;;  %v5187_v34 = vld [vmem:[%s7843_s1 + $0x100] ss:$16 sps:$4 sm:$0xff]   ;;  %v5188_v35 = vld [vmem:[%s7843_s1 + $0x108] ss:$16 sps:$4 sm:$0xff]  }
   0xd   :  { %v5189_v36 = vld [vmem:[%s7843_s1 + $0x124] ss:$16 sps:$4 sm:$0xff]   ;;  %v5191_v37 = vld [vmem:[%s7843_s1 + $0x12c] ss:$16 sps:$4 sm:$0xff]   ;;  %v5193_v38 = vld [vmem:[%s7843_s1 + $0x120] ss:$16 sps:$4 sm:$0xff]  }
   0xe   :  { %v5194_v39 = vld [vmem:[%s7843_s1 + $0x128] ss:$16 sps:$4 sm:$0xff]   ;;  %v5195_v40 = vld [vmem:[%s7843_s1 + $0x144] ss:$16 sps:$4 sm:$0xff]   ;;  %v5197_v41 = vld [vmem:[%s7843_s1 + $0x14c] ss:$16 sps:$4 sm:$0xff]  }
   0xf   :  { %3605 = vmatpush1.bf16.msra.mxu0 %v5157_v14  ;;  %3992 = vmatpush1.bf16.msra.mxu1 %v5158_v15  ;;  %v5199_v42 = vld [vmem:[%s7843_s1 + $0x140] ss:$16 sps:$4 sm:$0xff]   ;;  %v5200_v43 = vld [vmem:[%s7843_s1 + $0x148] ss:$16 sps:$4 sm:$0xff]   ;;  %v5201_v44 = vld [vmem:[%s7843_s1 + $0x164] ss:$16 sps:$4 sm:$0xff]  }
  0x10   :  { %3606 = vmatprep.subr.bf16.mxu0 %v5159_v16  ;;  %3993 = vmatprep.subr.bf16.mxu1 %v5161_v17  ;;  %v5203_v45 = vld [vmem:[%s7843_s1 + $0x16c] ss:$16 sps:$4 sm:$0xff]   ;;  %v5205_v46 = vld [vmem:[%s7843_s1 + $0x160] ss:$16 sps:$4 sm:$0xff]   ;;  %v5206_v47 = vld [vmem:[%s7843_s1 + $0x168] ss:$16 sps:$4 sm:$0xff]  }
  0x11   :  { %v5233_v48 = vld [vmem:[%s7844_s0 + $0x4] ss:$72 sps:$4 sm:$0xff]   ;;  %v5211_v51 = vld [vmem:[%s7843_s1 + $0x180] ss:$16 sps:$4 sm:$0xff]   ;;  %v5212_v52 = vld [vmem:[%s7843_s1 + $0x188] ss:$16 sps:$4 sm:$0xff]  }
  0x12   :  { %v5207_v49 = vld [vmem:[%s7843_s1 + $0x184] ss:$16 sps:$4 sm:$0xff]   ;;  %v5209_v50 = vld [vmem:[%s7843_s1 + $0x18c] ss:$16 sps:$4 sm:$0xff]   ;;  %3630 = vmatprep.mubr.bf16.mxu0 %v5233_v48  ;;  %4017 = vmatprep.mubr.bf16.mxu1 %v5233_v48  ;;  %v5217_v55 = vld [vmem:[%s7843_s1 + $0x1a0] ss:$16 sps:$4 sm:$0xff]  }
  0x13   :  { %3607 = vmatpush1.bf16.msra.mxu0 %v5163_v18  ;;  %3994 = vmatpush1.bf16.msra.mxu1 %v5164_v19  ;;  %v5213_v53 = vld [vmem:[%s7843_s1 + $0x1a4] ss:$16 sps:$4 sm:$0xff]   ;;  %v5215_v54 = vld [vmem:[%s7843_s1 + $0x1ac] ss:$16 sps:$4 sm:$0xff]   ;;  %v5218_v56 = vld [vmem:[%s7843_s1 + $0x1a8] ss:$16 sps:$4 sm:$0xff]  }
  0x14   :  { %3608 = vmatprep.subr.bf16.mxu0 %v5165_v20  ;;  %3995 = vmatprep.subr.bf16.mxu1 %v5167_v21  ;;  %v5219_v57 = vld [vmem:[%s7843_s1 + $0x1c4] ss:$16 sps:$4 sm:$0xff]   ;;  %v5221_v58 = vld [vmem:[%s7843_s1 + $0x1cc] ss:$16 sps:$4 sm:$0xff]   ;;  %v5223_v59 = vld [vmem:[%s7843_s1 + $0x1c0] ss:$16 sps:$4 sm:$0xff]  }
  0x15   :  { %v5224_v60 = vld [vmem:[%s7843_s1 + $0x1c8] ss:$16 sps:$4 sm:$0xff]   ;;  %v5225_v61 = vld [vmem:[%s7843_s1 + $0x1e4] ss:$16 sps:$4 sm:$0xff]   ;;  %v5227_v62 = vld [vmem:[%s7843_s1 + $0x1ec] ss:$16 sps:$4 sm:$0xff]  }
  0x16   :  { %v5229_v63 = vld [vmem:[%s7843_s1 + $0x1e0] ss:$16 sps:$4 sm:$0xff]   ;;  %v5230_v0 = vld [vmem:[%s7843_s1 + $0x1e8] ss:$16 sps:$4 sm:$0xff]   ;;  %v5236_v1 = vld [vmem:[%s7843_s1 + $0x204] ss:$16 sps:$4 sm:$0xff]  }
  0x17   :  { %3609 = vmatpush1.bf16.msra.mxu0 %v5169_v22  ;;  %3996 = vmatpush1.bf16.msra.mxu1 %v5170_v23  ;;  %v5239_v2 = vld [vmem:[%s7843_s1 + $0x20c] ss:$16 sps:$4 sm:$0xff]   ;;  %v5231_v3 = vld [vmem:[%s7844_s0] ss:$72 sps:$4 sm:$0xff]   ;;  %v5242_v6 = vld [vmem:[%s7843_s1 + $0x224] ss:$16 sps:$4 sm:$0xff]  }
  0x18   :  { %3610 = vmatprep.subr.bf16.mxu0 %v5171_v24  ;;  %3997 = vmatprep.subr.bf16.mxu1 %v5173_v25  ;;  %v5234_v4 = vld [vmem:[%s7843_s1 + $0x200] ss:$16 sps:$4 sm:$0xff]   ;;  %v5237_v5 = vld [vmem:[%s7843_s1 + $0x208] ss:$16 sps:$4 sm:$0xff]   ;;  %v5245_v7 = vld [vmem:[%s7843_s1 + $0x22c] ss:$16 sps:$4 sm:$0xff]  }
  0x19   :  { %v5240_v8 = vld [vmem:[%s7843_s1 + $0x220] ss:$16 sps:$4 sm:$0xff]   ;;  %v5243_v9 = vld [vmem:[%s7843_s1 + $0x228] ss:$16 sps:$4 sm:$0xff]   ;;  %v5248_v10 = vld [vmem:[%s7843_s1 + $0x244] ss:$16 sps:$4 sm:$0xff]  }
  0x1a   :  { %v5251_v11 = vld [vmem:[%s7843_s1 + $0x24c] ss:$16 sps:$4 sm:$0xff]   ;;  %v5246_v12 = vld [vmem:[%s7843_s1 + $0x240] ss:$16 sps:$4 sm:$0xff]   ;;  %v5249_v13 = vld [vmem:[%s7843_s1 + $0x248] ss:$16 sps:$4 sm:$0xff]  }
  0x1b   :  { %3611 = vmatpush1.bf16.msra.mxu0 %v5175_v26  ;;  %3998 = vmatpush1.bf16.msra.mxu1 %v5176_v27  ;;  %v5254_v14 = vld [vmem:[%s7843_s1 + $0x264] ss:$16 sps:$4 sm:$0xff]   ;;  %v5257_v15 = vld [vmem:[%s7843_s1 + $0x26c] ss:$16 sps:$4 sm:$0xff]   ;;  %v5252_v16 = vld [vmem:[%s7843_s1 + $0x260] ss:$16 sps:$4 sm:$0xff]  }
  0x1c   :  { %3612 = vmatprep.subr.bf16.mxu0 %v5177_v28  ;;  %3999 = vmatprep.subr.bf16.mxu1 %v5179_v29  ;;  %v5255_v17 = vld [vmem:[%s7843_s1 + $0x268] ss:$16 sps:$4 sm:$0xff]   ;;  %v5260_v18 = vld [vmem:[%s7843_s1 + $0x284] ss:$16 sps:$4 sm:$0xff]   ;;  %v5263_v19 = vld [vmem:[%s7843_s1 + $0x28c] ss:$16 sps:$4 sm:$0xff]  }
  0x1d   :  { %v5258_v20 = vld [vmem:[%s7843_s1 + $0x280] ss:$16 sps:$4 sm:$0xff]   ;;  %v5261_v21 = vld [vmem:[%s7843_s1 + $0x288] ss:$16 sps:$4 sm:$0xff]   ;;  %v5266_v22 = vld [vmem:[%s7843_s1 + $0x2a4] ss:$16 sps:$4 sm:$0xff]  }
  0x1e   :  { %v5269_v23 = vld [vmem:[%s7843_s1 + $0x2ac] ss:$16 sps:$4 sm:$0xff]   ;;  %v5264_v24 = vld [vmem:[%s7843_s1 + $0x2a0] ss:$16 sps:$4 sm:$0xff]   ;;  %v5267_v25 = vld [vmem:[%s7843_s1 + $0x2a8] ss:$16 sps:$4 sm:$0xff]  }
  0x1f   :  { %3613 = vmatpush1.bf16.msra.mxu0 %v5181_v30  ;;  %4000 = vmatpush1.bf16.msra.mxu1 %v5182_v31  ;;  %v5272_v26 = vld [vmem:[%s7843_s1 + $0x2c4] ss:$16 sps:$4 sm:$0xff]   ;;  %v5275_v27 = vld [vmem:[%s7843_s1 + $0x2cc] ss:$16 sps:$4 sm:$0xff]   ;;  %v5270_v28 = vld [vmem:[%s7843_s1 + $0x2c0] ss:$16 sps:$4 sm:$0xff]  }
  0x20   :  { %3614 = vmatprep.subr.bf16.mxu0 %v5183_v32  ;;  %4001 = vmatprep.subr.bf16.mxu1 %v5185_v33  ;;  %v5273_v29 = vld [vmem:[%s7843_s1 + $0x2c8] ss:$16 sps:$4 sm:$0xff]   ;;  %v5332_v30 = vld [vmem:[%s7844_s0 + $0xc] ss:$72 sps:$4 sm:$0xff]   ;;  %v5276_v33 = vld [vmem:[%s7843_s1 + $0x2e0] ss:$16 sps:$4 sm:$0xff]  }
  0x21   :  { %v5278_v31 = vld [vmem:[%s7843_s1 + $0x2e4] ss:$16 sps:$4 sm:$0xff]   ;;  %v5281_v32 = vld [vmem:[%s7843_s1 + $0x2ec] ss:$16 sps:$4 sm:$0xff]  }
  0x22   :  { %v5305_v48 = vld [vmem:[%s7843_s1 + $0x36c] ss:$16 sps:$4 sm:$0xff]  }
  0x23   :  { %3615 = vmatpush1.bf16.msra.mxu0 %v5187_v34  ;;  %4002 = vmatpush1.bf16.msra.mxu1 %v5188_v35  ;;  %v5279_v34 = vld [vmem:[%s7843_s1 + $0x2e8] ss:$16 sps:$4 sm:$0xff]   ;;  %v5284_v35 = vld [vmem:[%s7843_s1 + $0x304] ss:$16 sps:$4 sm:$0xff]  }
  0x24   :  { %3616 = vmatprep.subr.bf16.mxu0 %v5189_v36  ;;  %4003 = vmatprep.subr.bf16.mxu1 %v5191_v37  ;;  %v5287_v36 = vld [vmem:[%s7843_s1 + $0x30c] ss:$16 sps:$4 sm:$0xff]   ;;  %v5282_v37 = vld [vmem:[%s7843_s1 + $0x300] ss:$16 sps:$4 sm:$0xff]  }
  0x27   :  { %3617 = vmatpush1.bf16.msra.mxu0 %v5193_v38  ;;  %4004 = vmatpush1.bf16.msra.mxu1 %v5194_v39  ;;  %v5285_v38 = vld [vmem:[%s7843_s1 + $0x308] ss:$16 sps:$4 sm:$0xff]   ;;  %v5290_v39 = vld [vmem:[%s7843_s1 + $0x324] ss:$16 sps:$4 sm:$0xff]  }
  0x28   :  { %3618 = vmatprep.subr.bf16.mxu0 %v5195_v40  ;;  %4005 = vmatprep.subr.bf16.mxu1 %v5197_v41  ;;  %v5293_v40 = vld [vmem:[%s7843_s1 + $0x32c] ss:$16 sps:$4 sm:$0xff]   ;;  %v5288_v41 = vld [vmem:[%s7843_s1 + $0x320] ss:$16 sps:$4 sm:$0xff]  }
  0x2b   :  { %3619 = vmatpush1.bf16.msra.mxu0 %v5199_v42  ;;  %4006 = vmatpush1.bf16.msra.mxu1 %v5200_v43  ;;  %v5291_v42 = vld [vmem:[%s7843_s1 + $0x328] ss:$16 sps:$4 sm:$0xff]   ;;  %v5296_v43 = vld [vmem:[%s7843_s1 + $0x344] ss:$16 sps:$4 sm:$0xff]  }
  0x2c   :  { %3620 = vmatprep.subr.bf16.mxu0 %v5201_v44  ;;  %4007 = vmatprep.subr.bf16.mxu1 %v5203_v45  ;;  %v5299_v44 = vld [vmem:[%s7843_s1 + $0x34c] ss:$16 sps:$4 sm:$0xff]   ;;  %v5294_v45 = vld [vmem:[%s7843_s1 + $0x340] ss:$16 sps:$4 sm:$0xff]  }
  0x2f   :  { %3621 = vmatpush1.bf16.msra.mxu0 %v5205_v46  ;;  %4008 = vmatpush1.bf16.msra.mxu1 %v5206_v47  ;;  %v5297_v46 = vld [vmem:[%s7843_s1 + $0x348] ss:$16 sps:$4 sm:$0xff]   ;;  %v5302_v47 = vld [vmem:[%s7843_s1 + $0x364] ss:$16 sps:$4 sm:$0xff]  }
  0x30   :  { %3622 = vmatprep.subr.bf16.mxu0 %v5207_v49  ;;  %4009 = vmatprep.subr.bf16.mxu1 %v5209_v50  ;;  %v5300_v49 = vld [vmem:[%s7843_s1 + $0x360] ss:$16 sps:$4 sm:$0xff]   ;;  %v5303_v50 = vld [vmem:[%s7843_s1 + $0x368] ss:$16 sps:$4 sm:$0xff]  }
  0x33   :  { %3623 = vmatpush1.bf16.msra.mxu0 %v5211_v51  ;;  %4010 = vmatpush1.bf16.msra.mxu1 %v5212_v52  ;;  %v5308_v51 = vld [vmem:[%s7843_s1 + $0x384] ss:$16 sps:$4 sm:$0xff]   ;;  %v5311_v52 = vld [vmem:[%s7843_s1 + $0x38c] ss:$16 sps:$4 sm:$0xff]  }
  0x34   :  { %3624 = vmatprep.subr.bf16.mxu0 %v5213_v53  ;;  %4011 = vmatprep.subr.bf16.mxu1 %v5215_v54  ;;  %v5306_v53 = vld [vmem:[%s7843_s1 + $0x380] ss:$16 sps:$4 sm:$0xff]   ;;  %v5309_v54 = vld [vmem:[%s7843_s1 + $0x388] ss:$16 sps:$4 sm:$0xff]  }
  0x37   :  { %3625 = vmatpush1.bf16.msra.mxu0 %v5217_v55  ;;  %4012 = vmatpush1.bf16.msra.mxu1 %v5218_v56  ;;  %v5314_v55 = vld [vmem:[%s7843_s1 + $0x3a4] ss:$16 sps:$4 sm:$0xff]   ;;  %v5317_v56 = vld [vmem:[%s7843_s1 + $0x3ac] ss:$16 sps:$4 sm:$0xff]  }
  0x38   :  { %3626 = vmatprep.subr.bf16.mxu0 %v5219_v57  ;;  %4013 = vmatprep.subr.bf16.mxu1 %v5221_v58  ;;  %v5312_v57 = vld [vmem:[%s7843_s1 + $0x3a0] ss:$16 sps:$4 sm:$0xff]   ;;  %v5315_v58 = vld [vmem:[%s7843_s1 + $0x3a8] ss:$16 sps:$4 sm:$0xff]  }
  0x3b   :  { %3627 = vmatpush1.bf16.msra.mxu0 %v5223_v59  ;;  %4014 = vmatpush1.bf16.msra.mxu1 %v5224_v60  ;;  %v5320_v59 = vld [vmem:[%s7843_s1 + $0x3c4] ss:$16 sps:$4 sm:$0xff]   ;;  %v5323_v60 = vld [vmem:[%s7843_s1 + $0x3cc] ss:$16 sps:$4 sm:$0xff]  }
  0x3c   :  { %3628 = vmatprep.subr.bf16.mxu0 %v5225_v61  ;;  %4015 = vmatprep.subr.bf16.mxu1 %v5227_v62  ;;  %v5318_v61 = vld [vmem:[%s7843_s1 + $0x3c0] ss:$16 sps:$4 sm:$0xff]   ;;  %v5321_v62 = vld [vmem:[%s7843_s1 + $0x3c8] ss:$16 sps:$4 sm:$0xff]  }
  0x3f   :  { %3629 = vmatpush1.bf16.msra.mxu0 %v5229_v63  ;;  %4016 = vmatpush1.bf16.msra.mxu1 %v5230_v0  ;;  %v5326_v63 = vld [vmem:[%s7843_s1 + $0x3e4] ss:$16 sps:$4 sm:$0xff]   ;;  %v5329_v0 = vld [vmem:[%s7843_s1 + $0x3ec] ss:$16 sps:$4 sm:$0xff]  }
  0x40   :  { %3641 = vmatprep.subr.bf16.mxu0 %v5236_v1  ;;  %4028 = vmatprep.subr.bf16.mxu1 %v5239_v2  ;;  %v5324_v1 = vld [vmem:[%s7843_s1 + $0x3e0] ss:$16 sps:$4 sm:$0xff]   ;;  %v5327_v2 = vld [vmem:[%s7843_s1 + $0x3e8] ss:$16 sps:$4 sm:$0xff]  }
  0x42   :  { %3631 = vmatmul.mubr.bf16.vlgmr.msra.gmra.mrb[0].mxu0 %v5231_v3  ;;  %4018 = vmatmul.mubr.bf16.vlgmr.msra.gmra.mrb[0].mxu1 %v5231_v3  ;;  %v5335_v3 = vld [vmem:[%s7843_s1 + $0x404] ss:$16 sps:$4 sm:$0xff]  }
  0x43   :  { %3642 = vmatpush1.bf16.msra.mxu0 %v5234_v4  ;;  %4029 = vmatpush1.bf16.msra.mxu1 %v5237_v5  ;;  %v5338_v4 = vld [vmem:[%s7843_s1 + $0x40c] ss:$16 sps:$4 sm:$0xff]   ;;  %v5330_v5 = vld [vmem:[%s7844_s0 + $0x8] ss:$72 sps:$4 sm:$0xff]  }
  0x44   :  { %3643 = vmatprep.subr.bf16.mxu0 %v5242_v6  ;;  %4030 = vmatprep.subr.bf16.mxu1 %v5245_v7  ;;  %v5333_v6 = vld [vmem:[%s7843_s1 + $0x400] ss:$16 sps:$4 sm:$0xff]   ;;  %v5336_v7 = vld [vmem:[%s7843_s1 + $0x408] ss:$16 sps:$4 sm:$0xff]  }
  0x45   :  { %3673 = vmatprep.mubr.bf16.mxu0 %v5332_v30  ;;  %4060 = vmatprep.mubr.bf16.mxu1 %v5332_v30  ;;  %v5374_v30 = vld [vmem:[%s7843_s1 + $0x4cc] ss:$16 sps:$4 sm:$0xff]  }
  0x47   :  { %3644 = vmatpush1.bf16.msra.mxu0 %v5240_v8  ;;  %4031 = vmatpush1.bf16.msra.mxu1 %v5243_v9  ;;  %v5341_v8 = vld [vmem:[%s7843_s1 + $0x424] ss:$16 sps:$4 sm:$0xff]   ;;  %v5344_v9 = vld [vmem:[%s7843_s1 + $0x42c] ss:$16 sps:$4 sm:$0xff]  }
  0x48   :  { %3645 = vmatprep.subr.bf16.mxu0 %v5248_v10  ;;  %4032 = vmatprep.subr.bf16.mxu1 %v5251_v11  ;;  %v5339_v10 = vld [vmem:[%s7843_s1 + $0x420] ss:$16 sps:$4 sm:$0xff]   ;;  %v5342_v11 = vld [vmem:[%s7843_s1 + $0x428] ss:$16 sps:$4 sm:$0xff]  }
  0x4b   :  { %3646 = vmatpush1.bf16.msra.mxu0 %v5246_v12  ;;  %4033 = vmatpush1.bf16.msra.mxu1 %v5249_v13  ;;  %v5431_v12 = vld [vmem:[%s7844_s0 + $0x14] ss:$72 sps:$4 sm:$0xff]  }
  0x4c   :  { %3647 = vmatprep.subr.bf16.mxu0 %v5254_v14  ;;  %4034 = vmatprep.subr.bf16.mxu1 %v5257_v15  ;;  %v5347_v13 = vld [vmem:[%s7843_s1 + $0x444] ss:$16 sps:$4 sm:$0xff]   ;;  %v5350_v14 = vld [vmem:[%s7843_s1 + $0x44c] ss:$16 sps:$4 sm:$0xff]   ;;  %v5345_v15 = vld [vmem:[%s7843_s1 + $0x440] ss:$16 sps:$4 sm:$0xff]  }
  0x4f   :  { %3648 = vmatpush1.bf16.msra.mxu0 %v5252_v16  ;;  %4035 = vmatpush1.bf16.msra.mxu1 %v5255_v17  ;;  %v5348_v16 = vld [vmem:[%s7843_s1 + $0x448] ss:$16 sps:$4 sm:$0xff]   ;;  %v5353_v17 = vld [vmem:[%s7843_s1 + $0x464] ss:$16 sps:$4 sm:$0xff]  }
  0x50   :  { %3649 = vmatprep.subr.bf16.mxu0 %v5260_v18  ;;  %4036 = vmatprep.subr.bf16.mxu1 %v5263_v19  ;;  %v5356_v18 = vld [vmem:[%s7843_s1 + $0x46c] ss:$16 sps:$4 sm:$0xff]   ;;  %v5351_v19 = vld [vmem:[%s7843_s1 + $0x460] ss:$16 sps:$4 sm:$0xff]  }
  0x53   :  { %3650 = vmatpush1.bf16.msra.mxu0 %v5258_v20  ;;  %4037 = vmatpush1.bf16.msra.mxu1 %v5261_v21  ;;  %v5354_v20 = vld [vmem:[%s7843_s1 + $0x468] ss:$16 sps:$4 sm:$0xff]   ;;  %v5359_v21 = vld [vmem:[%s7843_s1 + $0x484] ss:$16 sps:$4 sm:$0xff]  }
  0x54   :  { %3651 = vmatprep.subr.bf16.mxu0 %v5266_v22  ;;  %4038 = vmatprep.subr.bf16.mxu1 %v5269_v23  ;;  %v5362_v22 = vld [vmem:[%s7843_s1 + $0x48c] ss:$16 sps:$4 sm:$0xff]   ;;  %v5357_v23 = vld [vmem:[%s7843_s1 + $0x480] ss:$16 sps:$4 sm:$0xff]  }
  0x57   :  { %3652 = vmatpush1.bf16.msra.mxu0 %v5264_v24  ;;  %4039 = vmatpush1.bf16.msra.mxu1 %v5267_v25  ;;  %v5360_v24 = vld [vmem:[%s7843_s1 + $0x488] ss:$16 sps:$4 sm:$0xff]   ;;  %v5365_v25 = vld [vmem:[%s7843_s1 + $0x4a4] ss:$16 sps:$4 sm:$0xff]  }
  0x58   :  { %3653 = vmatprep.subr.bf16.mxu0 %v5272_v26  ;;  %4040 = vmatprep.subr.bf16.mxu1 %v5275_v27  ;;  %v5368_v26 = vld [vmem:[%s7843_s1 + $0x4ac] ss:$16 sps:$4 sm:$0xff]   ;;  %v5363_v27 = vld [vmem:[%s7843_s1 + $0x4a0] ss:$16 sps:$4 sm:$0xff]  }
  0x5b   :  { %3654 = vmatpush1.bf16.msra.mxu0 %v5270_v28  ;;  %4041 = vmatpush1.bf16.msra.mxu1 %v5273_v29  ;;  %v5366_v28 = vld [vmem:[%s7843_s1 + $0x4a8] ss:$16 sps:$4 sm:$0xff]   ;;  %v5371_v29 = vld [vmem:[%s7843_s1 + $0x4c4] ss:$16 sps:$4 sm:$0xff]  }
  0x5c   :  { %3655 = vmatprep.subr.bf16.mxu0 %v5278_v31  ;;  %4042 = vmatprep.subr.bf16.mxu1 %v5281_v32  ;;  %v5369_v31 = vld [vmem:[%s7843_s1 + $0x4c0] ss:$16 sps:$4 sm:$0xff]   ;;  %v5372_v32 = vld [vmem:[%s7843_s1 + $0x4c8] ss:$16 sps:$4 sm:$0xff]  }
  0x5f   :  { %3656 = vmatpush1.bf16.msra.mxu0 %v5276_v33  ;;  %4043 = vmatpush1.bf16.msra.mxu1 %v5279_v34  ;;  %v5377_v33 = vld [vmem:[%s7843_s1 + $0x4e4] ss:$16 sps:$4 sm:$0xff]   ;;  %v5380_v34 = vld [vmem:[%s7843_s1 + $0x4ec] ss:$16 sps:$4 sm:$0xff]  }
  0x60   :  { %3657 = vmatprep.subr.bf16.mxu0 %v5284_v35  ;;  %4044 = vmatprep.subr.bf16.mxu1 %v5287_v36  ;;  %v5375_v35 = vld [vmem:[%s7843_s1 + $0x4e0] ss:$16 sps:$4 sm:$0xff]   ;;  %v5378_v36 = vld [vmem:[%s7843_s1 + $0x4e8] ss:$16 sps:$4 sm:$0xff]  }
  0x63   :  { %3658 = vmatpush1.bf16.msra.mxu0 %v5282_v37  ;;  %4045 = vmatpush1.bf16.msra.mxu1 %v5285_v38  ;;  %v5383_v37 = vld [vmem:[%s7843_s1 + $0x504] ss:$16 sps:$4 sm:$0xff]   ;;  %v5386_v38 = vld [vmem:[%s7843_s1 + $0x50c] ss:$16 sps:$4 sm:$0xff]  }
  0x64   :  { %3659 = vmatprep.subr.bf16.mxu0 %v5290_v39  ;;  %4046 = vmatprep.subr.bf16.mxu1 %v5293_v40  ;;  %v5381_v39 = vld [vmem:[%s7843_s1 + $0x500] ss:$16 sps:$4 sm:$0xff]   ;;  %v5384_v40 = vld [vmem:[%s7843_s1 + $0x508] ss:$16 sps:$4 sm:$0xff]  }
  0x67   :  { %3660 = vmatpush1.bf16.msra.mxu0 %v5288_v41  ;;  %4047 = vmatpush1.bf16.msra.mxu1 %v5291_v42  ;;  %v5389_v41 = vld [vmem:[%s7843_s1 + $0x524] ss:$16 sps:$4 sm:$0xff]   ;;  %v5392_v42 = vld [vmem:[%s7843_s1 + $0x52c] ss:$16 sps:$4 sm:$0xff]  }
  0x68   :  { %3661 = vmatprep.subr.bf16.mxu0 %v5296_v43  ;;  %4048 = vmatprep.subr.bf16.mxu1 %v5299_v44  ;;  %v5387_v43 = vld [vmem:[%s7843_s1 + $0x520] ss:$16 sps:$4 sm:$0xff]   ;;  %v5390_v44 = vld [vmem:[%s7843_s1 + $0x528] ss:$16 sps:$4 sm:$0xff]  }
  0x6b   :  { %3662 = vmatpush1.bf16.msra.mxu0 %v5294_v45  ;;  %4049 = vmatpush1.bf16.msra.mxu1 %v5297_v46  ;;  %v5395_v45 = vld [vmem:[%s7843_s1 + $0x544] ss:$16 sps:$4 sm:$0xff]   ;;  %v5398_v46 = vld [vmem:[%s7843_s1 + $0x54c] ss:$16 sps:$4 sm:$0xff]  }
  0x6c   :  { %3663 = vmatprep.subr.bf16.mxu0 %v5302_v47  ;;  %4050 = vmatprep.subr.bf16.mxu1 %v5305_v48  ;;  %v5393_v47 = vld [vmem:[%s7843_s1 + $0x540] ss:$16 sps:$4 sm:$0xff]   ;;  %v5396_v48 = vld [vmem:[%s7843_s1 + $0x548] ss:$16 sps:$4 sm:$0xff]  }
  0x6f   :  { %3664 = vmatpush1.bf16.msra.mxu0 %v5300_v49  ;;  %4051 = vmatpush1.bf16.msra.mxu1 %v5303_v50  ;;  %v5401_v49 = vld [vmem:[%s7843_s1 + $0x564] ss:$16 sps:$4 sm:$0xff]   ;;  %v5404_v50 = vld [vmem:[%s7843_s1 + $0x56c] ss:$16 sps:$4 sm:$0xff]  }
  0x70   :  { %3665 = vmatprep.subr.bf16.mxu0 %v5308_v51  ;;  %4052 = vmatprep.subr.bf16.mxu1 %v5311_v52  ;;  %v5399_v51 = vld [vmem:[%s7843_s1 + $0x560] ss:$16 sps:$4 sm:$0xff]   ;;  %v5402_v52 = vld [vmem:[%s7843_s1 + $0x568] ss:$16 sps:$4 sm:$0xff]  }
  0x73   :  { %3666 = vmatpush1.bf16.msra.mxu0 %v5306_v53  ;;  %4053 = vmatpush1.bf16.msra.mxu1 %v5309_v54  ;;  %v5407_v53 = vld [vmem:[%s7843_s1 + $0x584] ss:$16 sps:$4 sm:$0xff]   ;;  %v5410_v54 = vld [vmem:[%s7843_s1 + $0x58c] ss:$16 sps:$4 sm:$0xff]  }
  0x74   :  { %3667 = vmatprep.subr.bf16.mxu0 %v5314_v55  ;;  %4054 = vmatprep.subr.bf16.mxu1 %v5317_v56  ;;  %v5405_v55 = vld [vmem:[%s7843_s1 + $0x580] ss:$16 sps:$4 sm:$0xff]   ;;  %v5408_v56 = vld [vmem:[%s7843_s1 + $0x588] ss:$16 sps:$4 sm:$0xff]  }
  0x77   :  { %3668 = vmatpush1.bf16.msra.mxu0 %v5312_v57  ;;  %4055 = vmatpush1.bf16.msra.mxu1 %v5315_v58  ;;  %v5413_v57 = vld [vmem:[%s7843_s1 + $0x5a4] ss:$16 sps:$4 sm:$0xff]   ;;  %v5416_v58 = vld [vmem:[%s7843_s1 + $0x5ac] ss:$16 sps:$4 sm:$0xff]  }
  0x78   :  { %3669 = vmatprep.subr.bf16.mxu0 %v5320_v59  ;;  %4056 = vmatprep.subr.bf16.mxu1 %v5323_v60  ;;  %v5411_v59 = vld [vmem:[%s7843_s1 + $0x5a0] ss:$16 sps:$4 sm:$0xff]   ;;  %v5414_v60 = vld [vmem:[%s7843_s1 + $0x5a8] ss:$16 sps:$4 sm:$0xff]  }
  0x7b   :  { %3670 = vmatpush1.bf16.msra.mxu0 %v5318_v61  ;;  %4057 = vmatpush1.bf16.msra.mxu1 %v5321_v62  ;;  %v5419_v61 = vld [vmem:[%s7843_s1 + $0x5c4] ss:$16 sps:$4 sm:$0xff]   ;;  %v5422_v62 = vld [vmem:[%s7843_s1 + $0x5cc] ss:$16 sps:$4 sm:$0xff]  }
  0x7c   :  { %3671 = vmatprep.subr.bf16.mxu0 %v5326_v63  ;;  %4058 = vmatprep.subr.bf16.mxu1 %v5329_v0  ;;  %v5417_v63 = vld [vmem:[%s7843_s1 + $0x5c0] ss:$16 sps:$4 sm:$0xff]   ;;  %v5420_v0 = vld [vmem:[%s7843_s1 + $0x5c8] ss:$16 sps:$4 sm:$0xff]  }
  0x7f   :  { %3672 = vmatpush1.bf16.msra.mxu0 %v5324_v1  ;;  %4059 = vmatpush1.bf16.msra.mxu1 %v5327_v2  ;;  %v5425_v1 = vld [vmem:[%s7843_s1 + $0x5e4] ss:$16 sps:$4 sm:$0xff]   ;;  %v5428_v2 = vld [vmem:[%s7843_s1 + $0x5ec] ss:$16 sps:$4 sm:$0xff]  }
  0x80   :  { %3684 = vmatprep.subr.bf16.mxu0 %v5335_v3  ;;  %4071 = vmatprep.subr.bf16.mxu1 %v5338_v4  ;;  %v5423_v3 = vld [vmem:[%s7843_s1 + $0x5e0] ss:$16 sps:$4 sm:$0xff]   ;;  %v5426_v4 = vld [vmem:[%s7843_s1 + $0x5e8] ss:$16 sps:$4 sm:$0xff]  }
  0x82   :  { %3674 = vmatmul.mubr.bf16.vlgmr.msra.gmra.mrb[0].mxu0 %v5330_v5  ;;  %4061 = vmatmul.mubr.bf16.vlgmr.msra.gmra.mrb[0].mxu1 %v5330_v5  ;;  %v5434_v5 = vld [vmem:[%s7843_s1 + $0x604] ss:$16 sps:$4 sm:$0xff]  }
  0x83   :  { %3685 = vmatpush1.bf16.msra.mxu0 %v5333_v6  ;;  %4072 = vmatpush1.bf16.msra.mxu1 %v5336_v7  ;;  %v5437_v6 = vld [vmem:[%s7843_s1 + $0x60c] ss:$16 sps:$4 sm:$0xff]   ;;  %v5429_v7 = vld [vmem:[%s7844_s0 + $0x10] ss:$72 sps:$4 sm:$0xff]  }
  0x84   :  { %3686 = vmatprep.subr.bf16.mxu0 %v5341_v8  ;;  %4073 = vmatprep.subr.bf16.mxu1 %v5344_v9  ;;  %v5432_v8 = vld [vmem:[%s7843_s1 + $0x600] ss:$16 sps:$4 sm:$0xff]   ;;  %v5435_v9 = vld [vmem:[%s7843_s1 + $0x608] ss:$16 sps:$4 sm:$0xff]  }
  0x85   :  { %3716 = vmatprep.mubr.bf16.mxu0 %v5431_v12  ;;  %4103 = vmatprep.mubr.bf16.mxu1 %v5431_v12  ;;  %v5530_v12 = vld [vmem:[%s7844_s0 + $0x1c] ss:$72 sps:$4 sm:$0xff]  }
  0x87   :  { %3687 = vmatpush1.bf16.msra.mxu0 %v5339_v10  ;;  %4074 = vmatpush1.bf16.msra.mxu1 %v5342_v11  ;;  %v5440_v10 = vld [vmem:[%s7843_s1 + $0x624] ss:$16 sps:$4 sm:$0xff]   ;;  %v5443_v11 = vld [vmem:[%s7843_s1 + $0x62c] ss:$16 sps:$4 sm:$0xff]  }
  0x88   :  { %3688 = vmatprep.subr.bf16.mxu0 %v5347_v13  ;;  %4075 = vmatprep.subr.bf16.mxu1 %v5350_v14  ;;  %v5438_v13 = vld [vmem:[%s7843_s1 + $0x620] ss:$16 sps:$4 sm:$0xff]   ;;  %v5441_v14 = vld [vmem:[%s7843_s1 + $0x628] ss:$16 sps:$4 sm:$0xff]  }
  0x8b   :  { %3689 = vmatpush1.bf16.msra.mxu0 %v5345_v15  ;;  %4076 = vmatpush1.bf16.msra.mxu1 %v5348_v16  ;;  %v5446_v15 = vld [vmem:[%s7843_s1 + $0x644] ss:$16 sps:$4 sm:$0xff]   ;;  %v5449_v16 = vld [vmem:[%s7843_s1 + $0x64c] ss:$16 sps:$4 sm:$0xff]  }
  0x8c   :  { %3690 = vmatprep.subr.bf16.mxu0 %v5353_v17  ;;  %4077 = vmatprep.subr.bf16.mxu1 %v5356_v18  ;;  %v5444_v17 = vld [vmem:[%s7843_s1 + $0x640] ss:$16 sps:$4 sm:$0xff]   ;;  %v5447_v18 = vld [vmem:[%s7843_s1 + $0x648] ss:$16 sps:$4 sm:$0xff]  }
  0x8f   :  { %3691 = vmatpush1.bf16.msra.mxu0 %v5351_v19  ;;  %4078 = vmatpush1.bf16.msra.mxu1 %v5354_v20  ;;  %v5452_v19 = vld [vmem:[%s7843_s1 + $0x664] ss:$16 sps:$4 sm:$0xff]   ;;  %v5455_v20 = vld [vmem:[%s7843_s1 + $0x66c] ss:$16 sps:$4 sm:$0xff]  }
  0x90   :  { %3692 = vmatprep.subr.bf16.mxu0 %v5359_v21  ;;  %4079 = vmatprep.subr.bf16.mxu1 %v5362_v22  ;;  %v5450_v21 = vld [vmem:[%s7843_s1 + $0x660] ss:$16 sps:$4 sm:$0xff]   ;;  %v5453_v22 = vld [vmem:[%s7843_s1 + $0x668] ss:$16 sps:$4 sm:$0xff]  }
  0x93   :  { %3693 = vmatpush1.bf16.msra.mxu0 %v5357_v23  ;;  %4080 = vmatpush1.bf16.msra.mxu1 %v5360_v24  ;;  %v5458_v23 = vld [vmem:[%s7843_s1 + $0x684] ss:$16 sps:$4 sm:$0xff]   ;;  %v5461_v24 = vld [vmem:[%s7843_s1 + $0x68c] ss:$16 sps:$4 sm:$0xff]  }
  0x94   :  { %3694 = vmatprep.subr.bf16.mxu0 %v5365_v25  ;;  %4081 = vmatprep.subr.bf16.mxu1 %v5368_v26  ;;  %v5456_v25 = vld [vmem:[%s7843_s1 + $0x680] ss:$16 sps:$4 sm:$0xff]   ;;  %v5459_v26 = vld [vmem:[%s7843_s1 + $0x688] ss:$16 sps:$4 sm:$0xff]  }
  0x97   :  { %3695 = vmatpush1.bf16.msra.mxu0 %v5363_v27  ;;  %4082 = vmatpush1.bf16.msra.mxu1 %v5366_v28  ;;  %v5464_v27 = vld [vmem:[%s7843_s1 + $0x6a4] ss:$16 sps:$4 sm:$0xff]   ;;  %v5467_v28 = vld [vmem:[%s7843_s1 + $0x6ac] ss:$16 sps:$4 sm:$0xff]  }
  0x98   :  { %3696 = vmatprep.subr.bf16.mxu0 %v5371_v29  ;;  %4083 = vmatprep.subr.bf16.mxu1 %v5374_v30  ;;  %v5462_v29 = vld [vmem:[%s7843_s1 + $0x6a0] ss:$16 sps:$4 sm:$0xff]   ;;  %v5465_v30 = vld [vmem:[%s7843_s1 + $0x6a8] ss:$16 sps:$4 sm:$0xff]  }
  0x9b   :  { %3697 = vmatpush1.bf16.msra.mxu0 %v5369_v31  ;;  %4084 = vmatpush1.bf16.msra.mxu1 %v5372_v32  ;;  %v5470_v31 = vld [vmem:[%s7843_s1 + $0x6c4] ss:$16 sps:$4 sm:$0xff]   ;;  %v5473_v32 = vld [vmem:[%s7843_s1 + $0x6cc] ss:$16 sps:$4 sm:$0xff]  }
  0x9c   :  { %3698 = vmatprep.subr.bf16.mxu0 %v5377_v33  ;;  %4085 = vmatprep.subr.bf16.mxu1 %v5380_v34  ;;  %v5468_v33 = vld [vmem:[%s7843_s1 + $0x6c0] ss:$16 sps:$4 sm:$0xff]   ;;  %v5471_v34 = vld [vmem:[%s7843_s1 + $0x6c8] ss:$16 sps:$4 sm:$0xff]  }
  0x9f   :  { %3699 = vmatpush1.bf16.msra.mxu0 %v5375_v35  ;;  %4086 = vmatpush1.bf16.msra.mxu1 %v5378_v36  ;;  %v5476_v35 = vld [vmem:[%s7843_s1 + $0x6e4] ss:$16 sps:$4 sm:$0xff]   ;;  %v5479_v36 = vld [vmem:[%s7843_s1 + $0x6ec] ss:$16 sps:$4 sm:$0xff]  }
  0xa0   :  { %3700 = vmatprep.subr.bf16.mxu0 %v5383_v37  ;;  %4087 = vmatprep.subr.bf16.mxu1 %v5386_v38  ;;  %v5474_v37 = vld [vmem:[%s7843_s1 + $0x6e0] ss:$16 sps:$4 sm:$0xff]   ;;  %v5477_v38 = vld [vmem:[%s7843_s1 + $0x6e8] ss:$16 sps:$4 sm:$0xff]  }
  0xa3   :  { %3701 = vmatpush1.bf16.msra.mxu0 %v5381_v39  ;;  %4088 = vmatpush1.bf16.msra.mxu1 %v5384_v40  ;;  %v5482_v39 = vld [vmem:[%s7843_s1 + $0x704] ss:$16 sps:$4 sm:$0xff]   ;;  %v5485_v40 = vld [vmem:[%s7843_s1 + $0x70c] ss:$16 sps:$4 sm:$0xff]  }
  0xa4   :  { %3702 = vmatprep.subr.bf16.mxu0 %v5389_v41  ;;  %4089 = vmatprep.subr.bf16.mxu1 %v5392_v42  ;;  %v5480_v41 = vld [vmem:[%s7843_s1 + $0x700] ss:$16 sps:$4 sm:$0xff]   ;;  %v5483_v42 = vld [vmem:[%s7843_s1 + $0x708] ss:$16 sps:$4 sm:$0xff]  }
  0xa7   :  { %3703 = vmatpush1.bf16.msra.mxu0 %v5387_v43  ;;  %4090 = vmatpush1.bf16.msra.mxu1 %v5390_v44  ;;  %v5488_v43 = vld [vmem:[%s7843_s1 + $0x724] ss:$16 sps:$4 sm:$0xff]   ;;  %v5491_v44 = vld [vmem:[%s7843_s1 + $0x72c] ss:$16 sps:$4 sm:$0xff]  }
  0xa8   :  { %3704 = vmatprep.subr.bf16.mxu0 %v5395_v45  ;;  %4091 = vmatprep.subr.bf16.mxu1 %v5398_v46  ;;  %v5486_v45 = vld [vmem:[%s7843_s1 + $0x720] ss:$16 sps:$4 sm:$0xff]   ;;  %v5489_v46 = vld [vmem:[%s7843_s1 + $0x728] ss:$16 sps:$4 sm:$0xff]  }
  0xab   :  { %3705 = vmatpush1.bf16.msra.mxu0 %v5393_v47  ;;  %4092 = vmatpush1.bf16.msra.mxu1 %v5396_v48  ;;  %v5494_v47 = vld [vmem:[%s7843_s1 + $0x744] ss:$16 sps:$4 sm:$0xff]   ;;  %v5497_v48 = vld [vmem:[%s7843_s1 + $0x74c] ss:$16 sps:$4 sm:$0xff]  }
  0xac   :  { %3706 = vmatprep.subr.bf16.mxu0 %v5401_v49  ;;  %4093 = vmatprep.subr.bf16.mxu1 %v5404_v50  ;;  %v5492_v49 = vld [vmem:[%s7843_s1 + $0x740] ss:$16 sps:$4 sm:$0xff]   ;;  %v5495_v50 = vld [vmem:[%s7843_s1 + $0x748] ss:$16 sps:$4 sm:$0xff]  }
  0xaf   :  { %3707 = vmatpush1.bf16.msra.mxu0 %v5399_v51  ;;  %4094 = vmatpush1.bf16.msra.mxu1 %v5402_v52  ;;  %v5500_v51 = vld [vmem:[%s7843_s1 + $0x764] ss:$16 sps:$4 sm:$0xff]   ;;  %v5503_v52 = vld [vmem:[%s7843_s1 + $0x76c] ss:$16 sps:$4 sm:$0xff]  }
  0xb0   :  { %3708 = vmatprep.subr.bf16.mxu0 %v5407_v53  ;;  %4095 = vmatprep.subr.bf16.mxu1 %v5410_v54  ;;  %v5498_v53 = vld [vmem:[%s7843_s1 + $0x760] ss:$16 sps:$4 sm:$0xff]   ;;  %v5501_v54 = vld [vmem:[%s7843_s1 + $0x768] ss:$16 sps:$4 sm:$0xff]  }
  0xb3   :  { %3709 = vmatpush1.bf16.msra.mxu0 %v5405_v55  ;;  %4096 = vmatpush1.bf16.msra.mxu1 %v5408_v56  ;;  %v5506_v55 = vld [vmem:[%s7843_s1 + $0x784] ss:$16 sps:$4 sm:$0xff]   ;;  %v5509_v56 = vld [vmem:[%s7843_s1 + $0x78c] ss:$16 sps:$4 sm:$0xff]  }
  0xb4   :  { %3710 = vmatprep.subr.bf16.mxu0 %v5413_v57  ;;  %4097 = vmatprep.subr.bf16.mxu1 %v5416_v58  ;;  %v5504_v57 = vld [vmem:[%s7843_s1 + $0x780] ss:$16 sps:$4 sm:$0xff]   ;;  %v5507_v58 = vld [vmem:[%s7843_s1 + $0x788] ss:$16 sps:$4 sm:$0xff]  }
  0xb7   :  { %3711 = vmatpush1.bf16.msra.mxu0 %v5411_v59  ;;  %4098 = vmatpush1.bf16.msra.mxu1 %v5414_v60  ;;  %v5512_v59 = vld [vmem:[%s7843_s1 + $0x7a4] ss:$16 sps:$4 sm:$0xff]   ;;  %v5515_v60 = vld [vmem:[%s7843_s1 + $0x7ac] ss:$16 sps:$4 sm:$0xff]  }
  0xb8   :  { %3712 = vmatprep.subr.bf16.mxu0 %v5419_v61  ;;  %4099 = vmatprep.subr.bf16.mxu1 %v5422_v62  ;;  %v5510_v61 = vld [vmem:[%s7843_s1 + $0x7a0] ss:$16 sps:$4 sm:$0xff]   ;;  %v5513_v62 = vld [vmem:[%s7843_s1 + $0x7a8] ss:$16 sps:$4 sm:$0xff]  }
  0xbb   :  { %3713 = vmatpush1.bf16.msra.mxu0 %v5417_v63  ;;  %4100 = vmatpush1.bf16.msra.mxu1 %v5420_v0  ;;  %v5518_v63 = vld [vmem:[%s7843_s1 + $0x7c4] ss:$16 sps:$4 sm:$0xff]   ;;  %v5521_v0 = vld [vmem:[%s7843_s1 + $0x7cc] ss:$16 sps:$4 sm:$0xff]  }
  0xbc   :  { %3714 = vmatprep.subr.bf16.mxu0 %v5425_v1  ;;  %4101 = vmatprep.subr.bf16.mxu1 %v5428_v2  ;;  %v5516_v1 = vld [vmem:[%s7843_s1 + $0x7c0] ss:$16 sps:$4 sm:$0xff]   ;;  %v5519_v2 = vld [vmem:[%s7843_s1 + $0x7c8] ss:$16 sps:$4 sm:$0xff]  }
  0xbf   :  { %3715 = vmatpush1.bf16.msra.mxu0 %v5423_v3  ;;  %4102 = vmatpush1.bf16.msra.mxu1 %v5426_v4  ;;  %v5524_v3 = vld [vmem:[%s7843_s1 + $0x7e4] ss:$16 sps:$4 sm:$0xff]   ;;  %v5527_v4 = vld [vmem:[%s7843_s1 + $0x7ec] ss:$16 sps:$4 sm:$0xff]  }
  0xc0   :  { %3727 = vmatprep.subr.bf16.mxu0 %v5434_v5  ;;  %4114 = vmatprep.subr.bf16.mxu1 %v5437_v6  ;;  %v5522_v5 = vld [vmem:[%s7843_s1 + $0x7e0] ss:$16 sps:$4 sm:$0xff]   ;;  %v5525_v6 = vld [vmem:[%s7843_s1 + $0x7e8] ss:$16 sps:$4 sm:$0xff]  }
  0xc2   :  { %3717 = vmatmul.mubr.bf16.vlgmr.msra.gmra.mrb[0].mxu0 %v5429_v7  ;;  %4104 = vmatmul.mubr.bf16.vlgmr.msra.gmra.mrb[0].mxu1 %v5429_v7  ;;  %v5533_v7 = vld [vmem:[%s7843_s1 + $0x804] ss:$16 sps:$4 sm:$0xff]  }
  0xc3   :  { %3728 = vmatpush1.bf16.msra.mxu0 %v5432_v8  ;;  %4115 = vmatpush1.bf16.msra.mxu1 %v5435_v9  ;;  %v5536_v8 = vld [vmem:[%s7843_s1 + $0x80c] ss:$16 sps:$4 sm:$0xff]   ;;  %v5528_v9 = vld [vmem:[%s7844_s0 + $0x18] ss:$72 sps:$4 sm:$0xff]  }
  0xc4   :  { %3729 = vmatprep.subr.bf16.mxu0 %v5440_v10  ;;  %4116 = vmatprep.subr.bf16.mxu1 %v5443_v11  ;;  %v5531_v10 = vld [vmem:[%s7843_s1 + $0x800] ss:$16 sps:$4 sm:$0xff]   ;;  %v5534_v11 = vld [vmem:[%s7843_s1 + $0x808] ss:$16 sps:$4 sm:$0xff]  }
  0xc5   :  { %3759 = vmatprep.mubr.bf16.mxu0 %v5530_v12  ;;  %4146 = vmatprep.mubr.bf16.mxu1 %v5530_v12  ;;  %v5539_v12 = vld [vmem:[%s7843_s1 + $0x824] ss:$16 sps:$4 sm:$0xff]  }
  0xc7   :  { %3730 = vmatpush1.bf16.msra.mxu0 %v5438_v13  ;;  %4117 = vmatpush1.bf16.msra.mxu1 %v5441_v14  ;;  %v5542_v13 = vld [vmem:[%s7843_s1 + $0x82c] ss:$16 sps:$4 sm:$0xff]  }
  0xc8   :  { %3731 = vmatprep.subr.bf16.mxu0 %v5446_v15  ;;  %4118 = vmatprep.subr.bf16.mxu1 %v5449_v16  ;;  %v5629_v14 = vld [vmem:[%s7844_s0 + $0x24] ss:$72 sps:$4 sm:$0xff]   ;;  %v5537_v15 = vld [vmem:[%s7843_s1 + $0x820] ss:$16 sps:$4 sm:$0xff]   ;;  %v5540_v16 = vld [vmem:[%s7843_s1 + $0x828] ss:$16 sps:$4 sm:$0xff]  }
  0xcb   :  { %3732 = vmatpush1.bf16.msra.mxu0 %v5444_v17  ;;  %4119 = vmatpush1.bf16.msra.mxu1 %v5447_v18  ;;  %v5545_v17 = vld [vmem:[%s7843_s1 + $0x844] ss:$16 sps:$4 sm:$0xff]   ;;  %v5548_v18 = vld [vmem:[%s7843_s1 + $0x84c] ss:$16 sps:$4 sm:$0xff]  }
  0xcc   :  { %3733 = vmatprep.subr.bf16.mxu0 %v5452_v19  ;;  %4120 = vmatprep.subr.bf16.mxu1 %v5455_v20  ;;  %v5543_v19 = vld [vmem:[%s7843_s1 + $0x840] ss:$16 sps:$4 sm:$0xff]   ;;  %v5546_v20 = vld [vmem:[%s7843_s1 + $0x848] ss:$16 sps:$4 sm:$0xff]  }
  0xcf   :  { %3734 = vmatpush1.bf16.msra.mxu0 %v5450_v21  ;;  %4121 = vmatpush1.bf16.msra.mxu1 %v5453_v22  ;;  %v5551_v21 = vld [vmem:[%s7843_s1 + $0x864] ss:$16 sps:$4 sm:$0xff]   ;;  %v5554_v22 = vld [vmem:[%s7843_s1 + $0x86c] ss:$16 sps:$4 sm:$0xff]  }
  0xd0   :  { %3735 = vmatprep.subr.bf16.mxu0 %v5458_v23  ;;  %4122 = vmatprep.subr.bf16.mxu1 %v5461_v24  ;;  %v5549_v23 = vld [vmem:[%s7843_s1 + $0x860] ss:$16 sps:$4 sm:$0xff]   ;;  %v5552_v24 = vld [vmem:[%s7843_s1 + $0x868] ss:$16 sps:$4 sm:$0xff]  }
  0xd3   :  { %3736 = vmatpush1.bf16.msra.mxu0 %v5456_v25  ;;  %4123 = vmatpush1.bf16.msra.mxu1 %v5459_v26  ;;  %v5557_v25 = vld [vmem:[%s7843_s1 + $0x884] ss:$16 sps:$4 sm:$0xff]   ;;  %v5560_v26 = vld [vmem:[%s7843_s1 + $0x88c] ss:$16 sps:$4 sm:$0xff]  }
  0xd4   :  { %3737 = vmatprep.subr.bf16.mxu0 %v5464_v27  ;;  %4124 = vmatprep.subr.bf16.mxu1 %v5467_v28  ;;  %v5555_v27 = vld [vmem:[%s7843_s1 + $0x880] ss:$16 sps:$4 sm:$0xff]   ;;  %v5558_v28 = vld [vmem:[%s7843_s1 + $0x888] ss:$16 sps:$4 sm:$0xff]  }
  0xd7   :  { %3738 = vmatpush1.bf16.msra.mxu0 %v5462_v29  ;;  %4125 = vmatpush1.bf16.msra.mxu1 %v5465_v30  ;;  %v5563_v29 = vld [vmem:[%s7843_s1 + $0x8a4] ss:$16 sps:$4 sm:$0xff]   ;;  %v5566_v30 = vld [vmem:[%s7843_s1 + $0x8ac] ss:$16 sps:$4 sm:$0xff]  }
  0xd8   :  { %3739 = vmatprep.subr.bf16.mxu0 %v5470_v31  ;;  %4126 = vmatprep.subr.bf16.mxu1 %v5473_v32  ;;  %v5561_v31 = vld [vmem:[%s7843_s1 + $0x8a0] ss:$16 sps:$4 sm:$0xff]   ;;  %v5564_v32 = vld [vmem:[%s7843_s1 + $0x8a8] ss:$16 sps:$4 sm:$0xff]  }
  0xdb   :  { %3740 = vmatpush1.bf16.msra.mxu0 %v5468_v33  ;;  %4127 = vmatpush1.bf16.msra.mxu1 %v5471_v34  ;;  %v5569_v33 = vld [vmem:[%s7843_s1 + $0x8c4] ss:$16 sps:$4 sm:$0xff]   ;;  %v5572_v34 = vld [vmem:[%s7843_s1 + $0x8cc] ss:$16 sps:$4 sm:$0xff]  }
  0xdc   :  { %3741 = vmatprep.subr.bf16.mxu0 %v5476_v35  ;;  %4128 = vmatprep.subr.bf16.mxu1 %v5479_v36  ;;  %v5567_v35 = vld [vmem:[%s7843_s1 + $0x8c0] ss:$16 sps:$4 sm:$0xff]   ;;  %v5570_v36 = vld [vmem:[%s7843_s1 + $0x8c8] ss:$16 sps:$4 sm:$0xff]  }
  0xdf   :  { %3742 = vmatpush1.bf16.msra.mxu0 %v5474_v37  ;;  %4129 = vmatpush1.bf16.msra.mxu1 %v5477_v38  ;;  %v5575_v37 = vld [vmem:[%s7843_s1 + $0x8e4] ss:$16 sps:$4 sm:$0xff]   ;;  %v5578_v38 = vld [vmem:[%s7843_s1 + $0x8ec] ss:$16 sps:$4 sm:$0xff]  }
  0xe0   :  { %3743 = vmatprep.subr.bf16.mxu0 %v5482_v39  ;;  %4130 = vmatprep.subr.bf16.mxu1 %v5485_v40  ;;  %v5573_v39 = vld [vmem:[%s7843_s1 + $0x8e0] ss:$16 sps:$4 sm:$0xff]   ;;  %v5576_v40 = vld [vmem:[%s7843_s1 + $0x8e8] ss:$16 sps:$4 sm:$0xff]  }
  0xe3   :  { %3744 = vmatpush1.bf16.msra.mxu0 %v5480_v41  ;;  %4131 = vmatpush1.bf16.msra.mxu1 %v5483_v42  ;;  %v5581_v41 = vld [vmem:[%s7843_s1 + $0x904] ss:$16 sps:$4 sm:$0xff]   ;;  %v5584_v42 = vld [vmem:[%s7843_s1 + $0x90c] ss:$16 sps:$4 sm:$0xff]  }
  0xe4   :  { %3745 = vmatprep.subr.bf16.mxu0 %v5488_v43  ;;  %4132 = vmatprep.subr.bf16.mxu1 %v5491_v44  ;;  %v5579_v43 = vld [vmem:[%s7843_s1 + $0x900] ss:$16 sps:$4 sm:$0xff]   ;;  %v5582_v44 = vld [vmem:[%s7843_s1 + $0x908] ss:$16 sps:$4 sm:$0xff]  }
  0xe7   :  { %3746 = vmatpush1.bf16.msra.mxu0 %v5486_v45  ;;  %4133 = vmatpush1.bf16.msra.mxu1 %v5489_v46  ;;  %v5587_v45 = vld [vmem:[%s7843_s1 + $0x924] ss:$16 sps:$4 sm:$0xff]   ;;  %v5590_v46 = vld [vmem:[%s7843_s1 + $0x92c] ss:$16 sps:$4 sm:$0xff]  }
  0xe8   :  { %3747 = vmatprep.subr.bf16.mxu0 %v5494_v47  ;;  %4134 = vmatprep.subr.bf16.mxu1 %v5497_v48  ;;  %v5585_v47 = vld [vmem:[%s7843_s1 + $0x920] ss:$16 sps:$4 sm:$0xff]   ;;  %v5588_v48 = vld [vmem:[%s7843_s1 + $0x928] ss:$16 sps:$4 sm:$0xff]  }
  0xeb   :  { %3748 = vmatpush1.bf16.msra.mxu0 %v5492_v49  ;;  %4135 = vmatpush1.bf16.msra.mxu1 %v5495_v50  ;;  %v5593_v49 = vld [vmem:[%s7843_s1 + $0x944] ss:$16 sps:$4 sm:$0xff]   ;;  %v5596_v50 = vld [vmem:[%s7843_s1 + $0x94c] ss:$16 sps:$4 sm:$0xff]  }
  0xec   :  { %3749 = vmatprep.subr.bf16.mxu0 %v5500_v51  ;;  %4136 = vmatprep.subr.bf16.mxu1 %v5503_v52  ;;  %v5591_v51 = vld [vmem:[%s7843_s1 + $0x940] ss:$16 sps:$4 sm:$0xff]   ;;  %v5594_v52 = vld [vmem:[%s7843_s1 + $0x948] ss:$16 sps:$4 sm:$0xff]  }
  0xef   :  { %3750 = vmatpush1.bf16.msra.mxu0 %v5498_v53  ;;  %4137 = vmatpush1.bf16.msra.mxu1 %v5501_v54  ;;  %v5599_v53 = vld [vmem:[%s7843_s1 + $0x964] ss:$16 sps:$4 sm:$0xff]   ;;  %v5602_v54 = vld [vmem:[%s7843_s1 + $0x96c] ss:$16 sps:$4 sm:$0xff]  }
  0xf0   :  { %3751 = vmatprep.subr.bf16.mxu0 %v5506_v55  ;;  %4138 = vmatprep.subr.bf16.mxu1 %v5509_v56  ;;  %v5597_v55 = vld [vmem:[%s7843_s1 + $0x960] ss:$16 sps:$4 sm:$0xff]   ;;  %v5600_v56 = vld [vmem:[%s7843_s1 + $0x968] ss:$16 sps:$4 sm:$0xff]  }
  0xf3   :  { %3752 = vmatpush1.bf16.msra.mxu0 %v5504_v57  ;;  %4139 = vmatpush1.bf16.msra.mxu1 %v5507_v58  ;;  %v5605_v57 = vld [vmem:[%s7843_s1 + $0x984] ss:$16 sps:$4 sm:$0xff]   ;;  %v5608_v58 = vld [vmem:[%s7843_s1 + $0x98c] ss:$16 sps:$4 sm:$0xff]  }
  0xf4   :  { %3753 = vmatprep.subr.bf16.mxu0 %v5512_v59  ;;  %4140 = vmatprep.subr.bf16.mxu1 %v5515_v60  ;;  %v5603_v59 = vld [vmem:[%s7843_s1 + $0x980] ss:$16 sps:$4 sm:$0xff]   ;;  %v5606_v60 = vld [vmem:[%s7843_s1 + $0x988] ss:$16 sps:$4 sm:$0xff]  }
  0xf7   :  { %3754 = vmatpush1.bf16.msra.mxu0 %v5510_v61  ;;  %4141 = vmatpush1.bf16.msra.mxu1 %v5513_v62  ;;  %v5611_v61 = vld [vmem:[%s7843_s1 + $0x9a4] ss:$16 sps:$4 sm:$0xff]   ;;  %v5614_v62 = vld [vmem:[%s7843_s1 + $0x9ac] ss:$16 sps:$4 sm:$0xff]  }
  0xf8   :  { %3755 = vmatprep.subr.bf16.mxu0 %v5518_v63  ;;  %4142 = vmatprep.subr.bf16.mxu1 %v5521_v0  ;;  %v5609_v63 = vld [vmem:[%s7843_s1 + $0x9a0] ss:$16 sps:$4 sm:$0xff]   ;;  %v5612_v0 = vld [vmem:[%s7843_s1 + $0x9a8] ss:$16 sps:$4 sm:$0xff]  }
  0xfb   :  { %3756 = vmatpush1.bf16.msra.mxu0 %v5516_v1  ;;  %4143 = vmatpush1.bf16.msra.mxu1 %v5519_v2  ;;  %v5617_v1 = vld [vmem:[%s7843_s1 + $0x9c4] ss:$16 sps:$4 sm:$0xff]   ;;  %v5620_v2 = vld [vmem:[%s7843_s1 + $0x9cc] ss:$16 sps:$4 sm:$0xff]  }
  0xfc   :  { %3757 = vmatprep.subr.bf16.mxu0 %v5524_v3  ;;  %4144 = vmatprep.subr.bf16.mxu1 %v5527_v4  ;;  %v5615_v3 = vld [vmem:[%s7843_s1 + $0x9c0] ss:$16 sps:$4 sm:$0xff]   ;;  %v5618_v4 = vld [vmem:[%s7843_s1 + $0x9c8] ss:$16 sps:$4 sm:$0xff]  }
  0xff   :  { %3758 = vmatpush1.bf16.msra.mxu0 %v5522_v5  ;;  %4145 = vmatpush1.bf16.msra.mxu1 %v5525_v6  ;;  %v5623_v5 = vld [vmem:[%s7843_s1 + $0x9e4] ss:$16 sps:$4 sm:$0xff]   ;;  %v5626_v6 = vld [vmem:[%s7843_s1 + $0x9ec] ss:$16 sps:$4 sm:$0xff]  }
 0x100   :  { %3770 = vmatprep.subr.bf16.mxu0 %v5533_v7  ;;  %4157 = vmatprep.subr.bf16.mxu1 %v5536_v8  ;;  %v5621_v7 = vld [vmem:[%s7843_s1 + $0x9e0] ss:$16 sps:$4 sm:$0xff]   ;;  %v5624_v8 = vld [vmem:[%s7843_s1 + $0x9e8] ss:$16 sps:$4 sm:$0xff]  }
 0x102   :  { %3760 = vmatmul.mubr.bf16.vlgmr.msra.gmra.mrb[0].mxu0 %v5528_v9  ;;  %4147 = vmatmul.mubr.bf16.vlgmr.msra.gmra.mrb[0].mxu1 %v5528_v9  ;;  %v5627_v9 = vld [vmem:[%s7844_s0 + $0x20] ss:$72 sps:$4 sm:$0xff]  }
 0x103   :  { %3771 = vmatpush1.bf16.msra.mxu0 %v5531_v10  ;;  %4158 = vmatpush1.bf16.msra.mxu1 %v5534_v11  ;;  %v5632_v10 = vld [vmem:[%s7843_s1 + $0xa04] ss:$16 sps:$4 sm:$0xff]   ;;  %v5635_v11 = vld [vmem:[%s7843_s1 + $0xa0c] ss:$16 sps:$4 sm:$0xff]  }
 0x104   :  { %3772 = vmatprep.subr.bf16.mxu0 %v5539_v12  ;;  %4159 = vmatprep.subr.bf16.mxu1 %v5542_v13  ;;  %v5630_v12 = vld [vmem:[%s7843_s1 + $0xa00] ss:$16 sps:$4 sm:$0xff]   ;;  %v5633_v13 = vld [vmem:[%s7843_s1 + $0xa08] ss:$16 sps:$4 sm:$0xff]  }
 0x105   :  { %3802 = vmatprep.mubr.bf16.mxu0 %v5629_v14  ;;  %4189 = vmatprep.mubr.bf16.mxu1 %v5629_v14  ;;  %v5638_v14 = vld [vmem:[%s7843_s1 + $0xa24] ss:$16 sps:$4 sm:$0xff]  }
 0x107   :  { %3773 = vmatpush1.bf16.msra.mxu0 %v5537_v15  ;;  %4160 = vmatpush1.bf16.msra.mxu1 %v5540_v16  ;;  %v5641_v15 = vld [vmem:[%s7843_s1 + $0xa2c] ss:$16 sps:$4 sm:$0xff]  }
 0x108   :  { %3774 = vmatprep.subr.bf16.mxu0 %v5545_v17  ;;  %4161 = vmatprep.subr.bf16.mxu1 %v5548_v18  ;;  %v5728_v16 = vld [vmem:[%s7844_s0 + $0x2c] ss:$72 sps:$4 sm:$0xff]   ;;  %v5636_v17 = vld [vmem:[%s7843_s1 + $0xa20] ss:$16 sps:$4 sm:$0xff]   ;;  %v5639_v18 = vld [vmem:[%s7843_s1 + $0xa28] ss:$16 sps:$4 sm:$0xff]  }
 0x10b   :  { %3775 = vmatpush1.bf16.msra.mxu0 %v5543_v19  ;;  %4162 = vmatpush1.bf16.msra.mxu1 %v5546_v20  ;;  %v5644_v19 = vld [vmem:[%s7843_s1 + $0xa44] ss:$16 sps:$4 sm:$0xff]   ;;  %v5647_v20 = vld [vmem:[%s7843_s1 + $0xa4c] ss:$16 sps:$4 sm:$0xff]  }
 0x10c   :  { %3776 = vmatprep.subr.bf16.mxu0 %v5551_v21  ;;  %4163 = vmatprep.subr.bf16.mxu1 %v5554_v22  ;;  %v5642_v21 = vld [vmem:[%s7843_s1 + $0xa40] ss:$16 sps:$4 sm:$0xff]   ;;  %v5645_v22 = vld [vmem:[%s7843_s1 + $0xa48] ss:$16 sps:$4 sm:$0xff]  }
 0x10f   :  { %3777 = vmatpush1.bf16.msra.mxu0 %v5549_v23  ;;  %4164 = vmatpush1.bf16.msra.mxu1 %v5552_v24  ;;  %v5650_v23 = vld [vmem:[%s7843_s1 + $0xa64] ss:$16 sps:$4 sm:$0xff]   ;;  %v5653_v24 = vld [vmem:[%s7843_s1 + $0xa6c] ss:$16 sps:$4 sm:$0xff]  }
 0x110   :  { %3778 = vmatprep.subr.bf16.mxu0 %v5557_v25  ;;  %4165 = vmatprep.subr.bf16.mxu1 %v5560_v26  ;;  %v5648_v25 = vld [vmem:[%s7843_s1 + $0xa60] ss:$16 sps:$4 sm:$0xff]   ;;  %v5651_v26 = vld [vmem:[%s7843_s1 + $0xa68] ss:$16 sps:$4 sm:$0xff]  }
 0x113   :  { %3779 = vmatpush1.bf16.msra.mxu0 %v5555_v27  ;;  %4166 = vmatpush1.bf16.msra.mxu1 %v5558_v28  ;;  %v5656_v27 = vld [vmem:[%s7843_s1 + $0xa84] ss:$16 sps:$4 sm:$0xff]   ;;  %v5659_v28 = vld [vmem:[%s7843_s1 + $0xa8c] ss:$16 sps:$4 sm:$0xff]  }
 0x114   :  { %3780 = vmatprep.subr.bf16.mxu0 %v5563_v29  ;;  %4167 = vmatprep.subr.bf16.mxu1 %v5566_v30  ;;  %v5654_v29 = vld [vmem:[%s7843_s1 + $0xa80] ss:$16 sps:$4 sm:$0xff]   ;;  %v5657_v30 = vld [vmem:[%s7843_s1 + $0xa88] ss:$16 sps:$4 sm:$0xff]  }
 0x117   :  { %3781 = vmatpush1.bf16.msra.mxu0 %v5561_v31  ;;  %4168 = vmatpush1.bf16.msra.mxu1 %v5564_v32  ;;  %v5662_v31 = vld [vmem:[%s7843_s1 + $0xaa4] ss:$16 sps:$4 sm:$0xff]   ;;  %v5665_v32 = vld [vmem:[%s7843_s1 + $0xaac] ss:$16 sps:$4 sm:$0xff]  }
 0x118   :  { %3782 = vmatprep.subr.bf16.mxu0 %v5569_v33  ;;  %4169 = vmatprep.subr.bf16.mxu1 %v5572_v34  ;;  %v5660_v33 = vld [vmem:[%s7843_s1 + $0xaa0] ss:$16 sps:$4 sm:$0xff]   ;;  %v5663_v34 = vld [vmem:[%s7843_s1 + $0xaa8] ss:$16 sps:$4 sm:$0xff]  }
 0x11b   :  { %3783 = vmatpush1.bf16.msra.mxu0 %v5567_v35  ;;  %4170 = vmatpush1.bf16.msra.mxu1 %v5570_v36  ;;  %v5668_v35 = vld [vmem:[%s7843_s1 + $0xac4] ss:$16 sps:$4 sm:$0xff]   ;;  %v5671_v36 = vld [vmem:[%s7843_s1 + $0xacc] ss:$16 sps:$4 sm:$0xff]  }
 0x11c   :  { %3784 = vmatprep.subr.bf16.mxu0 %v5575_v37  ;;  %4171 = vmatprep.subr.bf16.mxu1 %v5578_v38  ;;  %v5666_v37 = vld [vmem:[%s7843_s1 + $0xac0] ss:$16 sps:$4 sm:$0xff]   ;;  %v5669_v38 = vld [vmem:[%s7843_s1 + $0xac8] ss:$16 sps:$4 sm:$0xff]  }
 0x11f   :  { %3785 = vmatpush1.bf16.msra.mxu0 %v5573_v39  ;;  %4172 = vmatpush1.bf16.msra.mxu1 %v5576_v40  ;;  %v5674_v39 = vld [vmem:[%s7843_s1 + $0xae4] ss:$16 sps:$4 sm:$0xff]   ;;  %v5677_v40 = vld [vmem:[%s7843_s1 + $0xaec] ss:$16 sps:$4 sm:$0xff]  }
 0x120   :  { %3786 = vmatprep.subr.bf16.mxu0 %v5581_v41  ;;  %4173 = vmatprep.subr.bf16.mxu1 %v5584_v42  ;;  %v5672_v41 = vld [vmem:[%s7843_s1 + $0xae0] ss:$16 sps:$4 sm:$0xff]   ;;  %v5675_v42 = vld [vmem:[%s7843_s1 + $0xae8] ss:$16 sps:$4 sm:$0xff]  }
 0x123   :  { %3787 = vmatpush1.bf16.msra.mxu0 %v5579_v43  ;;  %4174 = vmatpush1.bf16.msra.mxu1 %v5582_v44  ;;  %v5680_v43 = vld [vmem:[%s7843_s1 + $0xb04] ss:$16 sps:$4 sm:$0xff]   ;;  %v5683_v44 = vld [vmem:[%s7843_s1 + $0xb0c] ss:$16 sps:$4 sm:$0xff]  }
 0x124   :  { %3788 = vmatprep.subr.bf16.mxu0 %v5587_v45  ;;  %4175 = vmatprep.subr.bf16.mxu1 %v5590_v46  ;;  %v5678_v45 = vld [vmem:[%s7843_s1 + $0xb00] ss:$16 sps:$4 sm:$0xff]   ;;  %v5681_v46 = vld [vmem:[%s7843_s1 + $0xb08] ss:$16 sps:$4 sm:$0xff]  }
 0x127   :  { %3789 = vmatpush1.bf16.msra.mxu0 %v5585_v47  ;;  %4176 = vmatpush1.bf16.msra.mxu1 %v5588_v48  ;;  %v5686_v47 = vld [vmem:[%s7843_s1 + $0xb24] ss:$16 sps:$4 sm:$0xff]   ;;  %v5689_v48 = vld [vmem:[%s7843_s1 + $0xb2c] ss:$16 sps:$4 sm:$0xff]  }
 0x128   :  { %3790 = vmatprep.subr.bf16.mxu0 %v5593_v49  ;;  %4177 = vmatprep.subr.bf16.mxu1 %v5596_v50  ;;  %v5684_v49 = vld [vmem:[%s7843_s1 + $0xb20] ss:$16 sps:$4 sm:$0xff]   ;;  %v5687_v50 = vld [vmem:[%s7843_s1 + $0xb28] ss:$16 sps:$4 sm:$0xff]  }
 0x12b   :  { %3791 = vmatpush1.bf16.msra.mxu0 %v5591_v51  ;;  %4178 = vmatpush1.bf16.msra.mxu1 %v5594_v52  ;;  %v5692_v51 = vld [vmem:[%s7843_s1 + $0xb44] ss:$16 sps:$4 sm:$0xff]   ;;  %v5695_v52 = vld [vmem:[%s7843_s1 + $0xb4c] ss:$16 sps:$4 sm:$0xff]  }
 0x12c   :  { %3792 = vmatprep.subr.bf16.mxu0 %v5599_v53  ;;  %4179 = vmatprep.subr.bf16.mxu1 %v5602_v54  ;;  %v5690_v53 = vld [vmem:[%s7843_s1 + $0xb40] ss:$16 sps:$4 sm:$0xff]   ;;  %v5693_v54 = vld [vmem:[%s7843_s1 + $0xb48] ss:$16 sps:$4 sm:$0xff]  }
 0x12f   :  { %3793 = vmatpush1.bf16.msra.mxu0 %v5597_v55  ;;  %4180 = vmatpush1.bf16.msra.mxu1 %v5600_v56  ;;  %v5698_v55 = vld [vmem:[%s7843_s1 + $0xb64] ss:$16 sps:$4 sm:$0xff]   ;;  %v5701_v56 = vld [vmem:[%s7843_s1 + $0xb6c] ss:$16 sps:$4 sm:$0xff]  }
 0x130   :  { %3794 = vmatprep.subr.bf16.mxu0 %v5605_v57  ;;  %4181 = vmatprep.subr.bf16.mxu1 %v5608_v58  ;;  %v5696_v57 = vld [vmem:[%s7843_s1 + $0xb60] ss:$16 sps:$4 sm:$0xff]   ;;  %v5699_v58 = vld [vmem:[%s7843_s1 + $0xb68] ss:$16 sps:$4 sm:$0xff]  }
 0x133   :  { %3795 = vmatpush1.bf16.msra.mxu0 %v5603_v59  ;;  %4182 = vmatpush1.bf16.msra.mxu1 %v5606_v60  ;;  %v5704_v59 = vld [vmem:[%s7843_s1 + $0xb84] ss:$16 sps:$4 sm:$0xff]   ;;  %v5707_v60 = vld [vmem:[%s7843_s1 + $0xb8c] ss:$16 sps:$4 sm:$0xff]  }
 0x134   :  { %3796 = vmatprep.subr.bf16.mxu0 %v5611_v61  ;;  %4183 = vmatprep.subr.bf16.mxu1 %v5614_v62  ;;  %v5702_v61 = vld [vmem:[%s7843_s1 + $0xb80] ss:$16 sps:$4 sm:$0xff]   ;;  %v5705_v62 = vld [vmem:[%s7843_s1 + $0xb88] ss:$16 sps:$4 sm:$0xff]  }
 0x137   :  { %3797 = vmatpush1.bf16.msra.mxu0 %v5609_v63  ;;  %4184 = vmatpush1.bf16.msra.mxu1 %v5612_v0  ;;  %v5710_v63 = vld [vmem:[%s7843_s1 + $0xba4] ss:$16 sps:$4 sm:$0xff]   ;;  %v5713_v0 = vld [vmem:[%s7843_s1 + $0xbac] ss:$16 sps:$4 sm:$0xff]  }
 0x138   :  { %3798 = vmatprep.subr.bf16.mxu0 %v5617_v1  ;;  %4185 = vmatprep.subr.bf16.mxu1 %v5620_v2  ;;  %v5708_v1 = vld [vmem:[%s7843_s1 + $0xba0] ss:$16 sps:$4 sm:$0xff]   ;;  %v5711_v2 = vld [vmem:[%s7843_s1 + $0xba8] ss:$16 sps:$4 sm:$0xff]  }
 0x13b   :  { %3799 = vmatpush1.bf16.msra.mxu0 %v5615_v3  ;;  %4186 = vmatpush1.bf16.msra.mxu1 %v5618_v4  ;;  %v5716_v3 = vld [vmem:[%s7843_s1 + $0xbc4] ss:$16 sps:$4 sm:$0xff]   ;;  %v5719_v4 = vld [vmem:[%s7843_s1 + $0xbcc] ss:$16 sps:$4 sm:$0xff]  }
 0x13c   :  { %3800 = vmatprep.subr.bf16.mxu0 %v5623_v5  ;;  %4187 = vmatprep.subr.bf16.mxu1 %v5626_v6  ;;  %v5714_v5 = vld [vmem:[%s7843_s1 + $0xbc0] ss:$16 sps:$4 sm:$0xff]   ;;  %v5717_v6 = vld [vmem:[%s7843_s1 + $0xbc8] ss:$16 sps:$4 sm:$0xff]  }
 0x13f   :  { %3801 = vmatpush1.bf16.msra.mxu0 %v5621_v7  ;;  %4188 = vmatpush1.bf16.msra.mxu1 %v5624_v8  ;;  %v5722_v7 = vld [vmem:[%s7843_s1 + $0xbe4] ss:$16 sps:$4 sm:$0xff]   ;;  %v5725_v8 = vld [vmem:[%s7843_s1 + $0xbec] ss:$16 sps:$4 sm:$0xff]  }
 0x140   :  { %3813 = vmatprep.subr.bf16.mxu0 %v5632_v10  ;;  %4200 = vmatprep.subr.bf16.mxu1 %v5635_v11  ;;  %v5723_v10 = vld [vmem:[%s7843_s1 + $0xbe8] ss:$16 sps:$4 sm:$0xff]   ;;  %v5731_v11 = vld [vmem:[%s7843_s1 + $0xc04] ss:$16 sps:$4 sm:$0xff]  }
 0x142   :  { %3803 = vmatmul.mubr.bf16.vlgmr.msra.gmra.mrb[0].mxu0 %v5627_v9  ;;  %4190 = vmatmul.mubr.bf16.vlgmr.msra.gmra.mrb[0].mxu1 %v5627_v9  ;;  %v5720_v9 = vld [vmem:[%s7843_s1 + $0xbe0] ss:$16 sps:$4 sm:$0xff]  }
 0x143   :  { %3814 = vmatpush1.bf16.msra.mxu0 %v5630_v12  ;;  %4201 = vmatpush1.bf16.msra.mxu1 %v5633_v13  ;;  %v5734_v12 = vld [vmem:[%s7843_s1 + $0xc0c] ss:$16 sps:$4 sm:$0xff]   ;;  %v5726_v13 = vld [vmem:[%s7844_s0 + $0x28] ss:$72 sps:$4 sm:$0xff]  }
 0x144   :  { %3815 = vmatprep.subr.bf16.mxu0 %v5638_v14  ;;  %4202 = vmatprep.subr.bf16.mxu1 %v5641_v15  ;;  %v5729_v14 = vld [vmem:[%s7843_s1 + $0xc00] ss:$16 sps:$4 sm:$0xff]   ;;  %v5732_v15 = vld [vmem:[%s7843_s1 + $0xc08] ss:$16 sps:$4 sm:$0xff]  }
 0x145   :  { %3845 = vmatprep.mubr.bf16.mxu0 %v5728_v16  ;;  %4232 = vmatprep.mubr.bf16.mxu1 %v5728_v16  ;;  %v5737_v16 = vld [vmem:[%s7843_s1 + $0xc24] ss:$16 sps:$4 sm:$0xff]  }
 0x147   :  { %3816 = vmatpush1.bf16.msra.mxu0 %v5636_v17  ;;  %4203 = vmatpush1.bf16.msra.mxu1 %v5639_v18  ;;  %v5740_v17 = vld [vmem:[%s7843_s1 + $0xc2c] ss:$16 sps:$4 sm:$0xff]  }
 0x148   :  { %3817 = vmatprep.subr.bf16.mxu0 %v5644_v19  ;;  %4204 = vmatprep.subr.bf16.mxu1 %v5647_v20  ;;  %v5827_v18 = vld [vmem:[%s7844_s0 + $0x34] ss:$72 sps:$4 sm:$0xff]   ;;  %v5735_v19 = vld [vmem:[%s7843_s1 + $0xc20] ss:$16 sps:$4 sm:$0xff]   ;;  %v5738_v20 = vld [vmem:[%s7843_s1 + $0xc28] ss:$16 sps:$4 sm:$0xff]  }
 0x14b   :  { %3818 = vmatpush1.bf16.msra.mxu0 %v5642_v21  ;;  %4205 = vmatpush1.bf16.msra.mxu1 %v5645_v22  ;;  %v5743_v21 = vld [vmem:[%s7843_s1 + $0xc44] ss:$16 sps:$4 sm:$0xff]   ;;  %v5746_v22 = vld [vmem:[%s7843_s1 + $0xc4c] ss:$16 sps:$4 sm:$0xff]  }
 0x14c   :  { %3819 = vmatprep.subr.bf16.mxu0 %v5650_v23  ;;  %4206 = vmatprep.subr.bf16.mxu1 %v5653_v24  ;;  %v5741_v23 = vld [vmem:[%s7843_s1 + $0xc40] ss:$16 sps:$4 sm:$0xff]   ;;  %v5744_v24 = vld [vmem:[%s7843_s1 + $0xc48] ss:$16 sps:$4 sm:$0xff]  }
 0x14f   :  { %3820 = vmatpush1.bf16.msra.mxu0 %v5648_v25  ;;  %4207 = vmatpush1.bf16.msra.mxu1 %v5651_v26  ;;  %v5749_v25 = vld [vmem:[%s7843_s1 + $0xc64] ss:$16 sps:$4 sm:$0xff]   ;;  %v5752_v26 = vld [vmem:[%s7843_s1 + $0xc6c] ss:$16 sps:$4 sm:$0xff]  }
 0x150   :  { %3821 = vmatprep.subr.bf16.mxu0 %v5656_v27  ;;  %4208 = vmatprep.subr.bf16.mxu1 %v5659_v28  ;;  %v5747_v27 = vld [vmem:[%s7843_s1 + $0xc60] ss:$16 sps:$4 sm:$0xff]   ;;  %v5750_v28 = vld [vmem:[%s7843_s1 + $0xc68] ss:$16 sps:$4 sm:$0xff]  }
 0x153   :  { %3822 = vmatpush1.bf16.msra.mxu0 %v5654_v29  ;;  %4209 = vmatpush1.bf16.msra.mxu1 %v5657_v30  ;;  %v5755_v29 = vld [vmem:[%s7843_s1 + $0xc84] ss:$16 sps:$4 sm:$0xff]   ;;  %v5758_v30 = vld [vmem:[%s7843_s1 + $0xc8c] ss:$16 sps:$4 sm:$0xff]  }
 0x154   :  { %3823 = vmatprep.subr.bf16.mxu0 %v5662_v31  ;;  %4210 = vmatprep.subr.bf16.mxu1 %v5665_v32  ;;  %v5753_v31 = vld [vmem:[%s7843_s1 + $0xc80] ss:$16 sps:$4 sm:$0xff]   ;;  %v5756_v32 = vld [vmem:[%s7843_s1 + $0xc88] ss:$16 sps:$4 sm:$0xff]  }
 0x157   :  { %3824 = vmatpush1.bf16.msra.mxu0 %v5660_v33  ;;  %4211 = vmatpush1.bf16.msra.mxu1 %v5663_v34  ;;  %v5761_v33 = vld [vmem:[%s7843_s1 + $0xca4] ss:$16 sps:$4 sm:$0xff]   ;;  %v5764_v34 = vld [vmem:[%s7843_s1 + $0xcac] ss:$16 sps:$4 sm:$0xff]  }
 0x158   :  { %3825 = vmatprep.subr.bf16.mxu0 %v5668_v35  ;;  %4212 = vmatprep.subr.bf16.mxu1 %v5671_v36  ;;  %v5759_v35 = vld [vmem:[%s7843_s1 + $0xca0] ss:$16 sps:$4 sm:$0xff]   ;;  %v5762_v36 = vld [vmem:[%s7843_s1 + $0xca8] ss:$16 sps:$4 sm:$0xff]  }
 0x15b   :  { %3826 = vmatpush1.bf16.msra.mxu0 %v5666_v37  ;;  %4213 = vmatpush1.bf16.msra.mxu1 %v5669_v38  ;;  %v5767_v37 = vld [vmem:[%s7843_s1 + $0xcc4] ss:$16 sps:$4 sm:$0xff]   ;;  %v5770_v38 = vld [vmem:[%s7843_s1 + $0xccc] ss:$16 sps:$4 sm:$0xff]  }
 0x15c   :  { %3827 = vmatprep.subr.bf16.mxu0 %v5674_v39  ;;  %4214 = vmatprep.subr.bf16.mxu1 %v5677_v40  ;;  %v5765_v39 = vld [vmem:[%s7843_s1 + $0xcc0] ss:$16 sps:$4 sm:$0xff]   ;;  %v5768_v40 = vld [vmem:[%s7843_s1 + $0xcc8] ss:$16 sps:$4 sm:$0xff]  }
 0x15f   :  { %3828 = vmatpush1.bf16.msra.mxu0 %v5672_v41  ;;  %4215 = vmatpush1.bf16.msra.mxu1 %v5675_v42  ;;  %v5773_v41 = vld [vmem:[%s7843_s1 + $0xce4] ss:$16 sps:$4 sm:$0xff]   ;;  %v5776_v42 = vld [vmem:[%s7843_s1 + $0xcec] ss:$16 sps:$4 sm:$0xff]  }
 0x160   :  { %3829 = vmatprep.subr.bf16.mxu0 %v5680_v43  ;;  %4216 = vmatprep.subr.bf16.mxu1 %v5683_v44  ;;  %v5771_v43 = vld [vmem:[%s7843_s1 + $0xce0] ss:$16 sps:$4 sm:$0xff]   ;;  %v5774_v44 = vld [vmem:[%s7843_s1 + $0xce8] ss:$16 sps:$4 sm:$0xff]  }
 0x163   :  { %3830 = vmatpush1.bf16.msra.mxu0 %v5678_v45  ;;  %4217 = vmatpush1.bf16.msra.mxu1 %v5681_v46  ;;  %v5779_v45 = vld [vmem:[%s7843_s1 + $0xd04] ss:$16 sps:$4 sm:$0xff]   ;;  %v5782_v46 = vld [vmem:[%s7843_s1 + $0xd0c] ss:$16 sps:$4 sm:$0xff]  }
 0x164   :  { %3831 = vmatprep.subr.bf16.mxu0 %v5686_v47  ;;  %4218 = vmatprep.subr.bf16.mxu1 %v5689_v48  ;;  %v5777_v47 = vld [vmem:[%s7843_s1 + $0xd00] ss:$16 sps:$4 sm:$0xff]   ;;  %v5780_v48 = vld [vmem:[%s7843_s1 + $0xd08] ss:$16 sps:$4 sm:$0xff]  }
 0x167   :  { %3832 = vmatpush1.bf16.msra.mxu0 %v5684_v49  ;;  %4219 = vmatpush1.bf16.msra.mxu1 %v5687_v50  ;;  %v5785_v49 = vld [vmem:[%s7843_s1 + $0xd24] ss:$16 sps:$4 sm:$0xff]   ;;  %v5788_v50 = vld [vmem:[%s7843_s1 + $0xd2c] ss:$16 sps:$4 sm:$0xff]  }
 0x168   :  { %3833 = vmatprep.subr.bf16.mxu0 %v5692_v51  ;;  %4220 = vmatprep.subr.bf16.mxu1 %v5695_v52  ;;  %v5783_v51 = vld [vmem:[%s7843_s1 + $0xd20] ss:$16 sps:$4 sm:$0xff]   ;;  %v5786_v52 = vld [vmem:[%s7843_s1 + $0xd28] ss:$16 sps:$4 sm:$0xff]  }
 0x16b   :  { %3834 = vmatpush1.bf16.msra.mxu0 %v5690_v53  ;;  %4221 = vmatpush1.bf16.msra.mxu1 %v5693_v54  ;;  %v5791_v53 = vld [vmem:[%s7843_s1 + $0xd44] ss:$16 sps:$4 sm:$0xff]   ;;  %v5794_v54 = vld [vmem:[%s7843_s1 + $0xd4c] ss:$16 sps:$4 sm:$0xff]  }
 0x16c   :  { %3835 = vmatprep.subr.bf16.mxu0 %v5698_v55  ;;  %4222 = vmatprep.subr.bf16.mxu1 %v5701_v56  ;;  %v5789_v55 = vld [vmem:[%s7843_s1 + $0xd40] ss:$16 sps:$4 sm:$0xff]   ;;  %v5792_v56 = vld [vmem:[%s7843_s1 + $0xd48] ss:$16 sps:$4 sm:$0xff]  }
 0x16f   :  { %3836 = vmatpush1.bf16.msra.mxu0 %v5696_v57  ;;  %4223 = vmatpush1.bf16.msra.mxu1 %v5699_v58  ;;  %v5797_v57 = vld [vmem:[%s7843_s1 + $0xd64] ss:$16 sps:$4 sm:$0xff]   ;;  %v5800_v58 = vld [vmem:[%s7843_s1 + $0xd6c] ss:$16 sps:$4 sm:$0xff]  }
 0x170   :  { %3837 = vmatprep.subr.bf16.mxu0 %v5704_v59  ;;  %4224 = vmatprep.subr.bf16.mxu1 %v5707_v60  ;;  %v5795_v59 = vld [vmem:[%s7843_s1 + $0xd60] ss:$16 sps:$4 sm:$0xff]   ;;  %v5798_v60 = vld [vmem:[%s7843_s1 + $0xd68] ss:$16 sps:$4 sm:$0xff]  }
 0x173   :  { %3838 = vmatpush1.bf16.msra.mxu0 %v5702_v61  ;;  %4225 = vmatpush1.bf16.msra.mxu1 %v5705_v62  ;;  %v5803_v61 = vld [vmem:[%s7843_s1 + $0xd84] ss:$16 sps:$4 sm:$0xff]   ;;  %v5806_v62 = vld [vmem:[%s7843_s1 + $0xd8c] ss:$16 sps:$4 sm:$0xff]  }
 0x174   :  { %3839 = vmatprep.subr.bf16.mxu0 %v5710_v63  ;;  %4226 = vmatprep.subr.bf16.mxu1 %v5713_v0  ;;  %v5801_v63 = vld [vmem:[%s7843_s1 + $0xd80] ss:$16 sps:$4 sm:$0xff]   ;;  %v5804_v0 = vld [vmem:[%s7843_s1 + $0xd88] ss:$16 sps:$4 sm:$0xff]  }
 0x177   :  { %3840 = vmatpush1.bf16.msra.mxu0 %v5708_v1  ;;  %4227 = vmatpush1.bf16.msra.mxu1 %v5711_v2  ;;  %v5809_v1 = vld [vmem:[%s7843_s1 + $0xda4] ss:$16 sps:$4 sm:$0xff]   ;;  %v5812_v2 = vld [vmem:[%s7843_s1 + $0xdac] ss:$16 sps:$4 sm:$0xff]  }
 0x178   :  { %3841 = vmatprep.subr.bf16.mxu0 %v5716_v3  ;;  %4228 = vmatprep.subr.bf16.mxu1 %v5719_v4  ;;  %v5807_v3 = vld [vmem:[%s7843_s1 + $0xda0] ss:$16 sps:$4 sm:$0xff]   ;;  %v5810_v4 = vld [vmem:[%s7843_s1 + $0xda8] ss:$16 sps:$4 sm:$0xff]  }
 0x17b   :  { %3842 = vmatpush1.bf16.msra.mxu0 %v5714_v5  ;;  %4229 = vmatpush1.bf16.msra.mxu1 %v5717_v6  ;;  %v5815_v5 = vld [vmem:[%s7843_s1 + $0xdc4] ss:$16 sps:$4 sm:$0xff]   ;;  %v5818_v6 = vld [vmem:[%s7843_s1 + $0xdcc] ss:$16 sps:$4 sm:$0xff]  }
 0x17c   :  { %3843 = vmatprep.subr.bf16.mxu0 %v5722_v7  ;;  %4230 = vmatprep.subr.bf16.mxu1 %v5725_v8  ;;  %v5813_v7 = vld [vmem:[%s7843_s1 + $0xdc0] ss:$16 sps:$4 sm:$0xff]   ;;  %v5816_v8 = vld [vmem:[%s7843_s1 + $0xdc8] ss:$16 sps:$4 sm:$0xff]  }
 0x17f   :  { %3844 = vmatpush1.bf16.msra.mxu0 %v5720_v9  ;;  %4231 = vmatpush1.bf16.msra.mxu1 %v5723_v10  ;;  %v5821_v9 = vld [vmem:[%s7843_s1 + $0xde4] ss:$16 sps:$4 sm:$0xff]   ;;  %v5824_v10 = vld [vmem:[%s7843_s1 + $0xdec] ss:$16 sps:$4 sm:$0xff]  }
 0x180   :  { %3856 = vmatprep.subr.bf16.mxu0 %v5731_v11  ;;  %4243 = vmatprep.subr.bf16.mxu1 %v5734_v12  ;;  %v5819_v11 = vld [vmem:[%s7843_s1 + $0xde0] ss:$16 sps:$4 sm:$0xff]   ;;  %v5822_v12 = vld [vmem:[%s7843_s1 + $0xde8] ss:$16 sps:$4 sm:$0xff]  }
 0x182   :  { %3846 = vmatmul.mubr.bf16.vlgmr.msra.gmra.mrb[0].mxu0 %v5726_v13  ;;  %4233 = vmatmul.mubr.bf16.vlgmr.msra.gmra.mrb[0].mxu1 %v5726_v13  ;;  %v5830_v13 = vld [vmem:[%s7843_s1 + $0xe04] ss:$16 sps:$4 sm:$0xff]  }
 0x183   :  { %3857 = vmatpush1.bf16.msra.mxu0 %v5729_v14  ;;  %4244 = vmatpush1.bf16.msra.mxu1 %v5732_v15  ;;  %v5833_v14 = vld [vmem:[%s7843_s1 + $0xe0c] ss:$16 sps:$4 sm:$0xff]   ;;  %v5825_v15 = vld [vmem:[%s7844_s0 + $0x30] ss:$72 sps:$4 sm:$0xff]  }
 0x184   :  { %3858 = vmatprep.subr.bf16.mxu0 %v5737_v16  ;;  %4245 = vmatprep.subr.bf16.mxu1 %v5740_v17  ;;  %v5828_v16 = vld [vmem:[%s7843_s1 + $0xe00] ss:$16 sps:$4 sm:$0xff]   ;;  %v5831_v17 = vld [vmem:[%s7843_s1 + $0xe08] ss:$16 sps:$4 sm:$0xff]  }
 0x185   :  { %3888 = vmatprep.mubr.bf16.mxu0 %v5827_v18  ;;  %4275 = vmatprep.mubr.bf16.mxu1 %v5827_v18  ;;  %v5836_v18 = vld [vmem:[%s7843_s1 + $0xe24] ss:$16 sps:$4 sm:$0xff]  }
 0x187   :  { %3859 = vmatpush1.bf16.msra.mxu0 %v5735_v19  ;;  %4246 = vmatpush1.bf16.msra.mxu1 %v5738_v20  ;;  %v5839_v19 = vld [vmem:[%s7843_s1 + $0xe2c] ss:$16 sps:$4 sm:$0xff]  }
 0x188   :  { %3860 = vmatprep.subr.bf16.mxu0 %v5743_v21  ;;  %4247 = vmatprep.subr.bf16.mxu1 %v5746_v22  ;;  %v5926_v20 = vld [vmem:[%s7844_s0 + $0x3c] ss:$72 sps:$4 sm:$0xff]   ;;  %v5834_v21 = vld [vmem:[%s7843_s1 + $0xe20] ss:$16 sps:$4 sm:$0xff]   ;;  %v5837_v22 = vld [vmem:[%s7843_s1 + $0xe28] ss:$16 sps:$4 sm:$0xff]  }
 0x18b   :  { %3861 = vmatpush1.bf16.msra.mxu0 %v5741_v23  ;;  %4248 = vmatpush1.bf16.msra.mxu1 %v5744_v24  ;;  %v5842_v23 = vld [vmem:[%s7843_s1 + $0xe44] ss:$16 sps:$4 sm:$0xff]   ;;  %v5845_v24 = vld [vmem:[%s7843_s1 + $0xe4c] ss:$16 sps:$4 sm:$0xff]  }
 0x18c   :  { %3862 = vmatprep.subr.bf16.mxu0 %v5749_v25  ;;  %4249 = vmatprep.subr.bf16.mxu1 %v5752_v26  ;;  %v5840_v25 = vld [vmem:[%s7843_s1 + $0xe40] ss:$16 sps:$4 sm:$0xff]   ;;  %v5843_v26 = vld [vmem:[%s7843_s1 + $0xe48] ss:$16 sps:$4 sm:$0xff]  }
 0x18f   :  { %3863 = vmatpush1.bf16.msra.mxu0 %v5747_v27  ;;  %4250 = vmatpush1.bf16.msra.mxu1 %v5750_v28  ;;  %v5848_v27 = vld [vmem:[%s7843_s1 + $0xe64] ss:$16 sps:$4 sm:$0xff]   ;;  %v5851_v28 = vld [vmem:[%s7843_s1 + $0xe6c] ss:$16 sps:$4 sm:$0xff]  }
 0x190   :  { %3864 = vmatprep.subr.bf16.mxu0 %v5755_v29  ;;  %4251 = vmatprep.subr.bf16.mxu1 %v5758_v30  ;;  %v5846_v29 = vld [vmem:[%s7843_s1 + $0xe60] ss:$16 sps:$4 sm:$0xff]   ;;  %v5849_v30 = vld [vmem:[%s7843_s1 + $0xe68] ss:$16 sps:$4 sm:$0xff]  }
 0x193   :  { %3865 = vmatpush1.bf16.msra.mxu0 %v5753_v31  ;;  %4252 = vmatpush1.bf16.msra.mxu1 %v5756_v32  ;;  %v5854_v31 = vld [vmem:[%s7843_s1 + $0xe84] ss:$16 sps:$4 sm:$0xff]   ;;  %v5857_v32 = vld [vmem:[%s7843_s1 + $0xe8c] ss:$16 sps:$4 sm:$0xff]  }
 0x194   :  { %3866 = vmatprep.subr.bf16.mxu0 %v5761_v33  ;;  %4253 = vmatprep.subr.bf16.mxu1 %v5764_v34  ;;  %v5852_v33 = vld [vmem:[%s7843_s1 + $0xe80] ss:$16 sps:$4 sm:$0xff]   ;;  %v5855_v34 = vld [vmem:[%s7843_s1 + $0xe88] ss:$16 sps:$4 sm:$0xff]  }
 0x197   :  { %3867 = vmatpush1.bf16.msra.mxu0 %v5759_v35  ;;  %4254 = vmatpush1.bf16.msra.mxu1 %v5762_v36  ;;  %v5860_v35 = vld [vmem:[%s7843_s1 + $0xea4] ss:$16 sps:$4 sm:$0xff]   ;;  %v5863_v36 = vld [vmem:[%s7843_s1 + $0xeac] ss:$16 sps:$4 sm:$0xff]  }
 0x198   :  { %3868 = vmatprep.subr.bf16.mxu0 %v5767_v37  ;;  %4255 = vmatprep.subr.bf16.mxu1 %v5770_v38  ;;  %v5858_v37 = vld [vmem:[%s7843_s1 + $0xea0] ss:$16 sps:$4 sm:$0xff]   ;;  %v5861_v38 = vld [vmem:[%s7843_s1 + $0xea8] ss:$16 sps:$4 sm:$0xff]  }
 0x19b   :  { %3869 = vmatpush1.bf16.msra.mxu0 %v5765_v39  ;;  %4256 = vmatpush1.bf16.msra.mxu1 %v5768_v40  ;;  %v5866_v39 = vld [vmem:[%s7843_s1 + $0xec4] ss:$16 sps:$4 sm:$0xff]   ;;  %v5869_v40 = vld [vmem:[%s7843_s1 + $0xecc] ss:$16 sps:$4 sm:$0xff]  }
 0x19c   :  { %3870 = vmatprep.subr.bf16.mxu0 %v5773_v41  ;;  %4257 = vmatprep.subr.bf16.mxu1 %v5776_v42  ;;  %v5864_v41 = vld [vmem:[%s7843_s1 + $0xec0] ss:$16 sps:$4 sm:$0xff]   ;;  %v5867_v42 = vld [vmem:[%s7843_s1 + $0xec8] ss:$16 sps:$4 sm:$0xff]  }
 0x19f   :  { %3871 = vmatpush1.bf16.msra.mxu0 %v5771_v43  ;;  %4258 = vmatpush1.bf16.msra.mxu1 %v5774_v44  ;;  %v5872_v43 = vld [vmem:[%s7843_s1 + $0xee4] ss:$16 sps:$4 sm:$0xff]   ;;  %v5875_v44 = vld [vmem:[%s7843_s1 + $0xeec] ss:$16 sps:$4 sm:$0xff]  }
 0x1a0   :  { %3872 = vmatprep.subr.bf16.mxu0 %v5779_v45  ;;  %4259 = vmatprep.subr.bf16.mxu1 %v5782_v46  ;;  %v5870_v45 = vld [vmem:[%s7843_s1 + $0xee0] ss:$16 sps:$4 sm:$0xff]   ;;  %v5873_v46 = vld [vmem:[%s7843_s1 + $0xee8] ss:$16 sps:$4 sm:$0xff]  }
 0x1a3   :  { %3873 = vmatpush1.bf16.msra.mxu0 %v5777_v47  ;;  %4260 = vmatpush1.bf16.msra.mxu1 %v5780_v48  ;;  %v5878_v47 = vld [vmem:[%s7843_s1 + $0xf04] ss:$16 sps:$4 sm:$0xff]   ;;  %v5881_v48 = vld [vmem:[%s7843_s1 + $0xf0c] ss:$16 sps:$4 sm:$0xff]  }
 0x1a4   :  { %3874 = vmatprep.subr.bf16.mxu0 %v5785_v49  ;;  %4261 = vmatprep.subr.bf16.mxu1 %v5788_v50  ;;  %v5876_v49 = vld [vmem:[%s7843_s1 + $0xf00] ss:$16 sps:$4 sm:$0xff]   ;;  %v5879_v50 = vld [vmem:[%s7843_s1 + $0xf08] ss:$16 sps:$4 sm:$0xff]  }
 0x1a7   :  { %3875 = vmatpush1.bf16.msra.mxu0 %v5783_v51  ;;  %4262 = vmatpush1.bf16.msra.mxu1 %v5786_v52  ;;  %v5884_v51 = vld [vmem:[%s7843_s1 + $0xf24] ss:$16 sps:$4 sm:$0xff]   ;;  %v5887_v52 = vld [vmem:[%s7843_s1 + $0xf2c] ss:$16 sps:$4 sm:$0xff]  }
 0x1a8   :  { %3876 = vmatprep.subr.bf16.mxu0 %v5791_v53  ;;  %4263 = vmatprep.subr.bf16.mxu1 %v5794_v54  ;;  %v5882_v53 = vld [vmem:[%s7843_s1 + $0xf20] ss:$16 sps:$4 sm:$0xff]   ;;  %v5885_v54 = vld [vmem:[%s7843_s1 + $0xf28] ss:$16 sps:$4 sm:$0xff]  }
 0x1ab   :  { %3877 = vmatpush1.bf16.msra.mxu0 %v5789_v55  ;;  %4264 = vmatpush1.bf16.msra.mxu1 %v5792_v56  ;;  %v5890_v55 = vld [vmem:[%s7843_s1 + $0xf44] ss:$16 sps:$4 sm:$0xff]   ;;  %v5893_v56 = vld [vmem:[%s7843_s1 + $0xf4c] ss:$16 sps:$4 sm:$0xff]  }
 0x1ac   :  { %3878 = vmatprep.subr.bf16.mxu0 %v5797_v57  ;;  %4265 = vmatprep.subr.bf16.mxu1 %v5800_v58  ;;  %v5888_v57 = vld [vmem:[%s7843_s1 + $0xf40] ss:$16 sps:$4 sm:$0xff]   ;;  %v5891_v58 = vld [vmem:[%s7843_s1 + $0xf48] ss:$16 sps:$4 sm:$0xff]  }
 0x1af   :  { %3879 = vmatpush1.bf16.msra.mxu0 %v5795_v59  ;;  %4266 = vmatpush1.bf16.msra.mxu1 %v5798_v60  ;;  %v5896_v59 = vld [vmem:[%s7843_s1 + $0xf64] ss:$16 sps:$4 sm:$0xff]   ;;  %v5899_v60 = vld [vmem:[%s7843_s1 + $0xf6c] ss:$16 sps:$4 sm:$0xff]  }
 0x1b0   :  { %3880 = vmatprep.subr.bf16.mxu0 %v5803_v61  ;;  %4267 = vmatprep.subr.bf16.mxu1 %v5806_v62  ;;  %v5894_v61 = vld [vmem:[%s7843_s1 + $0xf60] ss:$16 sps:$4 sm:$0xff]   ;;  %v5897_v62 = vld [vmem:[%s7843_s1 + $0xf68] ss:$16 sps:$4 sm:$0xff]  }
 0x1b3   :  { %3881 = vmatpush1.bf16.msra.mxu0 %v5801_v63  ;;  %4268 = vmatpush1.bf16.msra.mxu1 %v5804_v0  ;;  %v5902_v63 = vld [vmem:[%s7843_s1 + $0xf84] ss:$16 sps:$4 sm:$0xff]   ;;  %v5905_v0 = vld [vmem:[%s7843_s1 + $0xf8c] ss:$16 sps:$4 sm:$0xff]  }
 0x1b4   :  { %3882 = vmatprep.subr.bf16.mxu0 %v5809_v1  ;;  %4269 = vmatprep.subr.bf16.mxu1 %v5812_v2  ;;  %v5900_v1 = vld [vmem:[%s7843_s1 + $0xf80] ss:$16 sps:$4 sm:$0xff]   ;;  %v5903_v2 = vld [vmem:[%s7843_s1 + $0xf88] ss:$16 sps:$4 sm:$0xff]  }
 0x1b7   :  { %3883 = vmatpush1.bf16.msra.mxu0 %v5807_v3  ;;  %4270 = vmatpush1.bf16.msra.mxu1 %v5810_v4  ;;  %v5908_v3 = vld [vmem:[%s7843_s1 + $0xfa4] ss:$16 sps:$4 sm:$0xff]   ;;  %v5911_v4 = vld [vmem:[%s7843_s1 + $0xfac] ss:$16 sps:$4 sm:$0xff]  }
 0x1b8   :  { %3884 = vmatprep.subr.bf16.mxu0 %v5815_v5  ;;  %4271 = vmatprep.subr.bf16.mxu1 %v5818_v6  ;;  %v5906_v5 = vld [vmem:[%s7843_s1 + $0xfa0] ss:$16 sps:$4 sm:$0xff]   ;;  %v5909_v6 = vld [vmem:[%s7843_s1 + $0xfa8] ss:$16 sps:$4 sm:$0xff]  }
 0x1bb   :  { %3885 = vmatpush1.bf16.msra.mxu0 %v5813_v7  ;;  %4272 = vmatpush1.bf16.msra.mxu1 %v5816_v8  ;;  %v5914_v7 = vld [vmem:[%s7843_s1 + $0xfc4] ss:$16 sps:$4 sm:$0xff]   ;;  %v5917_v8 = vld [vmem:[%s7843_s1 + $0xfcc] ss:$16 sps:$4 sm:$0xff]  }
 0x1bc   :  { %3886 = vmatprep.subr.bf16.mxu0 %v5821_v9  ;;  %4273 = vmatprep.subr.bf16.mxu1 %v5824_v10  ;;  %v5912_v9 = vld [vmem:[%s7843_s1 + $0xfc0] ss:$16 sps:$4 sm:$0xff]   ;;  %v5915_v10 = vld [vmem:[%s7843_s1 + $0xfc8] ss:$16 sps:$4 sm:$0xff]  }
 0x1bf   :  { %3887 = vmatpush1.bf16.msra.mxu0 %v5819_v11  ;;  %4274 = vmatpush1.bf16.msra.mxu1 %v5822_v12  ;;  %v5920_v11 = vld [vmem:[%s7843_s1 + $0xfe4] ss:$16 sps:$4 sm:$0xff]   ;;  %v5923_v12 = vld [vmem:[%s7843_s1 + $0xfec] ss:$16 sps:$4 sm:$0xff]  }
 0x1c0   :  { %3899 = vmatprep.subr.bf16.mxu0 %v5830_v13  ;;  %4286 = vmatprep.subr.bf16.mxu1 %v5833_v14  ;;  %v5918_v13 = vld [vmem:[%s7843_s1 + $0xfe0] ss:$16 sps:$4 sm:$0xff]   ;;  %v5921_v14 = vld [vmem:[%s7843_s1 + $0xfe8] ss:$16 sps:$4 sm:$0xff]  }
 0x1c2   :  { %3889 = vmatmul.mubr.bf16.vlgmr.msra.gmra.mrb[0].mxu0 %v5825_v15  ;;  %4276 = vmatmul.mubr.bf16.vlgmr.msra.gmra.mrb[0].mxu1 %v5825_v15  ;;  %v5929_v15 = vld [vmem:[%s7843_s1 + $0x1004] ss:$16 sps:$4 sm:$0xff]  }
 0x1c3   :  { %3900 = vmatpush1.bf16.msra.mxu0 %v5828_v16  ;;  %4287 = vmatpush1.bf16.msra.mxu1 %v5831_v17  ;;  %v5932_v16 = vld [vmem:[%s7843_s1 + $0x100c] ss:$16 sps:$4 sm:$0xff]   ;;  %v5924_v17 = vld [vmem:[%s7844_s0 + $0x38] ss:$72 sps:$4 sm:$0xff]  }
 0x1c4   :  { %3901 = vmatprep.subr.bf16.mxu0 %v5836_v18  ;;  %4288 = vmatprep.subr.bf16.mxu1 %v5839_v19  ;;  %v5927_v18 = vld [vmem:[%s7843_s1 + $0x1000] ss:$16 sps:$4 sm:$0xff]   ;;  %v5930_v19 = vld [vmem:[%s7843_s1 + $0x1008] ss:$16 sps:$4 sm:$0xff]  }
 0x1c5   :  { %3931 = vmatprep.mubr.bf16.mxu0 %v5926_v20  ;;  %4318 = vmatprep.mubr.bf16.mxu1 %v5926_v20  ;;  %v5935_v20 = vld [vmem:[%s7843_s1 + $0x1024] ss:$16 sps:$4 sm:$0xff]  }
 0x1c7   :  { %3902 = vmatpush1.bf16.msra.mxu0 %v5834_v21  ;;  %4289 = vmatpush1.bf16.msra.mxu1 %v5837_v22  ;;  %v5938_v21 = vld [vmem:[%s7843_s1 + $0x102c] ss:$16 sps:$4 sm:$0xff]  }
 0x1c8   :  { %3903 = vmatprep.subr.bf16.mxu0 %v5842_v23  ;;  %4290 = vmatprep.subr.bf16.mxu1 %v5845_v24  ;;  %v6025_v22 = vld [vmem:[%s7844_s0 + $0x44] ss:$72 sps:$4 sm:$0xff]   ;;  %v5933_v23 = vld [vmem:[%s7843_s1 + $0x1020] ss:$16 sps:$4 sm:$0xff]   ;;  %v5936_v24 = vld [vmem:[%s7843_s1 + $0x1028] ss:$16 sps:$4 sm:$0xff]  }
 0x1cb   :  { %3904 = vmatpush1.bf16.msra.mxu0 %v5840_v25  ;;  %4291 = vmatpush1.bf16.msra.mxu1 %v5843_v26  ;;  %v5941_v25 = vld [vmem:[%s7843_s1 + $0x1044] ss:$16 sps:$4 sm:$0xff]   ;;  %v5944_v26 = vld [vmem:[%s7843_s1 + $0x104c] ss:$16 sps:$4 sm:$0xff]  }
 0x1cc   :  { %3905 = vmatprep.subr.bf16.mxu0 %v5848_v27  ;;  %4292 = vmatprep.subr.bf16.mxu1 %v5851_v28  ;;  %v5939_v27 = vld [vmem:[%s7843_s1 + $0x1040] ss:$16 sps:$4 sm:$0xff]   ;;  %v5942_v28 = vld [vmem:[%s7843_s1 + $0x1048] ss:$16 sps:$4 sm:$0xff]  }
 0x1cf   :  { %3906 = vmatpush1.bf16.msra.mxu0 %v5846_v29  ;;  %4293 = vmatpush1.bf16.msra.mxu1 %v5849_v30  ;;  %v5947_v29 = vld [vmem:[%s7843_s1 + $0x1064] ss:$16 sps:$4 sm:$0xff]   ;;  %v5950_v30 = vld [vmem:[%s7843_s1 + $0x106c] ss:$16 sps:$4 sm:$0xff]  }
 0x1d0   :  { %3907 = vmatprep.subr.bf16.mxu0 %v5854_v31  ;;  %4294 = vmatprep.subr.bf16.mxu1 %v5857_v32  ;;  %v5945_v31 = vld [vmem:[%s7843_s1 + $0x1060] ss:$16 sps:$4 sm:$0xff]   ;;  %v5948_v32 = vld [vmem:[%s7843_s1 + $0x1068] ss:$16 sps:$4 sm:$0xff]  }
 0x1d3   :  { %3908 = vmatpush1.bf16.msra.mxu0 %v5852_v33  ;;  %4295 = vmatpush1.bf16.msra.mxu1 %v5855_v34  ;;  %v5953_v33 = vld [vmem:[%s7843_s1 + $0x1084] ss:$16 sps:$4 sm:$0xff]   ;;  %v5956_v34 = vld [vmem:[%s7843_s1 + $0x108c] ss:$16 sps:$4 sm:$0xff]  }
 0x1d4   :  { %3909 = vmatprep.subr.bf16.mxu0 %v5860_v35  ;;  %4296 = vmatprep.subr.bf16.mxu1 %v5863_v36  ;;  %v5951_v35 = vld [vmem:[%s7843_s1 + $0x1080] ss:$16 sps:$4 sm:$0xff]   ;;  %v5954_v36 = vld [vmem:[%s7843_s1 + $0x1088] ss:$16 sps:$4 sm:$0xff]  }
 0x1d7   :  { %3910 = vmatpush1.bf16.msra.mxu0 %v5858_v37  ;;  %4297 = vmatpush1.bf16.msra.mxu1 %v5861_v38  ;;  %v5959_v37 = vld [vmem:[%s7843_s1 + $0x10a4] ss:$16 sps:$4 sm:$0xff]   ;;  %v5962_v38 = vld [vmem:[%s7843_s1 + $0x10ac] ss:$16 sps:$4 sm:$0xff]  }
 0x1d8   :  { %3911 = vmatprep.subr.bf16.mxu0 %v5866_v39  ;;  %4298 = vmatprep.subr.bf16.mxu1 %v5869_v40  ;;  %v5957_v39 = vld [vmem:[%s7843_s1 + $0x10a0] ss:$16 sps:$4 sm:$0xff]   ;;  %v5960_v40 = vld [vmem:[%s7843_s1 + $0x10a8] ss:$16 sps:$4 sm:$0xff]  }
 0x1db   :  { %3912 = vmatpush1.bf16.msra.mxu0 %v5864_v41  ;;  %4299 = vmatpush1.bf16.msra.mxu1 %v5867_v42  ;;  %v5965_v41 = vld [vmem:[%s7843_s1 + $0x10c4] ss:$16 sps:$4 sm:$0xff]   ;;  %v5968_v42 = vld [vmem:[%s7843_s1 + $0x10cc] ss:$16 sps:$4 sm:$0xff]  }
 0x1dc   :  { %3913 = vmatprep.subr.bf16.mxu0 %v5872_v43  ;;  %4300 = vmatprep.subr.bf16.mxu1 %v5875_v44  ;;  %v5963_v43 = vld [vmem:[%s7843_s1 + $0x10c0] ss:$16 sps:$4 sm:$0xff]   ;;  %v5966_v44 = vld [vmem:[%s7843_s1 + $0x10c8] ss:$16 sps:$4 sm:$0xff]  }
 0x1df   :  { %3914 = vmatpush1.bf16.msra.mxu0 %v5870_v45  ;;  %4301 = vmatpush1.bf16.msra.mxu1 %v5873_v46  ;;  %v5971_v45 = vld [vmem:[%s7843_s1 + $0x10e4] ss:$16 sps:$4 sm:$0xff]   ;;  %v5974_v46 = vld [vmem:[%s7843_s1 + $0x10ec] ss:$16 sps:$4 sm:$0xff]  }
 0x1e0   :  { %3915 = vmatprep.subr.bf16.mxu0 %v5878_v47  ;;  %4302 = vmatprep.subr.bf16.mxu1 %v5881_v48  ;;  %v5969_v47 = vld [vmem:[%s7843_s1 + $0x10e0] ss:$16 sps:$4 sm:$0xff]   ;;  %v5972_v48 = vld [vmem:[%s7843_s1 + $0x10e8] ss:$16 sps:$4 sm:$0xff]  }
 0x1e3   :  { %3916 = vmatpush1.bf16.msra.mxu0 %v5876_v49  ;;  %4303 = vmatpush1.bf16.msra.mxu1 %v5879_v50  ;;  %v5977_v49 = vld [vmem:[%s7843_s1 + $0x1104] ss:$16 sps:$4 sm:$0xff]   ;;  %v5980_v50 = vld [vmem:[%s7843_s1 + $0x110c] ss:$16 sps:$4 sm:$0xff]  }
 0x1e4   :  { %3917 = vmatprep.subr.bf16.mxu0 %v5884_v51  ;;  %4304 = vmatprep.subr.bf16.mxu1 %v5887_v52  ;;  %v5975_v51 = vld [vmem:[%s7843_s1 + $0x1100] ss:$16 sps:$4 sm:$0xff]   ;;  %v5978_v52 = vld [vmem:[%s7843_s1 + $0x1108] ss:$16 sps:$4 sm:$0xff]  }
 0x1e7   :  { %3918 = vmatpush1.bf16.msra.mxu0 %v5882_v53  ;;  %4305 = vmatpush1.bf16.msra.mxu1 %v5885_v54  ;;  %v5983_v53 = vld [vmem:[%s7843_s1 + $0x1124] ss:$16 sps:$4 sm:$0xff]   ;;  %v5986_v54 = vld [vmem:[%s7843_s1 + $0x112c] ss:$16 sps:$4 sm:$0xff]  }
 0x1e8   :  { %3919 = vmatprep.subr.bf16.mxu0 %v5890_v55  ;;  %4306 = vmatprep.subr.bf16.mxu1 %v5893_v56  ;;  %v5981_v55 = vld [vmem:[%s7843_s1 + $0x1120] ss:$16 sps:$4 sm:$0xff]   ;;  %v5984_v56 = vld [vmem:[%s7843_s1 + $0x1128] ss:$16 sps:$4 sm:$0xff]  }
 0x1eb   :  { %3920 = vmatpush1.bf16.msra.mxu0 %v5888_v57  ;;  %4307 = vmatpush1.bf16.msra.mxu1 %v5891_v58  ;;  %v5989_v57 = vld [vmem:[%s7843_s1 + $0x1144] ss:$16 sps:$4 sm:$0xff]   ;;  %v5992_v58 = vld [vmem:[%s7843_s1 + $0x114c] ss:$16 sps:$4 sm:$0xff]  }
 0x1ec   :  { %3921 = vmatprep.subr.bf16.mxu0 %v5896_v59  ;;  %4308 = vmatprep.subr.bf16.mxu1 %v5899_v60  ;;  %v5987_v59 = vld [vmem:[%s7843_s1 + $0x1140] ss:$16 sps:$4 sm:$0xff]   ;;  %v5990_v60 = vld [vmem:[%s7843_s1 + $0x1148] ss:$16 sps:$4 sm:$0xff]  }
 0x1ef   :  { %3922 = vmatpush1.bf16.msra.mxu0 %v5894_v61  ;;  %4309 = vmatpush1.bf16.msra.mxu1 %v5897_v62  ;;  %v5995_v61 = vld [vmem:[%s7843_s1 + $0x1164] ss:$16 sps:$4 sm:$0xff]   ;;  %v5998_v62 = vld [vmem:[%s7843_s1 + $0x116c] ss:$16 sps:$4 sm:$0xff]  }
 0x1f0   :  { %3923 = vmatprep.subr.bf16.mxu0 %v5902_v63  ;;  %4310 = vmatprep.subr.bf16.mxu1 %v5905_v0  ;;  %v5993_v63 = vld [vmem:[%s7843_s1 + $0x1160] ss:$16 sps:$4 sm:$0xff]   ;;  %v5996_v0 = vld [vmem:[%s7843_s1 + $0x1168] ss:$16 sps:$4 sm:$0xff]  }
 0x1f3   :  { %3924 = vmatpush1.bf16.msra.mxu0 %v5900_v1  ;;  %4311 = vmatpush1.bf16.msra.mxu1 %v5903_v2  ;;  %v6001_v1 = vld [vmem:[%s7843_s1 + $0x1184] ss:$16 sps:$4 sm:$0xff]   ;;  %v6004_v2 = vld [vmem:[%s7843_s1 + $0x118c] ss:$16 sps:$4 sm:$0xff]  }
 0x1f4   :  { %3925 = vmatprep.subr.bf16.mxu0 %v5908_v3  ;;  %4312 = vmatprep.subr.bf16.mxu1 %v5911_v4  ;;  %v5999_v3 = vld [vmem:[%s7843_s1 + $0x1180] ss:$16 sps:$4 sm:$0xff]   ;;  %v6002_v4 = vld [vmem:[%s7843_s1 + $0x1188] ss:$16 sps:$4 sm:$0xff]  }
 0x1f7   :  { %3926 = vmatpush1.bf16.msra.mxu0 %v5906_v5  ;;  %4313 = vmatpush1.bf16.msra.mxu1 %v5909_v6  ;;  %v6007_v5 = vld [vmem:[%s7843_s1 + $0x11a4] ss:$16 sps:$4 sm:$0xff]   ;;  %v6010_v6 = vld [vmem:[%s7843_s1 + $0x11ac] ss:$16 sps:$4 sm:$0xff]  }
 0x1f8   :  { %3927 = vmatprep.subr.bf16.mxu0 %v5914_v7  ;;  %4314 = vmatprep.subr.bf16.mxu1 %v5917_v8  ;;  %v6005_v7 = vld [vmem:[%s7843_s1 + $0x11a0] ss:$16 sps:$4 sm:$0xff]   ;;  %v6008_v8 = vld [vmem:[%s7843_s1 + $0x11a8] ss:$16 sps:$4 sm:$0xff]  }
 0x1fb   :  { %3928 = vmatpush1.bf16.msra.mxu0 %v5912_v9  ;;  %4315 = vmatpush1.bf16.msra.mxu1 %v5915_v10  ;;  %v6013_v9 = vld [vmem:[%s7843_s1 + $0x11c4] ss:$16 sps:$4 sm:$0xff]   ;;  %v6016_v10 = vld [vmem:[%s7843_s1 + $0x11cc] ss:$16 sps:$4 sm:$0xff]  }
 0x1fc   :  { %3929 = vmatprep.subr.bf16.mxu0 %v5920_v11  ;;  %4316 = vmatprep.subr.bf16.mxu1 %v5923_v12  ;;  %v6011_v11 = vld [vmem:[%s7843_s1 + $0x11c0] ss:$16 sps:$4 sm:$0xff]   ;;  %v6014_v12 = vld [vmem:[%s7843_s1 + $0x11c8] ss:$16 sps:$4 sm:$0xff]  }
 0x1ff   :  { %3930 = vmatpush1.bf16.msra.mxu0 %v5918_v13  ;;  %4317 = vmatpush1.bf16.msra.mxu1 %v5921_v14  ;;  %v6019_v13 = vld [vmem:[%s7843_s1 + $0x11e4] ss:$16 sps:$4 sm:$0xff]   ;;  %v6022_v14 = vld [vmem:[%s7843_s1 + $0x11ec] ss:$16 sps:$4 sm:$0xff]  }
 0x200   :  { %3942 = vmatprep.subr.bf16.mxu0 %v5929_v15  ;;  %4329 = vmatprep.subr.bf16.mxu1 %v5932_v16  ;;  %v6017_v15 = vld [vmem:[%s7843_s1 + $0x11e0] ss:$16 sps:$4 sm:$0xff]   ;;  %v6020_v16 = vld [vmem:[%s7843_s1 + $0x11e8] ss:$16 sps:$4 sm:$0xff]  }
 0x202   :  { %3932 = vmatmul.mubr.bf16.vlgmr.msra.gmra.mrb[0].mxu0 %v5924_v17  ;;  %4319 = vmatmul.mubr.bf16.vlgmr.msra.gmra.mrb[0].mxu1 %v5924_v17  ;;  %v6023_v17 = vld [vmem:[%s7844_s0 + $0x40] ss:$72 sps:$4 sm:$0xff]  }
 0x203   :  { %3943 = vmatpush1.bf16.msra.mxu0 %v5927_v18  ;;  %4330 = vmatpush1.bf16.msra.mxu1 %v5930_v19  ;;  %v4401_v18 = vlaneseq }
 0x204   :  { %3944 = vmatprep.subr.bf16.mxu0 %v5935_v20  ;;  %4331 = vmatprep.subr.bf16.mxu1 %v5938_v21 }
 0x205   :  { %3974 = vmatprep.mubr.bf16.mxu0 %v6025_v22  ;;  %4361 = vmatprep.mubr.bf16.mxu1 %v6025_v22  ;;  %v4402_v19 = vshrl.u32 %v4401_v18, 7  ;;  %v4399_v22 = vld [vmem:[%s7845_s2] sm:$0xf] }
 0x207   :  { %3945 = vmatpush1.bf16.msra.mxu0 %v5933_v23  ;;  %4332 = vmatpush1.bf16.msra.mxu1 %v5936_v24  ;;  %v4403_v20 = vsub.s32 0, %v4402_v19  ;;  %v4411_v21 = vsub.s32 2, %v4402_v19  ;;  %v4407_v23 = vsub.s32 1, %v4402_v19  ;;  %v4415_v24 = vsub.s32 3, %v4402_v19 }
 0x208   :  { %3946 = vmatprep.subr.bf16.mxu0 %v5941_v25  ;;  %4333 = vmatprep.subr.bf16.mxu1 %v5944_v26 }
 0x209   :  { %v4404_v25 = vrot.slane %v4399_v22, %v4403_v20  ;;  %v4412_v26 = vrot.slane %v4399_v22, %v4411_v21 }
 0x20b   :  { %3947 = vmatpush1.bf16.msra.mxu0 %v5939_v27  ;;  %4334 = vmatpush1.bf16.msra.mxu1 %v5942_v28  ;;  %v4408_v27 = vrot.slane %v4399_v22, %v4407_v23  ;;  %v4416_v28 = vrot.slane %v4399_v22, %v4415_v24 }
 0x20c   :  { %3948 = vmatprep.subr.bf16.mxu0 %v5947_v29  ;;  %4335 = vmatprep.subr.bf16.mxu1 %v5950_v30 }
 0x20f   :  { %3949 = vmatpush1.bf16.msra.mxu0 %v5945_v31  ;;  %4336 = vmatpush1.bf16.msra.mxu1 %v5948_v32 }
 0x210   :  { %3950 = vmatprep.subr.bf16.mxu0 %v5953_v33  ;;  %4337 = vmatprep.subr.bf16.mxu1 %v5956_v34 }
 0x213   :  { %3951 = vmatpush1.bf16.msra.mxu0 %v5951_v35  ;;  %4338 = vmatpush1.bf16.msra.mxu1 %v5954_v36 }
 0x214   :  { %3952 = vmatprep.subr.bf16.mxu0 %v5959_v37  ;;  %4339 = vmatprep.subr.bf16.mxu1 %v5962_v38 }
 0x217   :  { %3953 = vmatpush1.bf16.msra.mxu0 %v5957_v39  ;;  %4340 = vmatpush1.bf16.msra.mxu1 %v5960_v40 }
 0x218   :  { %3954 = vmatprep.subr.bf16.mxu0 %v5965_v41  ;;  %4341 = vmatprep.subr.bf16.mxu1 %v5968_v42 }
 0x21b   :  { %3955 = vmatpush1.bf16.msra.mxu0 %v5963_v43  ;;  %4342 = vmatpush1.bf16.msra.mxu1 %v5966_v44 }
 0x21c   :  { %3956 = vmatprep.subr.bf16.mxu0 %v5971_v45  ;;  %4343 = vmatprep.subr.bf16.mxu1 %v5974_v46 }
 0x21f   :  { %3957 = vmatpush1.bf16.msra.mxu0 %v5969_v47  ;;  %4344 = vmatpush1.bf16.msra.mxu1 %v5972_v48 }
 0x220   :  { %3958 = vmatprep.subr.bf16.mxu0 %v5977_v49  ;;  %4345 = vmatprep.subr.bf16.mxu1 %v5980_v50 }
 0x223   :  { %3959 = vmatpush1.bf16.msra.mxu0 %v5975_v51  ;;  %4346 = vmatpush1.bf16.msra.mxu1 %v5978_v52 }
 0x224   :  { %3960 = vmatprep.subr.bf16.mxu0 %v5983_v53  ;;  %4347 = vmatprep.subr.bf16.mxu1 %v5986_v54 }
 0x227   :  { %3961 = vmatpush1.bf16.msra.mxu0 %v5981_v55  ;;  %4348 = vmatpush1.bf16.msra.mxu1 %v5984_v56 }
 0x228   :  { %3962 = vmatprep.subr.bf16.mxu0 %v5989_v57  ;;  %4349 = vmatprep.subr.bf16.mxu1 %v5992_v58 }
 0x22b   :  { %3963 = vmatpush1.bf16.msra.mxu0 %v5987_v59  ;;  %4350 = vmatpush1.bf16.msra.mxu1 %v5990_v60 }
 0x22c   :  { %3964 = vmatprep.subr.bf16.mxu0 %v5995_v61  ;;  %4351 = vmatprep.subr.bf16.mxu1 %v5998_v62 }
 0x22f   :  { %3965 = vmatpush1.bf16.msra.mxu0 %v5993_v63  ;;  %4352 = vmatpush1.bf16.msra.mxu1 %v5996_v0 }
 0x230   :  { %3966 = vmatprep.subr.bf16.mxu0 %v6001_v1  ;;  %4353 = vmatprep.subr.bf16.mxu1 %v6004_v2 }
 0x233   :  { %3967 = vmatpush1.bf16.msra.mxu0 %v5999_v3  ;;  %4354 = vmatpush1.bf16.msra.mxu1 %v6002_v4 }
 0x234   :  { %3968 = vmatprep.subr.bf16.mxu0 %v6007_v5  ;;  %4355 = vmatprep.subr.bf16.mxu1 %v6010_v6 }
 0x237   :  { %3969 = vmatpush1.bf16.msra.mxu0 %v6005_v7  ;;  %4356 = vmatpush1.bf16.msra.mxu1 %v6008_v8 }
 0x238   :  { %3970 = vmatprep.subr.bf16.mxu0 %v6013_v9  ;;  %4357 = vmatprep.subr.bf16.mxu1 %v6016_v10 }
 0x23b   :  { %3971 = vmatpush1.bf16.msra.mxu0 %v6011_v11  ;;  %4358 = vmatpush1.bf16.msra.mxu1 %v6014_v12 }
 0x23c   :  { %3972 = vmatprep.subr.bf16.mxu0 %v6019_v13  ;;  %4359 = vmatprep.subr.bf16.mxu1 %v6022_v14 }
 0x23f   :  { %3973 = vmatpush1.bf16.msra.mxu0 %v6017_v15  ;;  %4360 = vmatpush1.bf16.msra.mxu1 %v6020_v16 }
 0x242   :  { %3975 = vmatmul.mubr.bf16.vlgmr.msra.gmra.mrb[0].mxu0 %v6023_v17  ;;  %4362 = vmatmul.mubr.bf16.vlgmr.msra.gmra.mrb[0].mxu1 %v6023_v17 }
 0x315   :  { %v3976_v29 = vpop.f32.mrb[0].mxu0  ;;  %v4363_v30 = vpop.f32.mrb[0].mxu1 }
 0x316   :  { %v4421_v31 = vadd.f32 %v4404_v25, %v3976_v29  ;;  %v4423_v32 = vadd.f32 %v4412_v26, %v4363_v30  ;;  %v3978_v33 = vpop.f32.mrb[1].mxu0  ;;  %v4365_v34 = vpop.f32.mrb[1].mxu1 }
 0x317   :  { %v4422_v35 = vadd.f32 %v4408_v27, %v3978_v33  ;;  %v4424_v36 = vadd.f32 %v4416_v28, %v4365_v34  ;;  %v3980_v37 = vpop.f32.mrb[2].mxu0  ;;  %v4367_v38 = vpop.f32.mrb[2].mxu1 }
 0x318   :  { %v4429_v39 = vmax.f32 %v4421_v31, 0.0  ;;  %v4431_v40 = vmax.f32 %v4423_v32, 0.0  ;;  %v4425_v41 = vadd.f32 %v4404_v25, %v3980_v37  ;;  %v4427_v42 = vadd.f32 %v4412_v26, %v4367_v38  ;;  %v3982_v43 = vpop.f32.mrb[3].mxu0  ;;  %v4369_v44 = vpop.f32.mrb[3].mxu1 }
 0x319   :  { %v4430_v45 = vmax.f32 %v4422_v35, 0.0  ;;  %v4432_v46 = vmax.f32 %v4424_v36, 0.0  ;;  %v4426_v47 = vadd.f32 %v4408_v27, %v3982_v43  ;;  %v4428_v48 = vadd.f32 %v4416_v28, %v4369_v44 }
 0x31a   :  { %v4433_v49 = vmax.f32 %v4425_v41, 0.0  ;;  %v4435_v50 = vmax.f32 %v4427_v42, 0.0 }
 0x31b   :  { %v5067_v51 = vpack.c.bf16 %v4430_v45, %v4429_v39  ;;  %v5068_v52 = vpack.c.bf16 %v4432_v46, %v4431_v40  ;;  %v4434_v53 = vmax.f32 %v4426_v47, 0.0  ;;  %v4436_v54 = vmax.f32 %v4428_v48, 0.0 }
 0x31d   :  { %4461 = vst [vmem:[%s7846_s3] sm:$0xff] %v5067_v51  ;;  %4462 = vst [vmem:[%s7846_s3 + $0x8] sm:$0xff] %v5068_v52  ;;  %v5069_v55 = vpack.c.bf16 %v4434_v53, %v4433_v49  ;;  %v5070_v56 = vpack.c.bf16 %v4436_v54, %v4435_v50 }
 0x31f   :  { %4463 = vst [vmem:[%s7846_s3 + $0x10] sm:$0xff] %v5069_v55  ;;  %4464 = vst [vmem:[%s7846_s3 + $0x18] sm:$0xff] %v5070_v56 }

// kernel: _lambda_.12
= control target key start
LH: loop header
LB: loop body
LE: loop exit
PB: predicated region body
PF: predicated region fallthrough
CT: control target
= control target key end

     0   :  { %s1296_s12 = smov 0   ;;  %s1298_s13 = smov 0   ;;  %s1454_s0 = inlined_call_operand.vmem [shape: bf16[32,4608], index: 0, kind: input, shape index: {}]   ;;  %s1455_s1 = inlined_call_operand.vmem [shape: bf16[4608,256], index: 1, kind: input, shape index: {}]   ;;  %s1456_s2 = inlined_call_operand.vmem [shape: f32[1,256], index: 2, kind: input, shape index: {}]   ;;  %s1457_s3 = inlined_call_operand.vmem [shape: bf16[32,256], index: 3, kind: output, shape index: {}]  }
   0x1   :  { %s1300_s14 = smov 0   ;;  %s1302_s15 = smov 0  }
   0x2   :  { %s1304_s16 = smov 0  }
   0x3 LB: > { %s22_s17 = sadd.s32 1, %s1269_s15  ;;  %p41_p1 = scmp.ne.s32.totalorder %s1261_s13, %s1257_s12  ;;  %s1273_s16 = sphi %s1304_s16, %s13_s16   ;;  %s1269_s15 = sphi %s1302_s15, %s1461_s15   ;;  %s1265_s14 = sphi %s1300_s14, %s1460_s14   ;;  %s1261_s13 = sphi %s1298_s13, %s1459_s13   ;;  %s1257_s12 = sphi %s1296_s12, %s1458_s12  }
   0x4   : > { %p23_p0 = scmp.ge.s32.totalorder %s22_s17, 9  ;;  %p42_p2 = scmp.eq.s32.totalorder %s1273_s16, 0 }
   0x5   : > { %s34_s19 = sadd.s32 1, %s1261_s13  ;;  %p981_p5 = scmp.ge.s32.totalorder %s1273_s16, 9 }
   0x6   : > { %s1463_s17 = smov (%p23_p0, %s22_s17), 0  ;;  %p43_p3 = por %p42_p2, %p41_p1 }
   0x7   : > { %s30_s18 = ssub.s32 %s1269_s15, %s1463_s17  ;;  %143 = sbr.rel (%p981_p5) target bundleno = 22 (0x16), region = 20 }
   0x8   : > { %p32_p4 = scmp.eq.s32.totalorder %s30_s18, 0 }
   0xa   : > { %s1331_s20 = scalar_select %p32_p4, %s1261_s13, %s34_s19  }
   0xe   : > { %146 = sbr.rel (!%p43_p3) target bundleno = 22 (0x16), region = 24  ;;  %s148_s21 = sand.u32 (%p43_p3), 1, %s1261_s13  }
   0xf   : > { %s1072_s22 = sshll.u32 (%p43_p3), %s1269_s15, 4  ;;  %s982_s23 = sshll.u32 (%p43_p3), %s148_s21, 6 }
  0x10   : > { %s156_s26 = scalar_lea.vmem (%p43_p3), %s1454_s0, %s1072_s22  ;;  %s150_s27 = scalar_lea.vmem (%p43_p3), [#allocation3], %s982_s23 }
  0x11   : > { %v169_v0 = vld [vmem:[%s156_s26] sm:$0xff] (%p43_p3)  ;;  %v171_v1 = vld [vmem:[%s156_s26 + $0x8] sm:$0xff] (%p43_p3)  ;;  %v173_v2 = vld [vmem:[%s156_s26 + $0x90] sm:$0xff] (%p43_p3) }
  0x12   : > { %170 = vst [vmem:[%s150_s27] sm:$0xff] (%p43_p3), %v169_v0  ;;  %172 = vst [vmem:[%s150_s27 + $0x8] sm:$0xff] (%p43_p3), %v171_v1  ;;  %v175_v3 = vld [vmem:[%s156_s26 + $0x98] sm:$0xff] (%p43_p3)  ;;  %v177_v4 = vld [vmem:[%s156_s26 + $0x120] sm:$0xff] (%p43_p3) }
  0x13   : > { %174 = vst [vmem:[%s150_s27 + $0x10] sm:$0xff] (%p43_p3), %v173_v2  ;;  %v179_v5 = vld [vmem:[%s156_s26 + $0x128] sm:$0xff] (%p43_p3)  ;;  %176 = vst [vmem:[%s150_s27 + $0x18] sm:$0xff] (%p43_p3), %v175_v3  ;;  %v181_v6 = vld [vmem:[%s156_s26 + $0x1b0] sm:$0xff] (%p43_p3) }
  0x14   : > { %178 = vst [vmem:[%s150_s27 + $0x20] sm:$0xff] (%p43_p3), %v177_v4  ;;  %180 = vst [vmem:[%s150_s27 + $0x28] sm:$0xff] (%p43_p3), %v179_v5  ;;  %v183_v7 = vld [vmem:[%s156_s26 + $0x1b8] sm:$0xff] (%p43_p3) }
  0x15   : > { %182 = vst [vmem:[%s150_s27 + $0x30] sm:$0xff] %v181_v6  ;;  %184 = vst [vmem:[%s150_s27 + $0x38] sm:$0xff] %v183_v7 }
  0x16 PF: > { %p985_p6 = scmp.ge.s32.totalorder %s1273_s16, 1  ;;  %p199_p7 = scmp.lt.s32.totalorder %s1273_s16, 10 }
  0x18   : > { %p200_p8 = pnand %p985_p6, %p199_p7 }
  0x19   : > { %s206_s28 = sand.u32 (!%p200_p8), 1, %s1257_s12   ;;  %s987_s29 = sshll.u32 (!%p200_p8), %s1265_s14, 6 }
  0x1a   : > { %203 = sbr.rel (%p200_p8) target bundleno = 348 (0x15c), region = 51  ;;  %s986_s30 = sshll.u32 (!%p200_p8), %s206_s28, 6 }
  0x1b   : > { %p239_p9 = scmp.lt.s32.totalorder (!%p200_p8), %s987_s29, 575  ;;  %s1348_s8 = scalar_lea.vmem (!%p200_p8), [#allocation3], %s986_s30 }
  0x1c   : > { %p990_p10 = scmp.ne.s32.totalorder (!%p200_p8), %s1265_s14, 0 }
  0x21   : > { %s1465_s29 = smov (!%p239_p9, %s987_s29), 575  ;;  %255 = sbr.rel (%p990_p10) target bundleno = 40 (0x28), region = 59 }
  0x22   : > { %s1073_s4 = sshll.u32 %s1465_s29, 3  ;;  %v1275_v8 = vmov (!%p990_p10), 0.0  }
  0x23   : > { %s1346_s7 = scalar_lea.vmem %s1455_s1, %s1073_s4  ;;  %256 = vst [vmem:[#allocation2] sm:$0xff] (!%p990_p10), %v1275_v8  ;;  %257 = vst [vmem:[#allocation2 + $0x8] sm:$0xff] (!%p990_p10), %v1275_v8 }
  0x24   : > { %258 = vst [vmem:[#allocation2 + $0x10] sm:$0xff] (!%p990_p10), %v1275_v8  ;;  %259 = vst [vmem:[#allocation2 + $0x18] sm:$0xff] (!%p990_p10), %v1275_v8 }
  0x25   : > { %260 = vst [vmem:[#allocation2 + $0x20] sm:$0xff] (!%p990_p10), %v1275_v8  ;;  %261 = vst [vmem:[#allocation2 + $0x28] sm:$0xff] (!%p990_p10), %v1275_v8 }
  0x26   : > { %262 = vst [vmem:[#allocation2 + $0x30] sm:$0xff] (!%p990_p10), %v1275_v8  ;;  %263 = vst [vmem:[#allocation2 + $0x38] sm:$0xff] (!%p990_p10), %v1275_v8 }
  0x28 PF: > { %v1127_v9 = vld [vmem:[%s1346_s7 + $0x4] ss:$8 sps:$4 sm:$0xff]   ;;  %v1131_v11 = vld [vmem:[%s1346_s7] ss:$8 sps:$4 sm:$0xff]   ;;  %v1133_v13 = vld [vmem:[%s1346_s7 + $0x14] ss:$8 sps:$4 sm:$0xff]  }
  0x29   : > { %v1129_v10 = vld [vmem:[%s1346_s7 + $0x104] ss:$8 sps:$4 sm:$0xff]   ;;  %704 = vmatprep.subr.bf16.mxu1 %v1127_v9  ;;  %v1132_v12 = vld [vmem:[%s1346_s7 + $0x100] ss:$8 sps:$4 sm:$0xff]   ;;  %v1135_v14 = vld [vmem:[%s1346_s7 + $0x114] ss:$8 sps:$4 sm:$0xff]  }
  0x2a   : > { %757 = vmatprep.subr.bf16.mxu0 %v1129_v10  ;;  %705 = vmatpush1.bf16.msra.mxu1 %v1131_v11  ;;  %v1137_v15 = vld [vmem:[%s1346_s7 + $0x10] ss:$8 sps:$4 sm:$0xff]   ;;  %v1139_v17 = vld [vmem:[%s1346_s7 + $0x24] ss:$8 sps:$4 sm:$0xff]   ;;  %v1143_v19 = vld [vmem:[%s1346_s7 + $0x20] ss:$8 sps:$4 sm:$0xff]  }
  0x2b   : > { %758 = vmatpush1.bf16.msra.mxu0 %v1132_v12  ;;  %706 = vmatprep.subr.bf16.mxu1 %v1133_v13  ;;  %v1138_v16 = vld [vmem:[%s1346_s7 + $0x110] ss:$8 sps:$4 sm:$0xff]   ;;  %v1141_v18 = vld [vmem:[%s1346_s7 + $0x124] ss:$8 sps:$4 sm:$0xff]   ;;  %v1144_v20 = vld [vmem:[%s1346_s7 + $0x120] ss:$8 sps:$4 sm:$0xff]  }
  0x2c   : > { %759 = vmatprep.subr.bf16.mxu0 %v1135_v14  ;;  %v1145_v21 = vld [vmem:[%s1346_s7 + $0x34] ss:$8 sps:$4 sm:$0xff]   ;;  %v1149_v23 = vld [vmem:[%s1346_s7 + $0x30] ss:$8 sps:$4 sm:$0xff]   ;;  %v1151_v25 = vld [vmem:[%s1346_s7 + $0x44] ss:$8 sps:$4 sm:$0xff]  }
  0x2d   : > { %v1147_v22 = vld [vmem:[%s1346_s7 + $0x134] ss:$8 sps:$4 sm:$0xff]   ;;  %v1150_v24 = vld [vmem:[%s1346_s7 + $0x130] ss:$8 sps:$4 sm:$0xff]   ;;  %v1153_v26 = vld [vmem:[%s1346_s7 + $0x144] ss:$8 sps:$4 sm:$0xff]  }
  0x2e   : > { %707 = vmatpush1.bf16.msra.mxu1 %v1137_v15  ;;  %v1155_v27 = vld [vmem:[%s1346_s7 + $0x40] ss:$8 sps:$4 sm:$0xff]   ;;  %v1157_v29 = vld [vmem:[%s1346_s7 + $0x54] ss:$8 sps:$4 sm:$0xff]   ;;  %v1161_v31 = vld [vmem:[%s1346_s7 + $0x50] ss:$8 sps:$4 sm:$0xff]  }
  0x2f   : > { %760 = vmatpush1.bf16.msra.mxu0 %v1138_v16  ;;  %708 = vmatprep.subr.bf16.mxu1 %v1139_v17  ;;  %v1156_v28 = vld [vmem:[%s1346_s7 + $0x140] ss:$8 sps:$4 sm:$0xff]   ;;  %v1159_v30 = vld [vmem:[%s1346_s7 + $0x154] ss:$8 sps:$4 sm:$0xff]   ;;  %v1162_v32 = vld [vmem:[%s1346_s7 + $0x150] ss:$8 sps:$4 sm:$0xff]  }
  0x30   : > { %761 = vmatprep.subr.bf16.mxu0 %v1141_v18  ;;  %v1163_v33 = vld [vmem:[%s1346_s7 + $0x64] ss:$8 sps:$4 sm:$0xff]   ;;  %v1167_v35 = vld [vmem:[%s1346_s7 + $0x60] ss:$8 sps:$4 sm:$0xff]   ;;  %v1169_v37 = vld [vmem:[%s1346_s7 + $0x74] ss:$8 sps:$4 sm:$0xff]  }
  0x31   : > { %v1165_v34 = vld [vmem:[%s1346_s7 + $0x164] ss:$8 sps:$4 sm:$0xff]   ;;  %v1168_v36 = vld [vmem:[%s1346_s7 + $0x160] ss:$8 sps:$4 sm:$0xff]   ;;  %v1171_v38 = vld [vmem:[%s1346_s7 + $0x174] ss:$8 sps:$4 sm:$0xff]  }
  0x32   : > { %709 = vmatpush1.bf16.msra.mxu1 %v1143_v19  ;;  %v1173_v39 = vld [vmem:[%s1346_s7 + $0x70] ss:$8 sps:$4 sm:$0xff]   ;;  %v1175_v41 = vld [vmem:[%s1346_s7 + $0x84] ss:$8 sps:$4 sm:$0xff]   ;;  %v1179_v43 = vld [vmem:[%s1346_s7 + $0x80] ss:$8 sps:$4 sm:$0xff]  }
  0x33   : > { %762 = vmatpush1.bf16.msra.mxu0 %v1144_v20  ;;  %710 = vmatprep.subr.bf16.mxu1 %v1145_v21  ;;  %v1174_v40 = vld [vmem:[%s1346_s7 + $0x170] ss:$8 sps:$4 sm:$0xff]   ;;  %v1177_v42 = vld [vmem:[%s1346_s7 + $0x184] ss:$8 sps:$4 sm:$0xff]   ;;  %v1180_v44 = vld [vmem:[%s1346_s7 + $0x180] ss:$8 sps:$4 sm:$0xff]  }
  0x34   : > { %763 = vmatprep.subr.bf16.mxu0 %v1147_v22  ;;  %v1181_v45 = vld [vmem:[%s1346_s7 + $0x94] ss:$8 sps:$4 sm:$0xff]   ;;  %v1185_v47 = vld [vmem:[%s1346_s7 + $0x90] ss:$8 sps:$4 sm:$0xff]   ;;  %v1187_v49 = vld [vmem:[%s1346_s7 + $0xa4] ss:$8 sps:$4 sm:$0xff]  }
  0x35   : > { %v1183_v46 = vld [vmem:[%s1346_s7 + $0x194] ss:$8 sps:$4 sm:$0xff]   ;;  %v1186_v48 = vld [vmem:[%s1346_s7 + $0x190] ss:$8 sps:$4 sm:$0xff]   ;;  %v1189_v50 = vld [vmem:[%s1346_s7 + $0x1a4] ss:$8 sps:$4 sm:$0xff]  }
  0x36   : > { %711 = vmatpush1.bf16.msra.mxu1 %v1149_v23  ;;  %v1191_v51 = vld [vmem:[%s1346_s7 + $0xa0] ss:$8 sps:$4 sm:$0xff]   ;;  %v1193_v53 = vld [vmem:[%s1346_s7 + $0xb4] ss:$8 sps:$4 sm:$0xff]   ;;  %v1197_v55 = vld [vmem:[%s1346_s7 + $0xb0] ss:$8 sps:$4 sm:$0xff]  }
  0x37   : > { %764 = vmatpush1.bf16.msra.mxu0 %v1150_v24  ;;  %712 = vmatprep.subr.bf16.mxu1 %v1151_v25  ;;  %v1192_v52 = vld [vmem:[%s1346_s7 + $0x1a0] ss:$8 sps:$4 sm:$0xff]   ;;  %v1195_v54 = vld [vmem:[%s1346_s7 + $0x1b4] ss:$8 sps:$4 sm:$0xff]   ;;  %v1198_v56 = vld [vmem:[%s1346_s7 + $0x1b0] ss:$8 sps:$4 sm:$0xff]  }
  0x38   : > { %765 = vmatprep.subr.bf16.mxu0 %v1153_v26  ;;  %v1199_v57 = vld [vmem:[%s1346_s7 + $0xc4] ss:$8 sps:$4 sm:$0xff]   ;;  %v1203_v61 = vld [vmem:[%s1346_s7 + $0xc0] ss:$8 sps:$4 sm:$0xff]   ;;  %v1205_v63 = vld [vmem:[%s1346_s7 + $0xd4] ss:$8 sps:$4 sm:$0xff]  }
  0x39   : > { %v1225_v58 = vld [vmem:[%s1348_s8 + $0x4] ss:$16 sps:$4 sm:$0xff]   ;;  %v1228_v60 = vld [vmem:[%s1348_s8 + $0xc] ss:$16 sps:$4 sm:$0xff]   ;;  %v1204_v62 = vld [vmem:[%s1346_s7 + $0x1c0] ss:$8 sps:$4 sm:$0xff]  }
  0x3a   : > { %713 = vmatpush1.bf16.msra.mxu1 %v1155_v27  ;;  %v1201_v59 = vld [vmem:[%s1346_s7 + $0x1c4] ss:$8 sps:$4 sm:$0xff]   ;;  %736 = vmatprep.mubr.bf16.mxu1 %v1225_v58  ;;  %v1207_v0 = vld [vmem:[%s1346_s7 + $0x1d4] ss:$8 sps:$4 sm:$0xff]   ;;  %v1209_v1 = vld [vmem:[%s1346_s7 + $0xd0] ss:$8 sps:$4 sm:$0xff]  }
  0x3b   : > { %766 = vmatpush1.bf16.msra.mxu0 %v1156_v28  ;;  %714 = vmatprep.subr.bf16.mxu1 %v1157_v29  ;;  %v1210_v2 = vld [vmem:[%s1346_s7 + $0x1d0] ss:$8 sps:$4 sm:$0xff]   ;;  %v1211_v3 = vld [vmem:[%s1346_s7 + $0xe4] ss:$8 sps:$4 sm:$0xff]   ;;  %v1215_v5 = vld [vmem:[%s1346_s7 + $0xe0] ss:$8 sps:$4 sm:$0xff]  }
  0x3c   : > { %767 = vmatprep.subr.bf16.mxu0 %v1159_v30  ;;  %789 = vmatprep.mubr.bf16.mxu0 %v1228_v60  ;;  %v1213_v4 = vld [vmem:[%s1346_s7 + $0x1e4] ss:$8 sps:$4 sm:$0xff]   ;;  %v1216_v6 = vld [vmem:[%s1346_s7 + $0x1e0] ss:$8 sps:$4 sm:$0xff]   ;;  %v1217_v7 = vld [vmem:[%s1346_s7 + $0xf4] ss:$8 sps:$4 sm:$0xff]  }
  0x3d   : > { %v1219_v8 = vld [vmem:[%s1346_s7 + $0x1f4] ss:$8 sps:$4 sm:$0xff]   ;;  %v1221_v9 = vld [vmem:[%s1346_s7 + $0xf0] ss:$8 sps:$4 sm:$0xff]   ;;  %v264_v18 = vld [vmem:[#allocation2] sm:$0xff]  ;;  %p1063_p11 = scmp.ne.s32.totalorder %s1265_s14, 8 }
  0x3e   : > { %715 = vmatpush1.bf16.msra.mxu1 %v1161_v31  ;;  %v1222_v10 = vld [vmem:[%s1346_s7 + $0x1f0] ss:$8 sps:$4 sm:$0xff]   ;;  %v1229_v13 = vld [vmem:[%s1348_s8 + $0x24] ss:$16 sps:$4 sm:$0xff]   ;;  %v1231_v14 = vld [vmem:[%s1348_s8 + $0x2c] ss:$16 sps:$4 sm:$0xff]  }
  0x3f   : > { %768 = vmatpush1.bf16.msra.mxu0 %v1162_v32  ;;  %716 = vmatprep.subr.bf16.mxu1 %v1163_v33  ;;  %v1223_v11 = vld [vmem:[%s1348_s8] ss:$16 sps:$4 sm:$0xff]   ;;  %v1226_v12 = vld [vmem:[%s1348_s8 + $0x8] ss:$16 sps:$4 sm:$0xff]  }
  0x40   : > { %769 = vmatprep.subr.bf16.mxu0 %v1165_v34  ;;  %v1233_v15 = vld [vmem:[%s1348_s8 + $0x20] ss:$16 sps:$4 sm:$0xff]   ;;  %v1234_v16 = vld [vmem:[%s1348_s8 + $0x28] ss:$16 sps:$4 sm:$0xff]  }
  0x41   : > { %v265_v22 = vld [vmem:[#allocation2 + $0x8] sm:$0xff]  ;;  %v266_v26 = vld [vmem:[#allocation2 + $0x10] sm:$0xff]  ;;  %v267_v31 = vld [vmem:[#allocation2 + $0x18] sm:$0xff] }
  0x42   : > { %717 = vmatpush1.bf16.msra.mxu1 %v1167_v35 }
  0x43   : > { %770 = vmatpush1.bf16.msra.mxu0 %v1168_v36  ;;  %718 = vmatprep.subr.bf16.mxu1 %v1169_v37 }
  0x44   : > { %771 = vmatprep.subr.bf16.mxu0 %v1171_v38  ;;  %v268_v38 = vld [vmem:[#allocation2 + $0x20] sm:$0xff] }
  0x46   : > { %719 = vmatpush1.bf16.msra.mxu1 %v1173_v39 }
  0x47   : > { %772 = vmatpush1.bf16.msra.mxu0 %v1174_v40  ;;  %720 = vmatprep.subr.bf16.mxu1 %v1175_v41 }
  0x48   : > { %773 = vmatprep.subr.bf16.mxu0 %v1177_v42  ;;  %v269_v42 = vld [vmem:[#allocation2 + $0x28] sm:$0xff] }
  0x4a   : > { %721 = vmatpush1.bf16.msra.mxu1 %v1179_v43 }
  0x4b   : > { %774 = vmatpush1.bf16.msra.mxu0 %v1180_v44  ;;  %722 = vmatprep.subr.bf16.mxu1 %v1181_v45 }
  0x4c   : > { %775 = vmatprep.subr.bf16.mxu0 %v1183_v46  ;;  %v270_v46 = vld [vmem:[#allocation2 + $0x30] sm:$0xff] }
  0x4e   : > { %723 = vmatpush1.bf16.msra.mxu1 %v1185_v47 }
  0x4f   : > { %776 = vmatpush1.bf16.msra.mxu0 %v1186_v48  ;;  %724 = vmatprep.subr.bf16.mxu1 %v1187_v49 }
  0x50   : > { %777 = vmatprep.subr.bf16.mxu0 %v1189_v50 }
  0x52   : > { %725 = vmatpush1.bf16.msra.mxu1 %v1191_v51  ;;  %v271_v51 = vld [vmem:[#allocation2 + $0x38] sm:$0xff] }
  0x53   : > { %778 = vmatpush1.bf16.msra.mxu0 %v1192_v52  ;;  %726 = vmatprep.subr.bf16.mxu1 %v1193_v53 }
  0x54   : > { %779 = vmatprep.subr.bf16.mxu0 %v1195_v54 }
  0x56   : > { %727 = vmatpush1.bf16.msra.mxu1 %v1197_v55 }
  0x57   : > { %780 = vmatpush1.bf16.msra.mxu0 %v1198_v56  ;;  %728 = vmatprep.subr.bf16.mxu1 %v1199_v57  ;;  %v840_v57 = vlaneseq (!%p1063_p11) }
  0x58   : > { %781 = vmatprep.subr.bf16.mxu0 %v1201_v59  ;;  %v838_v59 = vld [vmem:[%s1456_s2] sm:$0x3] (!%p1063_p11) }
  0x59   : > { %v841_v58 = vshrl.u32 (!%p1063_p11), %v840_v57, 7 }
  0x5a   : > { %729 = vmatpush1.bf16.msra.mxu1 %v1203_v61 }
  0x5b   : > { %782 = vmatpush1.bf16.msra.mxu0 %v1204_v62  ;;  %730 = vmatprep.subr.bf16.mxu1 %v1205_v63  ;;  %v842_v62 = vsub.s32 (!%p1063_p11), 0, %v841_v58  ;;  %v846_v63 = vsub.s32 (!%p1063_p11), 1, %v841_v58 }
  0x5c   : > { %783 = vmatprep.subr.bf16.mxu0 %v1207_v0 }
  0x5e   : > { %731 = vmatpush1.bf16.msra.mxu1 %v1209_v1 }
  0x5f   : > { %784 = vmatpush1.bf16.msra.mxu0 %v1210_v2  ;;  %732 = vmatprep.subr.bf16.mxu1 %v1211_v3  ;;  %v843_v3 = vrot.slane (!%p1063_p11), %v838_v59, %v842_v62 }
  0x60   : > { %785 = vmatprep.subr.bf16.mxu0 %v1213_v4  ;;  %v847_v4 = vrot.slane (!%p1063_p11), %v838_v59, %v846_v63 }
  0x62   : > { %733 = vmatpush1.bf16.msra.mxu1 %v1215_v5 }
  0x63   : > { %786 = vmatpush1.bf16.msra.mxu0 %v1216_v6  ;;  %734 = vmatprep.subr.bf16.mxu1 %v1217_v7 }
  0x64   : > { %787 = vmatprep.subr.bf16.mxu0 %v1219_v8 }
  0x66   : > { %735 = vmatpush1.bf16.msra.mxu1 %v1221_v9 }
  0x67   : > { %788 = vmatpush1.bf16.msra.mxu0 %v1222_v10 }
  0x69   : > { %737 = vmatmul.mubr.bf16.vlgmr.msra.gmra.mrb[0].mxu1 %v1223_v11 }
  0x6a   : > { %790 = vmatmul.mubr.bf16.vlgmr.msra.gmra.mrb[0].mxu0 %v1226_v12  ;;  %746 = vmatprep.mubr.bf16.mxu1 %v1229_v13 }
  0x6b   : > { %799 = vmatprep.mubr.bf16.mxu0 %v1231_v14 }
  0x71   : > { %747 = vmatmul.mubr.bf16.gmra.mrb[4].mxu1 %v1233_v15 }
  0x72   : > { %800 = vmatmul.mubr.bf16.gmra.mrb[4].mxu0 %v1234_v16 }
 0x13c   : > { %v738_v17 = vpop.f32.mrb[0].mxu1 }
 0x13d   : > { %v791_v19 = vpop.f32.mrb[0].mxu0  ;;  %v740_v21 = vpop.f32.mrb[1].mxu1 }
 0x13e   : > { %v792_v20 = vadd.f32 %v791_v19, %v738_v17  ;;  %v793_v23 = vpop.f32.mrb[1].mxu0  ;;  %v742_v25 = vpop.f32.mrb[2].mxu1 }
 0x13f   : > { %v794_v24 = vadd.f32 %v793_v23, %v740_v21  ;;  %v795_v27 = vpop.f32.mrb[2].mxu0  ;;  %v744_v30 = vpop.f32.mrb[3].mxu1 }
 0x140   : > { %v810_v28 = vadd.f32 %v792_v20, %v264_v18  ;;  %v796_v29 = vadd.f32 %v795_v27, %v742_v25  ;;  %v797_v32 = vpop.f32.mrb[3].mxu0 }
 0x141   : > { %v811_v33 = vadd.f32 %v794_v24, %v265_v22  ;;  %v798_v34 = vadd.f32 %v797_v32, %v744_v30 }
 0x142   : > { %818 = vst [vmem:[#allocation2] sm:$0xff] %v810_v28  ;;  %v812_v35 = vadd.f32 %v796_v29, %v266_v26 }
 0x143   : > { %819 = vst [vmem:[#allocation2 + $0x8] sm:$0xff] %v811_v33  ;;  %v813_v36 = vadd.f32 %v798_v34, %v267_v31 }
 0x144   : > { %820 = vst [vmem:[#allocation2 + $0x10] sm:$0xff] %v812_v35  ;;  %v748_v37 = vpop.f32.mrb[4].mxu1 }
 0x145   : > { %821 = vst [vmem:[#allocation2 + $0x18] sm:$0xff] %v813_v36  ;;  %v801_v39 = vpop.f32.mrb[4].mxu0  ;;  %v750_v41 = vpop.f32.mrb[5].mxu1 }
 0x146   : > { %v802_v40 = vadd.f32 %v801_v39, %v748_v37  ;;  %v803_v43 = vpop.f32.mrb[5].mxu0  ;;  %v752_v45 = vpop.f32.mrb[6].mxu1 }
 0x147   : > { %v804_v44 = vadd.f32 %v803_v43, %v750_v41  ;;  %v805_v47 = vpop.f32.mrb[6].mxu0  ;;  %v754_v50 = vpop.f32.mrb[7].mxu1  ;;  %829 = sbr.rel (%p1063_p11) target bundleno = 348 (0x15c), region = 63 }
 0x148   : > { %v814_v48 = vadd.f32 %v802_v40, %v268_v38  ;;  %v806_v49 = vadd.f32 %v805_v47, %v752_v45  ;;  %v807_v52 = vpop.f32.mrb[7].mxu0 }
 0x149   : > { %v815_v53 = vadd.f32 %v804_v44, %v269_v42  ;;  %v808_v54 = vadd.f32 %v807_v52, %v754_v50  ;;  %v830_v60 = vld [vmem:[#allocation2] sm:$0xff] (!%p1063_p11) }
 0x14a   : > { %822 = vst [vmem:[#allocation2 + $0x20] sm:$0xff] %v814_v48  ;;  %v816_v55 = vadd.f32 %v806_v49, %v270_v46  ;;  %v831_v61 = vld [vmem:[#allocation2 + $0x8] sm:$0xff] (!%p1063_p11)  ;;  %v850_v8 = vadd.f32 (!%p1063_p11), %v843_v3, %v830_v60 }
 0x14b   : > { %823 = vst [vmem:[#allocation2 + $0x28] sm:$0xff] %v815_v53  ;;  %v817_v56 = vadd.f32 %v808_v54, %v271_v51  ;;  %v832_v0 = vld [vmem:[#allocation2 + $0x10] sm:$0xff] (!%p1063_p11)  ;;  %v851_v9 = vadd.f32 (!%p1063_p11), %v847_v4, %v831_v61 }
 0x14c   : > { %824 = vst [vmem:[#allocation2 + $0x30] sm:$0xff] %v816_v55  ;;  %v833_v1 = vld [vmem:[#allocation2 + $0x18] sm:$0xff] (!%p1063_p11)  ;;  %v852_v10 = vadd.f32 (!%p1063_p11), %v843_v3, %v832_v0  ;;  %v858_v16 = vmax.f32 (!%p1063_p11), %v850_v8, 0.0 }
 0x14d   : > { %825 = vst [vmem:[#allocation2 + $0x38] sm:$0xff] %v817_v56  ;;  %v853_v11 = vadd.f32 (!%p1063_p11), %v847_v4, %v833_v1  ;;  %v859_v17 = vmax.f32 (!%p1063_p11), %v851_v9, 0.0 }
 0x14e   : > { %v860_v18 = vmax.f32 %v852_v10, 0.0 }
 0x14f   : > { %v861_v19 = vmax.f32 %v853_v11, 0.0  ;;  %v1074_v24 = vpack.c.bf16 %v859_v17, %v858_v16 }
 0x151   : > { %v834_v2 = vld [vmem:[#allocation2 + $0x20] sm:$0xff]  ;;  %v1075_v25 = vpack.c.bf16 %v861_v19, %v860_v18  ;;  %890 = vst [vmem:[%s1457_s3] sm:$0xff] %v1074_v24 }
 0x152   : > { %v835_v5 = vld [vmem:[#allocation2 + $0x28] sm:$0xff]  ;;  %v854_v12 = vadd.f32 %v843_v3, %v834_v2 }
 0x153   : > { %v836_v6 = vld [vmem:[#allocation2 + $0x30] sm:$0xff]  ;;  %v855_v13 = vadd.f32 %v847_v4, %v835_v5  ;;  %891 = vst [vmem:[%s1457_s3 + $0x8] sm:$0xff] %v1075_v25 }
 0x154   : > { %v837_v7 = vld [vmem:[#allocation2 + $0x38] sm:$0xff]  ;;  %v856_v14 = vadd.f32 %v843_v3, %v836_v6  ;;  %v862_v20 = vmax.f32 %v854_v12, 0.0 }
 0x155   : > { %v857_v15 = vadd.f32 %v847_v4, %v837_v7  ;;  %v863_v21 = vmax.f32 %v855_v13, 0.0 }
 0x156   : > { %v864_v22 = vmax.f32 %v856_v14, 0.0 }
 0x157   : > { %v865_v23 = vmax.f32 %v857_v15, 0.0  ;;  %v1076_v26 = vpack.c.bf16 %v863_v21, %v862_v20 }
 0x159   : > { %v1077_v27 = vpack.c.bf16 %v865_v23, %v864_v22  ;;  %892 = vst [vmem:[%s1457_s3 + $0x10] sm:$0xff] %v1076_v26 }
 0x15b   : > { %893 = vst [vmem:[%s1457_s3 + $0x18] sm:$0xff] %v1077_v27 }
 0x15c PF: > { %s13_s16 = sadd.s32 1, %s1273_s16   ;;  %s1458_s12 = smov %s1261_s13 }
 0x15d   : > { %p10_p12 = scmp.ge.s32.totalorder %s13_s16, 11   ;;  %s1459_s13 = smov %s1331_s20 }
 0x15e   : > { %s1460_s14 = smov %s1269_s15  ;;  %s1461_s15 = smov %s1463_s17 }
 0x15f   :  { %12 = sbr.rel (!%p10_p12) target bundleno = 3 (0x3), region = 101 }

// kernel: _lambda_.13
= control target key start
LH: loop header
LB: loop body
LE: loop exit
PB: predicated region body
PF: predicated region fallthrough
CT: control target
= control target key end

     0   :  { %s1075_s12 = smov 0   ;;  %s1077_s13 = smov 0   ;;  %s1195_s0 = inlined_call_operand.vmem [shape: bf16[32,4608], index: 0, kind: input, shape index: {}]   ;;  %s1196_s1 = inlined_call_operand.vmem [shape: bf16[4608,128], index: 1, kind: input, shape index: {}]   ;;  %s1197_s2 = inlined_call_operand.vmem [shape: f32[1,128], index: 2, kind: input, shape index: {}]   ;;  %s1198_s3 = inlined_call_operand.vmem [shape: bf16[32,128], index: 3, kind: output, shape index: {}]  }
   0x1   :  { %s1079_s14 = smov 0   ;;  %s1081_s15 = smov 0  }
   0x2   :  { %s1083_s16 = smov 0  }
   0x3 LB: > { %s22_s17 = sadd.s32 1, %s1048_s15  ;;  %p41_p1 = scmp.ne.s32.totalorder %s1040_s13, %s1036_s12  ;;  %s1052_s16 = sphi %s1083_s16, %s13_s16   ;;  %s1048_s15 = sphi %s1081_s15, %s1202_s15   ;;  %s1044_s14 = sphi %s1079_s14, %s1201_s14   ;;  %s1040_s13 = sphi %s1077_s13, %s1200_s13   ;;  %s1036_s12 = sphi %s1075_s12, %s1199_s12  }
   0x4   : > { %p23_p0 = scmp.ge.s32.totalorder %s22_s17, 9  ;;  %p42_p2 = scmp.eq.s32.totalorder %s1052_s16, 0 }
   0x5   : > { %s34_s19 = sadd.s32 1, %s1040_s13  ;;  %p798_p5 = scmp.ge.s32.totalorder %s1052_s16, 9 }
   0x6   : > { %s1204_s17 = smov (%p23_p0, %s22_s17), 0  ;;  %p43_p3 = por %p42_p2, %p41_p1 }
   0x7   : > { %s30_s18 = ssub.s32 %s1048_s15, %s1204_s17  ;;  %143 = sbr.rel (%p798_p5) target bundleno = 22 (0x16), region = 20 }
   0x8   : > { %p32_p4 = scmp.eq.s32.totalorder %s30_s18, 0 }
   0xa   : > { %s1110_s20 = scalar_select %p32_p4, %s1040_s13, %s34_s19  }
   0xe   : > { %146 = sbr.rel (!%p43_p3) target bundleno = 22 (0x16), region = 24  ;;  %s148_s21 = sand.u32 (%p43_p3), 1, %s1040_s13  }
   0xf   : > { %s857_s22 = sshll.u32 (%p43_p3), %s1048_s15, 4  ;;  %s799_s23 = sshll.u32 (%p43_p3), %s148_s21, 6 }
  0x10   : > { %s156_s26 = scalar_lea.vmem (%p43_p3), %s1195_s0, %s857_s22  ;;  %s150_s27 = scalar_lea.vmem (%p43_p3), [#allocation3], %s799_s23 }
  0x11   : > { %v169_v0 = vld [vmem:[%s156_s26] sm:$0xff] (%p43_p3)  ;;  %v171_v1 = vld [vmem:[%s156_s26 + $0x8] sm:$0xff] (%p43_p3)  ;;  %v173_v2 = vld [vmem:[%s156_s26 + $0x90] sm:$0xff] (%p43_p3) }
  0x12   : > { %170 = vst [vmem:[%s150_s27] sm:$0xff] (%p43_p3), %v169_v0  ;;  %172 = vst [vmem:[%s150_s27 + $0x8] sm:$0xff] (%p43_p3), %v171_v1  ;;  %v175_v3 = vld [vmem:[%s156_s26 + $0x98] sm:$0xff] (%p43_p3)  ;;  %v177_v4 = vld [vmem:[%s156_s26 + $0x120] sm:$0xff] (%p43_p3) }
  0x13   : > { %174 = vst [vmem:[%s150_s27 + $0x10] sm:$0xff] (%p43_p3), %v173_v2  ;;  %v179_v5 = vld [vmem:[%s156_s26 + $0x128] sm:$0xff] (%p43_p3)  ;;  %176 = vst [vmem:[%s150_s27 + $0x18] sm:$0xff] (%p43_p3), %v175_v3  ;;  %v181_v6 = vld [vmem:[%s156_s26 + $0x1b0] sm:$0xff] (%p43_p3) }
  0x14   : > { %178 = vst [vmem:[%s150_s27 + $0x20] sm:$0xff] (%p43_p3), %v177_v4  ;;  %180 = vst [vmem:[%s150_s27 + $0x28] sm:$0xff] (%p43_p3), %v179_v5  ;;  %v183_v7 = vld [vmem:[%s156_s26 + $0x1b8] sm:$0xff] (%p43_p3) }
  0x15   : > { %182 = vst [vmem:[%s150_s27 + $0x30] sm:$0xff] %v181_v6  ;;  %184 = vst [vmem:[%s150_s27 + $0x38] sm:$0xff] %v183_v7 }
  0x16 PF: > { %p802_p6 = scmp.ge.s32.totalorder %s1052_s16, 1  ;;  %p198_p7 = scmp.lt.s32.totalorder %s1052_s16, 10 }
  0x18   : > { %p199_p8 = pnand %p802_p6, %p198_p7 }
  0x19   : > { %s205_s28 = sand.u32 (!%p199_p8), 1, %s1036_s12   ;;  %s804_s29 = sshll.u32 (!%p199_p8), %s1044_s14, 6 }
  0x1a   : > { %202 = sbr.rel (%p199_p8) target bundleno = 319 (0x13f), region = 51  ;;  %s803_s30 = sshll.u32 (!%p199_p8), %s205_s28, 6 }
  0x1b   : > { %p236_p9 = scmp.lt.s32.totalorder (!%p199_p8), %s804_s29, 575  ;;  %s1127_s8 = scalar_lea.vmem (!%p199_p8), [#allocation3], %s803_s30 }
  0x1c   : > { %p806_p10 = scmp.ne.s32.totalorder (!%p199_p8), %s1044_s14, 0 }
  0x21   : > { %s1206_s29 = smov (!%p236_p9, %s804_s29), 575  ;;  %251 = sbr.rel (%p806_p10) target bundleno = 40 (0x28), region = 59 }
  0x22   : > { %s805_s4 = sshll.u32 %s1206_s29, 2  ;;  %v1054_v8 = vmov (!%p806_p10), 0.0  }
  0x23   : > { %s1125_s7 = scalar_lea.vmem %s1196_s1, %s805_s4  ;;  %252 = vst [vmem:[#allocation2] sm:$0xff] (!%p806_p10), %v1054_v8  ;;  %253 = vst [vmem:[#allocation2 + $0x8] sm:$0xff] (!%p806_p10), %v1054_v8 }
  0x24   : > { %254 = vst [vmem:[#allocation2 + $0x10] sm:$0xff] (!%p806_p10), %v1054_v8  ;;  %255 = vst [vmem:[#allocation2 + $0x18] sm:$0xff] (!%p806_p10), %v1054_v8 }
  0x28 PF: > { %v970_v9 = vld [vmem:[%s1125_s7 + $0x40] sm:$0xff]   ;;  %v974_v13 = vld [vmem:[%s1125_s7 + $0x48] sm:$0xff]   ;;  %v978_v17 = vld [vmem:[%s1125_s7 + $0x50] sm:$0xff]   ;;  %p847_p11 = scmp.ne.s32.totalorder %s1044_s14, 8 }
  0x29   : > { %v971_v10 = vld [vmem:[%s1125_s7 + $0xc0] sm:$0xff]   ;;  %873 = vmatprep.subr.bf16.mxu0 %v970_v9  ;;  %v975_v14 = vld [vmem:[%s1125_s7 + $0xc8] sm:$0xff]   ;;  %v979_v18 = vld [vmem:[%s1125_s7 + $0xd0] sm:$0xff]  }
  0x2a   : > { %v972_v11 = vld [vmem:[%s1125_s7] sm:$0xff]   ;;  %901 = vmatprep.subr.bf16.mxu1 %v971_v10  ;;  %v976_v15 = vld [vmem:[%s1125_s7 + $0x8] sm:$0xff]   ;;  %v980_v19 = vld [vmem:[%s1125_s7 + $0x10] sm:$0xff]  }
  0x2b   : > { %v973_v12 = vld [vmem:[%s1125_s7 + $0x80] sm:$0xff]   ;;  %874 = vmatpush3.bf16.msra.mxu0 %v972_v11  ;;  %v977_v16 = vld [vmem:[%s1125_s7 + $0x88] sm:$0xff]   ;;  %v981_v20 = vld [vmem:[%s1125_s7 + $0x90] sm:$0xff]  }
  0x2c   : > { %902 = vmatpush3.bf16.msra.mxu1 %v973_v12  ;;  %875 = vmatprep.subr.bf16.mxu0 %v974_v13  ;;  %v982_v21 = vld [vmem:[%s1125_s7 + $0x58] sm:$0xff]   ;;  %v986_v25 = vld [vmem:[%s1125_s7 + $0x60] sm:$0xff]   ;;  %v990_v29 = vld [vmem:[%s1125_s7 + $0x68] sm:$0xff]  }
  0x2d   : > { %903 = vmatprep.subr.bf16.mxu1 %v975_v14  ;;  %v983_v22 = vld [vmem:[%s1125_s7 + $0xd8] sm:$0xff]   ;;  %v987_v26 = vld [vmem:[%s1125_s7 + $0xe0] sm:$0xff]   ;;  %v991_v30 = vld [vmem:[%s1125_s7 + $0xe8] sm:$0xff]  }
  0x2e   : > { %v984_v23 = vld [vmem:[%s1125_s7 + $0x18] sm:$0xff]   ;;  %v988_v27 = vld [vmem:[%s1125_s7 + $0x20] sm:$0xff]   ;;  %v992_v31 = vld [vmem:[%s1125_s7 + $0x28] sm:$0xff]  }
  0x2f   : > { %876 = vmatpush3.bf16.msra.mxu0 %v976_v15  ;;  %v985_v24 = vld [vmem:[%s1125_s7 + $0x98] sm:$0xff]   ;;  %v989_v28 = vld [vmem:[%s1125_s7 + $0xa0] sm:$0xff]   ;;  %v993_v32 = vld [vmem:[%s1125_s7 + $0xa8] sm:$0xff]  }
  0x30   : > { %904 = vmatpush3.bf16.msra.mxu1 %v977_v16  ;;  %877 = vmatprep.subr.bf16.mxu0 %v978_v17  ;;  %v994_v33 = vld [vmem:[%s1125_s7 + $0x70] sm:$0xff]   ;;  %v998_v37 = vld [vmem:[%s1125_s7 + $0x78] sm:$0xff]   ;;  %v256_v58 = vld [vmem:[#allocation2] sm:$0xff] }
  0x31   : > { %905 = vmatprep.subr.bf16.mxu1 %v979_v18  ;;  %v995_v34 = vld [vmem:[%s1125_s7 + $0xf0] sm:$0xff]   ;;  %v999_v38 = vld [vmem:[%s1125_s7 + $0xf8] sm:$0xff]   ;;  %v257_v63 = vld [vmem:[#allocation2 + $0x8] sm:$0xff] }
  0x32   : > { %v996_v35 = vld [vmem:[%s1125_s7 + $0x30] sm:$0xff]   ;;  %v1000_v39 = vld [vmem:[%s1125_s7 + $0x38] sm:$0xff]  }
  0x33   : > { %878 = vmatpush3.bf16.msra.mxu0 %v980_v19  ;;  %v997_v36 = vld [vmem:[%s1125_s7 + $0xb0] sm:$0xff]   ;;  %v1001_v40 = vld [vmem:[%s1125_s7 + $0xb8] sm:$0xff]  }
  0x34   : > { %906 = vmatpush3.bf16.msra.mxu1 %v981_v20  ;;  %879 = vmatprep.subr.bf16.mxu0 %v982_v21  ;;  %v1002_v41 = vld [vmem:[%s1127_s8] ss:$16 sps:$4 sm:$0xff]   ;;  %v1004_v42 = vld [vmem:[%s1127_s8 + $0x4] ss:$16 sps:$4 sm:$0xff]   ;;  %v1005_v43 = vld [vmem:[%s1127_s8 + $0x8] ss:$16 sps:$4 sm:$0xff]  }
  0x35   : > { %907 = vmatprep.subr.bf16.mxu1 %v983_v22  ;;  %v1007_v44 = vld [vmem:[%s1127_s8 + $0xc] ss:$16 sps:$4 sm:$0xff]   ;;  %596 = vmatprep.mubr.bf16.mxu0 %v1004_v42  ;;  %v1008_v45 = vld [vmem:[%s1127_s8 + $0x24] ss:$16 sps:$4 sm:$0xff]   ;;  %v1012_v47 = vld [vmem:[%s1127_s8 + $0x20] ss:$16 sps:$4 sm:$0xff]  }
  0x36   : > { %645 = vmatprep.mubr.bf16.mxu1 %v1007_v44  ;;  %v1010_v46 = vld [vmem:[%s1127_s8 + $0x2c] ss:$16 sps:$4 sm:$0xff]   ;;  %v1013_v48 = vld [vmem:[%s1127_s8 + $0x28] ss:$16 sps:$4 sm:$0xff]   ;;  %v258_v12 = vld [vmem:[#allocation2 + $0x10] sm:$0xff] }
  0x37   : > { %880 = vmatpush3.bf16.msra.mxu0 %v984_v23  ;;  %v259_v17 = vld [vmem:[#allocation2 + $0x18] sm:$0xff]  ;;  %v848_v23 = vld [vmem:[%s1197_s2] ss:$0 sm:$0xff] (!%p847_p11) }
  0x38   : > { %908 = vmatpush3.bf16.msra.mxu1 %v985_v24  ;;  %881 = vmatprep.subr.bf16.mxu0 %v986_v25 }
  0x39   : > { %909 = vmatprep.subr.bf16.mxu1 %v987_v26 }
  0x3b   : > { %882 = vmatpush3.bf16.msra.mxu0 %v988_v27 }
  0x3c   : > { %910 = vmatpush3.bf16.msra.mxu1 %v989_v28  ;;  %883 = vmatprep.subr.bf16.mxu0 %v990_v29 }
  0x3d   : > { %911 = vmatprep.subr.bf16.mxu1 %v991_v30 }
  0x3f   : > { %884 = vmatpush3.bf16.msra.mxu0 %v992_v31 }
  0x40   : > { %912 = vmatpush3.bf16.msra.mxu1 %v993_v32  ;;  %885 = vmatprep.subr.bf16.mxu0 %v994_v33 }
  0x41   : > { %913 = vmatprep.subr.bf16.mxu1 %v995_v34 }
  0x43   : > { %886 = vmatpush3.bf16.msra.mxu0 %v996_v35 }
  0x44   : > { %914 = vmatpush3.bf16.msra.mxu1 %v997_v36  ;;  %887 = vmatprep.subr.bf16.mxu0 %v998_v37 }
  0x45   : > { %915 = vmatprep.subr.bf16.mxu1 %v999_v38 }
  0x47   : > { %888 = vmatpush3.bf16.msra.mxu0 %v1000_v39 }
  0x48   : > { %916 = vmatpush3.bf16.msra.mxu1 %v1001_v40 }
  0x4a   : > { %597 = vmatmul.mubr.bf16.vlgmr.msra.gmra.mrb[0].mxu0 %v1002_v41 }
  0x4b   : > { %646 = vmatmul.mubr.bf16.vlgmr.msra.gmra.mrb[0].mxu1 %v1005_v43  ;;  %604 = vmatprep.mubr.bf16.mxu0 %v1008_v45 }
  0x4c   : > { %653 = vmatprep.mubr.bf16.mxu1 %v1010_v46 }
  0x52   : > { %605 = vmatmul.mubr.bf16.gmra.mrb[4].mxu0 %v1012_v47 }
  0x53   : > { %654 = vmatmul.mubr.bf16.gmra.mrb[4].mxu1 %v1013_v48 }
 0x11d   : > { %v889_v49 = vpop.f32.mrb[0].mxu0 }
 0x11e   : > { %v917_v50 = vpop.f32.mrb[0].mxu1  ;;  %v890_v51 = vpop.f32.mrb[1].mxu0 }
 0x11f   : > { %v891_v52 = vadd.f32 %v890_v51, %v889_v49  ;;  %v918_v53 = vpop.f32.mrb[1].mxu1  ;;  %v892_v54 = vpop.f32.mrb[2].mxu0 }
 0x120   : > { %v919_v55 = vadd.f32 %v918_v53, %v917_v50  ;;  %v920_v56 = vpop.f32.mrb[2].mxu1  ;;  %v893_v57 = vpop.f32.mrb[3].mxu0 }
 0x121   : > { %v894_v59 = vadd.f32 %v893_v57, %v892_v54  ;;  %v921_v60 = vpop.f32.mrb[3].mxu1 }
 0x122   : > { %v648_v61 = vadd.f32 %v919_v55, %v891_v52  ;;  %v922_v62 = vadd.f32 %v921_v60, %v920_v56 }
 0x124   : > { %v662_v0 = vadd.f32 %v648_v61, %v256_v58  ;;  %v651_v1 = vadd.f32 %v922_v62, %v894_v59 }
 0x125   : > { %v895_v2 = vpop.f32.mrb[4].mxu0 }
 0x126   : > { %666 = vst [vmem:[#allocation2] sm:$0xff] %v662_v0  ;;  %v663_v3 = vadd.f32 %v651_v1, %v257_v63  ;;  %v923_v4 = vpop.f32.mrb[4].mxu1  ;;  %v896_v5 = vpop.f32.mrb[5].mxu0 }
 0x127   : > { %v897_v6 = vadd.f32 %v896_v5, %v895_v2  ;;  %v924_v7 = vpop.f32.mrb[5].mxu1  ;;  %v898_v8 = vpop.f32.mrb[6].mxu0 }
 0x128   : > { %667 = vst [vmem:[#allocation2 + $0x8] sm:$0xff] %v663_v3  ;;  %v925_v9 = vadd.f32 %v924_v7, %v923_v4  ;;  %v926_v10 = vpop.f32.mrb[6].mxu1  ;;  %v899_v11 = vpop.f32.mrb[7].mxu0 }
 0x129   : > { %v900_v13 = vadd.f32 %v899_v11, %v898_v8  ;;  %v927_v14 = vpop.f32.mrb[7].mxu1 }
 0x12a   : > { %v656_v15 = vadd.f32 %v925_v9, %v897_v6  ;;  %v928_v16 = vadd.f32 %v927_v14, %v926_v10  ;;  %673 = sbr.rel (%p847_p11) target bundleno = 319 (0x13f), region = 63 }
 0x12c   : > { %v664_v18 = vadd.f32 %v656_v15, %v258_v12  ;;  %v659_v19 = vadd.f32 %v928_v16, %v900_v13 }
 0x12d   : > { %v674_v21 = vld [vmem:[#allocation2] sm:$0xff] (!%p847_p11) }
 0x12e   : > { %668 = vst [vmem:[#allocation2 + $0x10] sm:$0xff] %v664_v18  ;;  %v665_v20 = vadd.f32 %v659_v19, %v259_v17  ;;  %v685_v24 = vadd.f32 (!%p847_p11), %v848_v23, %v674_v21 }
 0x12f   : > { %v675_v22 = vld [vmem:[#allocation2 + $0x8] sm:$0xff] (!%p847_p11) }
 0x130   : > { %669 = vst [vmem:[#allocation2 + $0x18] sm:$0xff] %v665_v20  ;;  %v686_v25 = vadd.f32 (!%p847_p11), %v848_v23, %v675_v22  ;;  %v689_v30 = vmax.f32 (!%p847_p11), %v685_v24, 0.0 }
 0x132   : > { %v690_v31 = vmax.f32 %v686_v25, 0.0 }
 0x134   : > { %v865_v34 = vpack.c.bf16 %v690_v31, %v689_v30 }
 0x135   : > { %v676_v26 = vld [vmem:[#allocation2 + $0x10] sm:$0xff] }
 0x136   : > { %v687_v28 = vadd.f32 %v848_v23, %v676_v26  ;;  %866 = vst [vmem:[%s1198_s3] sm:$0xff] %v865_v34  }
 0x137   : > { %v677_v27 = vld [vmem:[#allocation2 + $0x18] sm:$0xff] }
 0x138   : > { %v688_v29 = vadd.f32 %v848_v23, %v677_v27  ;;  %v691_v32 = vmax.f32 %v687_v28, 0.0 }
 0x13a   : > { %v692_v33 = vmax.f32 %v688_v29, 0.0 }
 0x13c   : > { %v870_v35 = vpack.c.bf16 %v692_v33, %v691_v32 }
 0x13e   : > { %872 = vst [vmem:[%s1198_s3 + $0x8] sm:$0xff] %v870_v35  }
 0x13f PF: > { %s13_s16 = sadd.s32 1, %s1052_s16   ;;  %s1199_s12 = smov %s1040_s13 }
 0x140   : > { %p10_p12 = scmp.ge.s32.totalorder %s13_s16, 11   ;;  %s1200_s13 = smov %s1110_s20 }
 0x141   : > { %s1201_s14 = smov %s1048_s15  ;;  %s1202_s15 = smov %s1204_s17 }
 0x142   :  { %12 = sbr.rel (!%p10_p12) target bundleno = 3 (0x3), region = 101 }

// kernel: _lambda_.14
= control target key start
LH: loop header
LB: loop body
LE: loop exit
PB: predicated region body
PF: predicated region fallthrough
CT: control target
= control target key end

     0   :  { %vm19_vm0 = vcmask 523264   ;;  %vm3096_vm1 = vcmask 519168   ;;  %s5585_s1 = inlined_call_operand.vmem [shape: bf16[2304,64], index: 1, kind: input, shape index: {}]   ;;  %s5586_s0 = inlined_call_operand.vmem [shape: bf16[128,2304], index: 0, kind: input, shape index: {}]   ;;  %s5587_s2 = inlined_call_operand.vmem [shape: f32[1,64], index: 2, kind: input, shape index: {}]   ;;  %s5588_s3 = inlined_call_operand.vmem [shape: bf16[128,64], index: 3, kind: output, shape index: {}]  }
   0x1   :  { %v4031_v0 = vld [vmem:[%s5585_s1 + $0x40] sm:$0xff]   ;;  %v4033_v2 = vld [vmem:[%s5585_s1 + $0x48] sm:$0xff]   ;;  %v4035_v4 = vld [vmem:[%s5585_s1 + $0x50] sm:$0xff]  }
   0x2   :  { %v4032_v1 = vld [vmem:[%s5585_s1] sm:$0xff]   ;;  %3438 = vmatprep.subr.bf16.mxu0 %v4031_v0  ;;  %4014 = vmatprep.subr.bf16.mxu1 %v4031_v0  ;;  %v4034_v3 = vld [vmem:[%s5585_s1 + $0x8] sm:$0xff]   ;;  %v4036_v5 = vld [vmem:[%s5585_s1 + $0x10] sm:$0xff]  }
   0x3   :  { %3439 = vmatpush3.bf16.msra.mxu0 %v4032_v1  ;;  %4022 = vmatpush3.bf16.msra.mxu1 %v4032_v1  ;;  %v4037_v6 = vld [vmem:[%s5585_s1 + $0x58] sm:$0xff]   ;;  %v4039_v8 = vld [vmem:[%s5585_s1 + $0x60] sm:$0xff]   ;;  %v4041_v10 = vld [vmem:[%s5585_s1 + $0x68] sm:$0xff]  }
   0x4   :  { %3440 = vmatprep.subr.bf16.mxu0 %v4033_v2  ;;  %4015 = vmatprep.subr.bf16.mxu1 %v4033_v2  ;;  %v4038_v7 = vld [vmem:[%s5585_s1 + $0x18] sm:$0xff]   ;;  %v4040_v9 = vld [vmem:[%s5585_s1 + $0x20] sm:$0xff]   ;;  %v4042_v13 = vld [vmem:[%s5585_s1 + $0x28] sm:$0xff]  }
   0x5   :  { %v4049_v11 = vld [vmem:[%s5586_s0 + $0x4] ss:$72 sps:$4 sm:$0xff]   ;;  %v4043_v14 = vld [vmem:[%s5585_s1 + $0x70] sm:$0xff]   ;;  %v4045_v16 = vld [vmem:[%s5585_s1 + $0x78] sm:$0xff]  }
   0x6   :  { %v4052_v12 = vld [vmem:[%s5586_s0 + $0x244] ss:$72 sps:$4 sm:$0xff]   ;;  %2100 = vmatprep.mubr.bf16.mxu0 %v4049_v11  ;;  %v4044_v15 = vld [vmem:[%s5585_s1 + $0x30] sm:$0xff]   ;;  %v4046_v17 = vld [vmem:[%s5585_s1 + $0x38] sm:$0xff]  }
   0x7   :  { %3441 = vmatpush3.bf16.msra.mxu0 %v4034_v3  ;;  %4023 = vmatpush3.bf16.msra.mxu1 %v4034_v3  ;;  %v4047_v18 = vld [vmem:[%s5586_s0] ss:$72 sps:$4 sm:$0xff]   ;;  %v4061_v26 = vld [vmem:[%s5586_s0 + $0x94] ss:$72 sps:$4 sm:$0xff]   ;;  %v4065_v31 = vld [vmem:[%s5586_s0 + $0x90] ss:$72 sps:$4 sm:$0xff]  }
   0x8   :  { %3442 = vmatprep.subr.bf16.mxu0 %v4035_v4  ;;  %4016 = vmatprep.subr.bf16.mxu1 %v4035_v4  ;;  %v4050_v19 = vld [vmem:[%s5586_s0 + $0x240] ss:$72 sps:$4 sm:$0xff]   ;;  %v4063_v28 = vld [vmem:[%s5586_s0 + $0x2d4] ss:$72 sps:$4 sm:$0xff]   ;;  %v4066_v33 = vld [vmem:[%s5586_s0 + $0x2d0] ss:$72 sps:$4 sm:$0xff]  }
   0x9   :  { %2132 = vmatprep.mubr.bf16.mxu1 %v4052_v12  ;;  %v4053_v20 = vld [vmem:[%s5585_s1 + $0xc0] sm:$0xff]   ;;  %v4057_v24 = vld [vmem:[%s5585_s1 + $0xc8] sm:$0xff]   ;;  %v4067_v30 = vld [vmem:[%s5585_s1 + $0xd0] sm:$0xff]  }
   0xa   :  { %v4054_v21 = vld [vmem:[%s5585_s1 + $0x140] sm:$0xff]   ;;  %v4058_v25 = vld [vmem:[%s5585_s1 + $0x148] sm:$0xff]   ;;  %v4068_v32 = vld [vmem:[%s5585_s1 + $0x150] sm:$0xff]  }
   0xb   :  { %3443 = vmatpush3.bf16.msra.mxu0 %v4036_v5  ;;  %4024 = vmatpush3.bf16.msra.mxu1 %v4036_v5  ;;  %v4055_v22 = vld [vmem:[%s5585_s1 + $0x80] sm:$0xff]   ;;  %v4059_v27 = vld [vmem:[%s5585_s1 + $0x88] sm:$0xff]   ;;  %v4069_v34 = vld [vmem:[%s5585_s1 + $0x90] sm:$0xff]  }
   0xc   :  { %3444 = vmatprep.subr.bf16.mxu0 %v4037_v6  ;;  %4017 = vmatprep.subr.bf16.mxu1 %v4037_v6  ;;  %v4056_v23 = vld [vmem:[%s5585_s1 + $0x100] sm:$0xff]   ;;  %v4060_v29 = vld [vmem:[%s5585_s1 + $0x108] sm:$0xff]   ;;  %v4070_v35 = vld [vmem:[%s5585_s1 + $0x110] sm:$0xff]  }
   0xd   :  { %v4071_v36 = vld [vmem:[%s5585_s1 + $0xd8] sm:$0xff]   ;;  %v4075_v38 = vld [vmem:[%s5586_s0 + $0x124] ss:$72 sps:$4 sm:$0xff]   ;;  %v4079_v43 = vld [vmem:[%s5586_s0 + $0x120] ss:$72 sps:$4 sm:$0xff]  }
   0xe   :  { %v4072_v37 = vld [vmem:[%s5585_s1 + $0x158] sm:$0xff]   ;;  %v4077_v40 = vld [vmem:[%s5586_s0 + $0x364] ss:$72 sps:$4 sm:$0xff]   ;;  %v4080_v44 = vld [vmem:[%s5586_s0 + $0x360] ss:$72 sps:$4 sm:$0xff]  }
   0xf   :  { %3445 = vmatpush3.bf16.msra.mxu0 %v4038_v7  ;;  %4025 = vmatpush3.bf16.msra.mxu1 %v4038_v7  ;;  %v4073_v39 = vld [vmem:[%s5585_s1 + $0x98] sm:$0xff]   ;;  %v4081_v42 = vld [vmem:[%s5585_s1 + $0xe0] sm:$0xff]   ;;  %v4085_v48 = vld [vmem:[%s5585_s1 + $0xe8] sm:$0xff]  }
  0x10   :  { %3446 = vmatprep.subr.bf16.mxu0 %v4039_v8  ;;  %4018 = vmatprep.subr.bf16.mxu1 %v4039_v8  ;;  %v4074_v41 = vld [vmem:[%s5585_s1 + $0x118] sm:$0xff]   ;;  %v4082_v45 = vld [vmem:[%s5585_s1 + $0x160] sm:$0xff]   ;;  %v4086_v49 = vld [vmem:[%s5585_s1 + $0x168] sm:$0xff]  }
  0x11   :  { %v4083_v46 = vld [vmem:[%s5585_s1 + $0xa0] sm:$0xff]   ;;  %v4089_v50 = vld [vmem:[%s5586_s0 + $0x1b4] ss:$72 sps:$4 sm:$0xff]   ;;  %v4087_v52 = vld [vmem:[%s5585_s1 + $0xa8] sm:$0xff]  }
  0x12   :  { %v4084_v47 = vld [vmem:[%s5585_s1 + $0x120] sm:$0xff]   ;;  %v4091_v51 = vld [vmem:[%s5586_s0 + $0x3f4] ss:$72 sps:$4 sm:$0xff]   ;;  %v4088_v53 = vld [vmem:[%s5585_s1 + $0x128] sm:$0xff]  }
  0x13   :  { %3447 = vmatpush3.bf16.msra.mxu0 %v4040_v9  ;;  %4026 = vmatpush3.bf16.msra.mxu1 %v4040_v9  ;;  %v4095_v54 = vld [vmem:[%s5585_s1 + $0xf0] sm:$0xff]   ;;  %v4099_v60 = vld [vmem:[%s5585_s1 + $0xf8] sm:$0xff]   ;;  %v4109_v4 = vld [vmem:[%s5585_s1 + $0x1c0] sm:$0xff]  }
  0x14   :  { %3448 = vmatprep.subr.bf16.mxu0 %v4041_v10  ;;  %4019 = vmatprep.subr.bf16.mxu1 %v4041_v10  ;;  %v4093_v55 = vld [vmem:[%s5586_s0 + $0x1b0] ss:$72 sps:$4 sm:$0xff]   ;;  %v4105_v0 = vld [vmem:[%s5586_s0 + $0xc] ss:$72 sps:$4 sm:$0xff]   ;;  %v4110_v5 = vld [vmem:[%s5585_s1 + $0x180] sm:$0xff]  }
  0x15   :  { %v4094_v56 = vld [vmem:[%s5586_s0 + $0x3f0] ss:$72 sps:$4 sm:$0xff]   ;;  %v4108_v3 = vld [vmem:[%s5586_s0 + $0x14] ss:$72 sps:$4 sm:$0xff]   ;;  %v4111_v6 = vld [vmem:[%s5585_s1 + $0x240] sm:$0xff]  }
  0x16   :  { %v4096_v57 = vld [vmem:[%s5585_s1 + $0x170] sm:$0xff]   ;;  %v4100_v61 = vld [vmem:[%s5585_s1 + $0x178] sm:$0xff]   ;;  %v4112_v7 = vld [vmem:[%s5585_s1 + $0x200] sm:$0xff]  }
  0x17   :  { %3449 = vmatpush3.bf16.msra.mxu0 %v4042_v13  ;;  %4027 = vmatpush3.bf16.msra.mxu1 %v4042_v13  ;;  %v4097_v58 = vld [vmem:[%s5585_s1 + $0xb0] sm:$0xff]   ;;  %v4101_v62 = vld [vmem:[%s5585_s1 + $0xb8] sm:$0xff]   ;;  %v4115_v9 = vld [vmem:[%s5586_s0 + $0xa4] ss:$72 sps:$4 sm:$0xff]  }
  0x18   :  { %3450 = vmatprep.subr.bf16.mxu0 %v4043_v14  ;;  %4020 = vmatprep.subr.bf16.mxu1 %v4043_v14  ;;  %v4098_v59 = vld [vmem:[%s5585_s1 + $0x130] sm:$0xff]   ;;  %v4102_v63 = vld [vmem:[%s5585_s1 + $0x138] sm:$0xff]   ;;  %v4118_v11 = vld [vmem:[%s5586_s0 + $0xa0] ss:$72 sps:$4 sm:$0xff]  }
  0x19   :  { %v4103_v1 = vld [vmem:[%s5586_s0 + $0x8] ss:$72 sps:$4 sm:$0xff]   ;;  %v4113_v8 = vld [vmem:[%s5586_s0 + $0x9c] ss:$72 sps:$4 sm:$0xff]   ;;  %v4117_v10 = vld [vmem:[%s5586_s0 + $0x98] ss:$72 sps:$4 sm:$0xff]  }
  0x1a   :  { %v4106_v2 = vld [vmem:[%s5586_s0 + $0x10] ss:$72 sps:$4 sm:$0xff]   ;;  %v4119_v12 = vld [vmem:[%s5585_s1 + $0x1c8] sm:$0xff]  }
  0x1b   :  { %3451 = vmatpush3.bf16.msra.mxu0 %v4044_v15  ;;  %4028 = vmatpush3.bf16.msra.mxu1 %v4044_v15  ;;  %v4120_v13 = vld [vmem:[%s5585_s1 + $0x188] sm:$0xff]  }
  0x1c   :  { %3452 = vmatprep.subr.bf16.mxu0 %v4045_v16  ;;  %4021 = vmatprep.subr.bf16.mxu1 %v4045_v16  ;;  %v4121_v14 = vld [vmem:[%s5585_s1 + $0x248] sm:$0xff]  }
  0x1d   :  { %v4122_v15 = vld [vmem:[%s5585_s1 + $0x208] sm:$0xff]  }
  0x1e   :  { %v4123_v16 = vld [vmem:[%s5586_s0 + $0x12c] ss:$72 sps:$4 sm:$0xff]  }
  0x1f   :  { %3453 = vmatpush3.bf16.msra.mxu0 %v4046_v17  ;;  %4029 = vmatpush3.bf16.msra.mxu1 %v4046_v17  ;;  %v4125_v17 = vld [vmem:[%s5586_s0 + $0x134] ss:$72 sps:$4 sm:$0xff]  }
  0x20   :  { %3502 = vmatprep.subr.bf16.mxu1 %v4053_v20  ;;  %3566 = vmatprep.subr.bf16.mxu0 %v4054_v21  ;;  %v4128_v20 = vld [vmem:[%s5586_s0 + $0x130] ss:$72 sps:$4 sm:$0xff]  }
  0x21   :  { %v4130_v21 = vld [vmem:[%s5585_s1 + $0x190] sm:$0xff]  }
  0x22   :  { %2101 = vmatmul.mubr.bf16.vlgmr.msra.gmra.mrb[0].mxu0 %v4047_v18  ;;  %2133 = vmatmul.mubr.bf16.vlgmr.msra.gmra.mrb[0].mxu1 %v4050_v19  ;;  %v4129_v18 = vld [vmem:[%s5585_s1 + $0x1d0] sm:$0xff]  }
  0x23   :  { %3503 = vmatpush3.bf16.msra.mxu1 %v4055_v22  ;;  %3567 = vmatpush3.bf16.msra.mxu0 %v4056_v23  ;;  %v4127_v19 = vld [vmem:[%s5586_s0 + $0x128] ss:$72 sps:$4 sm:$0xff]  }
  0x24   :  { %3504 = vmatprep.subr.bf16.mxu1 %v4057_v24  ;;  %3568 = vmatprep.subr.bf16.mxu0 %v4058_v25  ;;  %v4131_v22 = vld [vmem:[%s5585_s1 + $0x250] sm:$0xff]   ;;  %v4133_v24 = vld [vmem:[%s5586_s0 + $0x1bc] ss:$72 sps:$4 sm:$0xff]  }
  0x25   :  { %2108 = vmatprep.mubr.bf16.mxu0 %v4061_v26  ;;  %2140 = vmatprep.mubr.bf16.mxu1 %v4063_v28  ;;  %v4132_v23 = vld [vmem:[%s5585_s1 + $0x210] sm:$0xff]   ;;  %v4135_v25 = vld [vmem:[%s5586_s0 + $0x1c4] ss:$72 sps:$4 sm:$0xff]   ;;  %v4139_v26 = vld [vmem:[%s5585_s1 + $0x1d8] sm:$0xff]  }
  0x26   :  { %v4137_v28 = vld [vmem:[%s5586_s0 + $0x1b8] ss:$72 sps:$4 sm:$0xff]  }
  0x27   :  { %3505 = vmatpush3.bf16.msra.mxu1 %v4059_v27  ;;  %3569 = vmatpush3.bf16.msra.mxu0 %v4060_v29  ;;  %v4140_v27 = vld [vmem:[%s5585_s1 + $0x198] sm:$0xff]  }
  0x28   :  { %3506 = vmatprep.subr.bf16.mxu1 %v4067_v30  ;;  %3570 = vmatprep.subr.bf16.mxu0 %v4068_v32  ;;  %v4141_v29 = vld [vmem:[%s5585_s1 + $0x258] sm:$0xff]   ;;  %v4143_v32 = vld [vmem:[%s5586_s0 + $0x24c] ss:$72 sps:$4 sm:$0xff]  }
  0x29   :  { %v4142_v30 = vld [vmem:[%s5585_s1 + $0x218] sm:$0xff]  }
  0x2a   :  { %2109 = vmatmul.mubr.bf16.gmra.mrb[4].mxu0 %v4065_v31  ;;  %2141 = vmatmul.mubr.bf16.gmra.mrb[4].mxu1 %v4066_v33  ;;  %v4138_v31 = vld [vmem:[%s5586_s0 + $0x1c0] ss:$72 sps:$4 sm:$0xff]   ;;  %v4145_v33 = vld [vmem:[%s5586_s0 + $0x254] ss:$72 sps:$4 sm:$0xff]  }
  0x2b   :  { %3507 = vmatpush3.bf16.msra.mxu1 %v4069_v34  ;;  %3571 = vmatpush3.bf16.msra.mxu0 %v4070_v35  ;;  %v4149_v34 = vld [vmem:[%s5585_s1 + $0x1e0] sm:$0xff]  }
  0x2c   :  { %3508 = vmatprep.subr.bf16.mxu1 %v4071_v36  ;;  %3572 = vmatprep.subr.bf16.mxu0 %v4072_v37  ;;  %v4150_v35 = vld [vmem:[%s5585_s1 + $0x1a0] sm:$0xff]  }
  0x2d   :  { %2116 = vmatprep.mubr.bf16.mxu0 %v4075_v38  ;;  %2148 = vmatprep.mubr.bf16.mxu1 %v4077_v40  ;;  %v4151_v36 = vld [vmem:[%s5585_s1 + $0x260] sm:$0xff]   ;;  %v4147_v38 = vld [vmem:[%s5586_s0 + $0x248] ss:$72 sps:$4 sm:$0xff]  }
  0x2e   :  { %v4152_v37 = vld [vmem:[%s5585_s1 + $0x220] sm:$0xff]  }
  0x2f   :  { %3509 = vmatpush3.bf16.msra.mxu1 %v4073_v39  ;;  %3573 = vmatpush3.bf16.msra.mxu0 %v4074_v41  ;;  %v4148_v39 = vld [vmem:[%s5586_s0 + $0x250] ss:$72 sps:$4 sm:$0xff]   ;;  %v4153_v40 = vld [vmem:[%s5586_s0 + $0x2dc] ss:$72 sps:$4 sm:$0xff]  }
  0x30   :  { %3510 = vmatprep.subr.bf16.mxu1 %v4081_v42  ;;  %3574 = vmatprep.subr.bf16.mxu0 %v4082_v45  ;;  %v4155_v41 = vld [vmem:[%s5586_s0 + $0x2e4] ss:$72 sps:$4 sm:$0xff]  }
  0x31   :  { %v4159_v42 = vld [vmem:[%s5585_s1 + $0x1e8] sm:$0xff]  }
  0x32   :  { %2117 = vmatmul.mubr.bf16.gmra.mrb[8].mxu0 %v4079_v43  ;;  %2149 = vmatmul.mubr.bf16.gmra.mrb[8].mxu1 %v4080_v44  ;;  %v4160_v43 = vld [vmem:[%s5585_s1 + $0x1a8] sm:$0xff]  }
  0x33   :  { %3511 = vmatpush3.bf16.msra.mxu1 %v4083_v46  ;;  %3575 = vmatpush3.bf16.msra.mxu0 %v4084_v47  ;;  %v4161_v44 = vld [vmem:[%s5585_s1 + $0x268] sm:$0xff]   ;;  %v4157_v46 = vld [vmem:[%s5586_s0 + $0x2d8] ss:$72 sps:$4 sm:$0xff]  }
  0x34   :  { %3512 = vmatprep.subr.bf16.mxu1 %v4085_v48  ;;  %3576 = vmatprep.subr.bf16.mxu0 %v4086_v49  ;;  %v4162_v45 = vld [vmem:[%s5585_s1 + $0x228] sm:$0xff]   ;;  %v4165_v49 = vld [vmem:[%s5586_s0 + $0x374] ss:$72 sps:$4 sm:$0xff]  }
  0x35   :  { %2124 = vmatprep.mubr.bf16.mxu0 %v4089_v50  ;;  %2156 = vmatprep.mubr.bf16.mxu1 %v4091_v51  ;;  %v4158_v47 = vld [vmem:[%s5586_s0 + $0x2e0] ss:$72 sps:$4 sm:$0xff]   ;;  %v4163_v48 = vld [vmem:[%s5586_s0 + $0x36c] ss:$72 sps:$4 sm:$0xff]  }
  0x36   :  { %v4169_v50 = vld [vmem:[%s5585_s1 + $0x1f0] sm:$0xff]  }
  0x37   :  { %3513 = vmatpush3.bf16.msra.mxu1 %v4087_v52  ;;  %3577 = vmatpush3.bf16.msra.mxu0 %v4088_v53  ;;  %v4170_v51 = vld [vmem:[%s5585_s1 + $0x1b0] sm:$0xff]  }
  0x38   :  { %3514 = vmatprep.subr.bf16.mxu1 %v4095_v54  ;;  %3578 = vmatprep.subr.bf16.mxu0 %v4096_v57  ;;  %v4171_v52 = vld [vmem:[%s5585_s1 + $0x270] sm:$0xff]   ;;  %v4173_v57 = vld [vmem:[%s5586_s0 + $0x3fc] ss:$72 sps:$4 sm:$0xff]  }
  0x39   :  { %v4172_v53 = vld [vmem:[%s5585_s1 + $0x230] sm:$0xff]  }
  0x3a   :  { %2125 = vmatmul.mubr.bf16.gmra.mrb[12].mxu0 %v4093_v55  ;;  %2157 = vmatmul.mubr.bf16.gmra.mrb[12].mxu1 %v4094_v56  ;;  %v4167_v54 = vld [vmem:[%s5586_s0 + $0x368] ss:$72 sps:$4 sm:$0xff]   ;;  %v4179_v56 = vld [vmem:[%s5585_s1 + $0x1f8] sm:$0xff]  }
  0x3b   :  { %3515 = vmatpush3.bf16.msra.mxu1 %v4097_v58  ;;  %3579 = vmatpush3.bf16.msra.mxu0 %v4098_v59  ;;  %v4168_v55 = vld [vmem:[%s5586_s0 + $0x370] ss:$72 sps:$4 sm:$0xff]   ;;  %v4175_v58 = vld [vmem:[%s5586_s0 + $0x404] ss:$72 sps:$4 sm:$0xff]  }
  0x3c   :  { %3516 = vmatprep.subr.bf16.mxu1 %v4099_v60  ;;  %3580 = vmatprep.subr.bf16.mxu0 %v4100_v61  ;;  %v4180_v59 = vld [vmem:[%s5585_s1 + $0x1b8] sm:$0xff]  }
  0x3d   :  { %2197 = vmatprep.mubr.bf16.mxu1 %v4105_v0  ;;  %2294 = vmatprep.mubr.bf16.mxu0 %v4108_v3  ;;  %v4181_v60 = vld [vmem:[%s5585_s1 + $0x278] sm:$0xff]   ;;  %v4178_v0 = vld [vmem:[%s5586_s0 + $0x400] ss:$72 sps:$4 sm:$0xff]   ;;  %v4188_v3 = vld [vmem:[%s5586_s0 + $0x24] ss:$72 sps:$4 sm:$0xff]  }
  0x3e   :  { %v4182_v61 = vld [vmem:[%s5585_s1 + $0x238] sm:$0xff]  }
  0x3f   :  { %3517 = vmatpush3.bf16.msra.mxu1 %v4101_v62  ;;  %3581 = vmatpush3.bf16.msra.mxu0 %v4102_v63  ;;  %v4189_v62 = vld [vmem:[%s5585_s1 + $0x2c0] sm:$0xff]  }
  0x40   :  { %3630 = vmatprep.subr.bf16.mxu1 %v4109_v4  ;;  %3694 = vmatprep.subr.bf16.mxu0 %v4111_v6  ;;  %v4177_v63 = vld [vmem:[%s5586_s0 + $0x3f8] ss:$72 sps:$4 sm:$0xff]  }
  0x41   :  { %v4183_v4 = vld [vmem:[%s5586_s0 + $0x18] ss:$72 sps:$4 sm:$0xff]  }
  0x42   :  { %2198 = vmatmul.mubr.bf16.vlgmr.msra.gmra.mrb[16].mxu1 %v4103_v1  ;;  %2295 = vmatmul.mubr.bf16.vlgmr.msra.gmra.mrb[16].mxu0 %v4106_v2  ;;  %v4191_v1 = vld [vmem:[%s5585_s1 + $0x340] sm:$0xff]  }
  0x43   :  { %3631 = vmatpush3.bf16.msra.mxu1 %v4110_v5  ;;  %3695 = vmatpush3.bf16.msra.mxu0 %v4112_v7  ;;  %v4185_v2 = vld [vmem:[%s5586_s0 + $0x1c] ss:$72 sps:$4 sm:$0xff]   ;;  %v4186_v5 = vld [vmem:[%s5586_s0 + $0x20] ss:$72 sps:$4 sm:$0xff]  }
  0x44   :  { %2205 = vmatprep.mubr.bf16.mxu1 %v4113_v8  ;;  %2302 = vmatprep.mubr.bf16.mxu0 %v4115_v9  ;;  %v4190_v6 = vld [vmem:[%s5585_s1 + $0x280] sm:$0xff]   ;;  %v4193_v8 = vld [vmem:[%s5586_s0 + $0xac] ss:$72 sps:$4 sm:$0xff]  }
  0x45   :  { %3632 = vmatprep.subr.bf16.mxu1 %v4119_v12  ;;  %3696 = vmatprep.subr.bf16.mxu0 %v4121_v14  ;;  %v4192_v7 = vld [vmem:[%s5585_s1 + $0x300] sm:$0xff]   ;;  %v4195_v9 = vld [vmem:[%s5586_s0 + $0xb4] ss:$72 sps:$4 sm:$0xff]   ;;  %v4201_v12 = vld [vmem:[%s5585_s1 + $0x348] sm:$0xff]  }
  0x46   :  { %v4209_v14 = vld [vmem:[%s5585_s1 + $0x2d0] sm:$0xff]  }
  0x47   :  { %3633 = vmatpush3.bf16.msra.mxu1 %v4120_v13  ;;  %3697 = vmatpush3.bf16.msra.mxu0 %v4122_v15  ;;  %v4202_v13 = vld [vmem:[%s5585_s1 + $0x308] sm:$0xff]  }
  0x48   :  { %3634 = vmatprep.subr.bf16.mxu1 %v4129_v18  ;;  %3698 = vmatprep.subr.bf16.mxu0 %v4131_v22  ;;  %v4197_v15 = vld [vmem:[%s5586_s0 + $0xa8] ss:$72 sps:$4 sm:$0xff]   ;;  %v4203_v18 = vld [vmem:[%s5586_s0 + $0x13c] ss:$72 sps:$4 sm:$0xff]  }
  0x49   :  { %v4219_v22 = vld [vmem:[%s5585_s1 + $0x2d8] sm:$0xff]  }
  0x4a   :  { %2206 = vmatmul.mubr.bf16.gmra.mrb[20].mxu1 %v4117_v10  ;;  %2303 = vmatmul.mubr.bf16.gmra.mrb[20].mxu0 %v4118_v11  ;;  %v4199_v10 = vld [vmem:[%s5585_s1 + $0x2c8] sm:$0xff]  }
  0x4b   :  { %2213 = vmatprep.mubr.bf16.mxu1 %v4123_v16  ;;  %2310 = vmatprep.mubr.bf16.mxu0 %v4125_v17  ;;  %v4200_v11 = vld [vmem:[%s5585_s1 + $0x288] sm:$0xff]   ;;  %v4198_v16 = vld [vmem:[%s5586_s0 + $0xb0] ss:$72 sps:$4 sm:$0xff]  }
  0x4c   :  { %3635 = vmatpush3.bf16.msra.mxu1 %v4130_v21  ;;  %3699 = vmatpush3.bf16.msra.mxu0 %v4132_v23  ;;  %v4211_v17 = vld [vmem:[%s5585_s1 + $0x350] sm:$0xff]   ;;  %v4221_v23 = vld [vmem:[%s5585_s1 + $0x358] sm:$0xff]  }
  0x4d   :  { %3636 = vmatprep.subr.bf16.mxu1 %v4139_v26  ;;  %3700 = vmatprep.subr.bf16.mxu0 %v4141_v29  ;;  %v4212_v21 = vld [vmem:[%s5585_s1 + $0x310] sm:$0xff]   ;;  %v4220_v26 = vld [vmem:[%s5585_s1 + $0x298] sm:$0xff]  }
  0x4e   :  { %v4215_v29 = vld [vmem:[%s5586_s0 + $0x1d4] ss:$72 sps:$4 sm:$0xff]  }
  0x50   :  { %3637 = vmatpush3.bf16.msra.mxu1 %v4140_v27  ;;  %3701 = vmatpush3.bf16.msra.mxu0 %v4142_v30  ;;  %v4222_v27 = vld [vmem:[%s5585_s1 + $0x318] sm:$0xff]   ;;  %v4229_v30 = vld [vmem:[%s5585_s1 + $0x2e0] sm:$0xff]  }
  0x51   :  { %3638 = vmatprep.subr.bf16.mxu1 %v4149_v34  ;;  %3702 = vmatprep.subr.bf16.mxu0 %v4151_v36  ;;  %v4217_v34 = vld [vmem:[%s5586_s0 + $0x1c8] ss:$72 sps:$4 sm:$0xff]  }
  0x52   :  { %2214 = vmatmul.mubr.bf16.gmra.mrb[24].mxu1 %v4127_v19  ;;  %2311 = vmatmul.mubr.bf16.gmra.mrb[24].mxu0 %v4128_v20  ;;  %v4205_v19 = vld [vmem:[%s5586_s0 + $0x144] ss:$72 sps:$4 sm:$0xff]   ;;  %v4210_v20 = vld [vmem:[%s5585_s1 + $0x290] sm:$0xff]  }
  0x53   :  { %2221 = vmatprep.mubr.bf16.mxu1 %v4133_v24  ;;  %2318 = vmatprep.mubr.bf16.mxu0 %v4135_v25  ;;  %v4207_v24 = vld [vmem:[%s5586_s0 + $0x138] ss:$72 sps:$4 sm:$0xff]   ;;  %v4239_v36 = vld [vmem:[%s5585_s1 + $0x2e8] sm:$0xff]  }
  0x54   :  { %3639 = vmatpush3.bf16.msra.mxu1 %v4150_v35  ;;  %3703 = vmatpush3.bf16.msra.mxu0 %v4152_v37  ;;  %v4208_v25 = vld [vmem:[%s5586_s0 + $0x140] ss:$72 sps:$4 sm:$0xff]   ;;  %v4218_v35 = vld [vmem:[%s5586_s0 + $0x1d0] ss:$72 sps:$4 sm:$0xff]   ;;  %v4223_v37 = vld [vmem:[%s5586_s0 + $0x25c] ss:$72 sps:$4 sm:$0xff]  }
  0x55   :  { %3640 = vmatprep.subr.bf16.mxu1 %v4159_v42  ;;  %3704 = vmatprep.subr.bf16.mxu0 %v4161_v44  ;;  %v4249_v42 = vld [vmem:[%s5585_s1 + $0x2f0] sm:$0xff]   ;;  %v4228_v44 = vld [vmem:[%s5586_s0 + $0x260] ss:$72 sps:$4 sm:$0xff]  }
  0x58   :  { %3641 = vmatpush3.bf16.msra.mxu1 %v4160_v43  ;;  %3705 = vmatpush3.bf16.msra.mxu0 %v4162_v45  ;;  %v4227_v43 = vld [vmem:[%s5586_s0 + $0x258] ss:$72 sps:$4 sm:$0xff]   ;;  %v4250_v45 = vld [vmem:[%s5585_s1 + $0x2b0] sm:$0xff]  }
  0x59   :  { %3642 = vmatprep.subr.bf16.mxu1 %v4169_v50  ;;  %3706 = vmatprep.subr.bf16.mxu0 %v4171_v52  ;;  %v4259_v50 = vld [vmem:[%s5585_s1 + $0x2f8] sm:$0xff]  }
  0x5a   :  { %2222 = vmatmul.mubr.bf16.gmra.mrb[28].mxu1 %v4137_v28  ;;  %2319 = vmatmul.mubr.bf16.gmra.mrb[28].mxu0 %v4138_v31  ;;  %v4213_v28 = vld [vmem:[%s5586_s0 + $0x1cc] ss:$72 sps:$4 sm:$0xff]   ;;  %v4230_v31 = vld [vmem:[%s5585_s1 + $0x2a0] sm:$0xff]   ;;  %v4261_v52 = vld [vmem:[%s5585_s1 + $0x378] sm:$0xff]  }
  0x5b   :  { %2229 = vmatprep.mubr.bf16.mxu1 %v4143_v32  ;;  %2326 = vmatprep.mubr.bf16.mxu0 %v4145_v33  ;;  %v4231_v32 = vld [vmem:[%s5585_s1 + $0x360] sm:$0xff]  }
  0x5c   :  { %3643 = vmatpush3.bf16.msra.mxu1 %v4170_v51  ;;  %3707 = vmatpush3.bf16.msra.mxu0 %v4172_v53  ;;  %v4232_v33 = vld [vmem:[%s5585_s1 + $0x320] sm:$0xff]   ;;  %v4260_v51 = vld [vmem:[%s5585_s1 + $0x2b8] sm:$0xff]  }
  0x5d   :  { %3644 = vmatprep.subr.bf16.mxu1 %v4179_v56  ;;  %3708 = vmatprep.subr.bf16.mxu0 %v4181_v60  ;;  %v4262_v53 = vld [vmem:[%s5585_s1 + $0x338] sm:$0xff]  }
  0x5e   :  { %v4243_v56 = vld [vmem:[%s5586_s0 + $0x37c] ss:$72 sps:$4 sm:$0xff]   ;;  %v4247_v60 = vld [vmem:[%s5586_s0 + $0x378] ss:$72 sps:$4 sm:$0xff]  }
  0x60   :  { %3645 = vmatpush3.bf16.msra.mxu1 %v4180_v59  ;;  %3709 = vmatpush3.bf16.msra.mxu0 %v4182_v61  ;;  %v4271_v59 = vld [vmem:[%s5585_s1 + $0x440] sm:$0xff]  }
  0x61   :  { %3758 = vmatprep.subr.bf16.mxu1 %v4189_v62  ;;  %3822 = vmatprep.subr.bf16.mxu0 %v4191_v1  ;;  %v4248_v61 = vld [vmem:[%s5586_s0 + $0x380] ss:$72 sps:$4 sm:$0xff]   ;;  %v4253_v62 = vld [vmem:[%s5586_s0 + $0x40c] ss:$72 sps:$4 sm:$0xff]   ;;  %v4258_v1 = vld [vmem:[%s5586_s0 + $0x410] ss:$72 sps:$4 sm:$0xff]  }
  0x62   :  { %2230 = vmatmul.mubr.bf16.gmra.mrb[32].mxu1 %v4147_v38  ;;  %2327 = vmatmul.mubr.bf16.gmra.mrb[32].mxu0 %v4148_v39  ;;  %v4225_v38 = vld [vmem:[%s5586_s0 + $0x264] ss:$72 sps:$4 sm:$0xff]  }
  0x63   :  { %2237 = vmatprep.mubr.bf16.mxu1 %v4153_v40  ;;  %2334 = vmatprep.mubr.bf16.mxu0 %v4155_v41  ;;  %v4240_v39 = vld [vmem:[%s5585_s1 + $0x2a8] sm:$0xff]  }
  0x64   :  { %v4241_v40 = vld [vmem:[%s5585_s1 + $0x368] sm:$0xff]  }
  0x65   :  { %v4242_v41 = vld [vmem:[%s5585_s1 + $0x328] sm:$0xff]  }
  0x6a   :  { %2238 = vmatmul.mubr.bf16.gmra.mrb[36].mxu1 %v4157_v46  ;;  %2335 = vmatmul.mubr.bf16.gmra.mrb[36].mxu0 %v4158_v47  ;;  %v4233_v46 = vld [vmem:[%s5586_s0 + $0x2ec] ss:$72 sps:$4 sm:$0xff]  }
  0x6b   :  { %2245 = vmatprep.mubr.bf16.mxu1 %v4163_v48  ;;  %2342 = vmatprep.mubr.bf16.mxu0 %v4165_v49  ;;  %v4251_v47 = vld [vmem:[%s5585_s1 + $0x370] sm:$0xff]  }
  0x6c   :  { %v4252_v48 = vld [vmem:[%s5585_s1 + $0x330] sm:$0xff]  }
  0x6d   :  { %v4235_v49 = vld [vmem:[%s5586_s0 + $0x2f4] ss:$72 sps:$4 sm:$0xff]  }
  0x72   :  { %2246 = vmatmul.mubr.bf16.gmra.mrb[40].mxu1 %v4167_v54  ;;  %2343 = vmatmul.mubr.bf16.gmra.mrb[40].mxu0 %v4168_v55  ;;  %v4237_v54 = vld [vmem:[%s5586_s0 + $0x2e8] ss:$72 sps:$4 sm:$0xff]  }
  0x73   :  { %2253 = vmatprep.mubr.bf16.mxu1 %v4173_v57  ;;  %2350 = vmatprep.mubr.bf16.mxu0 %v4175_v58  ;;  %v4238_v55 = vld [vmem:[%s5586_s0 + $0x2f0] ss:$72 sps:$4 sm:$0xff]   ;;  %v4245_v57 = vld [vmem:[%s5586_s0 + $0x384] ss:$72 sps:$4 sm:$0xff]  }
  0x74   :  { %v4269_v58 = vld [vmem:[%s5585_s1 + $0x3c0] sm:$0xff]  }
  0x7a   :  { %2254 = vmatmul.mubr.bf16.gmra.mrb[44].mxu1 %v4177_v63  ;;  %2351 = vmatmul.mubr.bf16.gmra.mrb[44].mxu0 %v4178_v0  ;;  %v4255_v63 = vld [vmem:[%s5586_s0 + $0x414] ss:$72 sps:$4 sm:$0xff]   ;;  %v4257_v0 = vld [vmem:[%s5586_s0 + $0x408] ss:$72 sps:$4 sm:$0xff]  }
  0x7b   :  { %2391 = vmatprep.mubr.bf16.mxu1 %v4185_v2  ;;  %2488 = vmatprep.mubr.bf16.mxu0 %v4188_v3  ;;  %v4265_v2 = vld [vmem:[%s5586_s0 + $0x2c] ss:$72 sps:$4 sm:$0xff]  }
  0x7c   :  { %v4268_v3 = vld [vmem:[%s5586_s0 + $0x34] ss:$72 sps:$4 sm:$0xff]  }
  0x82   :  { %2392 = vmatmul.mubr.bf16.vlgmr.msra.gmra.mrb[48].mxu1 %v4183_v4  ;;  %2489 = vmatmul.mubr.bf16.vlgmr.msra.gmra.mrb[48].mxu0 %v4186_v5  ;;  %v4263_v4 = vld [vmem:[%s5586_s0 + $0x28] ss:$72 sps:$4 sm:$0xff]  }
  0x83   :  { %3759 = vmatpush3.bf16.msra.mxu1 %v4190_v6  ;;  %3823 = vmatpush3.bf16.msra.mxu0 %v4192_v7  ;;  %v4266_v5 = vld [vmem:[%s5586_s0 + $0x30] ss:$72 sps:$4 sm:$0xff]   ;;  %v4270_v6 = vld [vmem:[%s5585_s1 + $0x380] sm:$0xff]  }
  0x84   :  { %2399 = vmatprep.mubr.bf16.mxu1 %v4193_v8  ;;  %2496 = vmatprep.mubr.bf16.mxu0 %v4195_v9  ;;  %v4272_v7 = vld [vmem:[%s5585_s1 + $0x400] sm:$0xff]  }
  0x85   :  { %3760 = vmatprep.subr.bf16.mxu1 %v4199_v10  ;;  %3824 = vmatprep.subr.bf16.mxu0 %v4201_v12  ;;  %v4273_v8 = vld [vmem:[%s5586_s0 + $0xbc] ss:$72 sps:$4 sm:$0xff]   ;;  %v4279_v10 = vld [vmem:[%s5585_s1 + $0x3c8] sm:$0xff]  }
  0x86   :  { %v4275_v9 = vld [vmem:[%s5586_s0 + $0xc4] ss:$72 sps:$4 sm:$0xff]  }
  0x87   :  { %3761 = vmatpush3.bf16.msra.mxu1 %v4200_v11  ;;  %3825 = vmatpush3.bf16.msra.mxu0 %v4202_v13  ;;  %v4281_v11 = vld [vmem:[%s5585_s1 + $0x448] sm:$0xff]  }
  0x88   :  { %3762 = vmatprep.subr.bf16.mxu1 %v4209_v14  ;;  %3826 = vmatprep.subr.bf16.mxu0 %v4211_v17  ;;  %v4280_v12 = vld [vmem:[%s5585_s1 + $0x388] sm:$0xff]   ;;  %v4289_v14 = vld [vmem:[%s5585_s1 + $0x3d0] sm:$0xff]  }
  0x89   :  { %v4282_v13 = vld [vmem:[%s5585_s1 + $0x408] sm:$0xff]   ;;  %v4291_v17 = vld [vmem:[%s5585_s1 + $0x450] sm:$0xff]  }
  0x8a   :  { %2400 = vmatmul.mubr.bf16.gmra.mrb[52].mxu1 %v4197_v15  ;;  %2497 = vmatmul.mubr.bf16.gmra.mrb[52].mxu0 %v4198_v16  ;;  %v4277_v15 = vld [vmem:[%s5586_s0 + $0xb8] ss:$72 sps:$4 sm:$0xff]  }
  0x8b   :  { %2407 = vmatprep.mubr.bf16.mxu1 %v4203_v18  ;;  %2504 = vmatprep.mubr.bf16.mxu0 %v4205_v19  ;;  %v4278_v16 = vld [vmem:[%s5586_s0 + $0xc0] ss:$72 sps:$4 sm:$0xff]   ;;  %v4283_v18 = vld [vmem:[%s5586_s0 + $0x14c] ss:$72 sps:$4 sm:$0xff]  }
  0x8c   :  { %3763 = vmatpush3.bf16.msra.mxu1 %v4210_v20  ;;  %3827 = vmatpush3.bf16.msra.mxu0 %v4212_v21  ;;  %v4285_v19 = vld [vmem:[%s5586_s0 + $0x154] ss:$72 sps:$4 sm:$0xff]  }
  0x8d   :  { %3764 = vmatprep.subr.bf16.mxu1 %v4219_v22  ;;  %3828 = vmatprep.subr.bf16.mxu0 %v4221_v23  ;;  %v4290_v20 = vld [vmem:[%s5585_s1 + $0x390] sm:$0xff]   ;;  %v4299_v22 = vld [vmem:[%s5585_s1 + $0x3d8] sm:$0xff]  }
  0x8e   :  { %v4292_v21 = vld [vmem:[%s5585_s1 + $0x410] sm:$0xff]   ;;  %v4301_v23 = vld [vmem:[%s5585_s1 + $0x458] sm:$0xff]  }
  0x90   :  { %3765 = vmatpush3.bf16.msra.mxu1 %v4220_v26  ;;  %3829 = vmatpush3.bf16.msra.mxu0 %v4222_v27  ;;  %v4287_v26 = vld [vmem:[%s5586_s0 + $0x148] ss:$72 sps:$4 sm:$0xff]  }
  0x91   :  { %3766 = vmatprep.subr.bf16.mxu1 %v4229_v30  ;;  %3830 = vmatprep.subr.bf16.mxu0 %v4231_v32  ;;  %v4288_v27 = vld [vmem:[%s5586_s0 + $0x150] ss:$72 sps:$4 sm:$0xff]   ;;  %v4293_v30 = vld [vmem:[%s5586_s0 + $0x1dc] ss:$72 sps:$4 sm:$0xff]  }
  0x92   :  { %2408 = vmatmul.mubr.bf16.gmra.mrb[56].mxu1 %v4207_v24  ;;  %2505 = vmatmul.mubr.bf16.gmra.mrb[56].mxu0 %v4208_v25  ;;  %v4300_v24 = vld [vmem:[%s5585_s1 + $0x398] sm:$0xff]   ;;  %v4310_v32 = vld [vmem:[%s5585_s1 + $0x3a0] sm:$0xff]  }
  0x93   :  { %2415 = vmatprep.mubr.bf16.mxu1 %v4213_v28  ;;  %2512 = vmatprep.mubr.bf16.mxu0 %v4215_v29  ;;  %v4302_v25 = vld [vmem:[%s5585_s1 + $0x418] sm:$0xff]   ;;  %v4309_v28 = vld [vmem:[%s5585_s1 + $0x3e0] sm:$0xff]  }
  0x94   :  { %3767 = vmatpush3.bf16.msra.mxu1 %v4230_v31  ;;  %3831 = vmatpush3.bf16.msra.mxu0 %v4232_v33  ;;  %v4311_v29 = vld [vmem:[%s5585_s1 + $0x460] sm:$0xff]  }
  0x95   :  { %3768 = vmatprep.subr.bf16.mxu1 %v4239_v36  ;;  %3832 = vmatprep.subr.bf16.mxu0 %v4241_v40  ;;  %v4295_v31 = vld [vmem:[%s5586_s0 + $0x1e4] ss:$72 sps:$4 sm:$0xff]   ;;  %v4329_v40 = vld [vmem:[%s5585_s1 + $0x3f0] sm:$0xff]  }
  0x96   :  { %v4312_v33 = vld [vmem:[%s5585_s1 + $0x420] sm:$0xff]   ;;  %v4320_v36 = vld [vmem:[%s5585_s1 + $0x3a8] sm:$0xff]  }
  0x98   :  { %3769 = vmatpush3.bf16.msra.mxu1 %v4240_v39  ;;  %3833 = vmatpush3.bf16.msra.mxu0 %v4242_v41  ;;  %v4298_v39 = vld [vmem:[%s5586_s0 + $0x1e0] ss:$72 sps:$4 sm:$0xff]   ;;  %v4303_v41 = vld [vmem:[%s5586_s0 + $0x26c] ss:$72 sps:$4 sm:$0xff]  }
  0x99   :  { %3770 = vmatprep.subr.bf16.mxu1 %v4249_v42  ;;  %3834 = vmatprep.subr.bf16.mxu0 %v4251_v47  ;;  %v4331_v42 = vld [vmem:[%s5585_s1 + $0x470] sm:$0xff]   ;;  %v4341_v47 = vld [vmem:[%s5585_s1 + $0x478] sm:$0xff]  }
  0x9a   :  { %2416 = vmatmul.mubr.bf16.gmra.mrb[60].mxu1 %v4217_v34  ;;  %2513 = vmatmul.mubr.bf16.gmra.mrb[60].mxu0 %v4218_v35  ;;  %v4319_v34 = vld [vmem:[%s5585_s1 + $0x3e8] sm:$0xff]  }
  0x9b   :  { %2423 = vmatprep.mubr.bf16.mxu1 %v4223_v37  ;;  %2520 = vmatprep.mubr.bf16.mxu0 %v4225_v38  ;;  %v4321_v35 = vld [vmem:[%s5585_s1 + $0x468] sm:$0xff]   ;;  %v4297_v38 = vld [vmem:[%s5586_s0 + $0x1d8] ss:$72 sps:$4 sm:$0xff]  }
  0x9c   :  { %3771 = vmatpush3.bf16.msra.mxu1 %v4250_v45  ;;  %3835 = vmatpush3.bf16.msra.mxu0 %v4252_v48  ;;  %v4322_v37 = vld [vmem:[%s5585_s1 + $0x428] sm:$0xff]   ;;  %v4332_v45 = vld [vmem:[%s5585_s1 + $0x430] sm:$0xff]   ;;  %v4340_v48 = vld [vmem:[%s5585_s1 + $0x3b8] sm:$0xff]  }
  0x9d   :  { %3772 = vmatprep.subr.bf16.mxu1 %v4259_v50  ;;  %3836 = vmatprep.subr.bf16.mxu0 %v4261_v52  ;;  %v4307_v50 = vld [vmem:[%s5586_s0 + $0x268] ss:$72 sps:$4 sm:$0xff]   ;;  %v4313_v52 = vld [vmem:[%s5586_s0 + $0x2fc] ss:$72 sps:$4 sm:$0xff]  }
  0xa0   :  { %3773 = vmatpush3.bf16.msra.mxu1 %v4260_v51  ;;  %3837 = vmatpush3.bf16.msra.mxu0 %v4262_v53  ;;  %v4308_v51 = vld [vmem:[%s5586_s0 + $0x270] ss:$72 sps:$4 sm:$0xff]   ;;  %v4315_v53 = vld [vmem:[%s5586_s0 + $0x304] ss:$72 sps:$4 sm:$0xff]  }
  0xa1   :  { %3886 = vmatprep.subr.bf16.mxu1 %v4269_v58  ;;  %3950 = vmatprep.subr.bf16.mxu0 %v4271_v59  ;;  %v4327_v58 = vld [vmem:[%s5586_s0 + $0x388] ss:$72 sps:$4 sm:$0xff]  }
  0xa2   :  { %2424 = vmatmul.mubr.bf16.gmra.mrb[64].mxu1 %v4227_v43  ;;  %2521 = vmatmul.mubr.bf16.gmra.mrb[64].mxu0 %v4228_v44  ;;  %v4305_v43 = vld [vmem:[%s5586_s0 + $0x274] ss:$72 sps:$4 sm:$0xff]   ;;  %v4328_v59 = vld [vmem:[%s5586_s0 + $0x390] ss:$72 sps:$4 sm:$0xff]  }
  0xa3   :  { %2431 = vmatprep.mubr.bf16.mxu1 %v4233_v46  ;;  %2528 = vmatprep.mubr.bf16.mxu0 %v4235_v49  ;;  %v4330_v44 = vld [vmem:[%s5585_s1 + $0x3b0] sm:$0xff]   ;;  %v4339_v46 = vld [vmem:[%s5585_s1 + $0x3f8] sm:$0xff]  }
  0xa4   :  { %v4342_v49 = vld [vmem:[%s5585_s1 + $0x438] sm:$0xff]  }
  0xaa   :  { %2432 = vmatmul.mubr.bf16.gmra.mrb[68].mxu1 %v4237_v54  ;;  %2529 = vmatmul.mubr.bf16.gmra.mrb[68].mxu0 %v4238_v55  ;;  %v4317_v54 = vld [vmem:[%s5586_s0 + $0x2f8] ss:$72 sps:$4 sm:$0xff]  }
  0xab   :  { %2439 = vmatprep.mubr.bf16.mxu1 %v4243_v56  ;;  %2536 = vmatprep.mubr.bf16.mxu0 %v4245_v57  ;;  %v4318_v55 = vld [vmem:[%s5586_s0 + $0x300] ss:$72 sps:$4 sm:$0xff]   ;;  %v4323_v56 = vld [vmem:[%s5586_s0 + $0x38c] ss:$72 sps:$4 sm:$0xff]  }
  0xac   :  { %v4325_v57 = vld [vmem:[%s5586_s0 + $0x394] ss:$72 sps:$4 sm:$0xff]  }
  0xb2   :  { %2440 = vmatmul.mubr.bf16.gmra.mrb[72].mxu1 %v4247_v60  ;;  %2537 = vmatmul.mubr.bf16.gmra.mrb[72].mxu0 %v4248_v61  ;;  %v4333_v60 = vld [vmem:[%s5586_s0 + $0x41c] ss:$72 sps:$4 sm:$0xff]  }
  0xb3   :  { %2447 = vmatprep.mubr.bf16.mxu1 %v4253_v62  ;;  %2544 = vmatprep.mubr.bf16.mxu0 %v4255_v63  ;;  %v4335_v61 = vld [vmem:[%s5586_s0 + $0x424] ss:$72 sps:$4 sm:$0xff]  }
  0xba   :  { %2448 = vmatmul.mubr.bf16.gmra.mrb[76].mxu1 %v4257_v0  ;;  %2545 = vmatmul.mubr.bf16.gmra.mrb[76].mxu0 %v4258_v1 }
  0xbb   :  { %2585 = vmatprep.mubr.bf16.mxu1 %v4265_v2  ;;  %2682 = vmatprep.mubr.bf16.mxu0 %v4268_v3  ;;  %v4337_v2 = vld [vmem:[%s5586_s0 + $0x418] ss:$72 sps:$4 sm:$0xff]  }
  0xbc   :  { %v4338_v3 = vld [vmem:[%s5586_s0 + $0x420] ss:$72 sps:$4 sm:$0xff]  }
  0xc2   :  { %2586 = vmatmul.mubr.bf16.vlgmr.msra.gmra.mrb[80].mxu1 %v4263_v4  ;;  %2683 = vmatmul.mubr.bf16.vlgmr.msra.gmra.mrb[80].mxu0 %v4266_v5 }
  0xc3   :  { %3887 = vmatpush3.bf16.msra.mxu1 %v4270_v6  ;;  %3951 = vmatpush3.bf16.msra.mxu0 %v4272_v7 }
  0xc4   :  { %2593 = vmatprep.mubr.bf16.mxu1 %v4273_v8  ;;  %2690 = vmatprep.mubr.bf16.mxu0 %v4275_v9  ;;  %v4345_v8 = vld [vmem:[%s5586_s0 + $0x3c] ss:$72 sps:$4 sm:$0xff]  }
  0xc5   :  { %3888 = vmatprep.subr.bf16.mxu1 %v4279_v10  ;;  %3952 = vmatprep.subr.bf16.mxu0 %v4281_v11  ;;  %v4348_v9 = vld [vmem:[%s5586_s0 + $0x44] ss:$72 sps:$4 sm:$0xff]  }
  0xc7   :  { %3889 = vmatpush3.bf16.msra.mxu1 %v4280_v12  ;;  %3953 = vmatpush3.bf16.msra.mxu0 %v4282_v13 }
  0xc8   :  { %3890 = vmatprep.subr.bf16.mxu1 %v4289_v14  ;;  %3954 = vmatprep.subr.bf16.mxu0 %v4291_v17 }
  0xca   :  { %2594 = vmatmul.mubr.bf16.gmra.mrb[84].mxu1 %v4277_v15  ;;  %2691 = vmatmul.mubr.bf16.gmra.mrb[84].mxu0 %v4278_v16 }
  0xcb   :  { %2601 = vmatprep.mubr.bf16.mxu1 %v4283_v18  ;;  %2698 = vmatprep.mubr.bf16.mxu0 %v4285_v19  ;;  %v4343_v18 = vld [vmem:[%s5586_s0 + $0x38] ss:$72 sps:$4 sm:$0xff]  }
  0xcc   :  { %3891 = vmatpush3.bf16.msra.mxu1 %v4290_v20  ;;  %3955 = vmatpush3.bf16.msra.mxu0 %v4292_v21  ;;  %v4346_v19 = vld [vmem:[%s5586_s0 + $0x40] ss:$72 sps:$4 sm:$0xff]  }
  0xcd   :  { %3892 = vmatprep.subr.bf16.mxu1 %v4299_v22  ;;  %3956 = vmatprep.subr.bf16.mxu0 %v4301_v23 }
  0xd0   :  { %3893 = vmatpush3.bf16.msra.mxu1 %v4300_v24  ;;  %3957 = vmatpush3.bf16.msra.mxu0 %v4302_v25  ;;  %v4349_v24 = vld [vmem:[%s5586_s0 + $0xcc] ss:$72 sps:$4 sm:$0xff]  }
  0xd1   :  { %3894 = vmatprep.subr.bf16.mxu1 %v4309_v28  ;;  %3958 = vmatprep.subr.bf16.mxu0 %v4311_v29  ;;  %v4351_v25 = vld [vmem:[%s5586_s0 + $0xd4] ss:$72 sps:$4 sm:$0xff]  }
  0xd2   :  { %2602 = vmatmul.mubr.bf16.gmra.mrb[88].mxu1 %v4287_v26  ;;  %2699 = vmatmul.mubr.bf16.gmra.mrb[88].mxu0 %v4288_v27 }
  0xd3   :  { %2609 = vmatprep.mubr.bf16.mxu1 %v4293_v30  ;;  %2706 = vmatprep.mubr.bf16.mxu0 %v4295_v31 }
  0xd4   :  { %3895 = vmatpush3.bf16.msra.mxu1 %v4310_v32  ;;  %3959 = vmatpush3.bf16.msra.mxu0 %v4312_v33 }
  0xd5   :  { %3896 = vmatprep.subr.bf16.mxu1 %v4319_v34  ;;  %3960 = vmatprep.subr.bf16.mxu0 %v4321_v35  ;;  %v4353_v34 = vld [vmem:[%s5586_s0 + $0xc8] ss:$72 sps:$4 sm:$0xff]  }
  0xd6   :  { %v4354_v35 = vld [vmem:[%s5586_s0 + $0xd0] ss:$72 sps:$4 sm:$0xff]  }
  0xd8   :  { %3897 = vmatpush3.bf16.msra.mxu1 %v4320_v36  ;;  %3961 = vmatpush3.bf16.msra.mxu0 %v4322_v37 }
  0xd9   :  { %3898 = vmatprep.subr.bf16.mxu1 %v4329_v40  ;;  %3962 = vmatprep.subr.bf16.mxu0 %v4331_v42  ;;  %v4355_v40 = vld [vmem:[%s5586_s0 + $0x15c] ss:$72 sps:$4 sm:$0xff]  }
  0xda   :  { %2610 = vmatmul.mubr.bf16.gmra.mrb[92].mxu1 %v4297_v38  ;;  %2707 = vmatmul.mubr.bf16.gmra.mrb[92].mxu0 %v4298_v39 }
  0xdb   :  { %2617 = vmatprep.mubr.bf16.mxu1 %v4303_v41  ;;  %2714 = vmatprep.mubr.bf16.mxu0 %v4305_v43  ;;  %v4357_v41 = vld [vmem:[%s5586_s0 + $0x164] ss:$72 sps:$4 sm:$0xff]  }
  0xdc   :  { %3899 = vmatpush3.bf16.msra.mxu1 %v4330_v44  ;;  %3963 = vmatpush3.bf16.msra.mxu0 %v4332_v45 }
  0xdd   :  { %3900 = vmatprep.subr.bf16.mxu1 %v4339_v46  ;;  %3964 = vmatprep.subr.bf16.mxu0 %v4341_v47 }
  0xe0   :  { %3901 = vmatpush3.bf16.msra.mxu1 %v4340_v48  ;;  %3965 = vmatpush3.bf16.msra.mxu0 %v4342_v49 }
  0xe2   :  { %2618 = vmatmul.mubr.bf16.gmra.mrb[96].mxu1 %v4307_v50  ;;  %2715 = vmatmul.mubr.bf16.gmra.mrb[96].mxu0 %v4308_v51  ;;  %v4359_v50 = vld [vmem:[%s5586_s0 + $0x158] ss:$72 sps:$4 sm:$0xff]  }
  0xe3   :  { %2625 = vmatprep.mubr.bf16.mxu1 %v4313_v52  ;;  %2722 = vmatprep.mubr.bf16.mxu0 %v4315_v53  ;;  %v4360_v51 = vld [vmem:[%s5586_s0 + $0x160] ss:$72 sps:$4 sm:$0xff]  }
  0xea   :  { %2626 = vmatmul.mubr.bf16.gmra.mrb[100].mxu1 %v4317_v54  ;;  %2723 = vmatmul.mubr.bf16.gmra.mrb[100].mxu0 %v4318_v55 }
  0xeb   :  { %2633 = vmatprep.mubr.bf16.mxu1 %v4323_v56  ;;  %2730 = vmatprep.mubr.bf16.mxu0 %v4325_v57  ;;  %v4361_v56 = vld [vmem:[%s5586_s0 + $0x1ec] ss:$72 sps:$4 sm:$0xff]  }
  0xec   :  { %v4363_v57 = vld [vmem:[%s5586_s0 + $0x1f4] ss:$72 sps:$4 sm:$0xff]  }
  0xf2   :  { %2634 = vmatmul.mubr.bf16.gmra.mrb[104].mxu1 %v4327_v58  ;;  %2731 = vmatmul.mubr.bf16.gmra.mrb[104].mxu0 %v4328_v59 }
  0xf3   :  { %2641 = vmatprep.mubr.bf16.mxu1 %v4333_v60  ;;  %2738 = vmatprep.mubr.bf16.mxu0 %v4335_v61 }
  0xf5   :  { %v3454_v62 = vpop.f32.mrb[0].mxu0  ;;  %v3478_v63 = vpop.f32.mrb[0].mxu1 }
  0xf6   :  { %v3455_v0 = vpop.f32.mrb[1].mxu0  ;;  %v3479_v1 = vpop.f32.mrb[1].mxu1 }
  0xf7   :  { %v5180_v4 = vadd.f32 %v3455_v0, %v3454_v62  ;;  %v5182_v5 = vadd.f32 %v3479_v1, %v3478_v63  ;;  %v3457_v6 = vpop.f32.mrb[2].mxu0  ;;  %v3481_v7 = vpop.f32.mrb[2].mxu1 }
  0xf8   :  { %v3458_v10 = vpop.f32.mrb[3].mxu0  ;;  %v3482_v11 = vpop.f32.mrb[3].mxu1 }
  0xf9   :  { %v5190_v12 = vadd.f32 %v3458_v10, %v3457_v6  ;;  %v5192_v13 = vadd.f32 %v3482_v11, %v3481_v7  ;;  %v4367_v10 = vld [vmem:[%s5586_s0 + $0x27c] ss:$72 sps:$4 sm:$0xff]  }
  0xfa   :  { %2642 = vmatmul.mubr.bf16.gmra.mrb[108].mxu1 %v4337_v2  ;;  %2739 = vmatmul.mubr.bf16.gmra.mrb[108].mxu0 %v4338_v3  ;;  %v4365_v2 = vld [vmem:[%s5586_s0 + $0x1e8] ss:$72 sps:$4 sm:$0xff]   ;;  %v4369_v11 = vld [vmem:[%s5586_s0 + $0x284] ss:$72 sps:$4 sm:$0xff]  }
  0xfb   :  { %2779 = vmatprep.mubr.bf16.mxu1 %v4345_v8  ;;  %2876 = vmatprep.mubr.bf16.mxu0 %v4348_v9  ;;  %v4366_v3 = vld [vmem:[%s5586_s0 + $0x1f0] ss:$72 sps:$4 sm:$0xff]  }
  0xfd   :  { %v3460_v14 = vpop.f32.mrb[4].mxu0  ;;  %v3484_v15 = vpop.f32.mrb[4].mxu1 }
  0xfe   :  { %v3461_v16 = vpop.f32.mrb[5].mxu0  ;;  %v3485_v17 = vpop.f32.mrb[5].mxu1 }
  0xff   :  { %v5200_v20 = vadd.f32 %v3461_v16, %v3460_v14  ;;  %v5202_v21 = vadd.f32 %v3485_v17, %v3484_v15  ;;  %v3463_v22 = vpop.f32.mrb[6].mxu0  ;;  %v3487_v23 = vpop.f32.mrb[6].mxu1 }
 0x100   :  { %v3464_v26 = vpop.f32.mrb[7].mxu0  ;;  %v3488_v27 = vpop.f32.mrb[7].mxu1 }
 0x101   :  { %v5210_v28 = vadd.f32 %v3464_v26, %v3463_v22  ;;  %v5212_v29 = vadd.f32 %v3488_v27, %v3487_v23 }
 0x102   :  { %2780 = vmatmul.mubr.bf16.vlgmr.msra.gmra.mrb[112].mxu1 %v4343_v18  ;;  %2877 = vmatmul.mubr.bf16.vlgmr.msra.gmra.mrb[112].mxu0 %v4346_v19 }
 0x103   :  { %2787 = vmatprep.mubr.bf16.mxu1 %v4349_v24  ;;  %2884 = vmatprep.mubr.bf16.mxu0 %v4351_v25 }
 0x105   :  { %v3466_v30 = vpop.f32.mrb[8].mxu0  ;;  %v3490_v31 = vpop.f32.mrb[8].mxu1 }
 0x106   :  { %v3467_v32 = vpop.f32.mrb[9].mxu0  ;;  %v3491_v33 = vpop.f32.mrb[9].mxu1 }
 0x107   :  { %v5220_v36 = vadd.f32 %v3467_v32, %v3466_v30  ;;  %v5222_v37 = vadd.f32 %v3491_v33, %v3490_v31  ;;  %v3469_v38 = vpop.f32.mrb[10].mxu0  ;;  %v3493_v39 = vpop.f32.mrb[10].mxu1  ;;  %v4372_v30 = vld [vmem:[%s5586_s0 + $0x280] ss:$72 sps:$4 sm:$0xff]  }
 0x108   :  { %v3470_v42 = vpop.f32.mrb[11].mxu0  ;;  %v3494_v43 = vpop.f32.mrb[11].mxu1 }
 0x109   :  { %v5230_v44 = vadd.f32 %v3470_v42, %v3469_v38  ;;  %v5232_v45 = vadd.f32 %v3494_v43, %v3493_v39 }
 0x10a   :  { %2788 = vmatmul.mubr.bf16.gmra.mrb[116].mxu1 %v4353_v34  ;;  %2885 = vmatmul.mubr.bf16.gmra.mrb[116].mxu0 %v4354_v35  ;;  %v4373_v34 = vld [vmem:[%s5586_s0 + $0x30c] ss:$72 sps:$4 sm:$0xff]  }
 0x10b   :  { %2795 = vmatprep.mubr.bf16.mxu1 %v4355_v40  ;;  %2892 = vmatprep.mubr.bf16.mxu0 %v4357_v41  ;;  %v4375_v35 = vld [vmem:[%s5586_s0 + $0x314] ss:$72 sps:$4 sm:$0xff]  }
 0x10d   :  { %v3472_v46 = vpop.f32.mrb[12].mxu0  ;;  %v3496_v47 = vpop.f32.mrb[12].mxu1 }
 0x10e   :  { %v3473_v48 = vpop.f32.mrb[13].mxu0  ;;  %v3497_v49 = vpop.f32.mrb[13].mxu1 }
 0x10f   :  { %v5240_v52 = vadd.f32 %v3473_v48, %v3472_v46  ;;  %v5242_v53 = vadd.f32 %v3497_v49, %v3496_v47  ;;  %v3475_v54 = vpop.f32.mrb[14].mxu0  ;;  %v3499_v55 = vpop.f32.mrb[14].mxu1 }
 0x110   :  { %v3476_v58 = vpop.f32.mrb[15].mxu0  ;;  %v3500_v59 = vpop.f32.mrb[15].mxu1 }
 0x111   :  { %v5250_v60 = vadd.f32 %v3476_v58, %v3475_v54  ;;  %v5252_v61 = vadd.f32 %v3500_v59, %v3499_v55  ;;  %v4378_v54 = vld [vmem:[%s5586_s0 + $0x310] ss:$72 sps:$4 sm:$0xff]   ;;  %v4379_v58 = vld [vmem:[%s5586_s0 + $0x39c] ss:$72 sps:$4 sm:$0xff]  }
 0x112   :  { %2796 = vmatmul.mubr.bf16.gmra.mrb[120].mxu1 %v4359_v50  ;;  %2893 = vmatmul.mubr.bf16.gmra.mrb[120].mxu0 %v4360_v51  ;;  %v4381_v59 = vld [vmem:[%s5586_s0 + $0x3a4] ss:$72 sps:$4 sm:$0xff]  }
 0x113   :  { %2803 = vmatprep.mubr.bf16.mxu1 %v4361_v56  ;;  %2900 = vmatprep.mubr.bf16.mxu0 %v4363_v57 }
 0x115   :  { %v3518_v62 = vpop.f32.mrb[16].mxu1  ;;  %v3582_v63 = vpop.f32.mrb[16].mxu0 }
 0x116   :  { %v3519_v0 = vpop.f32.mrb[17].mxu1  ;;  %v3583_v1 = vpop.f32.mrb[17].mxu0 }
 0x117   :  { %v3520_v6 = vadd.f32 %v3519_v0, %v3518_v62  ;;  %v3584_v7 = vadd.f32 %v3583_v1, %v3582_v63  ;;  %v3521_v8 = vpop.f32.mrb[18].mxu1  ;;  %v3585_v9 = vpop.f32.mrb[18].mxu0 }
 0x118   :  { %v3522_v14 = vpop.f32.mrb[19].mxu1  ;;  %v3586_v15 = vpop.f32.mrb[19].mxu0 }
 0x119   :  { %v2200_v16 = vadd.f32 %v3520_v6, %v5180_v4  ;;  %v3523_v17 = vadd.f32 %v3522_v14, %v3521_v8  ;;  %v3587_v18 = vadd.f32 %v3586_v15, %v3585_v9  ;;  %v4371_v4 = vld [vmem:[%s5586_s0 + $0x278] ss:$72 sps:$4 sm:$0xff]  }
 0x11a   :  { %2804 = vmatmul.mubr.bf16.gmra.mrb[124].mxu1 %v4365_v2  ;;  %2901 = vmatmul.mubr.bf16.gmra.mrb[124].mxu0 %v4366_v3  ;;  %v4384_v14 = vld [vmem:[%s5586_s0 + $0x3a0] ss:$72 sps:$4 sm:$0xff]  }
 0x11b   :  { %v5267_v19 = vadd.f32 %v3584_v7, %v2200_v16  ;;  %v2203_v22 = vadd.f32 %v3523_v17, %v5190_v12  ;;  %2811 = vmatprep.mubr.bf16.mxu1 %v4367_v10  ;;  %2908 = vmatprep.mubr.bf16.mxu0 %v4369_v11 }
 0x11d   :  { %v5270_v23 = vadd.f32 %v3587_v18, %v2203_v22  ;;  %v3524_v24 = vpop.f32.mrb[20].mxu1  ;;  %v3588_v25 = vpop.f32.mrb[20].mxu0  ;;  %v4385_v18 = vld [vmem:[%s5586_s0 + $0x42c] ss:$72 sps:$4 sm:$0xff]  }
 0x11e   :  { %v3525_v26 = vpop.f32.mrb[21].mxu1  ;;  %v3589_v27 = vpop.f32.mrb[21].mxu0  ;;  %v4387_v22 = vld [vmem:[%s5586_s0 + $0x434] ss:$72 sps:$4 sm:$0xff]  }
 0x11f   :  { %v3526_v31 = vadd.f32 %v3525_v26, %v3524_v24  ;;  %v3590_v32 = vadd.f32 %v3589_v27, %v3588_v25  ;;  %v3527_v33 = vpop.f32.mrb[22].mxu1  ;;  %v3591_v12 = vpop.f32.mrb[22].mxu0 }
 0x120   :  { %v3528_v38 = vpop.f32.mrb[23].mxu1  ;;  %v3592_v39 = vpop.f32.mrb[23].mxu0 }
 0x121   :  { %v2208_v40 = vadd.f32 %v3526_v31, %v5200_v20  ;;  %v3529_v41 = vadd.f32 %v3528_v38, %v3527_v33  ;;  %v3593_v42 = vadd.f32 %v3592_v39, %v3591_v12  ;;  %v4377_v20 = vld [vmem:[%s5586_s0 + $0x308] ss:$72 sps:$4 sm:$0xff]  }
 0x122   :  { %2812 = vmatmul.mubr.bf16.gmra.mrb[128].mxu1 %v4371_v4  ;;  %2909 = vmatmul.mubr.bf16.gmra.mrb[128].mxu0 %v4372_v30  ;;  %v4390_v38 = vld [vmem:[%s5586_s0 + $0x430] ss:$72 sps:$4 sm:$0xff]  }
 0x123   :  { %v5285_v43 = vadd.f32 %v3590_v32, %v2208_v40  ;;  %v2211_v46 = vadd.f32 %v3529_v41, %v5210_v28  ;;  %2819 = vmatprep.mubr.bf16.mxu1 %v4373_v34  ;;  %2916 = vmatprep.mubr.bf16.mxu0 %v4375_v35 }
 0x125   :  { %v5288_v47 = vadd.f32 %v3593_v42, %v2211_v46  ;;  %v3530_v48 = vpop.f32.mrb[24].mxu1  ;;  %v3594_v49 = vpop.f32.mrb[24].mxu0 }
 0x126   :  { %v3531_v50 = vpop.f32.mrb[25].mxu1  ;;  %v3595_v51 = vpop.f32.mrb[25].mxu0 }
 0x127   :  { %v3532_v55 = vadd.f32 %v3531_v50, %v3530_v48  ;;  %v3596_v56 = vadd.f32 %v3595_v51, %v3594_v49  ;;  %v3533_v57 = vpop.f32.mrb[26].mxu1  ;;  %v3597_v28 = vpop.f32.mrb[26].mxu0 }
 0x128   :  { %v3534_v62 = vpop.f32.mrb[27].mxu1  ;;  %v3598_v63 = vpop.f32.mrb[27].mxu0 }
 0x129   :  { %v2216_v0 = vadd.f32 %v3532_v55, %v5220_v36  ;;  %v3535_v1 = vadd.f32 %v3534_v62, %v3533_v57  ;;  %v3599_v2 = vadd.f32 %v3598_v63, %v3597_v28  ;;  %v4383_v36 = vld [vmem:[%s5586_s0 + $0x398] ss:$72 sps:$4 sm:$0xff]  }
 0x12a   :  { %2820 = vmatmul.mubr.bf16.gmra.mrb[132].mxu1 %v4377_v20  ;;  %2917 = vmatmul.mubr.bf16.gmra.mrb[132].mxu0 %v4378_v54 }
 0x12b   :  { %v5303_v3 = vadd.f32 %v3596_v56, %v2216_v0  ;;  %v2219_v6 = vadd.f32 %v3535_v1, %v5230_v44  ;;  %2827 = vmatprep.mubr.bf16.mxu1 %v4379_v58  ;;  %2924 = vmatprep.mubr.bf16.mxu0 %v4381_v59 }
 0x12d   :  { %v5306_v7 = vadd.f32 %v3599_v2, %v2219_v6  ;;  %v3536_v8 = vpop.f32.mrb[28].mxu1  ;;  %v3600_v9 = vpop.f32.mrb[28].mxu0 }
 0x12e   :  { %v3537_v10 = vpop.f32.mrb[29].mxu1  ;;  %v3601_v11 = vpop.f32.mrb[29].mxu0 }
 0x12f   :  { %v3538_v15 = vadd.f32 %v3537_v10, %v3536_v8  ;;  %v3602_v16 = vadd.f32 %v3601_v11, %v3600_v9  ;;  %v3539_v17 = vpop.f32.mrb[30].mxu1  ;;  %v3603_v44 = vpop.f32.mrb[30].mxu0 }
 0x130   :  { %v3540_v24 = vpop.f32.mrb[31].mxu1  ;;  %v3604_v25 = vpop.f32.mrb[31].mxu0 }
 0x131   :  { %v2224_v26 = vadd.f32 %v3538_v15, %v5240_v52  ;;  %v3541_v27 = vadd.f32 %v3540_v24, %v3539_v17  ;;  %v3605_v4 = vadd.f32 %v3604_v25, %v3603_v44  ;;  %v4389_v52 = vld [vmem:[%s5586_s0 + $0x428] ss:$72 sps:$4 sm:$0xff]  }
 0x132   :  { %2828 = vmatmul.mubr.bf16.gmra.mrb[136].mxu1 %v4383_v36  ;;  %2925 = vmatmul.mubr.bf16.gmra.mrb[136].mxu0 %v4384_v14 }
 0x133   :  { %v5321_v30 = vadd.f32 %v3602_v16, %v2224_v26  ;;  %v2227_v31 = vadd.f32 %v3541_v27, %v5250_v60  ;;  %2835 = vmatprep.mubr.bf16.mxu1 %v4385_v18  ;;  %2932 = vmatprep.mubr.bf16.mxu0 %v4387_v22 }
 0x135   :  { %v5324_v32 = vadd.f32 %v3605_v4, %v2227_v31  ;;  %v3542_v33 = vpop.f32.mrb[32].mxu1  ;;  %v3606_v12 = vpop.f32.mrb[32].mxu0 }
 0x136   :  { %v3543_v34 = vpop.f32.mrb[33].mxu1  ;;  %v3607_v35 = vpop.f32.mrb[33].mxu0 }
 0x137   :  { %v3544_v39 = vadd.f32 %v3543_v34, %v3542_v33  ;;  %v3608_v40 = vadd.f32 %v3607_v35, %v3606_v12  ;;  %v3545_v41 = vpop.f32.mrb[34].mxu1  ;;  %v3609_v60 = vpop.f32.mrb[34].mxu0 }
 0x138   :  { %v3546_v42 = vpop.f32.mrb[35].mxu1  ;;  %v3610_v46 = vpop.f32.mrb[35].mxu0 }
 0x139   :  { %v2232_v48 = vadd.f32 %v3544_v39, %v5182_v5  ;;  %v3547_v49 = vadd.f32 %v3546_v42, %v3545_v41  ;;  %v3611_v50 = vadd.f32 %v3610_v46, %v3609_v60 }
 0x13a   :  { %2836 = vmatmul.mubr.bf16.gmra.mrb[140].mxu1 %v4389_v52  ;;  %2933 = vmatmul.mubr.bf16.gmra.mrb[140].mxu0 %v4390_v38 }
 0x13b   :  { %v5333_v51 = vadd.f32 %v3608_v40, %v2232_v48  ;;  %v2235_v20 = vadd.f32 %v3547_v49, %v5192_v13 }
 0x13d   :  { %v5336_v54 = vadd.f32 %v3611_v50, %v2235_v20  ;;  %v3548_v55 = vpop.f32.mrb[36].mxu1  ;;  %v3612_v56 = vpop.f32.mrb[36].mxu0  ;;  %v4391_v50 = vmov 0.0  }
 0x13e   :  { %v3549_v57 = vpop.f32.mrb[37].mxu1  ;;  %v3613_v28 = vpop.f32.mrb[37].mxu0  ;;  %20 = vst.msk [vmem:[#allocation2] sm:$0xff] %vm19_vm0, %v4391_v50  ;;  %21 = vst.msk [vmem:[#allocation2 + $0x8] sm:$0xff] %vm19_vm0, %v4391_v50 }
 0x13f   :  { %v3550_v58 = vadd.f32 %v3549_v57, %v3548_v55  ;;  %v3614_v59 = vadd.f32 %v3613_v28, %v3612_v56  ;;  %v3551_v62 = vpop.f32.mrb[38].mxu1  ;;  %v3615_v63 = vpop.f32.mrb[38].mxu0  ;;  %22 = vst.msk [vmem:[#allocation2 + $0x10] sm:$0xff] %vm19_vm0, %v4391_v50  ;;  %23 = vst.msk [vmem:[#allocation2 + $0x18] sm:$0xff] %vm19_vm0, %v4391_v50 }
 0x140   :  { %v3552_v0 = vpop.f32.mrb[39].mxu1  ;;  %v3616_v5 = vpop.f32.mrb[39].mxu0  ;;  %24 = vst.msk [vmem:[#allocation2 + $0x20] sm:$0xff] %vm19_vm0, %v4391_v50  ;;  %25 = vst.msk [vmem:[#allocation2 + $0x28] sm:$0xff] %vm19_vm0, %v4391_v50 }
 0x141   :  { %v2240_v1 = vadd.f32 %v3550_v58, %v5202_v21  ;;  %v3553_v2 = vadd.f32 %v3552_v0, %v3551_v62  ;;  %v3617_v6 = vadd.f32 %v3616_v5, %v3615_v63  ;;  %26 = vst.msk [vmem:[#allocation2 + $0x30] sm:$0xff] %vm19_vm0, %v4391_v50  ;;  %27 = vst.msk [vmem:[#allocation2 + $0x38] sm:$0xff] %vm19_vm0, %v4391_v50 }
 0x142   :  { %28 = vst.msk [vmem:[#allocation2 + $0x40] sm:$0xff] %vm19_vm0, %v4391_v50  ;;  %29 = vst.msk [vmem:[#allocation2 + $0x48] sm:$0xff] %vm19_vm0, %v4391_v50 }
 0x143   :  { %v5339_v8 = vadd.f32 %v3614_v59, %v2240_v1  ;;  %v2243_v13 = vadd.f32 %v3553_v2, %v5212_v29  ;;  %30 = vst.msk [vmem:[#allocation2 + $0x50] sm:$0xff] %vm19_vm0, %v4391_v50  ;;  %31 = vst.msk [vmem:[#allocation2 + $0x58] sm:$0xff] %vm19_vm0, %v4391_v50 }
 0x144   :  { %32 = vst.msk [vmem:[#allocation2 + $0x60] sm:$0xff] %vm19_vm0, %v4391_v50  ;;  %33 = vst.msk [vmem:[#allocation2 + $0x68] sm:$0xff] %vm19_vm0, %v4391_v50 }
 0x145   :  { %v5342_v9 = vadd.f32 %v3617_v6, %v2243_v13  ;;  %v3554_v10 = vpop.f32.mrb[40].mxu1  ;;  %v3618_v11 = vpop.f32.mrb[40].mxu0  ;;  %34 = vst.msk [vmem:[#allocation2 + $0x70] sm:$0xff] %vm19_vm0, %v4391_v50  ;;  %35 = vst.msk [vmem:[#allocation2 + $0x78] sm:$0xff] %vm19_vm0, %v4391_v50 }
 0x146   :  { %v3555_v36 = vpop.f32.mrb[41].mxu1  ;;  %v3619_v14 = vpop.f32.mrb[41].mxu0 }
 0x147   :  { %v3556_v15 = vadd.f32 %v3555_v36, %v3554_v10  ;;  %v3620_v16 = vadd.f32 %v3619_v14, %v3618_v11  ;;  %v3557_v17 = vpop.f32.mrb[42].mxu1  ;;  %v3621_v44 = vpop.f32.mrb[42].mxu0 }
 0x148   :  { %v3558_v18 = vpop.f32.mrb[43].mxu1  ;;  %v3622_v22 = vpop.f32.mrb[43].mxu0 }
 0x149   :  { %v2248_v21 = vadd.f32 %v3556_v15, %v5222_v37  ;;  %v3559_v24 = vadd.f32 %v3558_v18, %v3557_v17  ;;  %v3623_v25 = vadd.f32 %v3622_v22, %v3621_v44 }
 0x14b   :  { %v5345_v26 = vadd.f32 %v3620_v16, %v2248_v21  ;;  %v2251_v29 = vadd.f32 %v3559_v24, %v5232_v45 }
 0x14d   :  { %v5348_v27 = vadd.f32 %v3623_v25, %v2251_v29  ;;  %v3560_v4 = vpop.f32.mrb[44].mxu1  ;;  %v3624_v31 = vpop.f32.mrb[44].mxu0 }
 0x14e   :  { %v3561_v33 = vpop.f32.mrb[45].mxu1  ;;  %v3625_v12 = vpop.f32.mrb[45].mxu0 }
 0x14f   :  { %v3562_v34 = vadd.f32 %v3561_v33, %v3560_v4  ;;  %v3626_v35 = vadd.f32 %v3625_v12, %v3624_v31  ;;  %v3563_v52 = vpop.f32.mrb[46].mxu1  ;;  %v3627_v38 = vpop.f32.mrb[46].mxu0 }
 0x150   :  { %v3564_v39 = vpop.f32.mrb[47].mxu1  ;;  %v3628_v40 = vpop.f32.mrb[47].mxu0 }
 0x151   :  { %v2256_v37 = vadd.f32 %v3562_v34, %v5242_v53  ;;  %v3565_v41 = vadd.f32 %v3564_v39, %v3563_v52  ;;  %v3629_v60 = vadd.f32 %v3628_v40, %v3627_v38 }
 0x153   :  { %v5351_v42 = vadd.f32 %v3626_v35, %v2256_v37  ;;  %v2259_v45 = vadd.f32 %v3565_v41, %v5252_v61 }
 0x155   :  { %v5354_v46 = vadd.f32 %v3629_v60, %v2259_v45  ;;  %v3646_v48 = vpop.f32.mrb[48].mxu1  ;;  %v3710_v49 = vpop.f32.mrb[48].mxu0 }
 0x156   :  { %v3647_v53 = vpop.f32.mrb[49].mxu1  ;;  %v3711_v61 = vpop.f32.mrb[49].mxu0 }
 0x157   :  { %v3648_v20 = vadd.f32 %v3647_v53, %v3646_v48  ;;  %v3712_v55 = vadd.f32 %v3711_v61, %v3710_v49  ;;  %v3649_v56 = vpop.f32.mrb[50].mxu1  ;;  %v3713_v57 = vpop.f32.mrb[50].mxu0 }
 0x158   :  { %v3650_v28 = vpop.f32.mrb[51].mxu1  ;;  %v3714_v58 = vpop.f32.mrb[51].mxu0 }
 0x159   :  { %v2394_v59 = vadd.f32 %v3648_v20, %v5267_v19  ;;  %v3651_v62 = vadd.f32 %v3650_v28, %v3649_v56  ;;  %v3715_v63 = vadd.f32 %v3714_v58, %v3713_v57 }
 0x15b   :  { %v5373_v0 = vadd.f32 %v3712_v55, %v2394_v59  ;;  %v2397_v5 = vadd.f32 %v3651_v62, %v5270_v23 }
 0x15d   :  { %v5376_v1 = vadd.f32 %v3715_v63, %v2397_v5  ;;  %v3652_v2 = vpop.f32.mrb[52].mxu1  ;;  %v3716_v6 = vpop.f32.mrb[52].mxu0 }
 0x15e   :  { %v3653_v13 = vpop.f32.mrb[53].mxu1  ;;  %v3717_v10 = vpop.f32.mrb[53].mxu0 }
 0x15f   :  { %v3654_v11 = vadd.f32 %v3653_v13, %v3652_v2  ;;  %v3718_v36 = vadd.f32 %v3717_v10, %v3716_v6  ;;  %v3655_v14 = vpop.f32.mrb[54].mxu1  ;;  %v3719_v15 = vpop.f32.mrb[54].mxu0 }
 0x160   :  { %v3656_v16 = vpop.f32.mrb[55].mxu1  ;;  %v3720_v17 = vpop.f32.mrb[55].mxu0 }
 0x161   :  { %v2402_v19 = vadd.f32 %v3654_v11, %v5285_v43  ;;  %v3657_v44 = vadd.f32 %v3656_v16, %v3655_v14  ;;  %v3721_v18 = vadd.f32 %v3720_v17, %v3719_v15 }
 0x163   :  { %v5379_v22 = vadd.f32 %v3718_v36, %v2402_v19  ;;  %v2405_v23 = vadd.f32 %v3657_v44, %v5288_v47 }
 0x165   :  { %v5382_v21 = vadd.f32 %v3721_v18, %v2405_v23  ;;  %v3658_v24 = vpop.f32.mrb[56].mxu1  ;;  %v3722_v25 = vpop.f32.mrb[56].mxu0 }
 0x166   :  { %v3659_v29 = vpop.f32.mrb[57].mxu1  ;;  %v3723_v4 = vpop.f32.mrb[57].mxu0 }
 0x167   :  { %v3660_v31 = vadd.f32 %v3659_v29, %v3658_v24  ;;  %v3724_v33 = vadd.f32 %v3723_v4, %v3722_v25  ;;  %v3661_v12 = vpop.f32.mrb[58].mxu1  ;;  %v3725_v34 = vpop.f32.mrb[58].mxu0 }
 0x168   :  { %v3662_v35 = vpop.f32.mrb[59].mxu1  ;;  %v3726_v52 = vpop.f32.mrb[59].mxu0 }
 0x169   :  { %v2410_v43 = vadd.f32 %v3660_v31, %v5303_v3  ;;  %v3663_v38 = vadd.f32 %v3662_v35, %v3661_v12  ;;  %v3727_v39 = vadd.f32 %v3726_v52, %v3725_v34 }
 0x16b   :  { %v5385_v40 = vadd.f32 %v3724_v33, %v2410_v43  ;;  %v2413_v47 = vadd.f32 %v3663_v38, %v5306_v7 }
 0x16d   :  { %v5388_v37 = vadd.f32 %v3727_v39, %v2413_v47  ;;  %v3664_v41 = vpop.f32.mrb[60].mxu1  ;;  %v3728_v60 = vpop.f32.mrb[60].mxu0 }
 0x16e   :  { %v3665_v45 = vpop.f32.mrb[61].mxu1  ;;  %v3729_v48 = vpop.f32.mrb[61].mxu0 }
 0x16f   :  { %v3666_v49 = vadd.f32 %v3665_v45, %v3664_v41  ;;  %v3730_v50 = vadd.f32 %v3729_v48, %v3728_v60  ;;  %v3667_v53 = vpop.f32.mrb[62].mxu1  ;;  %v3731_v61 = vpop.f32.mrb[62].mxu0 }
 0x170   :  { %v3668_v20 = vpop.f32.mrb[63].mxu1  ;;  %v3732_v55 = vpop.f32.mrb[63].mxu0 }
 0x171   :  { %v2418_v3 = vadd.f32 %v3666_v49, %v5321_v30  ;;  %v3669_v56 = vadd.f32 %v3668_v20, %v3667_v53  ;;  %v3733_v57 = vadd.f32 %v3732_v55, %v3731_v61 }
 0x173   :  { %v5391_v28 = vadd.f32 %v3730_v50, %v2418_v3  ;;  %v2421_v7 = vadd.f32 %v3669_v56, %v5324_v32 }
 0x175   :  { %v5394_v58 = vadd.f32 %v3733_v57, %v2421_v7  ;;  %v3670_v59 = vpop.f32.mrb[64].mxu1  ;;  %v3734_v62 = vpop.f32.mrb[64].mxu0 }
 0x176   :  { %v3671_v63 = vpop.f32.mrb[65].mxu1  ;;  %v3735_v5 = vpop.f32.mrb[65].mxu0 }
 0x177   :  { %v3672_v2 = vadd.f32 %v3671_v63, %v3670_v59  ;;  %v3736_v6 = vadd.f32 %v3735_v5, %v3734_v62  ;;  %v3673_v13 = vpop.f32.mrb[66].mxu1  ;;  %v3737_v10 = vpop.f32.mrb[66].mxu0 }
 0x178   :  { %v3674_v11 = vpop.f32.mrb[67].mxu1  ;;  %v3738_v36 = vpop.f32.mrb[67].mxu0 }
 0x179   :  { %v2426_v30 = vadd.f32 %v3672_v2, %v5333_v51  ;;  %v3675_v14 = vadd.f32 %v3674_v11, %v3673_v13  ;;  %v3739_v15 = vadd.f32 %v3738_v36, %v3737_v10 }
 0x17b   :  { %v5397_v16 = vadd.f32 %v3736_v6, %v2426_v30  ;;  %v2429_v32 = vadd.f32 %v3675_v14, %v5336_v54 }
 0x17d   :  { %v5400_v17 = vadd.f32 %v3739_v15, %v2429_v32  ;;  %v3676_v19 = vpop.f32.mrb[68].mxu1  ;;  %v3740_v44 = vpop.f32.mrb[68].mxu0 }
 0x17e   :  { %v3677_v18 = vpop.f32.mrb[69].mxu1  ;;  %v3741_v23 = vpop.f32.mrb[69].mxu0 }
 0x17f   :  { %v3678_v24 = vadd.f32 %v3677_v18, %v3676_v19  ;;  %v3742_v25 = vadd.f32 %v3741_v23, %v3740_v44  ;;  %v3679_v29 = vpop.f32.mrb[70].mxu1  ;;  %v3743_v4 = vpop.f32.mrb[70].mxu0 }
 0x180   :  { %v3680_v31 = vpop.f32.mrb[71].mxu1  ;;  %v3744_v33 = vpop.f32.mrb[71].mxu0 }
 0x181   :  { %v2434_v51 = vadd.f32 %v3678_v24, %v5339_v8  ;;  %v3681_v12 = vadd.f32 %v3680_v31, %v3679_v29  ;;  %v3745_v34 = vadd.f32 %v3744_v33, %v3743_v4 }
 0x183   :  { %v5403_v35 = vadd.f32 %v3742_v25, %v2434_v51  ;;  %v2437_v54 = vadd.f32 %v3681_v12, %v5342_v9 }
 0x185   :  { %v5406_v52 = vadd.f32 %v3745_v34, %v2437_v54  ;;  %v3682_v43 = vpop.f32.mrb[72].mxu1  ;;  %v3746_v38 = vpop.f32.mrb[72].mxu0 }
 0x186   :  { %v3683_v39 = vpop.f32.mrb[73].mxu1  ;;  %v3747_v47 = vpop.f32.mrb[73].mxu0 }
 0x187   :  { %v3684_v41 = vadd.f32 %v3683_v39, %v3682_v43  ;;  %v3748_v60 = vadd.f32 %v3747_v47, %v3746_v38  ;;  %v3685_v45 = vpop.f32.mrb[74].mxu1  ;;  %v3749_v48 = vpop.f32.mrb[74].mxu0 }
 0x188   :  { %v3686_v49 = vpop.f32.mrb[75].mxu1  ;;  %v3750_v50 = vpop.f32.mrb[75].mxu0 }
 0x189   :  { %v2442_v8 = vadd.f32 %v3684_v41, %v5345_v26  ;;  %v3687_v53 = vadd.f32 %v3686_v49, %v3685_v45  ;;  %v3751_v61 = vadd.f32 %v3750_v50, %v3749_v48 }
 0x18b   :  { %v5409_v20 = vadd.f32 %v3748_v60, %v2442_v8  ;;  %v2445_v9 = vadd.f32 %v3687_v53, %v5348_v27 }
 0x18d   :  { %v5412_v55 = vadd.f32 %v3751_v61, %v2445_v9  ;;  %v3688_v3 = vpop.f32.mrb[76].mxu1  ;;  %v3752_v56 = vpop.f32.mrb[76].mxu0 }
 0x18e   :  { %v3689_v57 = vpop.f32.mrb[77].mxu1  ;;  %v3753_v7 = vpop.f32.mrb[77].mxu0 }
 0x18f   :  { %v3690_v59 = vadd.f32 %v3689_v57, %v3688_v3  ;;  %v3754_v62 = vadd.f32 %v3753_v7, %v3752_v56  ;;  %v3691_v63 = vpop.f32.mrb[78].mxu1  ;;  %v3755_v5 = vpop.f32.mrb[78].mxu0 }
 0x190   :  { %v3692_v2 = vpop.f32.mrb[79].mxu1  ;;  %v3756_v6 = vpop.f32.mrb[79].mxu0 }
 0x191   :  { %v2450_v26 = vadd.f32 %v3690_v59, %v5351_v42  ;;  %v3693_v13 = vadd.f32 %v3692_v2, %v3691_v63  ;;  %v3757_v10 = vadd.f32 %v3756_v6, %v3755_v5 }
 0x193   :  { %v5415_v11 = vadd.f32 %v3754_v62, %v2450_v26  ;;  %v2453_v27 = vadd.f32 %v3693_v13, %v5354_v46 }
 0x195   :  { %v5418_v36 = vadd.f32 %v3757_v10, %v2453_v27  ;;  %v3774_v30 = vpop.f32.mrb[80].mxu1  ;;  %v3838_v14 = vpop.f32.mrb[80].mxu0 }
 0x196   :  { %v3775_v15 = vpop.f32.mrb[81].mxu1  ;;  %v3839_v32 = vpop.f32.mrb[81].mxu0 }
 0x197   :  { %v3776_v19 = vadd.f32 %v3775_v15, %v3774_v30  ;;  %v3840_v44 = vadd.f32 %v3839_v32, %v3838_v14  ;;  %v3777_v18 = vpop.f32.mrb[82].mxu1  ;;  %v3841_v23 = vpop.f32.mrb[82].mxu0 }
 0x198   :  { %v3778_v24 = vpop.f32.mrb[83].mxu1  ;;  %v3842_v25 = vpop.f32.mrb[83].mxu0 }
 0x199   :  { %v2588_v42 = vadd.f32 %v3776_v19, %v5373_v0  ;;  %v3779_v29 = vadd.f32 %v3778_v24, %v3777_v18  ;;  %v3843_v4 = vadd.f32 %v3842_v25, %v3841_v23 }
 0x19b   :  { %v5421_v31 = vadd.f32 %v3840_v44, %v2588_v42  ;;  %v2591_v46 = vadd.f32 %v3779_v29, %v5376_v1 }
 0x19d   :  { %v5424_v33 = vadd.f32 %v3843_v4, %v2591_v46  ;;  %v3780_v51 = vpop.f32.mrb[84].mxu1  ;;  %v3844_v12 = vpop.f32.mrb[84].mxu0 }
 0x19e   :  { %v3781_v34 = vpop.f32.mrb[85].mxu1  ;;  %v3845_v54 = vpop.f32.mrb[85].mxu0 }
 0x19f   :  { %v3782_v43 = vadd.f32 %v3781_v34, %v3780_v51  ;;  %v3846_v38 = vadd.f32 %v3845_v54, %v3844_v12  ;;  %v3783_v39 = vpop.f32.mrb[86].mxu1  ;;  %v3847_v47 = vpop.f32.mrb[86].mxu0 }
 0x1a0   :  { %v3784_v41 = vpop.f32.mrb[87].mxu1  ;;  %v3848_v60 = vpop.f32.mrb[87].mxu0 }
 0x1a1   :  { %v2596_v0 = vadd.f32 %v3782_v43, %v5379_v22  ;;  %v3785_v45 = vadd.f32 %v3784_v41, %v3783_v39  ;;  %v3849_v48 = vadd.f32 %v3848_v60, %v3847_v47 }
 0x1a3   :  { %v5427_v49 = vadd.f32 %v3846_v38, %v2596_v0  ;;  %v2599_v1 = vadd.f32 %v3785_v45, %v5382_v21 }
 0x1a5   :  { %v5430_v50 = vadd.f32 %v3849_v48, %v2599_v1  ;;  %v3786_v8 = vpop.f32.mrb[88].mxu1  ;;  %v3850_v53 = vpop.f32.mrb[88].mxu0 }
 0x1a6   :  { %v3787_v61 = vpop.f32.mrb[89].mxu1  ;;  %v3851_v9 = vpop.f32.mrb[89].mxu0 }
 0x1a7   :  { %v3788_v3 = vadd.f32 %v3787_v61, %v3786_v8  ;;  %v3852_v56 = vadd.f32 %v3851_v9, %v3850_v53  ;;  %v3789_v57 = vpop.f32.mrb[90].mxu1  ;;  %v3853_v7 = vpop.f32.mrb[90].mxu0 }
 0x1a8   :  { %v3790_v59 = vpop.f32.mrb[91].mxu1  ;;  %v3854_v62 = vpop.f32.mrb[91].mxu0 }
 0x1a9   :  { %v2604_v22 = vadd.f32 %v3788_v3, %v5385_v40  ;;  %v3791_v63 = vadd.f32 %v3790_v59, %v3789_v57  ;;  %v3855_v5 = vadd.f32 %v3854_v62, %v3853_v7 }
 0x1ab   :  { %v5433_v2 = vadd.f32 %v3852_v56, %v2604_v22  ;;  %v2607_v21 = vadd.f32 %v3791_v63, %v5388_v37 }
 0x1ad   :  { %v5436_v6 = vadd.f32 %v3855_v5, %v2607_v21  ;;  %v3792_v26 = vpop.f32.mrb[92].mxu1  ;;  %v3856_v13 = vpop.f32.mrb[92].mxu0 }
 0x1ae   :  { %v3793_v10 = vpop.f32.mrb[93].mxu1  ;;  %v3857_v27 = vpop.f32.mrb[93].mxu0 }
 0x1af   :  { %v3794_v30 = vadd.f32 %v3793_v10, %v3792_v26  ;;  %v3858_v14 = vadd.f32 %v3857_v27, %v3856_v13  ;;  %v3795_v15 = vpop.f32.mrb[94].mxu1  ;;  %v3859_v32 = vpop.f32.mrb[94].mxu0 }
 0x1b0   :  { %v3796_v19 = vpop.f32.mrb[95].mxu1  ;;  %v3860_v44 = vpop.f32.mrb[95].mxu0 }
 0x1b1   :  { %v2612_v40 = vadd.f32 %v3794_v30, %v5391_v28  ;;  %v3797_v18 = vadd.f32 %v3796_v19, %v3795_v15  ;;  %v3861_v23 = vadd.f32 %v3860_v44, %v3859_v32 }
 0x1b3   :  { %v5439_v24 = vadd.f32 %v3858_v14, %v2612_v40  ;;  %v2615_v37 = vadd.f32 %v3797_v18, %v5394_v58 }
 0x1b5   :  { %v5442_v25 = vadd.f32 %v3861_v23, %v2615_v37  ;;  %v3798_v42 = vpop.f32.mrb[96].mxu1  ;;  %v3862_v29 = vpop.f32.mrb[96].mxu0 }
 0x1b6   :  { %v3799_v4 = vpop.f32.mrb[97].mxu1  ;;  %v3863_v46 = vpop.f32.mrb[97].mxu0 }
 0x1b7   :  { %v3800_v51 = vadd.f32 %v3799_v4, %v3798_v42  ;;  %v3864_v12 = vadd.f32 %v3863_v46, %v3862_v29  ;;  %v3801_v34 = vpop.f32.mrb[98].mxu1  ;;  %v3865_v54 = vpop.f32.mrb[98].mxu0 }
 0x1b8   :  { %v3802_v43 = vpop.f32.mrb[99].mxu1  ;;  %v3866_v38 = vpop.f32.mrb[99].mxu0 }
 0x1b9   :  { %v2620_v28 = vadd.f32 %v3800_v51, %v5397_v16  ;;  %v3803_v39 = vadd.f32 %v3802_v43, %v3801_v34  ;;  %v3867_v47 = vadd.f32 %v3866_v38, %v3865_v54 }
 0x1bb   :  { %v5445_v41 = vadd.f32 %v3864_v12, %v2620_v28  ;;  %v2623_v58 = vadd.f32 %v3803_v39, %v5400_v17 }
 0x1bd   :  { %v5448_v60 = vadd.f32 %v3867_v47, %v2623_v58  ;;  %v3804_v0 = vpop.f32.mrb[100].mxu1  ;;  %v3868_v45 = vpop.f32.mrb[100].mxu0 }
 0x1be   :  { %v3805_v48 = vpop.f32.mrb[101].mxu1  ;;  %v3869_v1 = vpop.f32.mrb[101].mxu0 }
 0x1bf   :  { %v3806_v8 = vadd.f32 %v3805_v48, %v3804_v0  ;;  %v3870_v53 = vadd.f32 %v3869_v1, %v3868_v45  ;;  %v3807_v61 = vpop.f32.mrb[102].mxu1  ;;  %v3871_v9 = vpop.f32.mrb[102].mxu0 }
 0x1c0   :  { %v3808_v3 = vpop.f32.mrb[103].mxu1  ;;  %v3872_v56 = vpop.f32.mrb[103].mxu0 }
 0x1c1   :  { %v2628_v16 = vadd.f32 %v3806_v8, %v5403_v35  ;;  %v3809_v57 = vadd.f32 %v3808_v3, %v3807_v61  ;;  %v3873_v7 = vadd.f32 %v3872_v56, %v3871_v9  ;;  %v36_v3 = vld [vmem:[#allocation2] sm:$0xff] }
 0x1c3   :  { %v5451_v59 = vadd.f32 %v3870_v53, %v2628_v16  ;;  %v2631_v17 = vadd.f32 %v3809_v57, %v5406_v52  ;;  %v37_v16 = vld [vmem:[#allocation2 + $0x8] sm:$0xff] }
 0x1c5   :  { %v5454_v62 = vadd.f32 %v3873_v7, %v2631_v17  ;;  %v3810_v22 = vpop.f32.mrb[104].mxu1  ;;  %v3874_v63 = vpop.f32.mrb[104].mxu0 }
 0x1c6   :  { %v3811_v5 = vpop.f32.mrb[105].mxu1  ;;  %v3875_v21 = vpop.f32.mrb[105].mxu0 }
 0x1c7   :  { %v3812_v26 = vadd.f32 %v3811_v5, %v3810_v22  ;;  %v3876_v13 = vadd.f32 %v3875_v21, %v3874_v63  ;;  %v3813_v10 = vpop.f32.mrb[106].mxu1  ;;  %v3877_v27 = vpop.f32.mrb[106].mxu0 }
 0x1c8   :  { %v3814_v30 = vpop.f32.mrb[107].mxu1  ;;  %v3878_v14 = vpop.f32.mrb[107].mxu0 }
 0x1c9   :  { %v2636_v35 = vadd.f32 %v3812_v26, %v5409_v20  ;;  %v3815_v15 = vadd.f32 %v3814_v30, %v3813_v10  ;;  %v3879_v32 = vadd.f32 %v3878_v14, %v3877_v27 }
 0x1cb   :  { %v5457_v19 = vadd.f32 %v3876_v13, %v2636_v35  ;;  %v2639_v52 = vadd.f32 %v3815_v15, %v5412_v55  ;;  %v38_v15 = vld [vmem:[#allocation2 + $0x10] sm:$0xff] }
 0x1cd   :  { %v5460_v44 = vadd.f32 %v3879_v32, %v2639_v52  ;;  %v3816_v40 = vpop.f32.mrb[108].mxu1  ;;  %v3880_v18 = vpop.f32.mrb[108].mxu0 }
 0x1ce   :  { %v3817_v23 = vpop.f32.mrb[109].mxu1  ;;  %v3881_v37 = vpop.f32.mrb[109].mxu0 }
 0x1cf   :  { %v3818_v42 = vadd.f32 %v3817_v23, %v3816_v40  ;;  %v3882_v29 = vadd.f32 %v3881_v37, %v3880_v18  ;;  %v3819_v4 = vpop.f32.mrb[110].mxu1  ;;  %v3883_v46 = vpop.f32.mrb[110].mxu0  ;;  %v5477_v40 = vld [vmem:[%s5587_s2] ss:$0 sm:$0xff]  ;;  %v39_v18 = vld [vmem:[#allocation2 + $0x18] sm:$0xff] }
 0x1d0   :  { %v3820_v51 = vpop.f32.mrb[111].mxu1  ;;  %v3884_v12 = vpop.f32.mrb[111].mxu0 }
 0x1d1   :  { %v2644_v20 = vadd.f32 %v3818_v42, %v5415_v11  ;;  %v3821_v34 = vadd.f32 %v3820_v51, %v3819_v4  ;;  %v3885_v54 = vadd.f32 %v3884_v12, %v3883_v46 }
 0x1d3   :  { %v5463_v43 = vadd.f32 %v3882_v29, %v2644_v20  ;;  %v2647_v55 = vadd.f32 %v3821_v34, %v5418_v36 }
 0x1d5   :  { %v5466_v38 = vadd.f32 %v3885_v54, %v2647_v55  ;;  %v3902_v28 = vpop.f32.mrb[112].mxu1  ;;  %v3966_v39 = vpop.f32.mrb[112].mxu0 }
 0x1d6   :  { %v3903_v47 = vpop.f32.mrb[113].mxu1  ;;  %v3967_v58 = vpop.f32.mrb[113].mxu0 }
 0x1d7   :  { %v3904_v0 = vadd.f32 %v3903_v47, %v3902_v28  ;;  %v3968_v45 = vadd.f32 %v3967_v58, %v3966_v39  ;;  %v3905_v48 = vpop.f32.mrb[114].mxu1  ;;  %v3969_v1 = vpop.f32.mrb[114].mxu0 }
 0x1d8   :  { %v3906_v8 = vpop.f32.mrb[115].mxu1  ;;  %v3970_v53 = vpop.f32.mrb[115].mxu0 }
 0x1d9   :  { %v2782_v11 = vadd.f32 %v3904_v0, %v5421_v31  ;;  %v3907_v61 = vadd.f32 %v3906_v8, %v3905_v48  ;;  %v3971_v9 = vadd.f32 %v3970_v53, %v3969_v1  ;;  %v40_v48 = vld [vmem:[#allocation2 + $0x20] sm:$0xff] }
 0x1db   :  { %v2879_v56 = vadd.f32 %v3968_v45, %v2782_v11  ;;  %v2785_v36 = vadd.f32 %v3907_v61, %v5424_v33 }
 0x1dd   :  { %v2941_v57 = vadd.f32 %v2879_v56, %v36_v3  ;;  %v2882_v7 = vadd.f32 %v3971_v9, %v2785_v36  ;;  %v3908_v17 = vpop.f32.mrb[116].mxu1  ;;  %v3972_v22 = vpop.f32.mrb[116].mxu0  ;;  %v41_v9 = vld [vmem:[#allocation2 + $0x28] sm:$0xff] }
 0x1de   :  { %v3909_v63 = vpop.f32.mrb[117].mxu1  ;;  %v3973_v5 = vpop.f32.mrb[117].mxu0 }
 0x1df   :  { %2958 = vst.msk [vmem:[#allocation2] sm:$0xff] %vm19_vm0, %v2941_v57  ;;  %v2942_v21 = vadd.f32 %v2882_v7, %v37_v16  ;;  %v3910_v26 = vadd.f32 %v3909_v63, %v3908_v17  ;;  %v3974_v13 = vadd.f32 %v3973_v5, %v3972_v22  ;;  %v3911_v10 = vpop.f32.mrb[118].mxu1  ;;  %v3975_v31 = vpop.f32.mrb[118].mxu0 }
 0x1e0   :  { %v3912_v27 = vpop.f32.mrb[119].mxu1  ;;  %v3976_v30 = vpop.f32.mrb[119].mxu0 }
 0x1e1   :  { %2959 = vst.msk [vmem:[#allocation2 + $0x8] sm:$0xff] %vm19_vm0, %v2942_v21  ;;  %v2790_v33 = vadd.f32 %v3910_v26, %v5427_v49  ;;  %v3913_v14 = vadd.f32 %v3912_v27, %v3911_v10  ;;  %v3977_v35 = vadd.f32 %v3976_v30, %v3975_v31 }
 0x1e3   :  { %v2887_v32 = vadd.f32 %v3974_v13, %v2790_v33  ;;  %v2793_v52 = vadd.f32 %v3913_v14, %v5430_v50 }
 0x1e5   :  { %v2943_v23 = vadd.f32 %v2887_v32, %v38_v15  ;;  %v2890_v37 = vadd.f32 %v3977_v35, %v2793_v52  ;;  %v3914_v42 = vpop.f32.mrb[120].mxu1  ;;  %v3978_v29 = vpop.f32.mrb[120].mxu0  ;;  %v42_v35 = vld [vmem:[#allocation2 + $0x30] sm:$0xff] }
 0x1e6   :  { %v2977_v4 = vld [vmem:[#allocation2] sm:$0xff]  ;;  %v3915_v46 = vpop.f32.mrb[121].mxu1  ;;  %v3979_v51 = vpop.f32.mrb[121].mxu0 }
 0x1e7   :  { %v3000_v49 = vadd.f32 %v5477_v40, %v2977_v4  ;;  %2960 = vst.msk [vmem:[#allocation2 + $0x10] sm:$0xff] %vm19_vm0, %v2943_v23  ;;  %v2944_v12 = vadd.f32 %v2890_v37, %v39_v18  ;;  %v3916_v20 = vadd.f32 %v3915_v46, %v3914_v42  ;;  %v3980_v50 = vadd.f32 %v3979_v51, %v3978_v29  ;;  %v3917_v34 = vpop.f32.mrb[122].mxu1  ;;  %v3981_v54 = vpop.f32.mrb[122].mxu0  ;;  %v43_v37 = vld [vmem:[#allocation2 + $0x38] sm:$0xff] }
 0x1e8   :  { %v2978_v55 = vld [vmem:[#allocation2 + $0x8] sm:$0xff]  ;;  %v3918_v28 = vpop.f32.mrb[123].mxu1  ;;  %v3982_v39 = vpop.f32.mrb[123].mxu0 }
 0x1e9   :  { %v3016_v47 = vmax.f32 %v3000_v49, 0.0  ;;  %v3001_v58 = vadd.f32 %v5477_v40, %v2978_v55  ;;  %2961 = vst.msk [vmem:[#allocation2 + $0x18] sm:$0xff] %vm19_vm0, %v2944_v12  ;;  %v2798_v0 = vadd.f32 %v3916_v20, %v5433_v2  ;;  %v3919_v45 = vadd.f32 %v3918_v28, %v3917_v34 }
 0x1ea   :  { %v3983_v1 = vadd.f32 %v3982_v39, %v3981_v54 }
 0x1eb   :  { %v3422_v8 = vpack.c.bf16 %v3016_v47, %v3016_v47  ;;  %v3017_v53 = vmax.f32 %v3001_v58, 0.0  ;;  %v2895_v11 = vadd.f32 %v3980_v50, %v2798_v0  ;;  %v2801_v61 = vadd.f32 %v3919_v45, %v5436_v6 }
 0x1ed   :  { %3097 = vst.msk [vmem:[%s5588_s3] sm:$0xf] %vm3096_vm1, %v3422_v8  ;;  %v3423_v3 = vpack.c.bf16 %v3017_v53, %v3017_v53  ;;  %v2945_v56 = vadd.f32 %v2895_v11, %v40_v48  ;;  %v2898_v36 = vadd.f32 %v3983_v1, %v2801_v61  ;;  %v3920_v16 = vpop.f32.mrb[124].mxu1  ;;  %v3984_v2 = vpop.f32.mrb[124].mxu0  ;;  %v44_v1 = vld [vmem:[#allocation2 + $0x40] sm:$0xff] }
 0x1ee   :  { %v2979_v57 = vld [vmem:[#allocation2 + $0x10] sm:$0xff]  ;;  %v3921_v7 = vpop.f32.mrb[125].mxu1  ;;  %v3985_v17 = vpop.f32.mrb[125].mxu0 }
 0x1ef   :  { %3098 = vst.msk [vmem:[%s5588_s3 + $0x4] sm:$0xf] %vm3096_vm1, %v3423_v3  ;;  %v3002_v6 = vadd.f32 %v5477_v40, %v2979_v57  ;;  %v2946_v22 = vadd.f32 %v2898_v36, %v41_v9  ;;  %v3922_v63 = vadd.f32 %v3921_v7, %v3920_v16  ;;  %v3986_v5 = vadd.f32 %v3985_v17, %v3984_v2  ;;  %v3923_v21 = vpop.f32.mrb[126].mxu1  ;;  %v3987_v26 = vpop.f32.mrb[126].mxu0  ;;  %v45_v3 = vld [vmem:[#allocation2 + $0x48] sm:$0xff] }
 0x1f0   :  { %2962 = vst.msk [vmem:[#allocation2 + $0x20] sm:$0xff] %vm19_vm0, %v2945_v56  ;;  %v2980_v13 = vld [vmem:[#allocation2 + $0x18] sm:$0xff]  ;;  %v3924_v10 = vpop.f32.mrb[127].mxu1  ;;  %v3988_v31 = vpop.f32.mrb[127].mxu0 }
 0x1f1   :  { %v3018_v27 = vmax.f32 %v3002_v6, 0.0  ;;  %v3003_v30 = vadd.f32 %v5477_v40, %v2980_v13  ;;  %2963 = vst.msk [vmem:[#allocation2 + $0x28] sm:$0xff] %vm19_vm0, %v2946_v22  ;;  %v2806_v33 = vadd.f32 %v3922_v63, %v5439_v24  ;;  %v3925_v14 = vadd.f32 %v3924_v10, %v3923_v21 }
 0x1f2   :  { %v3989_v15 = vadd.f32 %v3988_v31, %v3987_v26 }
 0x1f3   :  { %v3424_v32 = vpack.c.bf16 %v3018_v27, %v3018_v27  ;;  %v3019_v52 = vmax.f32 %v3003_v30, 0.0  ;;  %v2903_v18 = vadd.f32 %v3986_v5, %v2806_v33  ;;  %v2809_v23 = vadd.f32 %v3925_v14, %v5442_v25  ;;  %v46_v14 = vld [vmem:[#allocation2 + $0x50] sm:$0xff] }
 0x1f5   :  { %3099 = vst.msk [vmem:[%s5588_s3 + $0x8] sm:$0xf] %vm3096_vm1, %v3424_v32  ;;  %v3425_v42 = vpack.c.bf16 %v3019_v52, %v3019_v52  ;;  %v2947_v29 = vadd.f32 %v2903_v18, %v42_v35  ;;  %v2906_v4 = vadd.f32 %v3989_v15, %v2809_v23  ;;  %v3926_v46 = vpop.f32.mrb[128].mxu1  ;;  %v3990_v51 = vpop.f32.mrb[128].mxu0  ;;  %v47_v23 = vld [vmem:[#allocation2 + $0x58] sm:$0xff] }
 0x1f6   :  { %v3927_v49 = vpop.f32.mrb[129].mxu1  ;;  %v3991_v12 = vpop.f32.mrb[129].mxu0 }
 0x1f7   :  { %v2981_v24 = vld [vmem:[#allocation2 + $0x20] sm:$0xff]  ;;  %3100 = vst.msk [vmem:[%s5588_s3 + $0xc] sm:$0xf] %vm3096_vm1, %v3425_v42  ;;  %v2948_v20 = vadd.f32 %v2906_v4, %v43_v37  ;;  %v3928_v50 = vadd.f32 %v3927_v49, %v3926_v46  ;;  %v3992_v34 = vadd.f32 %v3991_v12, %v3990_v51  ;;  %v3929_v54 = vpop.f32.mrb[130].mxu1  ;;  %v3993_v55 = vpop.f32.mrb[130].mxu0 }
 0x1f8   :  { %v3004_v25 = vadd.f32 %v5477_v40, %v2981_v24  ;;  %2964 = vst.msk [vmem:[#allocation2 + $0x30] sm:$0xff] %vm19_vm0, %v2947_v29  ;;  %v2982_v28 = vld [vmem:[#allocation2 + $0x28] sm:$0xff]  ;;  %v3930_v39 = vpop.f32.mrb[131].mxu1  ;;  %v3994_v47 = vpop.f32.mrb[131].mxu0 }
 0x1f9   :  { %v3005_v0 = vadd.f32 %v5477_v40, %v2982_v28  ;;  %2965 = vst.msk [vmem:[#allocation2 + $0x38] sm:$0xff] %vm19_vm0, %v2948_v20  ;;  %v2814_v45 = vadd.f32 %v3928_v50, %v5445_v41  ;;  %v3931_v48 = vadd.f32 %v3930_v39, %v3929_v54  ;;  %v3995_v8 = vadd.f32 %v3994_v47, %v3993_v55 }
 0x1fa   :  { %v3020_v58 = vmax.f32 %v3004_v25, 0.0 }
 0x1fb   :  { %v3021_v11 = vmax.f32 %v3005_v0, 0.0  ;;  %v2911_v61 = vadd.f32 %v3992_v34, %v2814_v45  ;;  %v2817_v9 = vadd.f32 %v3931_v48, %v5448_v60  ;;  %v48_v0 = vld [vmem:[#allocation2 + $0x60] sm:$0xff] }
 0x1fc   :  { %v3426_v53 = vpack.c.bf16 %v3020_v58, %v3020_v58 }
 0x1fd   :  { %v3427_v56 = vpack.c.bf16 %v3021_v11, %v3021_v11  ;;  %v2949_v36 = vadd.f32 %v2911_v61, %v44_v1  ;;  %v2914_v16 = vadd.f32 %v3995_v8, %v2817_v9  ;;  %v3932_v2 = vpop.f32.mrb[132].mxu1  ;;  %v3996_v57 = vpop.f32.mrb[132].mxu0  ;;  %v49_v11 = vld [vmem:[#allocation2 + $0x68] sm:$0xff] }
 0x1fe   :  { %3101 = vst.msk [vmem:[%s5588_s3 + $0x10] sm:$0xf] %vm3096_vm1, %v3426_v53  ;;  %v3933_v7 = vpop.f32.mrb[133].mxu1  ;;  %v3997_v17 = vpop.f32.mrb[133].mxu0 }
 0x1ff   :  { %v2983_v41 = vld [vmem:[#allocation2 + $0x30] sm:$0xff]  ;;  %3102 = vst.msk [vmem:[%s5588_s3 + $0x14] sm:$0xf] %vm3096_vm1, %v3427_v56  ;;  %v2950_v6 = vadd.f32 %v2914_v16, %v45_v3  ;;  %v3934_v22 = vadd.f32 %v3933_v7, %v3932_v2  ;;  %v3998_v63 = vadd.f32 %v3997_v17, %v3996_v57  ;;  %v3935_v5 = vpop.f32.mrb[134].mxu1  ;;  %v3999_v21 = vpop.f32.mrb[134].mxu0 }
 0x200   :  { %v3006_v60 = vadd.f32 %v5477_v40, %v2983_v41  ;;  %2966 = vst.msk [vmem:[#allocation2 + $0x40] sm:$0xff] %vm19_vm0, %v2949_v36  ;;  %v2984_v26 = vld [vmem:[#allocation2 + $0x38] sm:$0xff]  ;;  %v3936_v13 = vpop.f32.mrb[135].mxu1  ;;  %v4000_v10 = vpop.f32.mrb[135].mxu0 }
 0x201   :  { %v3007_v27 = vadd.f32 %v5477_v40, %v2984_v26  ;;  %2967 = vst.msk [vmem:[#allocation2 + $0x48] sm:$0xff] %vm19_vm0, %v2950_v6  ;;  %v2822_v30 = vadd.f32 %v3934_v22, %v5451_v59  ;;  %v3937_v33 = vadd.f32 %v3936_v13, %v3935_v5  ;;  %v4001_v35 = vadd.f32 %v4000_v10, %v3999_v21  ;;  %v50_v10 = vld [vmem:[#allocation2 + $0x70] sm:$0xff] }
 0x202   :  { %v3022_v31 = vmax.f32 %v3006_v60, 0.0 }
 0x203   :  { %v3023_v32 = vmax.f32 %v3007_v27, 0.0  ;;  %v2919_v52 = vadd.f32 %v3998_v63, %v2822_v30  ;;  %v2825_v18 = vadd.f32 %v3937_v33, %v5454_v62 }
 0x204   :  { %v3428_v15 = vpack.c.bf16 %v3022_v31, %v3022_v31 }
 0x205   :  { %v3429_v37 = vpack.c.bf16 %v3023_v32, %v3023_v32  ;;  %v2951_v42 = vadd.f32 %v2919_v52, %v46_v14  ;;  %v2922_v29 = vadd.f32 %v4001_v35, %v2825_v18  ;;  %v3938_v4 = vpop.f32.mrb[136].mxu1  ;;  %v4002_v46 = vpop.f32.mrb[136].mxu0  ;;  %v51_v35 = vld [vmem:[#allocation2 + $0x78] sm:$0xff] }
 0x206   :  { %3103 = vst.msk [vmem:[%s5588_s3 + $0x18] sm:$0xf] %vm3096_vm1, %v3428_v15  ;;  %v3939_v51 = vpop.f32.mrb[137].mxu1  ;;  %v4003_v24 = vpop.f32.mrb[137].mxu0 }
 0x207   :  { %v2985_v59 = vld [vmem:[#allocation2 + $0x40] sm:$0xff]  ;;  %3104 = vst.msk [vmem:[%s5588_s3 + $0x1c] sm:$0xf] %vm3096_vm1, %v3429_v37  ;;  %v2952_v49 = vadd.f32 %v2922_v29, %v47_v23  ;;  %v3940_v12 = vadd.f32 %v3939_v51, %v3938_v4  ;;  %v4004_v25 = vadd.f32 %v4003_v24, %v4002_v46  ;;  %v3941_v20 = vpop.f32.mrb[138].mxu1  ;;  %v4005_v50 = vpop.f32.mrb[138].mxu0 }
 0x208   :  { %v3008_v62 = vadd.f32 %v5477_v40, %v2985_v59  ;;  %2968 = vst.msk [vmem:[#allocation2 + $0x50] sm:$0xff] %vm19_vm0, %v2951_v42  ;;  %v2986_v34 = vld [vmem:[#allocation2 + $0x48] sm:$0xff]  ;;  %v3942_v54 = vpop.f32.mrb[139].mxu1  ;;  %v4006_v55 = vpop.f32.mrb[139].mxu0 }
 0x209   :  { %v3009_v39 = vadd.f32 %v5477_v40, %v2986_v34  ;;  %2969 = vst.msk [vmem:[#allocation2 + $0x58] sm:$0xff] %vm19_vm0, %v2952_v49  ;;  %v2830_v47 = vadd.f32 %v3940_v12, %v5457_v19  ;;  %v3943_v58 = vadd.f32 %v3942_v54, %v3941_v20  ;;  %v4007_v45 = vadd.f32 %v4006_v55, %v4005_v50 }
 0x20a   :  { %v3024_v28 = vmax.f32 %v3008_v62, 0.0 }
 0x20b   :  { %v3025_v1 = vmax.f32 %v3009_v39, 0.0  ;;  %v2927_v8 = vadd.f32 %v4004_v25, %v2830_v47  ;;  %v2833_v53 = vadd.f32 %v3943_v58, %v5460_v44 }
 0x20c   :  { %v3430_v48 = vpack.c.bf16 %v3024_v28, %v3024_v28 }
 0x20d   :  { %v3431_v61 = vpack.c.bf16 %v3025_v1, %v3025_v1  ;;  %v2953_v9 = vadd.f32 %v2927_v8, %v48_v0  ;;  %v2930_v3 = vadd.f32 %v4007_v45, %v2833_v53  ;;  %v3944_v56 = vpop.f32.mrb[140].mxu1  ;;  %v4008_v36 = vpop.f32.mrb[140].mxu0 }
 0x20e   :  { %3105 = vst.msk [vmem:[%s5588_s3 + $0x20] sm:$0xf] %vm3096_vm1, %v3430_v48  ;;  %v3945_v16 = vpop.f32.mrb[141].mxu1  ;;  %v4009_v2 = vpop.f32.mrb[141].mxu0 }
 0x20f   :  { %v2987_v19 = vld [vmem:[#allocation2 + $0x50] sm:$0xff]  ;;  %3106 = vst.msk [vmem:[%s5588_s3 + $0x24] sm:$0xf] %vm3096_vm1, %v3431_v61  ;;  %v2954_v57 = vadd.f32 %v2930_v3, %v49_v11  ;;  %v3946_v41 = vadd.f32 %v3945_v16, %v3944_v56  ;;  %v4010_v7 = vadd.f32 %v4009_v2, %v4008_v36  ;;  %v3947_v17 = vpop.f32.mrb[142].mxu1  ;;  %v4011_v60 = vpop.f32.mrb[142].mxu0 }
 0x210   :  { %v3010_v44 = vadd.f32 %v5477_v40, %v2987_v19  ;;  %2970 = vst.msk [vmem:[#allocation2 + $0x60] sm:$0xff] %vm19_vm0, %v2953_v9  ;;  %v2988_v6 = vld [vmem:[#allocation2 + $0x58] sm:$0xff]  ;;  %v3948_v22 = vpop.f32.mrb[143].mxu1  ;;  %v4012_v63 = vpop.f32.mrb[143].mxu0 }
 0x211   :  { %v3011_v21 = vadd.f32 %v5477_v40, %v2988_v6  ;;  %2971 = vst.msk [vmem:[#allocation2 + $0x68] sm:$0xff] %vm19_vm0, %v2954_v57  ;;  %v2838_v26 = vadd.f32 %v3946_v41, %v5463_v43  ;;  %v3949_v13 = vadd.f32 %v3948_v22, %v3947_v17  ;;  %v4013_v31 = vadd.f32 %v4012_v63, %v4011_v60 }
 0x212   :  { %v3026_v5 = vmax.f32 %v3010_v44, 0.0 }
 0x213   :  { %v3027_v30 = vmax.f32 %v3011_v21, 0.0  ;;  %v2935_v33 = vadd.f32 %v4010_v7, %v2838_v26  ;;  %v2841_v14 = vadd.f32 %v3949_v13, %v5466_v38 }
 0x214   :  { %v3432_v27 = vpack.c.bf16 %v3026_v5, %v3026_v5 }
 0x215   :  { %v3433_v15 = vpack.c.bf16 %v3027_v30, %v3027_v30  ;;  %v2955_v32 = vadd.f32 %v2935_v33, %v50_v10  ;;  %v2938_v52 = vadd.f32 %v4013_v31, %v2841_v14 }
 0x216   :  { %3107 = vst.msk [vmem:[%s5588_s3 + $0x28] sm:$0xf] %vm3096_vm1, %v3432_v27 }
 0x217   :  { %v2989_v18 = vld [vmem:[#allocation2 + $0x60] sm:$0xff]  ;;  %3108 = vst.msk [vmem:[%s5588_s3 + $0x2c] sm:$0xf] %vm3096_vm1, %v3433_v15  ;;  %v2956_v38 = vadd.f32 %v2938_v52, %v51_v35 }
 0x218   :  { %v3012_v43 = vadd.f32 %v5477_v40, %v2989_v18  ;;  %2972 = vst.msk [vmem:[#allocation2 + $0x70] sm:$0xff] %vm19_vm0, %v2955_v32  ;;  %v2990_v23 = vld [vmem:[#allocation2 + $0x68] sm:$0xff] }
 0x219   :  { %v3013_v42 = vadd.f32 %v5477_v40, %v2990_v23  ;;  %2973 = vst.msk [vmem:[#allocation2 + $0x78] sm:$0xff] %vm19_vm0, %v2956_v38 }
 0x21a   :  { %v3028_v37 = vmax.f32 %v3012_v43, 0.0 }
 0x21b   :  { %v3029_v4 = vmax.f32 %v3013_v42, 0.0 }
 0x21c   :  { %v3434_v29 = vpack.c.bf16 %v3028_v37, %v3028_v37 }
 0x21d   :  { %v3435_v46 = vpack.c.bf16 %v3029_v4, %v3029_v4 }
 0x21e   :  { %3109 = vst.msk [vmem:[%s5588_s3 + $0x30] sm:$0xf] %vm3096_vm1, %v3434_v29 }
 0x21f   :  { %v2991_v59 = vld [vmem:[#allocation2 + $0x70] sm:$0xff]  ;;  %3110 = vst.msk [vmem:[%s5588_s3 + $0x34] sm:$0xf] %vm3096_vm1, %v3435_v46 }
 0x220   :  { %v3014_v51 = vadd.f32 %v5477_v40, %v2991_v59  ;;  %v2992_v24 = vld [vmem:[#allocation2 + $0x78] sm:$0xff] }
 0x221   :  { %v3015_v49 = vadd.f32 %v5477_v40, %v2992_v24 }
 0x222   :  { %v3030_v62 = vmax.f32 %v3014_v51, 0.0 }
 0x223   :  { %v3031_v25 = vmax.f32 %v3015_v49, 0.0 }
 0x224   :  { %v3436_v12 = vpack.c.bf16 %v3030_v62, %v3030_v62 }
 0x225   :  { %v3437_v20 = vpack.c.bf16 %v3031_v25, %v3031_v25 }
 0x226   :  { %3111 = vst.msk [vmem:[%s5588_s3 + $0x38] sm:$0xf] %vm3096_vm1, %v3436_v12 }
 0x227   :  { %3112 = vst.msk [vmem:[%s5588_s3 + $0x3c] sm:$0xf] %vm3096_vm1, %v3437_v20 }

// kernel: _lambda_.15
= control target key start
LH: loop header
LB: loop body
LE: loop exit
PB: predicated region body
PF: predicated region fallthrough
CT: control target
= control target key end

     0   :  { %s4262_s12 = smov 0   ;;  %s4264_s13 = smov 0   ;;  %s5055_s0 = inlined_call_operand.vmem [shape: bf16[512,1152], index: 0, kind: input, shape index: {}]   ;;  %s5056_s1 = inlined_call_operand.vmem [shape: bf16[1152,128], index: 1, kind: input, shape index: {}]   ;;  %s5057_s2 = inlined_call_operand.vmem [shape: f32[1,128], index: 2, kind: input, shape index: {}]   ;;  %s5058_s3 = inlined_call_operand.vmem [shape: bf16[512,128], index: 3, kind: output, shape index: {}]  }
   0x1   :  { %s4266_s14 = smov 0  }
   0x2 LB: > { %s25_s15 = sadd.s32 1, %s4236_s13  ;;  %p2994_p0 = scmp.ge.s32.totalorder %s4240_s14, 1  ;;  %s4240_s14 = sphi %s4266_s14, %s13_s14   ;;  %s4236_s13 = sphi %s4264_s13, %s5060_s13   ;;  %s4232_s12 = sphi %s4262_s12, %s5059_s12  }
   0x3   : > { %p27_p1 = scmp.ge.s32.totalorder %s25_s15, 2  ;;  %p169_p2 = scmp.lt.s32.totalorder %s4240_s14, 3 }
   0x5   : > { %s5062_s15 = smov (%p27_p1, %s25_s15), 0  ;;  %p170_p3 = pnand %p2994_p0, %p169_p2 }
   0x6   : > { %v3938_v0 = vld [vmem:[%s5056_s1 + $0x40] sm:$0xff] (!%p170_p3)   ;;  %s2995_s18 = sshll.u32 (!%p170_p3), %s4232_s12, 5  ;;  %v3940_v2 = vld [vmem:[%s5056_s1 + $0x48] sm:$0xff] (!%p170_p3)   ;;  %v3942_v4 = vld [vmem:[%s5056_s1 + $0x50] sm:$0xff] (!%p170_p3)  }
   0x7   : > { %173 = sbr.rel (%p170_p3) target bundleno = 547 (0x223), region = 32  ;;  %v3939_v1 = vld [vmem:[%s5056_s1] sm:$0xff] (!%p170_p3)   ;;  %3377 = vmatprep.subr.bf16.mxu0 (!%p170_p3), %v3938_v0  ;;  %3897 = vmatprep.subr.bf16.mxu1 (!%p170_p3), %v3938_v0  ;;  %p205_p4 = scmp.lt.s32.totalorder (!%p170_p3), %s2995_s18, 63  ;;  %v3941_v3 = vld [vmem:[%s5056_s1 + $0x8] sm:$0xff] (!%p170_p3)   ;;  %v3943_v5 = vld [vmem:[%s5056_s1 + $0x10] sm:$0xff] (!%p170_p3)  }
   0x8   : > { %3378 = vmatpush3.bf16.msra.mxu0 (!%p170_p3), %v3939_v1  ;;  %3905 = vmatpush3.bf16.msra.mxu1 (!%p170_p3), %v3939_v1  ;;  %v3944_v6 = vld [vmem:[%s5056_s1 + $0x58] sm:$0xff] (!%p170_p3)   ;;  %v3946_v8 = vld [vmem:[%s5056_s1 + $0x60] sm:$0xff] (!%p170_p3)   ;;  %v3948_v10 = vld [vmem:[%s5056_s1 + $0x68] sm:$0xff] (!%p170_p3)  }
   0x9   : > { %3379 = vmatprep.subr.bf16.mxu0 (!%p170_p3), %v3940_v2  ;;  %3898 = vmatprep.subr.bf16.mxu1 (!%p170_p3), %v3940_v2  ;;  %v3945_v7 = vld [vmem:[%s5056_s1 + $0x18] sm:$0xff] (!%p170_p3)   ;;  %v3947_v9 = vld [vmem:[%s5056_s1 + $0x20] sm:$0xff] (!%p170_p3)   ;;  %v3949_v13 = vld [vmem:[%s5056_s1 + $0x28] sm:$0xff] (!%p170_p3)  }
   0xa   : > { %v3950_v14 = vld [vmem:[%s5056_s1 + $0x70] sm:$0xff] (!%p170_p3)   ;;  %v3952_v16 = vld [vmem:[%s5056_s1 + $0x78] sm:$0xff] (!%p170_p3)   ;;  %v3960_v18 = vld [vmem:[%s5056_s1 + $0xc0] sm:$0xff] (!%p170_p3)  }
   0xb   : > { %v3951_v15 = vld [vmem:[%s5056_s1 + $0x30] sm:$0xff] (!%p170_p3)   ;;  %v3953_v17 = vld [vmem:[%s5056_s1 + $0x38] sm:$0xff] (!%p170_p3)   ;;  %v3963_v21 = vld [vmem:[%s5056_s1 + $0x140] sm:$0xff] (!%p170_p3)  }
   0xc   : > { %3380 = vmatpush3.bf16.msra.mxu0 (!%p170_p3), %v3941_v3  ;;  %3906 = vmatpush3.bf16.msra.mxu1 (!%p170_p3), %v3941_v3  ;;  %v3961_v22 = vld [vmem:[%s5056_s1 + $0x80] sm:$0xff] (!%p170_p3)   ;;  %v3962_v23 = vld [vmem:[%s5056_s1 + $0xc8] sm:$0xff] (!%p170_p3)   ;;  %v3972_v31 = vld [vmem:[%s5056_s1 + $0xd0] sm:$0xff] (!%p170_p3)  }
   0xd   : > { %3381 = vmatprep.subr.bf16.mxu0 (!%p170_p3), %v3942_v4  ;;  %3899 = vmatprep.subr.bf16.mxu1 (!%p170_p3), %v3942_v4  ;;  %v3965_v24 = vld [vmem:[%s5056_s1 + $0x100] sm:$0xff] (!%p170_p3)   ;;  %v3964_v27 = vld [vmem:[%s5056_s1 + $0x88] sm:$0xff] (!%p170_p3)   ;;  %v3973_v32 = vld [vmem:[%s5056_s1 + $0x90] sm:$0xff] (!%p170_p3)  }
   0xe   : > { %s5064_s18 = smov (!%p205_p4, %s2995_s18), 63  ;;  %v3983_v28 = vld [vmem:[%s5056_s1 + $0x148] sm:$0xff]   ;;  %v3974_v34 = vld [vmem:[%s5056_s1 + $0xd8] sm:$0xff]   ;;  %v3982_v40 = vld [vmem:[%s5056_s1 + $0xe0] sm:$0xff]  }
   0xf   : > { %s3913_s4 = smul.u32 36, %s5064_s18  ;;  %v3985_v33 = vld [vmem:[%s5056_s1 + $0x108] sm:$0xff]   ;;  %v3975_v37 = vld [vmem:[%s5056_s1 + $0x98] sm:$0xff]   ;;  %v3984_v41 = vld [vmem:[%s5056_s1 + $0xa0] sm:$0xff]   ;;  %s2998_s6 = sshll.u32 %s5064_s18, 2 }
  0x10   : > { %3382 = vmatpush3.bf16.msra.mxu0 %v3943_v5  ;;  %3907 = vmatpush3.bf16.msra.mxu1 %v3943_v5  ;;  %v3986_v42 = vld [vmem:[%s5056_s1 + $0xe8] sm:$0xff]   ;;  %v3997_v43 = vld [vmem:[%s5056_s1 + $0x150] sm:$0xff]   ;;  %v3996_v52 = vld [vmem:[%s5056_s1 + $0xf8] sm:$0xff]   ;;  %s4960_s9 = scalar_lea.vmem %s5058_s3, %s2998_s6 }
  0x11   : > { %3383 = vmatprep.subr.bf16.mxu0 %v3944_v6  ;;  %3900 = vmatprep.subr.bf16.mxu1 %v3944_v6  ;;  %s4313_s11 = scalar_lea.vmem %s5055_s0, %s3913_s4  ;;  %v3999_v46 = vld [vmem:[%s5056_s1 + $0x110] sm:$0xff]   ;;  %v3987_v47 = vld [vmem:[%s5056_s1 + $0xa8] sm:$0xff]   ;;  %v4014_v55 = vld [vmem:[%s5056_s1 + $0x158] sm:$0xff]  }
  0x12   : > { %v3956_v11 = vld [vmem:[%s4313_s11 + $0x4] ss:$36 sps:$4 sm:$0xff]   ;;  %v3966_v25 = vld [vmem:[%s4313_s11 + $0x4c] ss:$36 sps:$4 sm:$0xff]   ;;  %v3976_v35 = vld [vmem:[%s4313_s11 + $0x94] ss:$36 sps:$4 sm:$0xff]  }
  0x13   : > { %v3959_v12 = vld [vmem:[%s4313_s11 + $0x364] ss:$36 sps:$4 sm:$0xff]   ;;  %1800 = vmatprep.mubr.bf16.mxu0 %v3956_v11  ;;  %v3968_v26 = vld [vmem:[%s4313_s11 + $0x3ac] ss:$36 sps:$4 sm:$0xff]   ;;  %v3978_v36 = vld [vmem:[%s4313_s11 + $0x3f4] ss:$36 sps:$4 sm:$0xff]  }
  0x14   : > { %3384 = vmatpush3.bf16.msra.mxu0 %v3945_v7  ;;  %3908 = vmatpush3.bf16.msra.mxu1 %v3945_v7  ;;  %v3954_v19 = vld [vmem:[%s4313_s11] ss:$36 sps:$4 sm:$0xff]   ;;  %v3970_v29 = vld [vmem:[%s4313_s11 + $0x48] ss:$36 sps:$4 sm:$0xff]   ;;  %v3980_v38 = vld [vmem:[%s4313_s11 + $0x90] ss:$36 sps:$4 sm:$0xff]  }
  0x15   : > { %3385 = vmatprep.subr.bf16.mxu0 %v3946_v8  ;;  %3901 = vmatprep.subr.bf16.mxu1 %v3946_v8  ;;  %v3957_v20 = vld [vmem:[%s4313_s11 + $0x360] ss:$36 sps:$4 sm:$0xff]   ;;  %v3971_v30 = vld [vmem:[%s4313_s11 + $0x3a8] ss:$36 sps:$4 sm:$0xff]   ;;  %v3981_v39 = vld [vmem:[%s4313_s11 + $0x3f0] ss:$36 sps:$4 sm:$0xff]  }
  0x16   : > { %1896 = vmatprep.mubr.bf16.mxu1 %v3959_v12  ;;  %v3988_v44 = vld [vmem:[%s4313_s11 + $0xdc] ss:$36 sps:$4 sm:$0xff]   ;;  %v3994_v48 = vld [vmem:[%s5056_s1 + $0xf0] sm:$0xff]   ;;  %v4000_v53 = vld [vmem:[%s4313_s11 + $0x124] ss:$36 sps:$4 sm:$0xff]  }
  0x17   : > { %v3990_v45 = vld [vmem:[%s4313_s11 + $0x43c] ss:$36 sps:$4 sm:$0xff]   ;;  %v3995_v51 = vld [vmem:[%s5056_s1 + $0xb0] sm:$0xff]   ;;  %v4002_v58 = vld [vmem:[%s4313_s11 + $0x8] ss:$36 sps:$4 sm:$0xff]  }
  0x18   : > { %3386 = vmatpush3.bf16.msra.mxu0 %v3947_v9  ;;  %3909 = vmatpush3.bf16.msra.mxu1 %v3947_v9  ;;  %v3992_v49 = vld [vmem:[%s4313_s11 + $0xd8] ss:$36 sps:$4 sm:$0xff]   ;;  %v4004_v54 = vld [vmem:[%s4313_s11 + $0xc] ss:$36 sps:$4 sm:$0xff]   ;;  %v4005_v59 = vld [vmem:[%s4313_s11 + $0x120] ss:$36 sps:$4 sm:$0xff]  }
  0x19   : > { %3387 = vmatprep.subr.bf16.mxu0 %v3948_v10  ;;  %3902 = vmatprep.subr.bf16.mxu1 %v3948_v10  ;;  %v3993_v50 = vld [vmem:[%s4313_s11 + $0x438] ss:$36 sps:$4 sm:$0xff]   ;;  %v4006_v60 = vld [vmem:[%s5056_s1 + $0x1c0] sm:$0xff]   ;;  %v4008_v62 = vld [vmem:[%s4313_s11 + $0x16c] ss:$36 sps:$4 sm:$0xff]  }
  0x1a   : > { %v4015_v56 = vld [vmem:[%s5056_s1 + $0x118] sm:$0xff]   ;;  %v4007_v61 = vld [vmem:[%s5056_s1 + $0x180] sm:$0xff]   ;;  %v4022_v1 = vld [vmem:[%s5056_s1 + $0x1c8] sm:$0xff]  }
  0x1b   : > { %v3998_v57 = vld [vmem:[%s5056_s1 + $0xb8] sm:$0xff]   ;;  %v4024_v0 = vld [vmem:[%s5056_s1 + $0x160] sm:$0xff]   ;;  %v4023_v3 = vld [vmem:[%s5056_s1 + $0x188] sm:$0xff]  }
  0x1c   : > { %3388 = vmatpush3.bf16.msra.mxu0 %v3949_v13  ;;  %3910 = vmatpush3.bf16.msra.mxu1 %v3949_v13  ;;  %v4010_v63 = vld [vmem:[%s4313_s11 + $0x54] ss:$36 sps:$4 sm:$0xff]   ;;  %v4025_v2 = vld [vmem:[%s5056_s1 + $0x120] sm:$0xff]   ;;  %v4012_v4 = vld [vmem:[%s4313_s11 + $0x168] ss:$36 sps:$4 sm:$0xff]  }
  0x1d   : > { %3389 = vmatprep.subr.bf16.mxu0 %v3950_v14  ;;  %3903 = vmatprep.subr.bf16.mxu1 %v3950_v14  ;;  %v4013_v5 = vld [vmem:[%s4313_s11 + $0x50] ss:$36 sps:$4 sm:$0xff]   ;;  %v4018_v7 = vld [vmem:[%s4313_s11 + $0x9c] ss:$36 sps:$4 sm:$0xff]   ;;  %v4038_v8 = vld [vmem:[%s5056_s1 + $0x168] sm:$0xff]  }
  0x1e   : > { %v4016_v6 = vld [vmem:[%s4313_s11 + $0x1b4] ss:$36 sps:$4 sm:$0xff]   ;;  %v4040_v10 = vld [vmem:[%s5056_s1 + $0x128] sm:$0xff]   ;;  %v4026_v14 = vld [vmem:[%s4313_s11 + $0x1fc] ss:$36 sps:$4 sm:$0xff]  }
  0x1f   : > { %v4039_v9 = vld [vmem:[%s5056_s1 + $0x1d0] sm:$0xff]   ;;  %v4021_v13 = vld [vmem:[%s4313_s11 + $0x98] ss:$36 sps:$4 sm:$0xff]  }
  0x20   : > { %3390 = vmatpush3.bf16.msra.mxu0 %v3951_v15  ;;  %3911 = vmatpush3.bf16.msra.mxu1 %v3951_v15  ;;  %v4041_v11 = vld [vmem:[%s5056_s1 + $0x190] sm:$0xff]  }
  0x21   : > { %3391 = vmatprep.subr.bf16.mxu0 %v3952_v16  ;;  %3904 = vmatprep.subr.bf16.mxu1 %v3952_v16  ;;  %v4020_v12 = vld [vmem:[%s4313_s11 + $0x1b0] ss:$36 sps:$4 sm:$0xff]  }
  0x22   : > { %v4048_v15 = vld [vmem:[%s5056_s1 + $0x170] sm:$0xff]  }
  0x23   : > { %v4049_v16 = vld [vmem:[%s5056_s1 + $0x130] sm:$0xff]  }
  0x24   : > { %3392 = vmatpush3.bf16.msra.mxu0 %v3953_v17  ;;  %3912 = vmatpush3.bf16.msra.mxu1 %v3953_v17  ;;  %v4028_v17 = vld [vmem:[%s4313_s11 + $0xe4] ss:$36 sps:$4 sm:$0xff]  }
  0x25   : > { %3489 = vmatprep.subr.bf16.mxu1 %v3960_v18  ;;  %3601 = vmatprep.subr.bf16.mxu0 %v3963_v21  ;;  %v4056_v18 = vld [vmem:[%s5056_s1 + $0x1d8] sm:$0xff]   ;;  %v4031_v21 = vld [vmem:[%s4313_s11 + $0xe0] ss:$36 sps:$4 sm:$0xff]  }
  0x27   : > { %1801 = vmatmul.mubr.bf16.vlgmr.msra.gmra.mrb[0].mxu0 %v3954_v19  ;;  %1897 = vmatmul.mubr.bf16.vlgmr.msra.gmra.mrb[0].mxu1 %v3957_v20  ;;  %v4057_v19 = vld [vmem:[%s5056_s1 + $0x198] sm:$0xff]  }
  0x28   : > { %3490 = vmatpush3.bf16.msra.mxu1 %v3961_v22  ;;  %3602 = vmatpush3.bf16.msra.mxu0 %v3965_v24  ;;  %v4030_v20 = vld [vmem:[%s4313_s11 + $0x1f8] ss:$36 sps:$4 sm:$0xff]   ;;  %v4032_v22 = vld [vmem:[%s4313_s11 + $0x244] ss:$36 sps:$4 sm:$0xff]  }
  0x29   : > { %3491 = vmatprep.subr.bf16.mxu1 %v3962_v23  ;;  %1808 = vmatprep.mubr.bf16.mxu0 %v3966_v25  ;;  %v4034_v23 = vld [vmem:[%s4313_s11 + $0x12c] ss:$36 sps:$4 sm:$0xff]   ;;  %v4064_v24 = vld [vmem:[%s5056_s1 + $0x178] sm:$0xff]  }
  0x2a   : > { %1904 = vmatprep.mubr.bf16.mxu1 %v3968_v26  ;;  %3603 = vmatprep.subr.bf16.mxu0 %v3983_v28  ;;  %v4065_v25 = vld [vmem:[%s5056_s1 + $0x138] sm:$0xff]   ;;  %v4072_v26 = vld [vmem:[%s5056_s1 + $0x1e0] sm:$0xff]  }
  0x2b   : > { %v4073_v28 = vld [vmem:[%s5056_s1 + $0x1a0] sm:$0xff]  }
  0x2c   : > { %3492 = vmatpush3.bf16.msra.mxu1 %v3964_v27  ;;  %3604 = vmatpush3.bf16.msra.mxu0 %v3985_v33  ;;  %v4036_v27 = vld [vmem:[%s4313_s11 + $0x240] ss:$36 sps:$4 sm:$0xff]   ;;  %v4087_v33 = vld [vmem:[%s5056_s1 + $0x1e8] sm:$0xff]  }
  0x2d   : > { %3493 = vmatprep.subr.bf16.mxu1 %v3972_v31  ;;  %3605 = vmatprep.subr.bf16.mxu0 %v3997_v43  ;;  %v4042_v31 = vld [vmem:[%s4313_s11 + $0x28c] ss:$36 sps:$4 sm:$0xff]   ;;  %v4058_v43 = vld [vmem:[%s4313_s11 + $0x31c] ss:$36 sps:$4 sm:$0xff]  }
  0x2f   : > { %1809 = vmatmul.mubr.bf16.gmra.mrb[4].mxu0 %v3970_v29  ;;  %1905 = vmatmul.mubr.bf16.gmra.mrb[4].mxu1 %v3971_v30  ;;  %v4074_v29 = vld [vmem:[%s5056_s1 + $0x200] sm:$0xff]   ;;  %v4037_v30 = vld [vmem:[%s4313_s11 + $0x128] ss:$36 sps:$4 sm:$0xff]  }
  0x30   : > { %3494 = vmatpush3.bf16.msra.mxu1 %v3973_v32  ;;  %1816 = vmatprep.mubr.bf16.mxu0 %v3976_v35  ;;  %v4044_v32 = vld [vmem:[%s4313_s11 + $0x174] ss:$36 sps:$4 sm:$0xff]   ;;  %v4088_v35 = vld [vmem:[%s5056_s1 + $0x1a8] sm:$0xff]  }
  0x31   : > { %3495 = vmatprep.subr.bf16.mxu1 %v3974_v34  ;;  %1912 = vmatprep.mubr.bf16.mxu1 %v3978_v36  ;;  %v4046_v34 = vld [vmem:[%s4313_s11 + $0x288] ss:$36 sps:$4 sm:$0xff]   ;;  %v4047_v36 = vld [vmem:[%s4313_s11 + $0x170] ss:$36 sps:$4 sm:$0xff]  }
  0x32   : > { %3606 = vmatpush3.bf16.msra.mxu0 %v3999_v46  ;;  %v4063_v46 = vld [vmem:[%s4313_s11 + $0x200] ss:$36 sps:$4 sm:$0xff]  }
  0x33   : > { %3607 = vmatprep.subr.bf16.mxu0 %v4014_v55  ;;  %v4089_v55 = vld [vmem:[%s5056_s1 + $0x208] sm:$0xff]  }
  0x34   : > { %3496 = vmatpush3.bf16.msra.mxu1 %v3975_v37  ;;  %v4050_v37 = vld [vmem:[%s4313_s11 + $0x2d4] ss:$36 sps:$4 sm:$0xff]  }
  0x35   : > { %3497 = vmatprep.subr.bf16.mxu1 %v3982_v40  ;;  %v4055_v40 = vld [vmem:[%s4313_s11 + $0x1b8] ss:$36 sps:$4 sm:$0xff]  }
  0x36   : > { %3608 = vmatpush3.bf16.msra.mxu0 %v4015_v56  ;;  %v4104_v56 = vld [vmem:[%s5056_s1 + $0x210] sm:$0xff]  }
  0x37   : > { %1817 = vmatmul.mubr.bf16.gmra.mrb[8].mxu0 %v3980_v38  ;;  %1913 = vmatmul.mubr.bf16.gmra.mrb[8].mxu1 %v3981_v39  ;;  %v4052_v38 = vld [vmem:[%s4313_s11 + $0x1bc] ss:$36 sps:$4 sm:$0xff]   ;;  %v4054_v39 = vld [vmem:[%s4313_s11 + $0x2d0] ss:$36 sps:$4 sm:$0xff]  }
  0x38   : > { %3498 = vmatpush3.bf16.msra.mxu1 %v3984_v41  ;;  %1824 = vmatprep.mubr.bf16.mxu0 %v3988_v44  ;;  %v4102_v41 = vld [vmem:[%s5056_s1 + $0x1f0] sm:$0xff]   ;;  %v4060_v44 = vld [vmem:[%s4313_s11 + $0x204] ss:$36 sps:$4 sm:$0xff]  }
  0x39   : > { %3499 = vmatprep.subr.bf16.mxu1 %v3986_v42  ;;  %1920 = vmatprep.mubr.bf16.mxu1 %v3990_v45  ;;  %v4103_v42 = vld [vmem:[%s5056_s1 + $0x1b0] sm:$0xff]   ;;  %v4062_v45 = vld [vmem:[%s4313_s11 + $0x318] ss:$36 sps:$4 sm:$0xff]  }
  0x3a   : > { %3609 = vmatprep.subr.bf16.mxu0 %v4024_v0  ;;  %v4086_v0 = vld [vmem:[%s4313_s11 + $0xa0] ss:$36 sps:$4 sm:$0xff]  }
  0x3b   : > { %3610 = vmatpush3.bf16.msra.mxu0 %v4025_v2  ;;  %v4092_v2 = vld [vmem:[%s4313_s11 + $0xec] ss:$36 sps:$4 sm:$0xff]  }
  0x3c   : > { %3500 = vmatpush3.bf16.msra.mxu1 %v3987_v47  ;;  %3611 = vmatprep.subr.bf16.mxu0 %v4038_v8  ;;  %v4117_v47 = vld [vmem:[%s5056_s1 + $0x1f8] sm:$0xff]  }
  0x3d   : > { %3501 = vmatprep.subr.bf16.mxu1 %v3994_v48  ;;  %v4118_v48 = vld [vmem:[%s5056_s1 + $0x1b8] sm:$0xff]  }
  0x3e   : > { %v4098_v8 = vld [vmem:[%s4313_s11 + $0x134] ss:$36 sps:$4 sm:$0xff]  }
  0x3f   : > { %1825 = vmatmul.mubr.bf16.gmra.mrb[12].mxu0 %v3992_v49  ;;  %1921 = vmatmul.mubr.bf16.gmra.mrb[12].mxu1 %v3993_v50  ;;  %v4066_v49 = vld [vmem:[%s4313_s11 + $0x24c] ss:$36 sps:$4 sm:$0xff]   ;;  %v4070_v50 = vld [vmem:[%s4313_s11 + $0x14] ss:$36 sps:$4 sm:$0xff]  }
  0x40   : > { %3502 = vmatpush3.bf16.msra.mxu1 %v3995_v51  ;;  %1832 = vmatprep.mubr.bf16.mxu0 %v4000_v53  ;;  %v4068_v51 = vld [vmem:[%s4313_s11 + $0x10] ss:$36 sps:$4 sm:$0xff]  }
  0x41   : > { %3503 = vmatprep.subr.bf16.mxu1 %v3996_v52  ;;  %1961 = vmatprep.mubr.bf16.mxu1 %v4004_v54  ;;  %v4071_v52 = vld [vmem:[%s4313_s11 + $0x248] ss:$36 sps:$4 sm:$0xff]   ;;  %v4075_v53 = vld [vmem:[%s4313_s11 + $0x294] ss:$36 sps:$4 sm:$0xff]   ;;  %v4077_v54 = vld [vmem:[%s4313_s11 + $0x5c] ss:$36 sps:$4 sm:$0xff]  }
  0x42   : > { %3612 = vmatpush3.bf16.msra.mxu0 %v4040_v10  ;;  %v4100_v10 = vld [vmem:[%s4313_s11 + $0x368] ss:$36 sps:$4 sm:$0xff]  }
  0x43   : > { %3613 = vmatprep.subr.bf16.mxu0 %v4048_v15  ;;  %v4110_v15 = vld [vmem:[%s4313_s11 + $0x178] ss:$36 sps:$4 sm:$0xff]  }
  0x44   : > { %3504 = vmatpush3.bf16.msra.mxu1 %v3998_v57  ;;  %v4079_v57 = vld [vmem:[%s4313_s11 + $0x290] ss:$36 sps:$4 sm:$0xff]  }
  0x45   : > { %3713 = vmatprep.subr.bf16.mxu1 %v4006_v60  ;;  %v4083_v60 = vld [vmem:[%s4313_s11 + $0xa4] ss:$36 sps:$4 sm:$0xff]  }
  0x46   : > { %3614 = vmatpush3.bf16.msra.mxu0 %v4049_v16  ;;  %v4111_v16 = vld [vmem:[%s4313_s11 + $0x3fc] ss:$36 sps:$4 sm:$0xff]  }
  0x47   : > { %1833 = vmatmul.mubr.bf16.gmra.mrb[16].mxu0 %v4005_v59  ;;  %1962 = vmatmul.mubr.bf16.vlgmr.msra.gmra.mrb[16].mxu1 %v4002_v58  ;;  %v4080_v58 = vld [vmem:[%s4313_s11 + $0x58] ss:$36 sps:$4 sm:$0xff]  }
  0x48   : > { %3714 = vmatpush3.bf16.msra.mxu1 %v4007_v61  ;;  %1840 = vmatprep.mubr.bf16.mxu0 %v4008_v62  ;;  %v4081_v59 = vld [vmem:[%s4313_s11 + $0x2dc] ss:$36 sps:$4 sm:$0xff]  }
  0x49   : > { %1969 = vmatprep.mubr.bf16.mxu1 %v4010_v63  ;;  %3715 = vmatprep.subr.bf16.mxu1 %v4022_v1  ;;  %v4119_v61 = vld [vmem:[%s5056_s1 + $0x218] sm:$0xff]   ;;  %v4132_v62 = vld [vmem:[%s5056_s1 + $0x220] sm:$0xff]  }
  0x4a   : > { %3615 = vmatprep.subr.bf16.mxu0 %v4064_v24  ;;  %v4085_v63 = vld [vmem:[%s4313_s11 + $0x2d8] ss:$36 sps:$4 sm:$0xff]   ;;  %v4090_v1 = vld [vmem:[%s4313_s11 + $0x324] ss:$36 sps:$4 sm:$0xff]  }
  0x4b   : > { %3616 = vmatpush3.bf16.msra.mxu0 %v4065_v25  ;;  %v4126_v24 = vld [vmem:[%s4313_s11 + $0x254] ss:$36 sps:$4 sm:$0xff]   ;;  %v4130_v25 = vld [vmem:[%s4313_s11 + $0x1c] ss:$36 sps:$4 sm:$0xff]  }
  0x4c   : > { %3716 = vmatpush3.bf16.msra.mxu1 %v4023_v3  ;;  %3849 = vmatprep.subr.bf16.mxu0 %v4074_v29  ;;  %v4145_v3 = vld [vmem:[%s5056_s1 + $0x228] sm:$0xff]  }
  0x4d   : > { %3717 = vmatprep.subr.bf16.mxu1 %v4039_v9  ;;  %v4171_v9 = vld [vmem:[%s5056_s1 + $0x238] sm:$0xff]  }
  0x4f   : > { %1841 = vmatmul.mubr.bf16.gmra.mrb[20].mxu0 %v4012_v4  ;;  %1970 = vmatmul.mubr.bf16.gmra.mrb[20].mxu1 %v4013_v5  ;;  %v4094_v4 = vld [vmem:[%s4313_s11 + $0x320] ss:$36 sps:$4 sm:$0xff]   ;;  %v4095_v5 = vld [vmem:[%s4313_s11 + $0xe8] ss:$36 sps:$4 sm:$0xff]  }
  0x50   : > { %1848 = vmatprep.mubr.bf16.mxu0 %v4016_v6  ;;  %1977 = vmatprep.mubr.bf16.mxu1 %v4018_v7  ;;  %v4158_v6 = vld [vmem:[%s5056_s1 + $0x230] sm:$0xff]  }
  0x51   : > { %3718 = vmatpush3.bf16.msra.mxu1 %v4041_v11  ;;  %v4096_v7 = vld [vmem:[%s4313_s11 + $0x36c] ss:$36 sps:$4 sm:$0xff]  }
  0x52   : > { %3719 = vmatprep.subr.bf16.mxu1 %v4056_v18  ;;  %v4101_v11 = vld [vmem:[%s4313_s11 + $0x130] ss:$36 sps:$4 sm:$0xff]   ;;  %v4115_v18 = vld [vmem:[%s4313_s11 + $0x3f8] ss:$36 sps:$4 sm:$0xff]  }
  0x55   : > { %3720 = vmatpush3.bf16.msra.mxu1 %v4057_v19  ;;  %v4116_v19 = vld [vmem:[%s4313_s11 + $0x1c0] ss:$36 sps:$4 sm:$0xff]  }
  0x56   : > { %3721 = vmatprep.subr.bf16.mxu1 %v4072_v26  ;;  %v4128_v26 = vld [vmem:[%s4313_s11 + $0x18] ss:$36 sps:$4 sm:$0xff]  }
  0x57   : > { %1849 = vmatmul.mubr.bf16.gmra.mrb[24].mxu0 %v4020_v12  ;;  %1978 = vmatmul.mubr.bf16.gmra.mrb[24].mxu1 %v4021_v13  ;;  %v4105_v12 = vld [vmem:[%s4313_s11 + $0x3b4] ss:$36 sps:$4 sm:$0xff]   ;;  %v4107_v13 = vld [vmem:[%s4313_s11 + $0x17c] ss:$36 sps:$4 sm:$0xff]  }
  0x58   : > { %1856 = vmatprep.mubr.bf16.mxu0 %v4026_v14  ;;  %1985 = vmatprep.mubr.bf16.mxu1 %v4028_v17  ;;  %v4109_v14 = vld [vmem:[%s4313_s11 + $0x3b0] ss:$36 sps:$4 sm:$0xff]   ;;  %v4113_v17 = vld [vmem:[%s4313_s11 + $0x1c4] ss:$36 sps:$4 sm:$0xff]  }
  0x59   : > { %3722 = vmatpush3.bf16.msra.mxu1 %v4073_v28  ;;  %v4133_v28 = vld [vmem:[%s4313_s11 + $0x29c] ss:$36 sps:$4 sm:$0xff]  }
  0x5a   : > { %3723 = vmatprep.subr.bf16.mxu1 %v4087_v33  ;;  %v4141_v33 = vld [vmem:[%s4313_s11 + $0xac] ss:$36 sps:$4 sm:$0xff]  }
  0x5d   : > { %3724 = vmatpush3.bf16.msra.mxu1 %v4088_v35  ;;  %v4144_v35 = vld [vmem:[%s4313_s11 + $0xa8] ss:$36 sps:$4 sm:$0xff]  }
  0x5e   : > { %3725 = vmatprep.subr.bf16.mxu1 %v4102_v41  ;;  %v4154_v41 = vld [vmem:[%s4313_s11 + $0x13c] ss:$36 sps:$4 sm:$0xff]  }
  0x5f   : > { %1857 = vmatmul.mubr.bf16.gmra.mrb[28].mxu0 %v4030_v20  ;;  %1986 = vmatmul.mubr.bf16.gmra.mrb[28].mxu1 %v4031_v21  ;;  %v4120_v20 = vld [vmem:[%s4313_s11 + $0x444] ss:$36 sps:$4 sm:$0xff]   ;;  %v4122_v21 = vld [vmem:[%s4313_s11 + $0x20c] ss:$36 sps:$4 sm:$0xff]  }
  0x60   : > { %1864 = vmatprep.mubr.bf16.mxu0 %v4032_v22  ;;  %1993 = vmatprep.mubr.bf16.mxu1 %v4034_v23  ;;  %v4124_v22 = vld [vmem:[%s4313_s11 + $0x440] ss:$36 sps:$4 sm:$0xff]   ;;  %v4125_v23 = vld [vmem:[%s4313_s11 + $0x208] ss:$36 sps:$4 sm:$0xff]  }
  0x61   : > { %3726 = vmatpush3.bf16.msra.mxu1 %v4103_v42  ;;  %v4156_v42 = vld [vmem:[%s4313_s11 + $0x370] ss:$36 sps:$4 sm:$0xff]  }
  0x62   : > { %3727 = vmatprep.subr.bf16.mxu1 %v4117_v47  ;;  %v4164_v47 = vld [vmem:[%s4313_s11 + $0x180] ss:$36 sps:$4 sm:$0xff]  }
  0x65   : > { %3728 = vmatpush3.bf16.msra.mxu1 %v4118_v48  ;;  %v4165_v48 = vld [vmem:[%s4313_s11 + $0x404] ss:$36 sps:$4 sm:$0xff]  }
  0x67   : > { %1865 = vmatmul.mubr.bf16.gmra.mrb[32].mxu0 %v4036_v27  ;;  %1994 = vmatmul.mubr.bf16.gmra.mrb[32].mxu1 %v4037_v30  ;;  %v4131_v27 = vld [vmem:[%s4313_s11 + $0x250] ss:$36 sps:$4 sm:$0xff]   ;;  %v4137_v30 = vld [vmem:[%s4313_s11 + $0x298] ss:$36 sps:$4 sm:$0xff]  }
  0x68   : > { %1872 = vmatprep.mubr.bf16.mxu0 %v4042_v31  ;;  %2001 = vmatprep.mubr.bf16.mxu1 %v4044_v32  ;;  %v4138_v31 = vld [vmem:[%s4313_s11 + $0x60] ss:$36 sps:$4 sm:$0xff]  }
  0x69   : > { %v4139_v32 = vld [vmem:[%s4313_s11 + $0x2e4] ss:$36 sps:$4 sm:$0xff]  }
  0x6f   : > { %1873 = vmatmul.mubr.bf16.gmra.mrb[36].mxu0 %v4046_v34  ;;  %2002 = vmatmul.mubr.bf16.gmra.mrb[36].mxu1 %v4047_v36  ;;  %v4143_v34 = vld [vmem:[%s4313_s11 + $0x2e0] ss:$36 sps:$4 sm:$0xff]   ;;  %v4146_v36 = vld [vmem:[%s4313_s11 + $0x32c] ss:$36 sps:$4 sm:$0xff]  }
  0x70   : > { %1880 = vmatprep.mubr.bf16.mxu0 %v4050_v37  ;;  %2009 = vmatprep.mubr.bf16.mxu1 %v4052_v38  ;;  %v4148_v37 = vld [vmem:[%s4313_s11 + $0xf4] ss:$36 sps:$4 sm:$0xff]   ;;  %v4150_v38 = vld [vmem:[%s4313_s11 + $0x328] ss:$36 sps:$4 sm:$0xff]  }
  0x77   : > { %1881 = vmatmul.mubr.bf16.gmra.mrb[40].mxu0 %v4054_v39  ;;  %2010 = vmatmul.mubr.bf16.gmra.mrb[40].mxu1 %v4055_v40  ;;  %v4151_v39 = vld [vmem:[%s4313_s11 + $0xf0] ss:$36 sps:$4 sm:$0xff]  }
  0x78   : > { %1888 = vmatprep.mubr.bf16.mxu0 %v4058_v43  ;;  %2017 = vmatprep.mubr.bf16.mxu1 %v4060_v44  ;;  %v4152_v40 = vld [vmem:[%s4313_s11 + $0x374] ss:$36 sps:$4 sm:$0xff]   ;;  %v4159_v44 = vld [vmem:[%s4313_s11 + $0x3bc] ss:$36 sps:$4 sm:$0xff]  }
  0x79   : > { %v4157_v43 = vld [vmem:[%s4313_s11 + $0x138] ss:$36 sps:$4 sm:$0xff]  }
  0x7f   : > { %1889 = vmatmul.mubr.bf16.gmra.mrb[44].mxu0 %v4062_v45  ;;  %2018 = vmatmul.mubr.bf16.gmra.mrb[44].mxu1 %v4063_v46  ;;  %v4161_v45 = vld [vmem:[%s4313_s11 + $0x184] ss:$36 sps:$4 sm:$0xff]   ;;  %v4163_v46 = vld [vmem:[%s4313_s11 + $0x3b8] ss:$36 sps:$4 sm:$0xff]  }
  0x80   : > { %2025 = vmatprep.mubr.bf16.mxu1 %v4066_v49  ;;  %2122 = vmatprep.mubr.bf16.mxu0 %v4070_v50  ;;  %v4167_v49 = vld [vmem:[%s4313_s11 + $0x1cc] ss:$36 sps:$4 sm:$0xff]   ;;  %v4169_v50 = vld [vmem:[%s4313_s11 + $0x400] ss:$36 sps:$4 sm:$0xff]  }
  0x87   : > { %2026 = vmatmul.mubr.bf16.gmra.mrb[48].mxu1 %v4071_v52  ;;  %2123 = vmatmul.mubr.bf16.vlgmr.msra.gmra.mrb[48].mxu0 %v4068_v51  ;;  %v4170_v51 = vld [vmem:[%s4313_s11 + $0x1c8] ss:$36 sps:$4 sm:$0xff]  }
  0x88   : > { %3850 = vmatpush3.bf16.msra.mxu0 %v4074_v29  ;;  %2033 = vmatprep.mubr.bf16.mxu1 %v4075_v53  ;;  %v4135_v29 = vld [vmem:[%s4313_s11 + $0x64] ss:$36 sps:$4 sm:$0xff]   ;;  %v4172_v52 = vld [vmem:[%s4313_s11 + $0x44c] ss:$36 sps:$4 sm:$0xff]   ;;  %v4174_v53 = vld [vmem:[%s4313_s11 + $0x214] ss:$36 sps:$4 sm:$0xff]  }
  0x89   : > { %2130 = vmatprep.mubr.bf16.mxu0 %v4077_v54  ;;  %3851 = vmatprep.subr.bf16.mxu0 %v4089_v55 }
  0x8c   : > { %3852 = vmatpush3.bf16.msra.mxu0 %v4089_v55 }
  0x8d   : > { %3853 = vmatprep.subr.bf16.mxu0 %v4104_v56 }
  0x8f   : > { %2034 = vmatmul.mubr.bf16.gmra.mrb[52].mxu1 %v4079_v57  ;;  %2131 = vmatmul.mubr.bf16.gmra.mrb[52].mxu0 %v4080_v58  ;;  %v4176_v58 = vld [vmem:[%s4313_s11 + $0x448] ss:$36 sps:$4 sm:$0xff]  }
  0x90   : > { %2041 = vmatprep.mubr.bf16.mxu1 %v4081_v59  ;;  %2138 = vmatprep.mubr.bf16.mxu0 %v4083_v60  ;;  %v4177_v59 = vld [vmem:[%s4313_s11 + $0x210] ss:$36 sps:$4 sm:$0xff]  }
  0x91   : > { %3854 = vmatpush3.bf16.msra.mxu0 %v4104_v56 }
  0x92   : > { %3855 = vmatprep.subr.bf16.mxu0 %v4119_v61 }
  0x95   : > { %3856 = vmatpush3.bf16.msra.mxu0 %v4119_v61 }
  0x96   : > { %3857 = vmatprep.subr.bf16.mxu0 %v4132_v62 }
  0x97   : > { %2042 = vmatmul.mubr.bf16.gmra.mrb[56].mxu1 %v4085_v63  ;;  %2139 = vmatmul.mubr.bf16.gmra.mrb[56].mxu0 %v4086_v0  ;;  %v4178_v0 = vld [vmem:[%s4313_s11 + $0x25c] ss:$36 sps:$4 sm:$0xff]  }
  0x98   : > { %2049 = vmatprep.mubr.bf16.mxu1 %v4090_v1  ;;  %2146 = vmatprep.mubr.bf16.mxu0 %v4092_v2  ;;  %v4180_v1 = vld [vmem:[%s4313_s11 + $0x20] ss:$36 sps:$4 sm:$0xff]  }
  0x99   : > { %3858 = vmatpush3.bf16.msra.mxu0 %v4132_v62 }
  0x9a   : > { %3859 = vmatprep.subr.bf16.mxu0 %v4145_v3 }
  0x9d   : > { %3860 = vmatpush3.bf16.msra.mxu0 %v4145_v3 }
  0x9e   : > { %3861 = vmatprep.subr.bf16.mxu0 %v4158_v6 }
  0x9f   : > { %2050 = vmatmul.mubr.bf16.gmra.mrb[60].mxu1 %v4094_v4  ;;  %2147 = vmatmul.mubr.bf16.gmra.mrb[60].mxu0 %v4095_v5 }
  0xa0   : > { %2057 = vmatprep.mubr.bf16.mxu1 %v4096_v7  ;;  %2154 = vmatprep.mubr.bf16.mxu0 %v4098_v8 }
  0xa1   : > { %3862 = vmatpush3.bf16.msra.mxu0 %v4158_v6 }
  0xa2   : > { %3863 = vmatprep.subr.bf16.mxu0 %v4171_v9 }
  0xa5   : > { %3864 = vmatpush3.bf16.msra.mxu0 %v4171_v9 }
  0xa7   : > { %2058 = vmatmul.mubr.bf16.gmra.mrb[64].mxu1 %v4100_v10  ;;  %2155 = vmatmul.mubr.bf16.gmra.mrb[64].mxu0 %v4101_v11  ;;  %v4181_v10 = vld [vmem:[%s4313_s11 + $0x258] ss:$36 sps:$4 sm:$0xff]   ;;  %v4182_v11 = vld [vmem:[%s4313_s11 + $0x68] ss:$36 sps:$4 sm:$0xff]  }
  0xa8   : > { %2065 = vmatprep.mubr.bf16.mxu1 %v4105_v12  ;;  %2162 = vmatprep.mubr.bf16.mxu0 %v4107_v13 }
  0xaf   : > { %2066 = vmatmul.mubr.bf16.gmra.mrb[68].mxu1 %v4109_v14  ;;  %2163 = vmatmul.mubr.bf16.gmra.mrb[68].mxu0 %v4110_v15 }
  0xb0   : > { %2073 = vmatprep.mubr.bf16.mxu1 %v4111_v16  ;;  %2170 = vmatprep.mubr.bf16.mxu0 %v4113_v17  ;;  %v4183_v16 = vld [vmem:[%s4313_s11 + $0x2a4] ss:$36 sps:$4 sm:$0xff]   ;;  %v4185_v17 = vld [vmem:[%s4313_s11 + $0xb0] ss:$36 sps:$4 sm:$0xff]  }
  0xb7   : > { %2074 = vmatmul.mubr.bf16.gmra.mrb[72].mxu1 %v4115_v18  ;;  %2171 = vmatmul.mubr.bf16.gmra.mrb[72].mxu0 %v4116_v19 }
  0xb8   : > { %2081 = vmatprep.mubr.bf16.mxu1 %v4120_v20  ;;  %2178 = vmatprep.mubr.bf16.mxu0 %v4122_v21 }
  0xbf   : > { %2082 = vmatmul.mubr.bf16.gmra.mrb[76].mxu1 %v4124_v22  ;;  %2179 = vmatmul.mubr.bf16.gmra.mrb[76].mxu0 %v4125_v23 }
  0xc0   : > { %2186 = vmatprep.mubr.bf16.mxu0 %v4126_v24  ;;  %2283 = vmatprep.mubr.bf16.mxu1 %v4130_v25 }
  0xc7   : > { %2187 = vmatmul.mubr.bf16.gmra.mrb[80].mxu0 %v4131_v27  ;;  %2284 = vmatmul.mubr.bf16.vlgmr.msra.gmra.mrb[80].mxu1 %v4128_v26  ;;  %v4186_v26 = vld [vmem:[%s4313_s11 + $0x2a0] ss:$36 sps:$4 sm:$0xff]   ;;  %v4187_v27 = vld [vmem:[%s4313_s11 + $0xf8] ss:$36 sps:$4 sm:$0xff]  }
  0xc8   : > { %2194 = vmatprep.mubr.bf16.mxu0 %v4133_v28  ;;  %2291 = vmatprep.mubr.bf16.mxu1 %v4135_v29 }
  0xcf   : > { %2195 = vmatmul.mubr.bf16.gmra.mrb[84].mxu0 %v4137_v30  ;;  %2292 = vmatmul.mubr.bf16.gmra.mrb[84].mxu1 %v4138_v31 }
  0xd0   : > { %2202 = vmatprep.mubr.bf16.mxu0 %v4139_v32  ;;  %2299 = vmatprep.mubr.bf16.mxu1 %v4141_v33  ;;  %v4188_v32 = vld [vmem:[%s4313_s11 + $0x2ec] ss:$36 sps:$4 sm:$0xff]   ;;  %v4190_v33 = vld [vmem:[%s4313_s11 + $0x140] ss:$36 sps:$4 sm:$0xff]  }
  0xd7   : > { %2203 = vmatmul.mubr.bf16.gmra.mrb[88].mxu0 %v4143_v34  ;;  %2300 = vmatmul.mubr.bf16.gmra.mrb[88].mxu1 %v4144_v35 }
  0xd8   : > { %2210 = vmatprep.mubr.bf16.mxu0 %v4146_v36  ;;  %2307 = vmatprep.mubr.bf16.mxu1 %v4148_v37 }
  0xdf   : > { %2211 = vmatmul.mubr.bf16.gmra.mrb[92].mxu0 %v4150_v38  ;;  %2308 = vmatmul.mubr.bf16.gmra.mrb[92].mxu1 %v4151_v39 }
  0xe0   : > { %2218 = vmatprep.mubr.bf16.mxu0 %v4152_v40  ;;  %2315 = vmatprep.mubr.bf16.mxu1 %v4154_v41 }
  0xe7   : > { %2219 = vmatmul.mubr.bf16.gmra.mrb[96].mxu0 %v4156_v42  ;;  %2316 = vmatmul.mubr.bf16.gmra.mrb[96].mxu1 %v4157_v43  ;;  %v4191_v42 = vld [vmem:[%s4313_s11 + $0x2e8] ss:$36 sps:$4 sm:$0xff]  }
  0xe8   : > { %2226 = vmatprep.mubr.bf16.mxu0 %v4159_v44  ;;  %2323 = vmatprep.mubr.bf16.mxu1 %v4161_v45  ;;  %v4192_v43 = vld [vmem:[%s4313_s11 + $0x188] ss:$36 sps:$4 sm:$0xff]  }
  0xef   : > { %2227 = vmatmul.mubr.bf16.gmra.mrb[100].mxu0 %v4163_v46  ;;  %2324 = vmatmul.mubr.bf16.gmra.mrb[100].mxu1 %v4164_v47 }
  0xf0   : > { %2234 = vmatprep.mubr.bf16.mxu0 %v4165_v48  ;;  %2331 = vmatprep.mubr.bf16.mxu1 %v4167_v49  ;;  %v4193_v48 = vld [vmem:[%s4313_s11 + $0x334] ss:$36 sps:$4 sm:$0xff]  }
  0xf1   : > { %v4195_v49 = vld [vmem:[%s4313_s11 + $0x1d0] ss:$36 sps:$4 sm:$0xff]  }
  0xf7   : > { %2235 = vmatmul.mubr.bf16.gmra.mrb[104].mxu0 %v4169_v50  ;;  %2332 = vmatmul.mubr.bf16.gmra.mrb[104].mxu1 %v4170_v51 }
  0xf8   : > { %2242 = vmatprep.mubr.bf16.mxu0 %v4172_v52  ;;  %2339 = vmatprep.mubr.bf16.mxu1 %v4174_v53 }
  0xfa   : > { %v3465_v54 = vpop.f32.mrb[0].mxu1  ;;  %v3393_v55 = vpop.f32.mrb[0].mxu0 }
  0xfb   : > { %v3466_v56 = vpop.f32.mrb[1].mxu1  ;;  %v3394_v57 = vpop.f32.mrb[1].mxu0 }
  0xfc   : > { %v4616_v60 = vadd.f32 %v3466_v56, %v3465_v54  ;;  %v3468_v61 = vpop.f32.mrb[2].mxu1  ;;  %v4618_v62 = vadd.f32 %v3394_v57, %v3393_v55  ;;  %v3396_v63 = vpop.f32.mrb[2].mxu0 }
  0xfd   : > { %v3469_v2 = vpop.f32.mrb[3].mxu1  ;;  %v3397_v3 = vpop.f32.mrb[3].mxu0 }
  0xfe   : > { %v4622_v4 = vadd.f32 %v3469_v2, %v3468_v61  ;;  %v4624_v5 = vadd.f32 %v3397_v3, %v3396_v63  ;;  %v4198_v2 = vld [vmem:[%s4313_s11 + $0x37c] ss:$36 sps:$4 sm:$0xff]  }
  0xff   : > { %2243 = vmatmul.mubr.bf16.gmra.mrb[108].mxu0 %v4176_v58  ;;  %2340 = vmatmul.mubr.bf16.gmra.mrb[108].mxu1 %v4177_v59  ;;  %v4196_v58 = vld [vmem:[%s4313_s11 + $0x330] ss:$36 sps:$4 sm:$0xff]   ;;  %v4197_v59 = vld [vmem:[%s4313_s11 + $0x218] ss:$36 sps:$4 sm:$0xff]   ;;  %v4200_v3 = vld [vmem:[%s4313_s11 + $0x260] ss:$36 sps:$4 sm:$0xff]  }
 0x100   : > { %2347 = vmatprep.mubr.bf16.mxu1 %v4178_v0  ;;  %3865 = vmatprep.mubr.bf16.mxu0 %v4180_v1 }
 0x102   : > { %v3471_v6 = vpop.f32.mrb[4].mxu1  ;;  %v3399_v7 = vpop.f32.mrb[4].mxu0 }
 0x103   : > { %v3472_v8 = vpop.f32.mrb[5].mxu1  ;;  %v3400_v9 = vpop.f32.mrb[5].mxu0 }
 0x104   : > { %v4628_v12 = vadd.f32 %v3472_v8, %v3471_v6  ;;  %v3474_v13 = vpop.f32.mrb[6].mxu1  ;;  %v4630_v14 = vadd.f32 %v3400_v9, %v3399_v7  ;;  %v3402_v15 = vpop.f32.mrb[6].mxu0 }
 0x105   : > { %v3475_v18 = vpop.f32.mrb[7].mxu1  ;;  %v3403_v19 = vpop.f32.mrb[7].mxu0 }
 0x106   : > { %v4634_v20 = vadd.f32 %v3475_v18, %v3474_v13  ;;  %v4636_v21 = vadd.f32 %v3403_v19, %v3402_v15  ;;  %v4201_v18 = vld [vmem:[%s4313_s11 + $0x378] ss:$36 sps:$4 sm:$0xff]   ;;  %v4202_v19 = vld [vmem:[%s4313_s11 + $0x2a8] ss:$36 sps:$4 sm:$0xff]  }
 0x107   : > { %2348 = vmatmul.mubr.bf16.gmra.mrb[112].mxu1 %v4181_v10  ;;  %3866 = vmatmul.mubr.bf16.vlgmr.msra.gmra.mrb[112].mxu0 %v4182_v11 }
 0x108   : > { %2355 = vmatprep.mubr.bf16.mxu1 %v4183_v16  ;;  %3869 = vmatprep.mubr.bf16.mxu0 %v4185_v17 }
 0x10a   : > { %v3477_v22 = vpop.f32.mrb[8].mxu1  ;;  %v3405_v23 = vpop.f32.mrb[8].mxu0 }
 0x10b   : > { %v3478_v24 = vpop.f32.mrb[9].mxu1  ;;  %v3406_v25 = vpop.f32.mrb[9].mxu0 }
 0x10c   : > { %v4640_v28 = vadd.f32 %v3478_v24, %v3477_v22  ;;  %v3480_v29 = vpop.f32.mrb[10].mxu1  ;;  %v4642_v30 = vadd.f32 %v3406_v25, %v3405_v23  ;;  %v3408_v31 = vpop.f32.mrb[10].mxu0  ;;  %v4203_v25 = vld [vmem:[%s4313_s11 + $0x3c4] ss:$36 sps:$4 sm:$0xff]  }
 0x10d   : > { %v3481_v34 = vpop.f32.mrb[11].mxu1  ;;  %v3409_v35 = vpop.f32.mrb[11].mxu0 }
 0x10e   : > { %v4646_v36 = vadd.f32 %v3481_v34, %v3480_v29  ;;  %v4648_v37 = vadd.f32 %v3409_v35, %v3408_v31 }
 0x10f   : > { %2356 = vmatmul.mubr.bf16.gmra.mrb[116].mxu1 %v4186_v26  ;;  %3870 = vmatmul.mubr.bf16.gmra.mrb[116].mxu0 %v4187_v27  ;;  %v4205_v26 = vld [vmem:[%s4313_s11 + $0x2f0] ss:$36 sps:$4 sm:$0xff]  }
 0x110   : > { %2363 = vmatprep.mubr.bf16.mxu1 %v4188_v32  ;;  %3873 = vmatprep.mubr.bf16.mxu0 %v4190_v33 }
 0x112   : > { %v3483_v38 = vpop.f32.mrb[12].mxu1  ;;  %v3411_v39 = vpop.f32.mrb[12].mxu0 }
 0x113   : > { %v3484_v40 = vpop.f32.mrb[13].mxu1  ;;  %v3412_v41 = vpop.f32.mrb[13].mxu0 }
 0x114   : > { %v4652_v44 = vadd.f32 %v3484_v40, %v3483_v38  ;;  %v3486_v45 = vpop.f32.mrb[14].mxu1  ;;  %v4654_v46 = vadd.f32 %v3412_v41, %v3411_v39  ;;  %v3414_v47 = vpop.f32.mrb[14].mxu0  ;;  %v4206_v40 = vld [vmem:[%s4313_s11 + $0x3c0] ss:$36 sps:$4 sm:$0xff]   ;;  %v4207_v41 = vld [vmem:[%s4313_s11 + $0x338] ss:$36 sps:$4 sm:$0xff]  }
 0x115   : > { %v3487_v50 = vpop.f32.mrb[15].mxu1  ;;  %v3415_v51 = vpop.f32.mrb[15].mxu0 }
 0x116   : > { %v4658_v52 = vadd.f32 %v3487_v50, %v3486_v45  ;;  %v4660_v53 = vadd.f32 %v3415_v51, %v3414_v47  ;;  %v4208_v47 = vld [vmem:[%s4313_s11 + $0x40c] ss:$36 sps:$4 sm:$0xff]  }
 0x117   : > { %2364 = vmatmul.mubr.bf16.gmra.mrb[120].mxu1 %v4191_v42  ;;  %3874 = vmatmul.mubr.bf16.gmra.mrb[120].mxu0 %v4192_v43 }
 0x118   : > { %2371 = vmatprep.mubr.bf16.mxu1 %v4193_v48  ;;  %3877 = vmatprep.mubr.bf16.mxu0 %v4195_v49  ;;  %v4210_v48 = vld [vmem:[%s4313_s11 + $0x380] ss:$36 sps:$4 sm:$0xff]  }
 0x11a   : > { %v3505_v54 = vpop.f32.mrb[16].mxu1  ;;  %v3417_v55 = vpop.f32.mrb[16].mxu0 }
 0x11b   : > { %v3506_v56 = vpop.f32.mrb[17].mxu1  ;;  %v3418_v57 = vpop.f32.mrb[17].mxu0 }
 0x11c   : > { %v3507_v61 = vadd.f32 %v3506_v56, %v3505_v54  ;;  %v3508_v63 = vpop.f32.mrb[18].mxu1  ;;  %v4664_v0 = vadd.f32 %v3418_v57, %v3417_v55  ;;  %v3420_v1 = vpop.f32.mrb[18].mxu0 }
 0x11d   : > { %v3509_v6 = vpop.f32.mrb[19].mxu1  ;;  %v3421_v7 = vpop.f32.mrb[19].mxu0 }
 0x11e   : > { %v4669_v8 = vadd.f32 %v3507_v61, %v4618_v62  ;;  %v3510_v9 = vadd.f32 %v3509_v6, %v3508_v63  ;;  %v4671_v10 = vadd.f32 %v3421_v7, %v3420_v1  ;;  %v4211_v61 = vld [vmem:[%s4313_s11 + $0x408] ss:$36 sps:$4 sm:$0xff]   ;;  %v4213_v6 = vld [vmem:[%s4313_s11 + $0x454] ss:$36 sps:$4 sm:$0xff]  }
 0x11f   : > { %2372 = vmatmul.mubr.bf16.gmra.mrb[124].mxu1 %v4196_v58  ;;  %3878 = vmatmul.mubr.bf16.gmra.mrb[124].mxu0 %v4197_v59  ;;  %v4212_v63 = vld [vmem:[%s4313_s11 + $0x3c8] ss:$36 sps:$4 sm:$0xff]   ;;  %v4215_v7 = vld [vmem:[%s4313_s11 + $0x410] ss:$36 sps:$4 sm:$0xff]  }
 0x120   : > { %v4674_v11 = vadd.f32 %v3510_v9, %v4624_v5  ;;  %2379 = vmatprep.mubr.bf16.mxu1 %v4198_v2  ;;  %3881 = vmatprep.mubr.bf16.mxu0 %v4200_v3 }
 0x122   : > { %v3511_v13 = vpop.f32.mrb[20].mxu1  ;;  %v3423_v15 = vpop.f32.mrb[20].mxu0 }
 0x123   : > { %v3512_v16 = vpop.f32.mrb[21].mxu1  ;;  %v3424_v17 = vpop.f32.mrb[21].mxu0 }
 0x124   : > { %v3513_v62 = vadd.f32 %v3512_v16, %v3511_v13  ;;  %v3514_v22 = vpop.f32.mrb[22].mxu1  ;;  %v4678_v23 = vadd.f32 %v3424_v17, %v3423_v15  ;;  %v3426_v24 = vpop.f32.mrb[22].mxu0 }
 0x125   : > { %v3515_v27 = vpop.f32.mrb[23].mxu1  ;;  %v3427_v5 = vpop.f32.mrb[23].mxu0 }
 0x126   : > { %v4683_v29 = vadd.f32 %v3513_v62, %v4630_v14  ;;  %v3516_v31 = vadd.f32 %v3515_v27, %v3514_v22  ;;  %v4685_v32 = vadd.f32 %v3427_v5, %v3426_v24  ;;  %v4216_v24 = vld [vmem:[%s4313_s11 + $0x450] ss:$36 sps:$4 sm:$0xff]  }
 0x127   : > { %2380 = vmatmul.mubr.bf16.gmra.mrb[128].mxu1 %v4201_v18  ;;  %3882 = vmatmul.mubr.bf16.gmra.mrb[128].mxu0 %v4202_v19 }
 0x128   : > { %v4688_v33 = vadd.f32 %v3516_v31, %v4636_v21  ;;  %2387 = vmatprep.mubr.bf16.mxu1 %v4203_v25  ;;  %3885 = vmatprep.mubr.bf16.mxu0 %v4205_v26  ;;  %v4217_v25 = vld [vmem:[%s4313_s11 + $0x458] ss:$36 sps:$4 sm:$0xff]  }
 0x12a   : > { %v3517_v34 = vpop.f32.mrb[24].mxu1  ;;  %v3429_v35 = vpop.f32.mrb[24].mxu0 }
 0x12b   : > { %v3518_v38 = vpop.f32.mrb[25].mxu1  ;;  %v3430_v39 = vpop.f32.mrb[25].mxu0 }
 0x12c   : > { %v3519_v14 = vadd.f32 %v3518_v38, %v3517_v34  ;;  %v3520_v42 = vpop.f32.mrb[26].mxu1  ;;  %v4692_v43 = vadd.f32 %v3430_v39, %v3429_v35  ;;  %v3432_v45 = vpop.f32.mrb[26].mxu0 }
 0x12d   : > { %v3521_v49 = vpop.f32.mrb[27].mxu1  ;;  %v3433_v21 = vpop.f32.mrb[27].mxu0 }
 0x12e   : > { %v4697_v50 = vadd.f32 %v3519_v14, %v4642_v30  ;;  %v3522_v51 = vadd.f32 %v3521_v49, %v3520_v42  ;;  %v4699_v54 = vadd.f32 %v3433_v21, %v3432_v45 }
 0x12f   : > { %2388 = vmatmul.mubr.bf16.gmra.mrb[132].mxu1 %v4206_v40  ;;  %3886 = vmatmul.mubr.bf16.gmra.mrb[132].mxu0 %v4207_v41 }
 0x130   : > { %v4702_v55 = vadd.f32 %v3522_v51, %v4648_v37  ;;  %2395 = vmatprep.mubr.bf16.mxu1 %v4208_v47  ;;  %3889 = vmatprep.mubr.bf16.mxu0 %v4210_v48 }
 0x132   : > { %v3523_v56 = vpop.f32.mrb[28].mxu1  ;;  %v3435_v57 = vpop.f32.mrb[28].mxu0 }
 0x133   : > { %v3524_v58 = vpop.f32.mrb[29].mxu1  ;;  %v3436_v59 = vpop.f32.mrb[29].mxu0 }
 0x134   : > { %v3525_v30 = vadd.f32 %v3524_v58, %v3523_v56  ;;  %v3526_v1 = vpop.f32.mrb[30].mxu1  ;;  %v4706_v2 = vadd.f32 %v3436_v59, %v3435_v57  ;;  %v3438_v3 = vpop.f32.mrb[30].mxu0 }
 0x135   : > { %v3527_v9 = vpop.f32.mrb[31].mxu1  ;;  %v3439_v37 = vpop.f32.mrb[31].mxu0 }
 0x136   : > { %v4711_v13 = vadd.f32 %v3525_v30, %v4654_v46  ;;  %v3528_v15 = vadd.f32 %v3527_v9, %v3526_v1  ;;  %v4713_v16 = vadd.f32 %v3439_v37, %v3438_v3 }
 0x137   : > { %2396 = vmatmul.mubr.bf16.gmra.mrb[136].mxu1 %v4211_v61  ;;  %3890 = vmatmul.mubr.bf16.gmra.mrb[136].mxu0 %v4212_v63 }
 0x138   : > { %v4716_v17 = vadd.f32 %v3528_v15, %v4660_v53  ;;  %2403 = vmatprep.mubr.bf16.mxu1 %v4213_v6  ;;  %3893 = vmatprep.mubr.bf16.mxu0 %v4215_v7 }
 0x13a   : > { %v3529_v18 = vpop.f32.mrb[32].mxu1  ;;  %v3441_v19 = vpop.f32.mrb[32].mxu0 }
 0x13b   : > { %v3530_v62 = vpop.f32.mrb[33].mxu1  ;;  %v3442_v22 = vpop.f32.mrb[33].mxu0 }
 0x13c   : > { %v3531_v26 = vadd.f32 %v3530_v62, %v3529_v18  ;;  %v3532_v27 = vpop.f32.mrb[34].mxu1  ;;  %v3443_v46 = vadd.f32 %v3442_v22, %v3441_v19  ;;  %v3444_v5 = vpop.f32.mrb[34].mxu0 }
 0x13d   : > { %v3533_v31 = vpop.f32.mrb[35].mxu1  ;;  %v3445_v34 = vpop.f32.mrb[35].mxu0 }
 0x13e   : > { %v4721_v35 = vadd.f32 %v3531_v26, %v4664_v0  ;;  %v3534_v38 = vadd.f32 %v3533_v31, %v3532_v27  ;;  %v3446_v53 = vadd.f32 %v3445_v34, %v3444_v5 }
 0x13f   : > { %2404 = vmatmul.mubr.bf16.gmra.mrb[140].mxu1 %v4216_v24  ;;  %3894 = vmatmul.mubr.bf16.gmra.mrb[140].mxu0 %v4217_v25 }
 0x140   : > { %v4724_v39 = vadd.f32 %v3534_v38, %v4671_v10 }
 0x142   : > { %v3535_v40 = vpop.f32.mrb[36].mxu1  ;;  %v3447_v41 = vpop.f32.mrb[36].mxu0 }
 0x143   : > { %v3536_v14 = vpop.f32.mrb[37].mxu1  ;;  %v3448_v42 = vpop.f32.mrb[37].mxu0 }
 0x144   : > { %v3537_v45 = vadd.f32 %v3536_v14, %v3535_v40  ;;  %v3538_v47 = vpop.f32.mrb[38].mxu1  ;;  %v3449_v48 = vadd.f32 %v3448_v42, %v3447_v41  ;;  %v3450_v49 = vpop.f32.mrb[38].mxu0 }
 0x145   : > { %v3539_v21 = vpop.f32.mrb[39].mxu1  ;;  %v3451_v51 = vpop.f32.mrb[39].mxu0 }
 0x146   : > { %v4727_v0 = vadd.f32 %v3537_v45, %v4678_v23  ;;  %v3540_v56 = vadd.f32 %v3539_v21, %v3538_v47  ;;  %v3452_v57 = vadd.f32 %v3451_v51, %v3450_v49 }
 0x148   : > { %v4730_v58 = vadd.f32 %v3540_v56, %v4685_v32 }
 0x14a   : > { %v3541_v10 = vpop.f32.mrb[40].mxu1  ;;  %v3453_v59 = vpop.f32.mrb[40].mxu0 }
 0x14b   : > { %v3542_v61 = vpop.f32.mrb[41].mxu1  ;;  %v3454_v63 = vpop.f32.mrb[41].mxu0 }
 0x14c   : > { %v3543_v30 = vadd.f32 %v3542_v61, %v3541_v10  ;;  %v3544_v1 = vpop.f32.mrb[42].mxu1  ;;  %v4732_v3 = vadd.f32 %v3454_v63, %v3453_v59  ;;  %v3456_v6 = vpop.f32.mrb[42].mxu0 }
 0x14d   : > { %v3545_v7 = vpop.f32.mrb[43].mxu1  ;;  %v3457_v9 = vpop.f32.mrb[43].mxu0 }
 0x14e   : > { %v4735_v37 = vadd.f32 %v3543_v30, %v4692_v43  ;;  %v3546_v23 = vadd.f32 %v3545_v7, %v3544_v1  ;;  %v3458_v15 = vadd.f32 %v3457_v9, %v3456_v6 }
 0x150   : > { %v4738_v18 = vadd.f32 %v3546_v23, %v4699_v54 }
 0x152   : > { %v3547_v32 = vpop.f32.mrb[44].mxu1  ;;  %v3459_v19 = vpop.f32.mrb[44].mxu0 }
 0x153   : > { %v3548_v62 = vpop.f32.mrb[45].mxu1  ;;  %v3460_v22 = vpop.f32.mrb[45].mxu0 }
 0x154   : > { %v3549_v24 = vadd.f32 %v3548_v62, %v3547_v32  ;;  %v3550_v25 = vpop.f32.mrb[46].mxu1  ;;  %v4740_v26 = vadd.f32 %v3460_v22, %v3459_v19  ;;  %v3462_v27 = vpop.f32.mrb[46].mxu0 }
 0x155   : > { %v3551_v5 = vpop.f32.mrb[47].mxu1  ;;  %v3463_v31 = vpop.f32.mrb[47].mxu0 }
 0x156   : > { %v4743_v34 = vadd.f32 %v3549_v24, %v4706_v2  ;;  %v3552_v43 = vadd.f32 %v3551_v5, %v3550_v25  ;;  %v4745_v38 = vadd.f32 %v3463_v31, %v3462_v27 }
 0x158   : > { %v4748_v54 = vadd.f32 %v3552_v43, %v4713_v16 }
 0x15a   : > { %v3553_v40 = vpop.f32.mrb[48].mxu1  ;;  %v3617_v41 = vpop.f32.mrb[48].mxu0 }
 0x15b   : > { %v3554_v14 = vpop.f32.mrb[49].mxu1  ;;  %v3618_v42 = vpop.f32.mrb[49].mxu0 }
 0x15c   : > { %v3555_v45 = vadd.f32 %v3554_v14, %v3553_v40  ;;  %v3619_v47 = vadd.f32 %v3618_v42, %v3617_v41  ;;  %v3556_v49 = vpop.f32.mrb[50].mxu1  ;;  %v3620_v21 = vpop.f32.mrb[50].mxu0 }
 0x15d   : > { %v3557_v51 = vpop.f32.mrb[51].mxu1  ;;  %v3621_v56 = vpop.f32.mrb[51].mxu0 }
 0x15e   : > { %v4750_v10 = vadd.f32 %v3555_v45, %v3443_v46  ;;  %v4753_v2 = vadd.f32 %v3619_v47, %v4669_v8  ;;  %v3558_v59 = vadd.f32 %v3557_v51, %v3556_v49  ;;  %v3622_v61 = vadd.f32 %v3621_v56, %v3620_v21 }
 0x160   : > { %v4755_v63 = vadd.f32 %v3558_v59, %v3446_v53  ;;  %v4758_v16 = vadd.f32 %v3622_v61, %v4674_v11 }
 0x162   : > { %v3559_v30 = vpop.f32.mrb[52].mxu1  ;;  %v3623_v1 = vpop.f32.mrb[52].mxu0 }
 0x163   : > { %v3560_v6 = vpop.f32.mrb[53].mxu1  ;;  %v3624_v7 = vpop.f32.mrb[53].mxu0 }
 0x164   : > { %v3561_v9 = vadd.f32 %v3560_v6, %v3559_v30  ;;  %v3625_v23 = vadd.f32 %v3624_v7, %v3623_v1  ;;  %v3562_v32 = vpop.f32.mrb[54].mxu1  ;;  %v3626_v19 = vpop.f32.mrb[54].mxu0 }
 0x165   : > { %v3563_v46 = vpop.f32.mrb[55].mxu1  ;;  %v3627_v62 = vpop.f32.mrb[55].mxu0 }
 0x166   : > { %v4760_v22 = vadd.f32 %v3561_v9, %v3449_v48  ;;  %v4763_v8 = vadd.f32 %v3625_v23, %v4683_v29  ;;  %v3564_v53 = vadd.f32 %v3563_v46, %v3562_v32  ;;  %v3628_v24 = vadd.f32 %v3627_v62, %v3626_v19 }
 0x168   : > { %v4765_v25 = vadd.f32 %v3564_v53, %v3452_v57  ;;  %v4768_v11 = vadd.f32 %v3628_v24, %v4688_v33 }
 0x16a   : > { %v3565_v27 = vpop.f32.mrb[56].mxu1  ;;  %v3629_v5 = vpop.f32.mrb[56].mxu0 }
 0x16b   : > { %v3566_v31 = vpop.f32.mrb[57].mxu1  ;;  %v3630_v43 = vpop.f32.mrb[57].mxu0 }
 0x16c   : > { %v3567_v40 = vadd.f32 %v3566_v31, %v3565_v27  ;;  %v3631_v41 = vadd.f32 %v3630_v43, %v3629_v5  ;;  %v3568_v14 = vpop.f32.mrb[58].mxu1  ;;  %v3632_v42 = vpop.f32.mrb[58].mxu0 }
 0x16d   : > { %v3569_v48 = vpop.f32.mrb[59].mxu1  ;;  %v3633_v45 = vpop.f32.mrb[59].mxu0 }
 0x16e   : > { %v4771_v29 = vadd.f32 %v3567_v40, %v4732_v3  ;;  %v4774_v47 = vadd.f32 %v3631_v41, %v4697_v50  ;;  %v3570_v57 = vadd.f32 %v3569_v48, %v3568_v14  ;;  %v3634_v49 = vadd.f32 %v3633_v45, %v3632_v42 }
 0x170   : > { %v4776_v33 = vadd.f32 %v3570_v57, %v3458_v15  ;;  %v4779_v21 = vadd.f32 %v3634_v49, %v4702_v55 }
 0x172   : > { %v3571_v51 = vpop.f32.mrb[60].mxu1  ;;  %v3635_v56 = vpop.f32.mrb[60].mxu0 }
 0x173   : > { %v3572_v59 = vpop.f32.mrb[61].mxu1  ;;  %v3636_v61 = vpop.f32.mrb[61].mxu0 }
 0x174   : > { %v3573_v30 = vadd.f32 %v3572_v59, %v3571_v51  ;;  %v3637_v1 = vadd.f32 %v3636_v61, %v3635_v56  ;;  %v3574_v6 = vpop.f32.mrb[62].mxu1  ;;  %v3638_v7 = vpop.f32.mrb[62].mxu0 }
 0x175   : > { %v3575_v3 = vpop.f32.mrb[63].mxu1  ;;  %v3639_v9 = vpop.f32.mrb[63].mxu0 }
 0x176   : > { %v4782_v50 = vadd.f32 %v3573_v30, %v4740_v26  ;;  %v4785_v23 = vadd.f32 %v3637_v1, %v4711_v13  ;;  %v3576_v15 = vadd.f32 %v3575_v3, %v3574_v6  ;;  %v3640_v32 = vadd.f32 %v3639_v9, %v3638_v7 }
 0x178   : > { %v4788_v55 = vadd.f32 %v3576_v15, %v4745_v38  ;;  %v4791_v19 = vadd.f32 %v3640_v32, %v4716_v17 }
 0x17a   : > { %v3577_v46 = vpop.f32.mrb[64].mxu1  ;;  %v3641_v62 = vpop.f32.mrb[64].mxu0 }
 0x17b   : > { %v3578_v53 = vpop.f32.mrb[65].mxu1  ;;  %v3642_v24 = vpop.f32.mrb[65].mxu0 }
 0x17c   : > { %v3579_v27 = vadd.f32 %v3578_v53, %v3577_v46  ;;  %v3643_v5 = vadd.f32 %v3642_v24, %v3641_v62  ;;  %v3580_v31 = vpop.f32.mrb[66].mxu1  ;;  %v3644_v26 = vpop.f32.mrb[66].mxu0 }
 0x17d   : > { %v3581_v43 = vpop.f32.mrb[67].mxu1  ;;  %v3645_v40 = vpop.f32.mrb[67].mxu0 }
 0x17e   : > { %v4794_v13 = vadd.f32 %v3579_v27, %v4616_v60  ;;  %v4797_v41 = vadd.f32 %v3643_v5, %v4721_v35  ;;  %v3582_v38 = vadd.f32 %v3581_v43, %v3580_v31  ;;  %v3646_v14 = vadd.f32 %v3645_v40, %v3644_v26 }
 0x180   : > { %v4800_v17 = vadd.f32 %v3582_v38, %v4622_v4  ;;  %v4803_v42 = vadd.f32 %v3646_v14, %v4724_v39 }
 0x182   : > { %v3583_v48 = vpop.f32.mrb[68].mxu1  ;;  %v3647_v45 = vpop.f32.mrb[68].mxu0 }
 0x183   : > { %v3584_v57 = vpop.f32.mrb[69].mxu1  ;;  %v3648_v49 = vpop.f32.mrb[69].mxu0 }
 0x184   : > { %v3585_v51 = vadd.f32 %v3584_v57, %v3583_v48  ;;  %v3649_v56 = vadd.f32 %v3648_v49, %v3647_v45  ;;  %v3586_v59 = vpop.f32.mrb[70].mxu1  ;;  %v3650_v60 = vpop.f32.mrb[70].mxu0 }
 0x185   : > { %v3587_v61 = vpop.f32.mrb[71].mxu1  ;;  %v3651_v30 = vpop.f32.mrb[71].mxu0 }
 0x186   : > { %v4806_v35 = vadd.f32 %v3585_v51, %v4628_v12  ;;  %v4809_v1 = vadd.f32 %v3649_v56, %v4727_v0  ;;  %v3588_v4 = vadd.f32 %v3587_v61, %v3586_v59  ;;  %v3652_v6 = vadd.f32 %v3651_v30, %v3650_v60 }
 0x188   : > { %v4812_v39 = vadd.f32 %v3588_v4, %v4634_v20  ;;  %v4815_v7 = vadd.f32 %v3652_v6, %v4730_v58 }
 0x18a   : > { %v3589_v3 = vpop.f32.mrb[72].mxu1  ;;  %v3653_v9 = vpop.f32.mrb[72].mxu0 }
 0x18b   : > { %v3590_v15 = vpop.f32.mrb[73].mxu1  ;;  %v3654_v32 = vpop.f32.mrb[73].mxu0 }
 0x18c   : > { %v3591_v46 = vadd.f32 %v3590_v15, %v3589_v3  ;;  %v3655_v62 = vadd.f32 %v3654_v32, %v3653_v9  ;;  %v3592_v53 = vpop.f32.mrb[74].mxu1  ;;  %v3656_v12 = vpop.f32.mrb[74].mxu0 }
 0x18d   : > { %v3593_v24 = vpop.f32.mrb[75].mxu1  ;;  %v3657_v27 = vpop.f32.mrb[75].mxu0 }
 0x18e   : > { %v4818_v0 = vadd.f32 %v3591_v46, %v4640_v28  ;;  %v4821_v5 = vadd.f32 %v3655_v62, %v4735_v37  ;;  %v3594_v20 = vadd.f32 %v3593_v24, %v3592_v53  ;;  %v3658_v31 = vadd.f32 %v3657_v27, %v3656_v12 }
 0x190   : > { %v4824_v58 = vadd.f32 %v3594_v20, %v4646_v36  ;;  %v4827_v26 = vadd.f32 %v3658_v31, %v4738_v18 }
 0x192   : > { %v3595_v43 = vpop.f32.mrb[76].mxu1  ;;  %v3659_v40 = vpop.f32.mrb[76].mxu0 }
 0x193   : > { %v3596_v38 = vpop.f32.mrb[77].mxu1  ;;  %v3660_v14 = vpop.f32.mrb[77].mxu0 }
 0x194   : > { %v3597_v48 = vadd.f32 %v3596_v38, %v3595_v43  ;;  %v3661_v45 = vadd.f32 %v3660_v14, %v3659_v40  ;;  %v3598_v57 = vpop.f32.mrb[78].mxu1  ;;  %v3662_v28 = vpop.f32.mrb[78].mxu0 }
 0x195   : > { %v3599_v49 = vpop.f32.mrb[79].mxu1  ;;  %v3663_v51 = vpop.f32.mrb[79].mxu0 }
 0x196   : > { %v4830_v37 = vadd.f32 %v3597_v48, %v4652_v44  ;;  %v4833_v56 = vadd.f32 %v3661_v45, %v4743_v34  ;;  %v3600_v36 = vadd.f32 %v3599_v49, %v3598_v57  ;;  %v3664_v59 = vadd.f32 %v3663_v51, %v3662_v28 }
 0x198   : > { %v4836_v18 = vadd.f32 %v3600_v36, %v4658_v52  ;;  %v4839_v60 = vadd.f32 %v3664_v59, %v4748_v54 }
 0x19a   : > { %v3665_v61 = vpop.f32.mrb[80].mxu0  ;;  %v3729_v30 = vpop.f32.mrb[80].mxu1 }
 0x19b   : > { %v3666_v4 = vpop.f32.mrb[81].mxu0  ;;  %v3730_v6 = vpop.f32.mrb[81].mxu1 }
 0x19c   : > { %v3667_v3 = vadd.f32 %v3666_v4, %v3665_v61  ;;  %v3731_v9 = vadd.f32 %v3730_v6, %v3729_v30  ;;  %v3668_v15 = vpop.f32.mrb[82].mxu0  ;;  %v3732_v44 = vpop.f32.mrb[82].mxu1 }
 0x19d   : > { %v3669_v32 = vpop.f32.mrb[83].mxu0  ;;  %v3733_v46 = vpop.f32.mrb[83].mxu1 }
 0x19e   : > { %v4842_v34 = vadd.f32 %v3667_v3, %v4750_v10  ;;  %v3670_v62 = vadd.f32 %v3669_v32, %v3668_v15  ;;  %v3734_v53 = vadd.f32 %v3733_v46, %v3732_v44  ;;  %v4845_v52 = vadd.f32 %v3731_v9, %v4753_v2 }
 0x1a0   : > { %v4848_v54 = vadd.f32 %v3670_v62, %v4755_v63  ;;  %v4851_v12 = vadd.f32 %v3734_v53, %v4758_v16 }
 0x1a2   : > { %v3671_v24 = vpop.f32.mrb[84].mxu0  ;;  %v3735_v27 = vpop.f32.mrb[84].mxu1 }
 0x1a3   : > { %v3672_v20 = vpop.f32.mrb[85].mxu0  ;;  %v3736_v31 = vpop.f32.mrb[85].mxu1 }
 0x1a4   : > { %v3673_v43 = vadd.f32 %v3672_v20, %v3671_v24  ;;  %v3737_v40 = vadd.f32 %v3736_v31, %v3735_v27  ;;  %v3674_v38 = vpop.f32.mrb[86].mxu0  ;;  %v3738_v10 = vpop.f32.mrb[86].mxu1 }
 0x1a5   : > { %v3675_v14 = vpop.f32.mrb[87].mxu0  ;;  %v3739_v48 = vpop.f32.mrb[87].mxu1 }
 0x1a6   : > { %v4854_v45 = vadd.f32 %v3673_v43, %v4760_v22  ;;  %v3676_v2 = vadd.f32 %v3675_v14, %v3674_v38  ;;  %v3740_v57 = vadd.f32 %v3739_v48, %v3738_v10  ;;  %v4857_v63 = vadd.f32 %v3737_v40, %v4763_v8 }
 0x1a8   : > { %v4860_v16 = vadd.f32 %v3676_v2, %v4765_v25  ;;  %v4863_v28 = vadd.f32 %v3740_v57, %v4768_v11 }
 0x1aa   : > { %v3677_v49 = vpop.f32.mrb[88].mxu0  ;;  %v3741_v51 = vpop.f32.mrb[88].mxu1 }
 0x1ab   : > { %v3678_v36 = vpop.f32.mrb[89].mxu0  ;;  %v3742_v59 = vpop.f32.mrb[89].mxu1 }
 0x1ac   : > { %v3679_v61 = vadd.f32 %v3678_v36, %v3677_v49  ;;  %v3743_v30 = vadd.f32 %v3742_v59, %v3741_v51  ;;  %v3680_v4 = vpop.f32.mrb[90].mxu0  ;;  %v3744_v22 = vpop.f32.mrb[90].mxu1 }
 0x1ad   : > { %v3681_v6 = vpop.f32.mrb[91].mxu0  ;;  %v3745_v3 = vpop.f32.mrb[91].mxu1 }
 0x1ae   : > { %v4866_v9 = vadd.f32 %v3679_v61, %v4771_v29  ;;  %v3682_v8 = vadd.f32 %v3681_v6, %v3680_v4  ;;  %v3746_v15 = vadd.f32 %v3745_v3, %v3744_v22  ;;  %v4869_v25 = vadd.f32 %v3743_v30, %v4774_v47 }
 0x1b0   : > { %v4872_v11 = vadd.f32 %v3682_v8, %v4776_v33  ;;  %v4875_v44 = vadd.f32 %v3746_v15, %v4779_v21 }
 0x1b2   : > { %v3683_v32 = vpop.f32.mrb[92].mxu0  ;;  %v3747_v46 = vpop.f32.mrb[92].mxu1 }
 0x1b3   : > { %v3684_v62 = vpop.f32.mrb[93].mxu0  ;;  %v3748_v53 = vpop.f32.mrb[93].mxu1 }
 0x1b4   : > { %v3685_v24 = vadd.f32 %v3684_v62, %v3683_v32  ;;  %v3749_v27 = vadd.f32 %v3748_v53, %v3747_v46  ;;  %v3686_v20 = vpop.f32.mrb[94].mxu0  ;;  %v3750_v29 = vpop.f32.mrb[94].mxu1 }
 0x1b5   : > { %v3687_v31 = vpop.f32.mrb[95].mxu0  ;;  %v3751_v43 = vpop.f32.mrb[95].mxu1 }
 0x1b6   : > { %v4878_v40 = vadd.f32 %v3685_v24, %v4782_v50  ;;  %v3688_v47 = vadd.f32 %v3687_v31, %v3686_v20  ;;  %v3752_v38 = vadd.f32 %v3751_v43, %v3750_v29  ;;  %v4881_v33 = vadd.f32 %v3749_v27, %v4785_v23 }
 0x1b8   : > { %v4884_v21 = vadd.f32 %v3688_v47, %v4788_v55  ;;  %v4887_v10 = vadd.f32 %v3752_v38, %v4791_v19 }
 0x1ba   : > { %v3689_v14 = vpop.f32.mrb[96].mxu0  ;;  %v3753_v48 = vpop.f32.mrb[96].mxu1 }
 0x1bb   : > { %v3690_v2 = vpop.f32.mrb[97].mxu0  ;;  %v3754_v57 = vpop.f32.mrb[97].mxu1 }
 0x1bc   : > { %v3691_v49 = vadd.f32 %v3690_v2, %v3689_v14  ;;  %v3755_v51 = vadd.f32 %v3754_v57, %v3753_v48  ;;  %v3692_v36 = vpop.f32.mrb[98].mxu0  ;;  %v3756_v50 = vpop.f32.mrb[98].mxu1 }
 0x1bd   : > { %v3693_v59 = vpop.f32.mrb[99].mxu0  ;;  %v3757_v61 = vpop.f32.mrb[99].mxu1 }
 0x1be   : > { %v4890_v30 = vadd.f32 %v3691_v49, %v4794_v13  ;;  %v3694_v23 = vadd.f32 %v3693_v59, %v3692_v36  ;;  %v3758_v4 = vadd.f32 %v3757_v61, %v3756_v50  ;;  %v4893_v55 = vadd.f32 %v3755_v51, %v4797_v41 }
 0x1c0   : > { %v4896_v19 = vadd.f32 %v3694_v23, %v4800_v17  ;;  %v4899_v22 = vadd.f32 %v3758_v4, %v4803_v42 }
 0x1c2   : > { %v3695_v6 = vpop.f32.mrb[100].mxu0  ;;  %v3759_v3 = vpop.f32.mrb[100].mxu1 }
 0x1c3   : > { %v3696_v8 = vpop.f32.mrb[101].mxu0  ;;  %v3760_v15 = vpop.f32.mrb[101].mxu1 }
 0x1c4   : > { %v3697_v32 = vadd.f32 %v3696_v8, %v3695_v6  ;;  %v3761_v46 = vadd.f32 %v3760_v15, %v3759_v3  ;;  %v3698_v62 = vpop.f32.mrb[102].mxu0  ;;  %v3762_v13 = vpop.f32.mrb[102].mxu1 }
 0x1c5   : > { %v3699_v53 = vpop.f32.mrb[103].mxu0  ;;  %v3763_v24 = vpop.f32.mrb[103].mxu1 }
 0x1c6   : > { %v4902_v27 = vadd.f32 %v3697_v32, %v4806_v35  ;;  %v3700_v41 = vadd.f32 %v3699_v53, %v3698_v62  ;;  %v3764_v20 = vadd.f32 %v3763_v24, %v3762_v13  ;;  %v4905_v17 = vadd.f32 %v3761_v46, %v4809_v1 }
 0x1c8   : > { %v4908_v42 = vadd.f32 %v3700_v41, %v4812_v39  ;;  %v4911_v29 = vadd.f32 %v3764_v20, %v4815_v7  ;;  %v4940_v41 = vld [vmem:[%s5057_s2] ss:$0 sm:$0xff] }
 0x1ca   : > { %v3701_v31 = vpop.f32.mrb[104].mxu0  ;;  %v3765_v43 = vpop.f32.mrb[104].mxu1 }
 0x1cb   : > { %v3702_v47 = vpop.f32.mrb[105].mxu0  ;;  %v3766_v38 = vpop.f32.mrb[105].mxu1 }
 0x1cc   : > { %v3703_v14 = vadd.f32 %v3702_v47, %v3701_v31  ;;  %v3767_v48 = vadd.f32 %v3766_v38, %v3765_v43  ;;  %v3704_v2 = vpop.f32.mrb[106].mxu0  ;;  %v3768_v35 = vpop.f32.mrb[106].mxu1 }
 0x1cd   : > { %v3705_v57 = vpop.f32.mrb[107].mxu0  ;;  %v3769_v49 = vpop.f32.mrb[107].mxu1 }
 0x1ce   : > { %v4914_v51 = vadd.f32 %v3703_v14, %v4818_v0  ;;  %v3706_v1 = vadd.f32 %v3705_v57, %v3704_v2  ;;  %v3770_v36 = vadd.f32 %v3769_v49, %v3768_v35  ;;  %v4917_v39 = vadd.f32 %v3767_v48, %v4821_v5 }
 0x1d0   : > { %v4920_v7 = vadd.f32 %v3706_v1, %v4824_v58  ;;  %v4923_v50 = vadd.f32 %v3770_v36, %v4827_v26 }
 0x1d2   : > { %v3707_v59 = vpop.f32.mrb[108].mxu0  ;;  %v3771_v61 = vpop.f32.mrb[108].mxu1 }
 0x1d3   : > { %v3708_v23 = vpop.f32.mrb[109].mxu0  ;;  %v3772_v4 = vpop.f32.mrb[109].mxu1 }
 0x1d4   : > { %v3709_v6 = vadd.f32 %v3708_v23, %v3707_v59  ;;  %v3773_v3 = vadd.f32 %v3772_v4, %v3771_v61  ;;  %v3710_v8 = vpop.f32.mrb[110].mxu0  ;;  %v3774_v0 = vpop.f32.mrb[110].mxu1 }
 0x1d5   : > { %v3711_v15 = vpop.f32.mrb[111].mxu0  ;;  %v3775_v32 = vpop.f32.mrb[111].mxu1 }
 0x1d6   : > { %v4926_v46 = vadd.f32 %v3709_v6, %v4830_v37  ;;  %v3712_v5 = vadd.f32 %v3711_v15, %v3710_v8  ;;  %v3776_v62 = vadd.f32 %v3775_v32, %v3774_v0  ;;  %v4929_v58 = vadd.f32 %v3773_v3, %v4833_v56 }
 0x1d8   : > { %v4932_v26 = vadd.f32 %v3712_v5, %v4836_v18  ;;  %v4935_v13 = vadd.f32 %v3776_v62, %v4839_v60 }
 0x1da   : > { %v3777_v53 = vpop.f32.mrb[112].mxu1  ;;  %v3867_v24 = vpop.f32.mrb[112].mxu0 }
 0x1db   : > { %v2455_v37 = vadd.f32 %v3867_v24, %v4857_v63  ;;  %v3778_v20 = vpop.f32.mrb[113].mxu1  ;;  %v2446_v31 = vpop.f32.mrb[113].mxu0 }
 0x1dc   : > { %v3779_v56 = vadd.f32 %v3778_v20, %v3777_v53  ;;  %v2447_v43 = vadd.f32 %v2446_v31, %v4845_v52  ;;  %v3780_v18 = vpop.f32.mrb[114].mxu1  ;;  %v3868_v47 = vpop.f32.mrb[114].mxu0 }
 0x1dd   : > { %v2681_v60 = vadd.f32 %v4940_v41, %v2455_v37  ;;  %v2458_v38 = vadd.f32 %v3868_v47, %v4863_v28  ;;  %v3781_v14 = vpop.f32.mrb[115].mxu1  ;;  %v2449_v48 = vpop.f32.mrb[115].mxu0 }
 0x1de   : > { %v2679_v2 = vadd.f32 %v4940_v41, %v2447_v43  ;;  %v3782_v35 = vadd.f32 %v3781_v14, %v3780_v18  ;;  %v2450_v57 = vadd.f32 %v2449_v48, %v4851_v12  ;;  %v4949_v63 = vadd.f32 %v3779_v56, %v4842_v34 }
 0x1df   : > { %v2682_v49 = vadd.f32 %v4940_v41, %v2458_v38  ;;  %v2713_v36 = vmax.f32 %v2681_v60, 0.0 }
 0x1e0   : > { %v2680_v52 = vadd.f32 %v4940_v41, %v2450_v57  ;;  %v4955_v1 = vadd.f32 %v3782_v35, %v4848_v54  ;;  %v2711_v59 = vmax.f32 %v2679_v2, 0.0 }
 0x1e1   : > { %v2714_v28 = vmax.f32 %v2682_v49, 0.0 }
 0x1e2   : > { %v2712_v12 = vmax.f32 %v2680_v52, 0.0  ;;  %v3783_v34 = vpop.f32.mrb[116].mxu1  ;;  %v3871_v61 = vpop.f32.mrb[116].mxu0 }
 0x1e3   : > { %v3290_v23 = vpack.c.bf16 %v2714_v28, %v2713_v36  ;;  %v2471_v4 = vadd.f32 %v3871_v61, %v4881_v33  ;;  %v3784_v6 = vpop.f32.mrb[117].mxu1  ;;  %v2462_v3 = vpop.f32.mrb[117].mxu0 }
 0x1e4   : > { %v3285_v54 = vpack.c.bf16 %v2712_v12, %v2711_v59  ;;  %v3785_v8 = vadd.f32 %v3784_v6, %v3783_v34  ;;  %v2463_v0 = vadd.f32 %v2462_v3, %v4869_v25  ;;  %v3786_v15 = vpop.f32.mrb[118].mxu1  ;;  %v3872_v32 = vpop.f32.mrb[118].mxu0 }
 0x1e5   : > { %3362 = vst [vmem:[%s4960_s9 + $0x8] sm:$0xff] %v3290_v23   ;;  %v2685_v5 = vadd.f32 %v4940_v41, %v2471_v4  ;;  %v2474_v62 = vadd.f32 %v3872_v32, %v4887_v10  ;;  %v3787_v53 = vpop.f32.mrb[119].mxu1  ;;  %v2465_v24 = vpop.f32.mrb[119].mxu0 }
 0x1e6   : > { %3286 = vst [vmem:[%s4960_s9] sm:$0xff] %v3285_v54   ;;  %v2683_v37 = vadd.f32 %v4940_v41, %v2463_v0  ;;  %v3788_v20 = vadd.f32 %v3787_v53, %v3786_v15  ;;  %v2466_v33 = vadd.f32 %v2465_v24, %v4875_v44  ;;  %v4971_v31 = vadd.f32 %v3785_v8, %v4854_v45 }
 0x1e7   : > { %v2686_v25 = vadd.f32 %v4940_v41, %v2474_v62  ;;  %v2717_v10 = vmax.f32 %v2685_v5, 0.0 }
 0x1e8   : > { %v2684_v56 = vadd.f32 %v4940_v41, %v2466_v33  ;;  %v4976_v43 = vadd.f32 %v3788_v20, %v4860_v16  ;;  %v2715_v47 = vmax.f32 %v2683_v37, 0.0 }
 0x1e9   : > { %v2718_v18 = vmax.f32 %v2686_v25, 0.0 }
 0x1ea   : > { %v2716_v60 = vmax.f32 %v2684_v56, 0.0  ;;  %v3789_v38 = vpop.f32.mrb[120].mxu1  ;;  %v3875_v14 = vpop.f32.mrb[120].mxu0 }
 0x1eb   : > { %v3300_v48 = vpack.c.bf16 %v2718_v18, %v2717_v10  ;;  %v2487_v44 = vadd.f32 %v3875_v14, %v4905_v17  ;;  %v3790_v45 = vpop.f32.mrb[121].mxu1  ;;  %v2478_v2 = vpop.f32.mrb[121].mxu0 }
 0x1ec   : > { %v3295_v35 = vpack.c.bf16 %v2716_v60, %v2715_v47  ;;  %v3791_v57 = vadd.f32 %v3790_v45, %v3789_v38  ;;  %v2479_v49 = vadd.f32 %v2478_v2, %v4893_v55  ;;  %v3792_v52 = vpop.f32.mrb[122].mxu1  ;;  %v3876_v16 = vpop.f32.mrb[122].mxu0 }
 0x1ed   : > { %3364 = vst [vmem:[%s4960_s9 + $0x18] sm:$0xff] %v3300_v48   ;;  %v2689_v36 = vadd.f32 %v4940_v41, %v2487_v44  ;;  %v2490_v28 = vadd.f32 %v3876_v16, %v4911_v29  ;;  %v3793_v59 = vpop.f32.mrb[123].mxu1  ;;  %v2481_v12 = vpop.f32.mrb[123].mxu0 }
 0x1ee   : > { %3363 = vst [vmem:[%s4960_s9 + $0x10] sm:$0xff] %v3295_v35   ;;  %v2687_v34 = vadd.f32 %v4940_v41, %v2479_v49  ;;  %v3794_v61 = vadd.f32 %v3793_v59, %v3792_v52  ;;  %v2482_v17 = vadd.f32 %v2481_v12, %v4899_v22  ;;  %v4987_v23 = vadd.f32 %v3791_v57, %v4866_v9 }
 0x1ef   : > { %v2690_v55 = vadd.f32 %v4940_v41, %v2490_v28  ;;  %v2721_v29 = vmax.f32 %v2689_v36, 0.0 }
 0x1f0   : > { %v2688_v4 = vadd.f32 %v4940_v41, %v2482_v17  ;;  %v4992_v6 = vadd.f32 %v3794_v61, %v4872_v11  ;;  %v2719_v54 = vmax.f32 %v2687_v34, 0.0 }
 0x1f1   : > { %v2722_v3 = vmax.f32 %v2690_v55, 0.0 }
 0x1f2   : > { %v2720_v8 = vmax.f32 %v2688_v4, 0.0  ;;  %v3795_v0 = vpop.f32.mrb[124].mxu1  ;;  %v3879_v15 = vpop.f32.mrb[124].mxu0 }
 0x1f3   : > { %v3310_v32 = vpack.c.bf16 %v2722_v3, %v2721_v29  ;;  %v2503_v22 = vadd.f32 %v3879_v15, %v4929_v58  ;;  %v3796_v9 = vpop.f32.mrb[125].mxu1  ;;  %v2494_v5 = vpop.f32.mrb[125].mxu0 }
 0x1f4   : > { %v3305_v62 = vpack.c.bf16 %v2720_v8, %v2719_v54  ;;  %v3797_v53 = vadd.f32 %v3796_v9, %v3795_v0  ;;  %v2495_v24 = vadd.f32 %v2494_v5, %v4917_v39  ;;  %v3798_v37 = vpop.f32.mrb[126].mxu1  ;;  %v3880_v11 = vpop.f32.mrb[126].mxu0 }
 0x1f5   : > { %3366 = vst [vmem:[%s4960_s9 + $0x28] sm:$0xff] %v3310_v32   ;;  %v2693_v20 = vadd.f32 %v4940_v41, %v2503_v22  ;;  %v2506_v33 = vadd.f32 %v3880_v11, %v4935_v13  ;;  %v3799_v25 = vpop.f32.mrb[127].mxu1  ;;  %v2497_v56 = vpop.f32.mrb[127].mxu0 }
 0x1f6   : > { %3365 = vst [vmem:[%s4960_s9 + $0x20] sm:$0xff] %v3305_v62   ;;  %v2691_v10 = vadd.f32 %v4940_v41, %v2495_v24  ;;  %v3800_v18 = vadd.f32 %v3799_v25, %v3798_v37  ;;  %v2498_v58 = vadd.f32 %v2497_v56, %v4923_v50  ;;  %v2374_v47 = vadd.f32 %v3797_v53, %v4878_v40 }
 0x1f7   : > { %v2694_v60 = vadd.f32 %v4940_v41, %v2506_v33  ;;  %v2725_v14 = vmax.f32 %v2693_v20, 0.0 }
 0x1f8   : > { %v2692_v39 = vadd.f32 %v4940_v41, %v2498_v58  ;;  %v2377_v38 = vadd.f32 %v3800_v18, %v4884_v21  ;;  %v2723_v13 = vmax.f32 %v2691_v10, 0.0 }
 0x1f9   : > { %v2726_v48 = vmax.f32 %v2694_v60, 0.0 }
 0x1fa   : > { %v2724_v44 = vmax.f32 %v2692_v39, 0.0  ;;  %v3801_v45 = vpop.f32.mrb[128].mxu1  ;;  %v3883_v2 = vpop.f32.mrb[128].mxu0 }
 0x1fb   : > { %v3320_v35 = vpack.c.bf16 %v2726_v48, %v2725_v14  ;;  %v2519_v57 = vadd.f32 %v3883_v2, %v4971_v31  ;;  %v3802_v50 = vpop.f32.mrb[129].mxu1  ;;  %v2510_v49 = vpop.f32.mrb[129].mxu0 }
 0x1fc   : > { %v3315_v40 = vpack.c.bf16 %v2724_v44, %v2723_v13  ;;  %v3803_v52 = vadd.f32 %v3802_v50, %v3801_v45  ;;  %v2511_v16 = vadd.f32 %v2510_v49, %v4949_v63  ;;  %v3804_v36 = vpop.f32.mrb[130].mxu1  ;;  %v3884_v28 = vpop.f32.mrb[130].mxu0 }
 0x1fd   : > { %3368 = vst [vmem:[%s4960_s9 + $0x38] sm:$0xff] %v3320_v35   ;;  %v2697_v21 = vadd.f32 %v4940_v41, %v2519_v57  ;;  %v2522_v59 = vadd.f32 %v3884_v28, %v4976_v43  ;;  %v3805_v12 = vpop.f32.mrb[131].mxu1  ;;  %v2513_v34 = vpop.f32.mrb[131].mxu0 }
 0x1fe   : > { %3367 = vst [vmem:[%s4960_s9 + $0x30] sm:$0xff] %v3315_v40   ;;  %v2695_v61 = vadd.f32 %v4940_v41, %v2511_v16  ;;  %v3806_v17 = vadd.f32 %v3805_v12, %v3804_v36  ;;  %v2514_v31 = vadd.f32 %v2513_v34, %v4955_v1  ;;  %v2382_v55 = vadd.f32 %v3803_v52, %v4890_v30 }
 0x1ff   : > { %v2698_v4 = vadd.f32 %v4940_v41, %v2522_v59  ;;  %v2729_v3 = vmax.f32 %v2697_v21, 0.0 }
 0x200   : > { %v2696_v63 = vadd.f32 %v4940_v41, %v2514_v31  ;;  %v2385_v29 = vadd.f32 %v3806_v17, %v4896_v19  ;;  %v2727_v43 = vmax.f32 %v2695_v61, 0.0 }
 0x201   : > { %v2730_v54 = vmax.f32 %v2698_v4, 0.0 }
 0x202   : > { %v2728_v8 = vmax.f32 %v2696_v63, 0.0  ;;  %v3807_v0 = vpop.f32.mrb[132].mxu1  ;;  %v3887_v15 = vpop.f32.mrb[132].mxu0 }
 0x203   : > { %v3330_v32 = vpack.c.bf16 %v2730_v54, %v2729_v3  ;;  %v2535_v22 = vadd.f32 %v3887_v15, %v2374_v47  ;;  %v3808_v9 = vpop.f32.mrb[133].mxu1  ;;  %v2526_v1 = vpop.f32.mrb[133].mxu0 }
 0x204   : > { %v3325_v5 = vpack.c.bf16 %v2728_v8, %v2727_v43  ;;  %v3809_v30 = vadd.f32 %v3808_v9, %v3807_v0  ;;  %v2527_v62 = vadd.f32 %v2526_v1, %v4987_v23  ;;  %v3810_v53 = vpop.f32.mrb[134].mxu1  ;;  %v3888_v24 = vpop.f32.mrb[134].mxu0 }
 0x205   : > { %3370 = vst [vmem:[%s4960_s9 + $0x48] sm:$0xff] %v3330_v32   ;;  %v2701_v19 = vadd.f32 %v4940_v41, %v2535_v22  ;;  %v2538_v37 = vadd.f32 %v3888_v24, %v2377_v38  ;;  %v3811_v11 = vpop.f32.mrb[135].mxu1  ;;  %v2529_v20 = vpop.f32.mrb[135].mxu0 }
 0x206   : > { %3369 = vst [vmem:[%s4960_s9 + $0x40] sm:$0xff] %v3325_v5   ;;  %v2699_v33 = vadd.f32 %v4940_v41, %v2527_v62  ;;  %v3812_v25 = vadd.f32 %v3811_v11, %v3810_v53  ;;  %v2530_v56 = vadd.f32 %v2529_v20, %v4992_v6  ;;  %v2390_v10 = vadd.f32 %v3809_v30, %v4902_v27 }
 0x207   : > { %v2702_v18 = vadd.f32 %v4940_v41, %v2538_v37  ;;  %v2733_v47 = vmax.f32 %v2701_v19, 0.0 }
 0x208   : > { %v2700_v23 = vadd.f32 %v4940_v41, %v2530_v56  ;;  %v2393_v58 = vadd.f32 %v3812_v25, %v4908_v42  ;;  %v2731_v39 = vmax.f32 %v2699_v33, 0.0 }
 0x209   : > { %v2734_v60 = vmax.f32 %v2702_v18, 0.0 }
 0x20a   : > { %v2732_v38 = vmax.f32 %v2700_v23, 0.0  ;;  %v3813_v14 = vpop.f32.mrb[136].mxu1  ;;  %v3891_v48 = vpop.f32.mrb[136].mxu0 }
 0x20b   : > { %v3340_v13 = vpack.c.bf16 %v2734_v60, %v2733_v47  ;;  %v2551_v44 = vadd.f32 %v3891_v48, %v2390_v10  ;;  %v3814_v45 = vpop.f32.mrb[137].mxu1  ;;  %v2542_v6 = vpop.f32.mrb[137].mxu0 }
 0x20c   : > { %v3335_v2 = vpack.c.bf16 %v2732_v38, %v2731_v39  ;;  %v3815_v27 = vadd.f32 %v3814_v45, %v3813_v14  ;;  %v2543_v35 = vadd.f32 %v2542_v6, %v2382_v55  ;;  %v3816_v57 = vpop.f32.mrb[138].mxu1  ;;  %v3892_v50 = vpop.f32.mrb[138].mxu0 }
 0x20d   : > { %3372 = vst [vmem:[%s4960_s9 + $0x58] sm:$0xff] %v3340_v13   ;;  %v2705_v42 = vadd.f32 %v4940_v41, %v2551_v44  ;;  %v2554_v49 = vadd.f32 %v3892_v50, %v2393_v58  ;;  %v3817_v40 = vpop.f32.mrb[139].mxu1  ;;  %v2545_v52 = vpop.f32.mrb[139].mxu0 }
 0x20e   : > { %3371 = vst [vmem:[%s4960_s9 + $0x50] sm:$0xff] %v3335_v2   ;;  %v2703_v16 = vadd.f32 %v4940_v41, %v2543_v35  ;;  %v3818_v36 = vadd.f32 %v3817_v40, %v3816_v57  ;;  %v2546_v28 = vadd.f32 %v2545_v52, %v2385_v29  ;;  %v2398_v21 = vadd.f32 %v3815_v27, %v4914_v51 }
 0x20f   : > { %v2706_v59 = vadd.f32 %v4940_v41, %v2554_v49  ;;  %v2737_v61 = vmax.f32 %v2705_v42, 0.0 }
 0x210   : > { %v2704_v12 = vadd.f32 %v4940_v41, %v2546_v28  ;;  %v2401_v34 = vadd.f32 %v3818_v36, %v4920_v7  ;;  %v2735_v31 = vmax.f32 %v2703_v16, 0.0 }
 0x211   : > { %v2738_v17 = vmax.f32 %v2706_v59, 0.0 }
 0x212   : > { %v2736_v55 = vmax.f32 %v2704_v12, 0.0  ;;  %v3819_v4 = vpop.f32.mrb[140].mxu1  ;;  %v3895_v63 = vpop.f32.mrb[140].mxu0 }
 0x213   : > { %v3350_v3 = vpack.c.bf16 %v2738_v17, %v2737_v61  ;;  %v3820_v54 = vpop.f32.mrb[141].mxu1  ;;  %v2558_v43 = vpop.f32.mrb[141].mxu0 }
 0x214   : > { %v3345_v29 = vpack.c.bf16 %v2736_v55, %v2735_v31  ;;  %v3821_v8 = vadd.f32 %v3820_v54, %v3819_v4  ;;  %v2559_v51 = vadd.f32 %v2558_v43, %v2398_v21  ;;  %v3822_v0 = vpop.f32.mrb[142].mxu1  ;;  %v3896_v15 = vpop.f32.mrb[142].mxu0 }
 0x215   : > { %3374 = vst [vmem:[%s4960_s9 + $0x68] sm:$0xff] %v3350_v3   ;;  %v3823_v32 = vpop.f32.mrb[143].mxu1  ;;  %v2561_v22 = vpop.f32.mrb[143].mxu0 }
 0x216   : > { %3373 = vst [vmem:[%s4960_s9 + $0x60] sm:$0xff] %v3345_v29   ;;  %v2406_v7 = vadd.f32 %v3821_v8, %v4926_v46  ;;  %v2707_v9 = vadd.f32 %v4940_v41, %v2559_v51  ;;  %v3824_v1 = vadd.f32 %v3823_v32, %v3822_v0  ;;  %v2562_v5 = vadd.f32 %v2561_v22, %v2401_v34 }
 0x218   : > { %v2567_v30 = vadd.f32 %v3895_v63, %v2406_v7  ;;  %v2409_v62 = vadd.f32 %v3824_v1, %v4932_v26  ;;  %v2708_v53 = vadd.f32 %v4940_v41, %v2562_v5  ;;  %v2739_v19 = vmax.f32 %v2707_v9, 0.0 }
 0x21a   : > { %v2709_v24 = vadd.f32 %v4940_v41, %v2567_v30  ;;  %v2570_v37 = vadd.f32 %v3896_v15, %v2409_v62  ;;  %v2740_v11 = vmax.f32 %v2708_v53, 0.0 }
 0x21c   : > { %v2710_v20 = vadd.f32 %v4940_v41, %v2570_v37  ;;  %v3355_v33 = vpack.c.bf16 %v2740_v11, %v2739_v19  ;;  %v2741_v25 = vmax.f32 %v2709_v24, 0.0 }
 0x21e   : > { %v2742_v46 = vmax.f32 %v2710_v20, 0.0  ;;  %3375 = vst [vmem:[%s4960_s9 + $0x70] sm:$0xff] %v3355_v33  }
 0x220   : > { %v3360_v56 = vpack.c.bf16 %v2742_v46, %v2741_v25 }
 0x222   : > { %3376 = vst [vmem:[%s4960_s9 + $0x78] sm:$0xff] %v3360_v56  }
 0x223 PF: > { %s13_s14 = sadd.s32 1, %s4240_s14   ;;  %s5059_s12 = smov %s4236_s13 }
 0x224   : > { %p10_p5 = scmp.ge.s32.totalorder %s13_s14, 4   ;;  %s5060_s13 = smov %s5062_s15 }
 0x226   :  { %12 = sbr.rel (!%p10_p5) target bundleno = 2 (0x2), region = 73 }

</bundles_post_ra>
